<compile_context>
chip_gen: v7x
topology: tpu7x:2x2x1
jax: 0.10.0
libtpu: 0.0.40
codegen_flags: <defaults>
</compile_context>

<pallas_src>
import jax
import jax.numpy as jnp
from jax import lax
from jax.experimental import pallas as pl
from jax.experimental.pallas import tpu as pltpu
import numpy as np

# Small, lane-friendly dims consistent with the module's forward.
VOCAB = 50
EMBED_DIM = 128
ENC_HID = 128
DEC_HID = 128
BATCH = 2
SEQ = 8


# ----------------------------------------------------------------------------
# Pallas kernel
# ----------------------------------------------------------------------------
def encoder_kernel(emb_ref,      # (T, Bp, E)
                   wih_ref,      # (E, 6H)   [fwd r,z,n | bwd r,z,n]
                   gib_ref,      # (1, 6H)   bih (+ bhh for r,z gates) folded
                   whh_ref,      # (2H, 6H)  block-diagonal recurrent weights
                   bhhn_ref,     # (1, 2H)   bhh for the n gate, fwd | bwd
                   wfc_ref,      # (2H, DEC_HID)
                   bfc_ref,      # (1, DEC_HID)
                   out_ref,      # (T, Bp, 2H)
                   hid_ref,      # (Bp, DEC_HID)
                   gi_ref):      # scratch (T, Bp, 6H)
    T, B, E = emb_ref.shape
    H = ENC_HID

    # ---- Hoisted input projection for both directions (one big matmul) ----
    emb2d = emb_ref[...].reshape(T * B, E)
    gi_all = jnp.dot(emb2d, wih_ref[...],
                     preferred_element_type=jnp.float32) + gib_ref[...]
    gi_ref[...] = gi_all.reshape(T, B, 6 * H)

    bhh_n_f = bhhn_ref[:, 0:H]           # (1, H)
    bhh_n_b = bhhn_ref[:, H:2 * H]       # (1, H)

    def sigmoid(x):
        # EUP tanh instead of a VPU divide on the serial critical path.
        return 0.5 * (jnp.tanh(0.5 * x) + 1.0)

    # Carry = concatenated [h_fwd | h_bwd] state, (B, 2H).
    h_cat = jnp.zeros((B, 2 * H), jnp.float32)

    # Fully-unrolled fused time loop: step t runs fwd@t and bwd@(T-1-t).
    for t in range(T):
        tb = T - 1 - t

        # One block-diagonal recurrent matmul for both directions.
        gh = jnp.dot(h_cat, whh_ref[...],
                     preferred_element_type=jnp.float32)      # (B, 6H)

        gi_f = gi_ref[t, :, 0:3 * H]       # (B, 3H)  fwd input proj @ t
        gi_b = gi_ref[tb, :, 3 * H:6 * H]  # (B, 3H)  bwd input proj @ T-1-t

        # Forward direction (PyTorch GRU gate order r, z, n).
        r_f = sigmoid(gi_f[:, 0:H] + gh[:, 0:H])
        z_f = sigmoid(gi_f[:, H:2 * H] + gh[:, H:2 * H])
        n_f = jnp.tanh(gi_f[:, 2 * H:3 * H] + r_f * (gh[:, 2 * H:3 * H] + bhh_n_f))
        h_f = (1.0 - z_f) * n_f + z_f * h_cat[:, 0:H]

        # Backward direction.
        r_b = sigmoid(gi_b[:, 0:H] + gh[:, 3 * H:4 * H])
        z_b = sigmoid(gi_b[:, H:2 * H] + gh[:, 4 * H:5 * H])
        n_b = jnp.tanh(gi_b[:, 2 * H:3 * H] + r_b * (gh[:, 5 * H:6 * H] + bhh_n_b))
        h_b = (1.0 - z_b) * n_b + z_b * h_cat[:, H:2 * H]

        # Full-tile (8,128) unmasked stores into the lane-dense output.
        out_ref[t, :, 0:H] = h_f
        out_ref[tb, :, H:2 * H] = h_b

        # 128-aligned lane concat (layout no-op) for the next recurrent matmul.
        h_cat = jnp.concatenate([h_f, h_b], axis=1)

    # hidden = tanh(fc([h_fwd_final, h_bwd_final])) -- carry is already cat'd.
    hid_ref[...] = jnp.tanh(
        jnp.dot(h_cat, wfc_ref[...], preferred_element_type=jnp.float32)
        + bfc_ref[...])


# ----------------------------------------------------------------------------
# Wrapper
# ----------------------------------------------------------------------------
def encoder_forward(params, input_sen, token_type=None):
    emb = params["embedding"][input_sen]                       # (B, T, E)
    if token_type is not None:
        emb = emb + params["tt_embedding"][token_type]
    emb = emb.astype(jnp.float32)

    B, T, E = emb.shape
    H = ENC_HID
    B_pad = ((B + 7) // 8) * 8                                 # sublane granule

    emb_t = jnp.transpose(emb, (1, 0, 2))                      # (T, B, E)
    emb_t = jnp.pad(emb_t, ((0, 0), (0, B_pad - B), (0, 0)))   # (T, Bp, E)

    # ---- Fuse weights / biases for the block-diagonal formulation ----------
    wih_cat = jnp.concatenate([params["wih_f"], params["wih_b"]], axis=1)  # (E, 6H)

    whh_bd = jnp.zeros((2 * H, 6 * H), jnp.float32)
    whh_bd = whh_bd.at[:H, :3 * H].set(params["whh_f"])
    whh_bd = whh_bd.at[H:, 3 * H:].set(params["whh_b"])                    # (2H, 6H)

    def fold_bias(bih, bhh):
        # r,z gates: bih + bhh folded; n gate: bih only (bhh_n multiplied by r).
        return jnp.concatenate([bih[:, :2 * H] + bhh[:, :2 * H],
                                bih[:, 2 * H:]], axis=1)

    gi_bias = jnp.concatenate([fold_bias(params["bih_f"], params["bhh_f"]),
                               fold_bias(params["bih_b"], params["bhh_b"])],
                              axis=1)                                      # (1, 6H)
    bhh_n = jnp.concatenate([params["bhh_f"][:, 2 * H:],
                             params["bhh_b"][:, 2 * H:]], axis=1)          # (1, 2H)

    vmem = pl.BlockSpec(memory_space=pltpu.MemorySpace.VMEM)

    out, hidden = pl.pallas_call(
        encoder_kernel,
        out_shape=(
            jax.ShapeDtypeStruct((T, B_pad, 2 * H), jnp.float32),
            jax.ShapeDtypeStruct((B_pad, DEC_HID), jnp.float32),
        ),
        in_specs=[vmem] * 7,
        out_specs=(vmem, vmem),
        scratch_shapes=[pltpu.VMEM((T, B_pad, 6 * H), jnp.float32)],
    )(emb_t, wih_cat, gi_bias, whh_bd, bhh_n, params["wfc"], params["bfc"])

    output = jnp.transpose(out, (1, 0, 2))[:B]                 # (B, T, 2H)
    return output, hidden[:B]                                  # (B, DEC_HID)


# ----------------------------------------------------------------------------
# Pure-JAX reference (mirrors torch.nn.GRU bidirectional forward)
# ----------------------------------------------------------------------------
def _gru_step_ref(x, h, wih, whh, bih, bhh, H):
    gi = x @ wih + bih
    gh = h @ whh + bhh
    r = jax.nn.sigmoid(gi[:, 0:H] + gh[:, 0:H])
    z = jax.nn.sigmoid(gi[:, H:2 * H] + gh[:, H:2 * H])
    n = jnp.tanh(gi[:, 2 * H:3 * H] + r * gh[:, 2 * H:3 * H])
    return (1.0 - z) * n + z * h


def encoder_forward_ref(params, input_sen, token_type=None):
    emb = params["embedding"][input_sen]
    if token_type is not None:
        emb = emb + params["tt_embedding"][token_type]
    emb = emb.astype(jnp.float32)
    B, T, _ = emb.shape
    H = ENC_HID

    def run(xs, wih, whh, bih, bhh):
        def step(h, x):
            h_new = _gru_step_ref(x, h, wih, whh, bih, bhh, H)
            return h_new, h_new
        h_fin, outs = lax.scan(step, jnp.zeros((B, H), jnp.float32), xs)
        return outs, h_fin

    xs = jnp.transpose(emb, (1, 0, 2))
    out_f, hf = run(xs, params["wih_f"], params["whh_f"],
                    params["bih_f"], params["bhh_f"])
    out_b_rev, hb = run(xs[::-1], params["wih_b"], params["whh_b"],
                        params["bih_b"], params["bhh_b"])
    out_b = out_b_rev[::-1]
    output = jnp.transpose(jnp.concatenate([out_f, out_b], axis=-1), (1, 0, 2))
    hidden = jnp.tanh(jnp.concatenate([hf, hb], axis=1) @ params["wfc"]
                      + params["bfc"])
    return output, hidden


# ----------------------------------------------------------------------------
# Params / main
# ----------------------------------------------------------------------------
def init_params(key):
    ks = jax.random.split(key, 16)
    s = 1.0 / np.sqrt(ENC_HID)
    u = lambda k, shape: jax.random.uniform(k, shape, jnp.float32, -s, s)
    return {
        "embedding": jax.random.normal(ks[0], (VOCAB, EMBED_DIM), jnp.float32) * 0.1,
        "tt_embedding": jax.random.normal(ks[1], (2, EMBED_DIM), jnp.float32) * 0.1,
        # GRU weights stored pre-transposed: x @ W layout, gate order (r, z, n).
        "wih_f": u(ks[2], (EMBED_DIM, 3 * ENC_HID)),
        "whh_f": u(ks[3], (ENC_HID, 3 * ENC_HID)),
        "bih_f": u(ks[4], (1, 3 * ENC_HID)),
        "bhh_f": u(ks[5], (1, 3 * ENC_HID)),
        "wih_b": u(ks[6], (EMBED_DIM, 3 * ENC_HID)),
        "whh_b": u(ks[7], (ENC_HID, 3 * ENC_HID)),
        "bih_b": u(ks[8], (1, 3 * ENC_HID)),
        "bhh_b": u(ks[9], (1, 3 * ENC_HID)),
        "wfc": u(ks[10], (2 * ENC_HID, DEC_HID)),
        "bfc": u(ks[11], (1, DEC_HID)),
    }


if __name__ == "__main__":
    key = jax.random.PRNGKey(0)
    params = init_params(key)

    k1, k2 = jax.random.split(jax.random.PRNGKey(1))
    input_sen = jax.random.randint(k1, (BATCH, SEQ), 0, VOCAB, dtype=jnp.int32)
    token_type = jax.random.randint(k2, (BATCH, SEQ), 0, 2, dtype=jnp.int32)

    output, hidden = encoder_forward(params, input_sen, token_type)
    output, hidden = jax.block_until_ready((output, hidden))

    ref_out, ref_hid = encoder_forward_ref(params, input_sen, token_type)
    assert output.shape == (BATCH, SEQ, 2 * ENC_HID)
    assert hidden.shape == (BATCH, DEC_HID)
    np.testing.assert_allclose(np.asarray(output), np.asarray(ref_out),
                               rtol=1e-4, atol=1e-4)
    np.testing.assert_allclose(np.asarray(hidden), np.asarray(ref_hid),
                               rtol=1e-4, atol=1e-4)
    # TODO(synk): no pack_padded_sequence-style length masking (all sequences
    # assumed full length), matching the reference module's simple forward.
    print("KERNEL_OK")
</pallas_src>

<mosaic_0001>
module attributes {stable_mosaic.version = 11 : i64} {
  func.func @encoder_kernel(%arg0: memref<8x8x128xf32, #tpu.memory_space<vmem>>, %arg1: memref<128x768xf32, #tpu.memory_space<vmem>>, %arg2: memref<1x768xf32, #tpu.memory_space<vmem>>, %arg3: memref<256x768xf32, #tpu.memory_space<vmem>>, %arg4: memref<1x256xf32, #tpu.memory_space<vmem>>, %arg5: memref<256x128xf32, #tpu.memory_space<vmem>>, %arg6: memref<1x128xf32, #tpu.memory_space<vmem>>, %arg7: memref<8x8x256xf32, #tpu.memory_space<vmem>>, %arg8: memref<8x128xf32, #tpu.memory_space<vmem>>, %arg9: memref<8x8x768xf32, #tpu.memory_space<vmem>>) attributes {dimension_semantics = [], scalar_prefetch = 0 : i64, scratch_operands = 1 : i64, tpu.core_type = #tpu.core_type<tc>} {
    %c0 = arith.constant 0 : index
    %c0_0 = arith.constant 0 : index
    %c0_1 = arith.constant 0 : index
    %0 = vector.load %arg0[%c0, %c0_0, %c0_1] : memref<8x8x128xf32, #tpu.memory_space<vmem>>, vector<8x8x128xf32>
    %1 = vector.shape_cast %0 : vector<8x8x128xf32> to vector<64x128xf32>
    %c0_2 = arith.constant 0 : index
    %c0_3 = arith.constant 0 : index
    %2 = vector.load %arg1[%c0_2, %c0_3] : memref<128x768xf32, #tpu.memory_space<vmem>>, vector<128x768xf32>
    %cst = arith.constant dense<0.000000e+00> : vector<64x768xf32>
    %3 = tpu.matmul %1, %2, %cst {dimension_numbers = #tpu.dot_dimension_numbers<[1], [0], [0], [1], [0, 0, 1, 1], [], []>} : vector<64x128xf32>, vector<128x768xf32>, vector<64x768xf32> -> vector<64x768xf32>
    %c0_4 = arith.constant 0 : index
    %c0_5 = arith.constant 0 : index
    %4 = vector.load %arg2[%c0_4, %c0_5] : memref<1x768xf32, #tpu.memory_space<vmem>>, vector<1x768xf32>
    %5 = vector.broadcast %4 : vector<1x768xf32> to vector<64x768xf32>
    %6 = arith.addf %3, %5 : vector<64x768xf32>
    %7 = vector.shape_cast %6 : vector<64x768xf32> to vector<8x8x768xf32>
    %c0_6 = arith.constant 0 : index
    %c0_7 = arith.constant 0 : index
    %c0_8 = arith.constant 0 : index
    %8 = vector.load %arg9[%c0_6, %c0_7, %c0_8] : memref<8x8x768xf32, #tpu.memory_space<vmem>>, vector<8x8x768xf32>
    tpu.vector_store %arg9[%c0_6, %c0_7, %c0_8], %7 {strides = array<i32>} : memref<8x8x768xf32, #tpu.memory_space<vmem>>, vector<8x8x768xf32>,
    %c0_9 = arith.constant 0 : index
    %c0_10 = arith.constant 0 : index
    %9 = vector.load %arg4[%c0_9, %c0_10] : memref<1x256xf32, #tpu.memory_space<vmem>>, vector<1x128xf32>
    %c0_11 = arith.constant 0 : index
    %c128 = arith.constant 128 : index
    %10 = vector.load %arg4[%c0_11, %c128] : memref<1x256xf32, #tpu.memory_space<vmem>>, vector<1x128xf32>
    %cst_12 = arith.constant 0.000000e+00 : f32
    %11 = vector.broadcast %cst_12 : f32 to vector<8x256xf32>
    %c0_13 = arith.constant 0 : index
    %c0_14 = arith.constant 0 : index
    %12 = vector.load %arg3[%c0_13, %c0_14] : memref<256x768xf32, #tpu.memory_space<vmem>>, vector<256x768xf32>
    %cst_15 = arith.constant dense<0.000000e+00> : vector<8x768xf32>
    %13 = tpu.matmul %11, %12, %cst_15 {dimension_numbers = #tpu.dot_dimension_numbers<[1], [0], [0], [1], [0, 0, 1, 1], [], []>} : vector<8x256xf32>, vector<256x768xf32>, vector<8x768xf32> -> vector<8x768xf32>
    %c0_16 = arith.constant 0 : index
    %c0_17 = arith.constant 0 : index
    %c0_18 = arith.constant 0 : index
    %14 = vector.load %arg9[%c0_16, %c0_17, %c0_18] : memref<8x8x768xf32, #tpu.memory_space<vmem>>, vector<1x8x384xf32>
    %15 = vector.shape_cast %14 : vector<1x8x384xf32> to vector<8x384xf32>
    %c7 = arith.constant 7 : index
    %c0_19 = arith.constant 0 : index
    %c384 = arith.constant 384 : index
    %16 = vector.load %arg9[%c7, %c0_19, %c384] : memref<8x8x768xf32, #tpu.memory_space<vmem>>, vector<1x8x384xf32>
    %17 = vector.shape_cast %16 : vector<1x8x384xf32> to vector<8x384xf32>
    %18 = vector.extract_strided_slice %15 {offsets = [0, 0], sizes = [8, 128], strides = [1, 1]} : vector<8x384xf32> to vector<8x128xf32>
    %19 = vector.extract_strided_slice %13 {offsets = [0, 0], sizes = [8, 128], strides = [1, 1]} : vector<8x768xf32> to vector<8x128xf32>
    %20 = arith.addf %18, %19 : vector<8x128xf32>
    %cst_20 = arith.constant 5.000000e-01 : f32
    %21 = vector.broadcast %cst_20 : f32 to vector<8x128xf32>
    %22 = arith.mulf %21, %20 : vector<8x128xf32>
    %23 = math.tanh %22 : vector<8x128xf32>
    %cst_21 = arith.constant 1.000000e+00 : f32
    %24 = vector.broadcast %cst_21 : f32 to vector<8x128xf32>
    %25 = arith.addf %23, %24 : vector<8x128xf32>
    %cst_22 = arith.constant 5.000000e-01 : f32
    %26 = vector.broadcast %cst_22 : f32 to vector<8x128xf32>
    %27 = arith.mulf %26, %25 : vector<8x128xf32>
    %28 = vector.extract_strided_slice %15 {offsets = [0, 128], sizes = [8, 128], strides = [1, 1]} : vector<8x384xf32> to vector<8x128xf32>
    %29 = vector.extract_strided_slice %13 {offsets = [0, 128], sizes = [8, 128], strides = [1, 1]} : vector<8x768xf32> to vector<8x128xf32>
    %30 = arith.addf %28, %29 : vector<8x128xf32>
    %cst_23 = arith.constant 5.000000e-01 : f32
    %31 = vector.broadcast %cst_23 : f32 to vector<8x128xf32>
    %32 = arith.mulf %31, %30 : vector<8x128xf32>
    %33 = math.tanh %32 : vector<8x128xf32>
    %cst_24 = arith.constant 1.000000e+00 : f32
    %34 = vector.broadcast %cst_24 : f32 to vector<8x128xf32>
    %35 = arith.addf %33, %34 : vector<8x128xf32>
    %cst_25 = arith.constant 5.000000e-01 : f32
    %36 = vector.broadcast %cst_25 : f32 to vector<8x128xf32>
    %37 = arith.mulf %36, %35 : vector<8x128xf32>
    %38 = vector.extract_strided_slice %15 {offsets = [0, 256], sizes = [8, 128], strides = [1, 1]} : vector<8x384xf32> to vector<8x128xf32>
    %39 = vector.extract_strided_slice %13 {offsets = [0, 256], sizes = [8, 128], strides = [1, 1]} : vector<8x768xf32> to vector<8x128xf32>
    %40 = vector.broadcast %9 : vector<1x128xf32> to vector<8x128xf32>
    %41 = arith.addf %39, %40 : vector<8x128xf32>
    %42 = arith.mulf %27, %41 : vector<8x128xf32>
    %43 = arith.addf %38, %42 : vector<8x128xf32>
    %44 = math.tanh %43 : vector<8x128xf32>
    %cst_26 = arith.constant 1.000000e+00 : f32
    %45 = vector.broadcast %cst_26 : f32 to vector<8x128xf32>
    %46 = arith.subf %45, %37 : vector<8x128xf32>
    %47 = arith.mulf %46, %44 : vector<8x128xf32>
    %48 = vector.extract_strided_slice %11 {offsets = [0, 0], sizes = [8, 128], strides = [1, 1]} : vector<8x256xf32> to vector<8x128xf32>
    %49 = arith.mulf %37, %48 : vector<8x128xf32>
    %50 = arith.addf %47, %49 : vector<8x128xf32>
    %51 = vector.extract_strided_slice %17 {offsets = [0, 0], sizes = [8, 128], strides = [1, 1]} : vector<8x384xf32> to vector<8x128xf32>
    %52 = vector.extract_strided_slice %13 {offsets = [0, 384], sizes = [8, 128], strides = [1, 1]} : vector<8x768xf32> to vector<8x128xf32>
    %53 = arith.addf %51, %52 : vector<8x128xf32>
    %cst_27 = arith.constant 5.000000e-01 : f32
    %54 = vector.broadcast %cst_27 : f32 to vector<8x128xf32>
    %55 = arith.mulf %54, %53 : vector<8x128xf32>
    %56 = math.tanh %55 : vector<8x128xf32>
    %cst_28 = arith.constant 1.000000e+00 : f32
    %57 = vector.broadcast %cst_28 : f32 to vector<8x128xf32>
    %58 = arith.addf %56, %57 : vector<8x128xf32>
    %cst_29 = arith.constant 5.000000e-01 : f32
    %59 = vector.broadcast %cst_29 : f32 to vector<8x128xf32>
    %60 = arith.mulf %59, %58 : vector<8x128xf32>
    %61 = vector.extract_strided_slice %17 {offsets = [0, 128], sizes = [8, 128], strides = [1, 1]} : vector<8x384xf32> to vector<8x128xf32>
    %62 = vector.extract_strided_slice %13 {offsets = [0, 512], sizes = [8, 128], strides = [1, 1]} : vector<8x768xf32> to vector<8x128xf32>
    %63 = arith.addf %61, %62 : vector<8x128xf32>
    %cst_30 = arith.constant 5.000000e-01 : f32
    %64 = vector.broadcast %cst_30 : f32 to vector<8x128xf32>
    %65 = arith.mulf %64, %63 : vector<8x128xf32>
    %66 = math.tanh %65 : vector<8x128xf32>
    %cst_31 = arith.constant 1.000000e+00 : f32
    %67 = vector.broadcast %cst_31 : f32 to vector<8x128xf32>
    %68 = arith.addf %66, %67 : vector<8x128xf32>
    %cst_32 = arith.constant 5.000000e-01 : f32
    %69 = vector.broadcast %cst_32 : f32 to vector<8x128xf32>
    %70 = arith.mulf %69, %68 : vector<8x128xf32>
    %71 = vector.extract_strided_slice %17 {offsets = [0, 256], sizes = [8, 128], strides = [1, 1]} : vector<8x384xf32> to vector<8x128xf32>
    %72 = vector.extract_strided_slice %13 {offsets = [0, 640], sizes = [8, 128], strides = [1, 1]} : vector<8x768xf32> to vector<8x128xf32>
    %73 = vector.broadcast %10 : vector<1x128xf32> to vector<8x128xf32>
    %74 = arith.addf %72, %73 : vector<8x128xf32>
    %75 = arith.mulf %60, %74 : vector<8x128xf32>
    %76 = arith.addf %71, %75 : vector<8x128xf32>
    %77 = math.tanh %76 : vector<8x128xf32>
    %cst_33 = arith.constant 1.000000e+00 : f32
    %78 = vector.broadcast %cst_33 : f32 to vector<8x128xf32>
    %79 = arith.subf %78, %70 : vector<8x128xf32>
    %80 = arith.mulf %79, %77 : vector<8x128xf32>
    %81 = vector.extract_strided_slice %11 {offsets = [0, 128], sizes = [8, 128], strides = [1, 1]} : vector<8x256xf32> to vector<8x128xf32>
    %82 = arith.mulf %70, %81 : vector<8x128xf32>
    %83 = arith.addf %80, %82 : vector<8x128xf32>
    %c0_34 = arith.constant 0 : index
    %c0_35 = arith.constant 0 : index
    %c0_36 = arith.constant 0 : index
    %84 = vector.load %arg7[%c0_34, %c0_35, %c0_36] : memref<8x8x256xf32, #tpu.memory_space<vmem>>, vector<1x8x128xf32>
    %85 = vector.shape_cast %84 : vector<1x8x128xf32> to vector<8x128xf32>
    %86 = vector.shape_cast %50 : vector<8x128xf32> to vector<1x8x128xf32>
    tpu.vector_store %arg7[%c0_34, %c0_35, %c0_36], %86 {strides = array<i32>} : memref<8x8x256xf32, #tpu.memory_space<vmem>>, vector<1x8x128xf32>,
    %c7_37 = arith.constant 7 : index
    %c0_38 = arith.constant 0 : index
    %c128_39 = arith.constant 128 : index
    %87 = vector.load %arg7[%c7_37, %c0_38, %c128_39] : memref<8x8x256xf32, #tpu.memory_space<vmem>>, vector<1x8x128xf32>
    %88 = vector.shape_cast %87 : vector<1x8x128xf32> to vector<8x128xf32>
    %89 = vector.shape_cast %83 : vector<8x128xf32> to vector<1x8x128xf32>
    tpu.vector_store %arg7[%c7_37, %c0_38, %c128_39], %89 {strides = array<i32>} : memref<8x8x256xf32, #tpu.memory_space<vmem>>, vector<1x8x128xf32>,
    %90 = tpu.concatenate %50, %83 in 1 : vector<8x128xf32>, vector<8x128xf32> -> vector<8x256xf32>
    %c0_40 = arith.constant 0 : index
    %c0_41 = arith.constant 0 : index
    %91 = vector.load %arg3[%c0_40, %c0_41] : memref<256x768xf32, #tpu.memory_space<vmem>>, vector<256x768xf32>
    %cst_42 = arith.constant dense<0.000000e+00> : vector<8x768xf32>
    %92 = tpu.matmul %90, %91, %cst_42 {dimension_numbers = #tpu.dot_dimension_numbers<[1], [0], [0], [1], [0, 0, 1, 1], [], []>} : vector<8x256xf32>, vector<256x768xf32>, vector<8x768xf32> -> vector<8x768xf32>
    %c1 = arith.constant 1 : index
    %c0_43 = arith.constant 0 : index
    %c0_44 = arith.constant 0 : index
    %93 = vector.load %arg9[%c1, %c0_43, %c0_44] : memref<8x8x768xf32, #tpu.memory_space<vmem>>, vector<1x8x384xf32>
    %94 = vector.shape_cast %93 : vector<1x8x384xf32> to vector<8x384xf32>
    %c6 = arith.constant 6 : index
    %c0_45 = arith.constant 0 : index
    %c384_46 = arith.constant 384 : index
    %95 = vector.load %arg9[%c6, %c0_45, %c384_46] : memref<8x8x768xf32, #tpu.memory_space<vmem>>, vector<1x8x384xf32>
    %96 = vector.shape_cast %95 : vector<1x8x384xf32> to vector<8x384xf32>
    %97 = vector.extract_strided_slice %94 {offsets = [0, 0], sizes = [8, 128], strides = [1, 1]} : vector<8x384xf32> to vector<8x128xf32>
    %98 = vector.extract_strided_slice %92 {offsets = [0, 0], sizes = [8, 128], strides = [1, 1]} : vector<8x768xf32> to vector<8x128xf32>
    %99 = arith.addf %97, %98 : vector<8x128xf32>
    %cst_47 = arith.constant 5.000000e-01 : f32
    %100 = vector.broadcast %cst_47 : f32 to vector<8x128xf32>
    %101 = arith.mulf %100, %99 : vector<8x128xf32>
    %102 = math.tanh %101 : vector<8x128xf32>
    %cst_48 = arith.constant 1.000000e+00 : f32
    %103 = vector.broadcast %cst_48 : f32 to vector<8x128xf32>
    %104 = arith.addf %102, %103 : vector<8x128xf32>
    %cst_49 = arith.constant 5.000000e-01 : f32
    %105 = vector.broadcast %cst_49 : f32 to vector<8x128xf32>
    %106 = arith.mulf %105, %104 : vector<8x128xf32>
    %107 = vector.extract_strided_slice %94 {offsets = [0, 128], sizes = [8, 128], strides = [1, 1]} : vector<8x384xf32> to vector<8x128xf32>
    %108 = vector.extract_strided_slice %92 {offsets = [0, 128], sizes = [8, 128], strides = [1, 1]} : vector<8x768xf32> to vector<8x128xf32>
    %109 = arith.addf %107, %108 : vector<8x128xf32>
    %cst_50 = arith.constant 5.000000e-01 : f32
    %110 = vector.broadcast %cst_50 : f32 to vector<8x128xf32>
    %111 = arith.mulf %110, %109 : vector<8x128xf32>
    %112 = math.tanh %111 : vector<8x128xf32>
    %cst_51 = arith.constant 1.000000e+00 : f32
    %113 = vector.broadcast %cst_51 : f32 to vector<8x128xf32>
    %114 = arith.addf %112, %113 : vector<8x128xf32>
    %cst_52 = arith.constant 5.000000e-01 : f32
    %115 = vector.broadcast %cst_52 : f32 to vector<8x128xf32>
    %116 = arith.mulf %115, %114 : vector<8x128xf32>
    %117 = vector.extract_strided_slice %94 {offsets = [0, 256], sizes = [8, 128], strides = [1, 1]} : vector<8x384xf32> to vector<8x128xf32>
    %118 = vector.extract_strided_slice %92 {offsets = [0, 256], sizes = [8, 128], strides = [1, 1]} : vector<8x768xf32> to vector<8x128xf32>
    %119 = vector.broadcast %9 : vector<1x128xf32> to vector<8x128xf32>
    %120 = arith.addf %118, %119 : vector<8x128xf32>
    %121 = arith.mulf %106, %120 : vector<8x128xf32>
    %122 = arith.addf %117, %121 : vector<8x128xf32>
    %123 = math.tanh %122 : vector<8x128xf32>
    %cst_53 = arith.constant 1.000000e+00 : f32
    %124 = vector.broadcast %cst_53 : f32 to vector<8x128xf32>
    %125 = arith.subf %124, %116 : vector<8x128xf32>
    %126 = arith.mulf %125, %123 : vector<8x128xf32>
    %127 = vector.extract_strided_slice %90 {offsets = [0, 0], sizes = [8, 128], strides = [1, 1]} : vector<8x256xf32> to vector<8x128xf32>
    %128 = arith.mulf %116, %127 : vector<8x128xf32>
    %129 = arith.addf %126, %128 : vector<8x128xf32>
    %130 = vector.extract_strided_slice %96 {offsets = [0, 0], sizes = [8, 128], strides = [1, 1]} : vector<8x384xf32> to vector<8x128xf32>
    %131 = vector.extract_strided_slice %92 {offsets = [0, 384], sizes = [8, 128], strides = [1, 1]} : vector<8x768xf32> to vector<8x128xf32>
    %132 = arith.addf %130, %131 : vector<8x128xf32>
    %cst_54 = arith.constant 5.000000e-01 : f32
    %133 = vector.broadcast %cst_54 : f32 to vector<8x128xf32>
    %134 = arith.mulf %133, %132 : vector<8x128xf32>
    %135 = math.tanh %134 : vector<8x128xf32>
    %cst_55 = arith.constant 1.000000e+00 : f32
    %136 = vector.broadcast %cst_55 : f32 to vector<8x128xf32>
    %137 = arith.addf %135, %136 : vector<8x128xf32>
    %cst_56 = arith.constant 5.000000e-01 : f32
    %138 = vector.broadcast %cst_56 : f32 to vector<8x128xf32>
    %139 = arith.mulf %138, %137 : vector<8x128xf32>
    %140 = vector.extract_strided_slice %96 {offsets = [0, 128], sizes = [8, 128], strides = [1, 1]} : vector<8x384xf32> to vector<8x128xf32>
    %141 = vector.extract_strided_slice %92 {offsets = [0, 512], sizes = [8, 128], strides = [1, 1]} : vector<8x768xf32> to vector<8x128xf32>
    %142 = arith.addf %140, %141 : vector<8x128xf32>
    %cst_57 = arith.constant 5.000000e-01 : f32
    %143 = vector.broadcast %cst_57 : f32 to vector<8x128xf32>
    %144 = arith.mulf %143, %142 : vector<8x128xf32>
    %145 = math.tanh %144 : vector<8x128xf32>
    %cst_58 = arith.constant 1.000000e+00 : f32
    %146 = vector.broadcast %cst_58 : f32 to vector<8x128xf32>
    %147 = arith.addf %145, %146 : vector<8x128xf32>
    %cst_59 = arith.constant 5.000000e-01 : f32
    %148 = vector.broadcast %cst_59 : f32 to vector<8x128xf32>
    %149 = arith.mulf %148, %147 : vector<8x128xf32>
    %150 = vector.extract_strided_slice %96 {offsets = [0, 256], sizes = [8, 128], strides = [1, 1]} : vector<8x384xf32> to vector<8x128xf32>
    %151 = vector.extract_strided_slice %92 {offsets = [0, 640], sizes = [8, 128], strides = [1, 1]} : vector<8x768xf32> to vector<8x128xf32>
    %152 = vector.broadcast %10 : vector<1x128xf32> to vector<8x128xf32>
    %153 = arith.addf %151, %152 : vector<8x128xf32>
    %154 = arith.mulf %139, %153 : vector<8x128xf32>
    %155 = arith.addf %150, %154 : vector<8x128xf32>
    %156 = math.tanh %155 : vector<8x128xf32>
    %cst_60 = arith.constant 1.000000e+00 : f32
    %157 = vector.broadcast %cst_60 : f32 to vector<8x128xf32>
    %158 = arith.subf %157, %149 : vector<8x128xf32>
    %159 = arith.mulf %158, %156 : vector<8x128xf32>
    %160 = vector.extract_strided_slice %90 {offsets = [0, 128], sizes = [8, 128], strides = [1, 1]} : vector<8x256xf32> to vector<8x128xf32>
    %161 = arith.mulf %149, %160 : vector<8x128xf32>
    %162 = arith.addf %159, %161 : vector<8x128xf32>
    %c1_61 = arith.constant 1 : index
    %c0_62 = arith.constant 0 : index
    %c0_63 = arith.constant 0 : index
    %163 = vector.load %arg7[%c1_61, %c0_62, %c0_63] : memref<8x8x256xf32, #tpu.memory_space<vmem>>, vector<1x8x128xf32>
    %164 = vector.shape_cast %163 : vector<1x8x128xf32> to vector<8x128xf32>
    %165 = vector.shape_cast %129 : vector<8x128xf32> to vector<1x8x128xf32>
    tpu.vector_store %arg7[%c1_61, %c0_62, %c0_63], %165 {strides = array<i32>} : memref<8x8x256xf32, #tpu.memory_space<vmem>>, vector<1x8x128xf32>,
    %c6_64 = arith.constant 6 : index
    %c0_65 = arith.constant 0 : index
    %c128_66 = arith.constant 128 : index
    %166 = vector.load %arg7[%c6_64, %c0_65, %c128_66] : memref<8x8x256xf32, #tpu.memory_space<vmem>>, vector<1x8x128xf32>
    %167 = vector.shape_cast %166 : vector<1x8x128xf32> to vector<8x128xf32>
    %168 = vector.shape_cast %162 : vector<8x128xf32> to vector<1x8x128xf32>
    tpu.vector_store %arg7[%c6_64, %c0_65, %c128_66], %168 {strides = array<i32>} : memref<8x8x256xf32, #tpu.memory_space<vmem>>, vector<1x8x128xf32>,
    %169 = tpu.concatenate %129, %162 in 1 : vector<8x128xf32>, vector<8x128xf32> -> vector<8x256xf32>
    %c0_67 = arith.constant 0 : index
    %c0_68 = arith.constant 0 : index
    %170 = vector.load %arg3[%c0_67, %c0_68] : memref<256x768xf32, #tpu.memory_space<vmem>>, vector<256x768xf32>
    %cst_69 = arith.constant dense<0.000000e+00> : vector<8x768xf32>
    %171 = tpu.matmul %169, %170, %cst_69 {dimension_numbers = #tpu.dot_dimension_numbers<[1], [0], [0], [1], [0, 0, 1, 1], [], []>} : vector<8x256xf32>, vector<256x768xf32>, vector<8x768xf32> -> vector<8x768xf32>
    %c2 = arith.constant 2 : index
    %c0_70 = arith.constant 0 : index
    %c0_71 = arith.constant 0 : index
    %172 = vector.load %arg9[%c2, %c0_70, %c0_71] : memref<8x8x768xf32, #tpu.memory_space<vmem>>, vector<1x8x384xf32>
    %173 = vector.shape_cast %172 : vector<1x8x384xf32> to vector<8x384xf32>
    %c5 = arith.constant 5 : index
    %c0_72 = arith.constant 0 : index
    %c384_73 = arith.constant 384 : index
    %174 = vector.load %arg9[%c5, %c0_72, %c384_73] : memref<8x8x768xf32, #tpu.memory_space<vmem>>, vector<1x8x384xf32>
    %175 = vector.shape_cast %174 : vector<1x8x384xf32> to vector<8x384xf32>
    %176 = vector.extract_strided_slice %173 {offsets = [0, 0], sizes = [8, 128], strides = [1, 1]} : vector<8x384xf32> to vector<8x128xf32>
    %177 = vector.extract_strided_slice %171 {offsets = [0, 0], sizes = [8, 128], strides = [1, 1]} : vector<8x768xf32> to vector<8x128xf32>
    %178 = arith.addf %176, %177 : vector<8x128xf32>
    %cst_74 = arith.constant 5.000000e-01 : f32
    %179 = vector.broadcast %cst_74 : f32 to vector<8x128xf32>
    %180 = arith.mulf %179, %178 : vector<8x128xf32>
    %181 = math.tanh %180 : vector<8x128xf32>
    %cst_75 = arith.constant 1.000000e+00 : f32
    %182 = vector.broadcast %cst_75 : f32 to vector<8x128xf32>
    %183 = arith.addf %181, %182 : vector<8x128xf32>
    %cst_76 = arith.constant 5.000000e-01 : f32
    %184 = vector.broadcast %cst_76 : f32 to vector<8x128xf32>
    %185 = arith.mulf %184, %183 : vector<8x128xf32>
    %186 = vector.extract_strided_slice %173 {offsets = [0, 128], sizes = [8, 128], strides = [1, 1]} : vector<8x384xf32> to vector<8x128xf32>
    %187 = vector.extract_strided_slice %171 {offsets = [0, 128], sizes = [8, 128], strides = [1, 1]} : vector<8x768xf32> to vector<8x128xf32>
    %188 = arith.addf %186, %187 : vector<8x128xf32>
    %cst_77 = arith.constant 5.000000e-01 : f32
    %189 = vector.broadcast %cst_77 : f32 to vector<8x128xf32>
    %190 = arith.mulf %189, %188 : vector<8x128xf32>
    %191 = math.tanh %190 : vector<8x128xf32>
    %cst_78 = arith.constant 1.000000e+00 : f32
    %192 = vector.broadcast %cst_78 : f32 to vector<8x128xf32>
    %193 = arith.addf %191, %192 : vector<8x128xf32>
    %cst_79 = arith.constant 5.000000e-01 : f32
    %194 = vector.broadcast %cst_79 : f32 to vector<8x128xf32>
    %195 = arith.mulf %194, %193 : vector<8x128xf32>
    %196 = vector.extract_strided_slice %173 {offsets = [0, 256], sizes = [8, 128], strides = [1, 1]} : vector<8x384xf32> to vector<8x128xf32>
    %197 = vector.extract_strided_slice %171 {offsets = [0, 256], sizes = [8, 128], strides = [1, 1]} : vector<8x768xf32> to vector<8x128xf32>
    %198 = vector.broadcast %9 : vector<1x128xf32> to vector<8x128xf32>
    %199 = arith.addf %197, %198 : vector<8x128xf32>
    %200 = arith.mulf %185, %199 : vector<8x128xf32>
    %201 = arith.addf %196, %200 : vector<8x128xf32>
    %202 = math.tanh %201 : vector<8x128xf32>
    %cst_80 = arith.constant 1.000000e+00 : f32
    %203 = vector.broadcast %cst_80 : f32 to vector<8x128xf32>
    %204 = arith.subf %203, %195 : vector<8x128xf32>
    %205 = arith.mulf %204, %202 : vector<8x128xf32>
    %206 = vector.extract_strided_slice %169 {offsets = [0, 0], sizes = [8, 128], strides = [1, 1]} : vector<8x256xf32> to vector<8x128xf32>
    %207 = arith.mulf %195, %206 : vector<8x128xf32>
    %208 = arith.addf %205, %207 : vector<8x128xf32>
    %209 = vector.extract_strided_slice %175 {offsets = [0, 0], sizes = [8, 128], strides = [1, 1]} : vector<8x384xf32> to vector<8x128xf32>
    %210 = vector.extract_strided_slice %171 {offsets = [0, 384], sizes = [8, 128], strides = [1, 1]} : vector<8x768xf32> to vector<8x128xf32>
    %211 = arith.addf %209, %210 : vector<8x128xf32>
    %cst_81 = arith.constant 5.000000e-01 : f32
    %212 = vector.broadcast %cst_81 : f32 to vector<8x128xf32>
    %213 = arith.mulf %212, %211 : vector<8x128xf32>
    %214 = math.tanh %213 : vector<8x128xf32>
    %cst_82 = arith.constant 1.000000e+00 : f32
    %215 = vector.broadcast %cst_82 : f32 to vector<8x128xf32>
    %216 = arith.addf %214, %215 : vector<8x128xf32>
    %cst_83 = arith.constant 5.000000e-01 : f32
    %217 = vector.broadcast %cst_83 : f32 to vector<8x128xf32>
    %218 = arith.mulf %217, %216 : vector<8x128xf32>
    %219 = vector.extract_strided_slice %175 {offsets = [0, 128], sizes = [8, 128], strides = [1, 1]} : vector<8x384xf32> to vector<8x128xf32>
    %220 = vector.extract_strided_slice %171 {offsets = [0, 512], sizes = [8, 128], strides = [1, 1]} : vector<8x768xf32> to vector<8x128xf32>
    %221 = arith.addf %219, %220 : vector<8x128xf32>
    %cst_84 = arith.constant 5.000000e-01 : f32
    %222 = vector.broadcast %cst_84 : f32 to vector<8x128xf32>
    %223 = arith.mulf %222, %221 : vector<8x128xf32>
    %224 = math.tanh %223 : vector<8x128xf32>
    %cst_85 = arith.constant 1.000000e+00 : f32
    %225 = vector.broadcast %cst_85 : f32 to vector<8x128xf32>
    %226 = arith.addf %224, %225 : vector<8x128xf32>
    %cst_86 = arith.constant 5.000000e-01 : f32
    %227 = vector.broadcast %cst_86 : f32 to vector<8x128xf32>
    %228 = arith.mulf %227, %226 : vector<8x128xf32>
    %229 = vector.extract_strided_slice %175 {offsets = [0, 256], sizes = [8, 128], strides = [1, 1]} : vector<8x384xf32> to vector<8x128xf32>
    %230 = vector.extract_strided_slice %171 {offsets = [0, 640], sizes = [8, 128], strides = [1, 1]} : vector<8x768xf32> to vector<8x128xf32>
    %231 = vector.broadcast %10 : vector<1x128xf32> to vector<8x128xf32>
    %232 = arith.addf %230, %231 : vector<8x128xf32>
    %233 = arith.mulf %218, %232 : vector<8x128xf32>
    %234 = arith.addf %229, %233 : vector<8x128xf32>
    %235 = math.tanh %234 : vector<8x128xf32>
    %cst_87 = arith.constant 1.000000e+00 : f32
    %236 = vector.broadcast %cst_87 : f32 to vector<8x128xf32>
    %237 = arith.subf %236, %228 : vector<8x128xf32>
    %238 = arith.mulf %237, %235 : vector<8x128xf32>
    %239 = vector.extract_strided_slice %169 {offsets = [0, 128], sizes = [8, 128], strides = [1, 1]} : vector<8x256xf32> to vector<8x128xf32>
    %240 = arith.mulf %228, %239 : vector<8x128xf32>
    %241 = arith.addf %238, %240 : vector<8x128xf32>
    %c2_88 = arith.constant 2 : index
    %c0_89 = arith.constant 0 : index
    %c0_90 = arith.constant 0 : index
    %242 = vector.load %arg7[%c2_88, %c0_89, %c0_90] : memref<8x8x256xf32, #tpu.memory_space<vmem>>, vector<1x8x128xf32>
    %243 = vector.shape_cast %242 : vector<1x8x128xf32> to vector<8x128xf32>
    %244 = vector.shape_cast %208 : vector<8x128xf32> to vector<1x8x128xf32>
    tpu.vector_store %arg7[%c2_88, %c0_89, %c0_90], %244 {strides = array<i32>} : memref<8x8x256xf32, #tpu.memory_space<vmem>>, vector<1x8x128xf32>,
    %c5_91 = arith.constant 5 : index
    %c0_92 = arith.constant 0 : index
    %c128_93 = arith.constant 128 : index
    %245 = vector.load %arg7[%c5_91, %c0_92, %c128_93] : memref<8x8x256xf32, #tpu.memory_space<vmem>>, vector<1x8x128xf32>
    %246 = vector.shape_cast %245 : vector<1x8x128xf32> to vector<8x128xf32>
    %247 = vector.shape_cast %241 : vector<8x128xf32> to vector<1x8x128xf32>
    tpu.vector_store %arg7[%c5_91, %c0_92, %c128_93], %247 {strides = array<i32>} : memref<8x8x256xf32, #tpu.memory_space<vmem>>, vector<1x8x128xf32>,
    %248 = tpu.concatenate %208, %241 in 1 : vector<8x128xf32>, vector<8x128xf32> -> vector<8x256xf32>
    %c0_94 = arith.constant 0 : index
    %c0_95 = arith.constant 0 : index
    %249 = vector.load %arg3[%c0_94, %c0_95] : memref<256x768xf32, #tpu.memory_space<vmem>>, vector<256x768xf32>
    %cst_96 = arith.constant dense<0.000000e+00> : vector<8x768xf32>
    %250 = tpu.matmul %248, %249, %cst_96 {dimension_numbers = #tpu.dot_dimension_numbers<[1], [0], [0], [1], [0, 0, 1, 1], [], []>} : vector<8x256xf32>, vector<256x768xf32>, vector<8x768xf32> -> vector<8x768xf32>
    %c3 = arith.constant 3 : index
    %c0_97 = arith.constant 0 : index
    %c0_98 = arith.constant 0 : index
    %251 = vector.load %arg9[%c3, %c0_97, %c0_98] : memref<8x8x768xf32, #tpu.memory_space<vmem>>, vector<1x8x384xf32>
    %252 = vector.shape_cast %251 : vector<1x8x384xf32> to vector<8x384xf32>
    %c4 = arith.constant 4 : index
    %c0_99 = arith.constant 0 : index
    %c384_100 = arith.constant 384 : index
    %253 = vector.load %arg9[%c4, %c0_99, %c384_100] : memref<8x8x768xf32, #tpu.memory_space<vmem>>, vector<1x8x384xf32>
    %254 = vector.shape_cast %253 : vector<1x8x384xf32> to vector<8x384xf32>
    %255 = vector.extract_strided_slice %252 {offsets = [0, 0], sizes = [8, 128], strides = [1, 1]} : vector<8x384xf32> to vector<8x128xf32>
    %256 = vector.extract_strided_slice %250 {offsets = [0, 0], sizes = [8, 128], strides = [1, 1]} : vector<8x768xf32> to vector<8x128xf32>
    %257 = arith.addf %255, %256 : vector<8x128xf32>
    %cst_101 = arith.constant 5.000000e-01 : f32
    %258 = vector.broadcast %cst_101 : f32 to vector<8x128xf32>
    %259 = arith.mulf %258, %257 : vector<8x128xf32>
    %260 = math.tanh %259 : vector<8x128xf32>
    %cst_102 = arith.constant 1.000000e+00 : f32
    %261 = vector.broadcast %cst_102 : f32 to vector<8x128xf32>
    %262 = arith.addf %260, %261 : vector<8x128xf32>
    %cst_103 = arith.constant 5.000000e-01 : f32
    %263 = vector.broadcast %cst_103 : f32 to vector<8x128xf32>
    %264 = arith.mulf %263, %262 : vector<8x128xf32>
    %265 = vector.extract_strided_slice %252 {offsets = [0, 128], sizes = [8, 128], strides = [1, 1]} : vector<8x384xf32> to vector<8x128xf32>
    %266 = vector.extract_strided_slice %250 {offsets = [0, 128], sizes = [8, 128], strides = [1, 1]} : vector<8x768xf32> to vector<8x128xf32>
    %267 = arith.addf %265, %266 : vector<8x128xf32>
    %cst_104 = arith.constant 5.000000e-01 : f32
    %268 = vector.broadcast %cst_104 : f32 to vector<8x128xf32>
    %269 = arith.mulf %268, %267 : vector<8x128xf32>
    %270 = math.tanh %269 : vector<8x128xf32>
    %cst_105 = arith.constant 1.000000e+00 : f32
    %271 = vector.broadcast %cst_105 : f32 to vector<8x128xf32>
    %272 = arith.addf %270, %271 : vector<8x128xf32>
    %cst_106 = arith.constant 5.000000e-01 : f32
    %273 = vector.broadcast %cst_106 : f32 to vector<8x128xf32>
    %274 = arith.mulf %273, %272 : vector<8x128xf32>
    %275 = vector.extract_strided_slice %252 {offsets = [0, 256], sizes = [8, 128], strides = [1, 1]} : vector<8x384xf32> to vector<8x128xf32>
    %276 = vector.extract_strided_slice %250 {offsets = [0, 256], sizes = [8, 128], strides = [1, 1]} : vector<8x768xf32> to vector<8x128xf32>
    %277 = vector.broadcast %9 : vector<1x128xf32> to vector<8x128xf32>
    %278 = arith.addf %276, %277 : vector<8x128xf32>
    %279 = arith.mulf %264, %278 : vector<8x128xf32>
    %280 = arith.addf %275, %279 : vector<8x128xf32>
    %281 = math.tanh %280 : vector<8x128xf32>
    %cst_107 = arith.constant 1.000000e+00 : f32
    %282 = vector.broadcast %cst_107 : f32 to vector<8x128xf32>
    %283 = arith.subf %282, %274 : vector<8x128xf32>
    %284 = arith.mulf %283, %281 : vector<8x128xf32>
    %285 = vector.extract_strided_slice %248 {offsets = [0, 0], sizes = [8, 128], strides = [1, 1]} : vector<8x256xf32> to vector<8x128xf32>
    %286 = arith.mulf %274, %285 : vector<8x128xf32>
    %287 = arith.addf %284, %286 : vector<8x128xf32>
    %288 = vector.extract_strided_slice %254 {offsets = [0, 0], sizes = [8, 128], strides = [1, 1]} : vector<8x384xf32> to vector<8x128xf32>
    %289 = vector.extract_strided_slice %250 {offsets = [0, 384], sizes = [8, 128], strides = [1, 1]} : vector<8x768xf32> to vector<8x128xf32>
    %290 = arith.addf %288, %289 : vector<8x128xf32>
    %cst_108 = arith.constant 5.000000e-01 : f32
    %291 = vector.broadcast %cst_108 : f32 to vector<8x128xf32>
    %292 = arith.mulf %291, %290 : vector<8x128xf32>
    %293 = math.tanh %292 : vector<8x128xf32>
    %cst_109 = arith.constant 1.000000e+00 : f32
    %294 = vector.broadcast %cst_109 : f32 to vector<8x128xf32>
    %295 = arith.addf %293, %294 : vector<8x128xf32>
    %cst_110 = arith.constant 5.000000e-01 : f32
    %296 = vector.broadcast %cst_110 : f32 to vector<8x128xf32>
    %297 = arith.mulf %296, %295 : vector<8x128xf32>
    %298 = vector.extract_strided_slice %254 {offsets = [0, 128], sizes = [8, 128], strides = [1, 1]} : vector<8x384xf32> to vector<8x128xf32>
    %299 = vector.extract_strided_slice %250 {offsets = [0, 512], sizes = [8, 128], strides = [1, 1]} : vector<8x768xf32> to vector<8x128xf32>
    %300 = arith.addf %298, %299 : vector<8x128xf32>
    %cst_111 = arith.constant 5.000000e-01 : f32
    %301 = vector.broadcast %cst_111 : f32 to vector<8x128xf32>
    %302 = arith.mulf %301, %300 : vector<8x128xf32>
    %303 = math.tanh %302 : vector<8x128xf32>
    %cst_112 = arith.constant 1.000000e+00 : f32
    %304 = vector.broadcast %cst_112 : f32 to vector<8x128xf32>
    %305 = arith.addf %303, %304 : vector<8x128xf32>
    %cst_113 = arith.constant 5.000000e-01 : f32
    %306 = vector.broadcast %cst_113 : f32 to vector<8x128xf32>
    %307 = arith.mulf %306, %305 : vector<8x128xf32>
    %308 = vector.extract_strided_slice %254 {offsets = [0, 256], sizes = [8, 128], strides = [1, 1]} : vector<8x384xf32> to vector<8x128xf32>
    %309 = vector.extract_strided_slice %250 {offsets = [0, 640], sizes = [8, 128], strides = [1, 1]} : vector<8x768xf32> to vector<8x128xf32>
    %310 = vector.broadcast %10 : vector<1x128xf32> to vector<8x128xf32>
    %311 = arith.addf %309, %310 : vector<8x128xf32>
    %312 = arith.mulf %297, %311 : vector<8x128xf32>
    %313 = arith.addf %308, %312 : vector<8x128xf32>
    %314 = math.tanh %313 : vector<8x128xf32>
    %cst_114 = arith.constant 1.000000e+00 : f32
    %315 = vector.broadcast %cst_114 : f32 to vector<8x128xf32>
    %316 = arith.subf %315, %307 : vector<8x128xf32>
    %317 = arith.mulf %316, %314 : vector<8x128xf32>
    %318 = vector.extract_strided_slice %248 {offsets = [0, 128], sizes = [8, 128], strides = [1, 1]} : vector<8x256xf32> to vector<8x128xf32>
    %319 = arith.mulf %307, %318 : vector<8x128xf32>
    %320 = arith.addf %317, %319 : vector<8x128xf32>
    %c3_115 = arith.constant 3 : index
    %c0_116 = arith.constant 0 : index
    %c0_117 = arith.constant 0 : index
    %321 = vector.load %arg7[%c3_115, %c0_116, %c0_117] : memref<8x8x256xf32, #tpu.memory_space<vmem>>, vector<1x8x128xf32>
    %322 = vector.shape_cast %321 : vector<1x8x128xf32> to vector<8x128xf32>
    %323 = vector.shape_cast %287 : vector<8x128xf32> to vector<1x8x128xf32>
    tpu.vector_store %arg7[%c3_115, %c0_116, %c0_117], %323 {strides = array<i32>} : memref<8x8x256xf32, #tpu.memory_space<vmem>>, vector<1x8x128xf32>,
    %c4_118 = arith.constant 4 : index
    %c0_119 = arith.constant 0 : index
    %c128_120 = arith.constant 128 : index
    %324 = vector.load %arg7[%c4_118, %c0_119, %c128_120] : memref<8x8x256xf32, #tpu.memory_space<vmem>>, vector<1x8x128xf32>
    %325 = vector.shape_cast %324 : vector<1x8x128xf32> to vector<8x128xf32>
    %326 = vector.shape_cast %320 : vector<8x128xf32> to vector<1x8x128xf32>
    tpu.vector_store %arg7[%c4_118, %c0_119, %c128_120], %326 {strides = array<i32>} : memref<8x8x256xf32, #tpu.memory_space<vmem>>, vector<1x8x128xf32>,
    %327 = tpu.concatenate %287, %320 in 1 : vector<8x128xf32>, vector<8x128xf32> -> vector<8x256xf32>
    %c0_121 = arith.constant 0 : index
    %c0_122 = arith.constant 0 : index
    %328 = vector.load %arg3[%c0_121, %c0_122] : memref<256x768xf32, #tpu.memory_space<vmem>>, vector<256x768xf32>
    %cst_123 = arith.constant dense<0.000000e+00> : vector<8x768xf32>
    %329 = tpu.matmul %327, %328, %cst_123 {dimension_numbers = #tpu.dot_dimension_numbers<[1], [0], [0], [1], [0, 0, 1, 1], [], []>} : vector<8x256xf32>, vector<256x768xf32>, vector<8x768xf32> -> vector<8x768xf32>
    %c4_124 = arith.constant 4 : index
    %c0_125 = arith.constant 0 : index
    %c0_126 = arith.constant 0 : index
    %330 = vector.load %arg9[%c4_124, %c0_125, %c0_126] : memref<8x8x768xf32, #tpu.memory_space<vmem>>, vector<1x8x384xf32>
    %331 = vector.shape_cast %330 : vector<1x8x384xf32> to vector<8x384xf32>
    %c3_127 = arith.constant 3 : index
    %c0_128 = arith.constant 0 : index
    %c384_129 = arith.constant 384 : index
    %332 = vector.load %arg9[%c3_127, %c0_128, %c384_129] : memref<8x8x768xf32, #tpu.memory_space<vmem>>, vector<1x8x384xf32>
    %333 = vector.shape_cast %332 : vector<1x8x384xf32> to vector<8x384xf32>
    %334 = vector.extract_strided_slice %331 {offsets = [0, 0], sizes = [8, 128], strides = [1, 1]} : vector<8x384xf32> to vector<8x128xf32>
    %335 = vector.extract_strided_slice %329 {offsets = [0, 0], sizes = [8, 128], strides = [1, 1]} : vector<8x768xf32> to vector<8x128xf32>
    %336 = arith.addf %334, %335 : vector<8x128xf32>
    %cst_130 = arith.constant 5.000000e-01 : f32
    %337 = vector.broadcast %cst_130 : f32 to vector<8x128xf32>
    %338 = arith.mulf %337, %336 : vector<8x128xf32>
    %339 = math.tanh %338 : vector<8x128xf32>
    %cst_131 = arith.constant 1.000000e+00 : f32
    %340 = vector.broadcast %cst_131 : f32 to vector<8x128xf32>
    %341 = arith.addf %339, %340 : vector<8x128xf32>
    %cst_132 = arith.constant 5.000000e-01 : f32
    %342 = vector.broadcast %cst_132 : f32 to vector<8x128xf32>
    %343 = arith.mulf %342, %341 : vector<8x128xf32>
    %344 = vector.extract_strided_slice %331 {offsets = [0, 128], sizes = [8, 128], strides = [1, 1]} : vector<8x384xf32> to vector<8x128xf32>
    %345 = vector.extract_strided_slice %329 {offsets = [0, 128], sizes = [8, 128], strides = [1, 1]} : vector<8x768xf32> to vector<8x128xf32>
    %346 = arith.addf %344, %345 : vector<8x128xf32>
    %cst_133 = arith.constant 5.000000e-01 : f32
    %347 = vector.broadcast %cst_133 : f32 to vector<8x128xf32>
    %348 = arith.mulf %347, %346 : vector<8x128xf32>
    %349 = math.tanh %348 : vector<8x128xf32>
    %cst_134 = arith.constant 1.000000e+00 : f32
    %350 = vector.broadcast %cst_134 : f32 to vector<8x128xf32>
    %351 = arith.addf %349, %350 : vector<8x128xf32>
    %cst_135 = arith.constant 5.000000e-01 : f32
    %352 = vector.broadcast %cst_135 : f32 to vector<8x128xf32>
    %353 = arith.mulf %352, %351 : vector<8x128xf32>
    %354 = vector.extract_strided_slice %331 {offsets = [0, 256], sizes = [8, 128], strides = [1, 1]} : vector<8x384xf32> to vector<8x128xf32>
    %355 = vector.extract_strided_slice %329 {offsets = [0, 256], sizes = [8, 128], strides = [1, 1]} : vector<8x768xf32> to vector<8x128xf32>
    %356 = vector.broadcast %9 : vector<1x128xf32> to vector<8x128xf32>
    %357 = arith.addf %355, %356 : vector<8x128xf32>
    %358 = arith.mulf %343, %357 : vector<8x128xf32>
    %359 = arith.addf %354, %358 : vector<8x128xf32>
    %360 = math.tanh %359 : vector<8x128xf32>
    %cst_136 = arith.constant 1.000000e+00 : f32
    %361 = vector.broadcast %cst_136 : f32 to vector<8x128xf32>
    %362 = arith.subf %361, %353 : vector<8x128xf32>
    %363 = arith.mulf %362, %360 : vector<8x128xf32>
    %364 = vector.extract_strided_slice %327 {offsets = [0, 0], sizes = [8, 128], strides = [1, 1]} : vector<8x256xf32> to vector<8x128xf32>
    %365 = arith.mulf %353, %364 : vector<8x128xf32>
    %366 = arith.addf %363, %365 : vector<8x128xf32>
    %367 = vector.extract_strided_slice %333 {offsets = [0, 0], sizes = [8, 128], strides = [1, 1]} : vector<8x384xf32> to vector<8x128xf32>
    %368 = vector.extract_strided_slice %329 {offsets = [0, 384], sizes = [8, 128], strides = [1, 1]} : vector<8x768xf32> to vector<8x128xf32>
    %369 = arith.addf %367, %368 : vector<8x128xf32>
    %cst_137 = arith.constant 5.000000e-01 : f32
    %370 = vector.broadcast %cst_137 : f32 to vector<8x128xf32>
    %371 = arith.mulf %370, %369 : vector<8x128xf32>
    %372 = math.tanh %371 : vector<8x128xf32>
    %cst_138 = arith.constant 1.000000e+00 : f32
    %373 = vector.broadcast %cst_138 : f32 to vector<8x128xf32>
    %374 = arith.addf %372, %373 : vector<8x128xf32>
    %cst_139 = arith.constant 5.000000e-01 : f32
    %375 = vector.broadcast %cst_139 : f32 to vector<8x128xf32>
    %376 = arith.mulf %375, %374 : vector<8x128xf32>
    %377 = vector.extract_strided_slice %333 {offsets = [0, 128], sizes = [8, 128], strides = [1, 1]} : vector<8x384xf32> to vector<8x128xf32>
    %378 = vector.extract_strided_slice %329 {offsets = [0, 512], sizes = [8, 128], strides = [1, 1]} : vector<8x768xf32> to vector<8x128xf32>
    %379 = arith.addf %377, %378 : vector<8x128xf32>
    %cst_140 = arith.constant 5.000000e-01 : f32
    %380 = vector.broadcast %cst_140 : f32 to vector<8x128xf32>
    %381 = arith.mulf %380, %379 : vector<8x128xf32>
    %382 = math.tanh %381 : vector<8x128xf32>
    %cst_141 = arith.constant 1.000000e+00 : f32
    %383 = vector.broadcast %cst_141 : f32 to vector<8x128xf32>
    %384 = arith.addf %382, %383 : vector<8x128xf32>
    %cst_142 = arith.constant 5.000000e-01 : f32
    %385 = vector.broadcast %cst_142 : f32 to vector<8x128xf32>
    %386 = arith.mulf %385, %384 : vector<8x128xf32>
    %387 = vector.extract_strided_slice %333 {offsets = [0, 256], sizes = [8, 128], strides = [1, 1]} : vector<8x384xf32> to vector<8x128xf32>
    %388 = vector.extract_strided_slice %329 {offsets = [0, 640], sizes = [8, 128], strides = [1, 1]} : vector<8x768xf32> to vector<8x128xf32>
    %389 = vector.broadcast %10 : vector<1x128xf32> to vector<8x128xf32>
    %390 = arith.addf %388, %389 : vector<8x128xf32>
    %391 = arith.mulf %376, %390 : vector<8x128xf32>
    %392 = arith.addf %387, %391 : vector<8x128xf32>
    %393 = math.tanh %392 : vector<8x128xf32>
    %cst_143 = arith.constant 1.000000e+00 : f32
    %394 = vector.broadcast %cst_143 : f32 to vector<8x128xf32>
    %395 = arith.subf %394, %386 : vector<8x128xf32>
    %396 = arith.mulf %395, %393 : vector<8x128xf32>
    %397 = vector.extract_strided_slice %327 {offsets = [0, 128], sizes = [8, 128], strides = [1, 1]} : vector<8x256xf32> to vector<8x128xf32>
    %398 = arith.mulf %386, %397 : vector<8x128xf32>
    %399 = arith.addf %396, %398 : vector<8x128xf32>
    %c4_144 = arith.constant 4 : index
    %c0_145 = arith.constant 0 : index
    %c0_146 = arith.constant 0 : index
    %400 = vector.load %arg7[%c4_144, %c0_145, %c0_146] : memref<8x8x256xf32, #tpu.memory_space<vmem>>, vector<1x8x128xf32>
    %401 = vector.shape_cast %400 : vector<1x8x128xf32> to vector<8x128xf32>
    %402 = vector.shape_cast %366 : vector<8x128xf32> to vector<1x8x128xf32>
    tpu.vector_store %arg7[%c4_144, %c0_145, %c0_146], %402 {strides = array<i32>} : memref<8x8x256xf32, #tpu.memory_space<vmem>>, vector<1x8x128xf32>,
    %c3_147 = arith.constant 3 : index
    %c0_148 = arith.constant 0 : index
    %c128_149 = arith.constant 128 : index
    %403 = vector.load %arg7[%c3_147, %c0_148, %c128_149] : memref<8x8x256xf32, #tpu.memory_space<vmem>>, vector<1x8x128xf32>
    %404 = vector.shape_cast %403 : vector<1x8x128xf32> to vector<8x128xf32>
    %405 = vector.shape_cast %399 : vector<8x128xf32> to vector<1x8x128xf32>
    tpu.vector_store %arg7[%c3_147, %c0_148, %c128_149], %405 {strides = array<i32>} : memref<8x8x256xf32, #tpu.memory_space<vmem>>, vector<1x8x128xf32>,
    %406 = tpu.concatenate %366, %399 in 1 : vector<8x128xf32>, vector<8x128xf32> -> vector<8x256xf32>
    %c0_150 = arith.constant 0 : index
    %c0_151 = arith.constant 0 : index
    %407 = vector.load %arg3[%c0_150, %c0_151] : memref<256x768xf32, #tpu.memory_space<vmem>>, vector<256x768xf32>
    %cst_152 = arith.constant dense<0.000000e+00> : vector<8x768xf32>
    %408 = tpu.matmul %406, %407, %cst_152 {dimension_numbers = #tpu.dot_dimension_numbers<[1], [0], [0], [1], [0, 0, 1, 1], [], []>} : vector<8x256xf32>, vector<256x768xf32>, vector<8x768xf32> -> vector<8x768xf32>
    %c5_153 = arith.constant 5 : index
    %c0_154 = arith.constant 0 : index
    %c0_155 = arith.constant 0 : index
    %409 = vector.load %arg9[%c5_153, %c0_154, %c0_155] : memref<8x8x768xf32, #tpu.memory_space<vmem>>, vector<1x8x384xf32>
    %410 = vector.shape_cast %409 : vector<1x8x384xf32> to vector<8x384xf32>
    %c2_156 = arith.constant 2 : index
    %c0_157 = arith.constant 0 : index
    %c384_158 = arith.constant 384 : index
    %411 = vector.load %arg9[%c2_156, %c0_157, %c384_158] : memref<8x8x768xf32, #tpu.memory_space<vmem>>, vector<1x8x384xf32>
    %412 = vector.shape_cast %411 : vector<1x8x384xf32> to vector<8x384xf32>
    %413 = vector.extract_strided_slice %410 {offsets = [0, 0], sizes = [8, 128], strides = [1, 1]} : vector<8x384xf32> to vector<8x128xf32>
    %414 = vector.extract_strided_slice %408 {offsets = [0, 0], sizes = [8, 128], strides = [1, 1]} : vector<8x768xf32> to vector<8x128xf32>
    %415 = arith.addf %413, %414 : vector<8x128xf32>
    %cst_159 = arith.constant 5.000000e-01 : f32
    %416 = vector.broadcast %cst_159 : f32 to vector<8x128xf32>
    %417 = arith.mulf %416, %415 : vector<8x128xf32>
    %418 = math.tanh %417 : vector<8x128xf32>
    %cst_160 = arith.constant 1.000000e+00 : f32
    %419 = vector.broadcast %cst_160 : f32 to vector<8x128xf32>
    %420 = arith.addf %418, %419 : vector<8x128xf32>
    %cst_161 = arith.constant 5.000000e-01 : f32
    %421 = vector.broadcast %cst_161 : f32 to vector<8x128xf32>
    %422 = arith.mulf %421, %420 : vector<8x128xf32>
    %423 = vector.extract_strided_slice %410 {offsets = [0, 128], sizes = [8, 128], strides = [1, 1]} : vector<8x384xf32> to vector<8x128xf32>
    %424 = vector.extract_strided_slice %408 {offsets = [0, 128], sizes = [8, 128], strides = [1, 1]} : vector<8x768xf32> to vector<8x128xf32>
    %425 = arith.addf %423, %424 : vector<8x128xf32>
    %cst_162 = arith.constant 5.000000e-01 : f32
    %426 = vector.broadcast %cst_162 : f32 to vector<8x128xf32>
    %427 = arith.mulf %426, %425 : vector<8x128xf32>
    %428 = math.tanh %427 : vector<8x128xf32>
    %cst_163 = arith.constant 1.000000e+00 : f32
    %429 = vector.broadcast %cst_163 : f32 to vector<8x128xf32>
    %430 = arith.addf %428, %429 : vector<8x128xf32>
    %cst_164 = arith.constant 5.000000e-01 : f32
    %431 = vector.broadcast %cst_164 : f32 to vector<8x128xf32>
    %432 = arith.mulf %431, %430 : vector<8x128xf32>
    %433 = vector.extract_strided_slice %410 {offsets = [0, 256], sizes = [8, 128], strides = [1, 1]} : vector<8x384xf32> to vector<8x128xf32>
    %434 = vector.extract_strided_slice %408 {offsets = [0, 256], sizes = [8, 128], strides = [1, 1]} : vector<8x768xf32> to vector<8x128xf32>
    %435 = vector.broadcast %9 : vector<1x128xf32> to vector<8x128xf32>
    %436 = arith.addf %434, %435 : vector<8x128xf32>
    %437 = arith.mulf %422, %436 : vector<8x128xf32>
    %438 = arith.addf %433, %437 : vector<8x128xf32>
    %439 = math.tanh %438 : vector<8x128xf32>
    %cst_165 = arith.constant 1.000000e+00 : f32
    %440 = vector.broadcast %cst_165 : f32 to vector<8x128xf32>
    %441 = arith.subf %440, %432 : vector<8x128xf32>
    %442 = arith.mulf %441, %439 : vector<8x128xf32>
    %443 = vector.extract_strided_slice %406 {offsets = [0, 0], sizes = [8, 128], strides = [1, 1]} : vector<8x256xf32> to vector<8x128xf32>
    %444 = arith.mulf %432, %443 : vector<8x128xf32>
    %445 = arith.addf %442, %444 : vector<8x128xf32>
    %446 = vector.extract_strided_slice %412 {offsets = [0, 0], sizes = [8, 128], strides = [1, 1]} : vector<8x384xf32> to vector<8x128xf32>
    %447 = vector.extract_strided_slice %408 {offsets = [0, 384], sizes = [8, 128], strides = [1, 1]} : vector<8x768xf32> to vector<8x128xf32>
    %448 = arith.addf %446, %447 : vector<8x128xf32>
    %cst_166 = arith.constant 5.000000e-01 : f32
    %449 = vector.broadcast %cst_166 : f32 to vector<8x128xf32>
    %450 = arith.mulf %449, %448 : vector<8x128xf32>
    %451 = math.tanh %450 : vector<8x128xf32>
    %cst_167 = arith.constant 1.000000e+00 : f32
    %452 = vector.broadcast %cst_167 : f32 to vector<8x128xf32>
    %453 = arith.addf %451, %452 : vector<8x128xf32>
    %cst_168 = arith.constant 5.000000e-01 : f32
    %454 = vector.broadcast %cst_168 : f32 to vector<8x128xf32>
    %455 = arith.mulf %454, %453 : vector<8x128xf32>
    %456 = vector.extract_strided_slice %412 {offsets = [0, 128], sizes = [8, 128], strides = [1, 1]} : vector<8x384xf32> to vector<8x128xf32>
    %457 = vector.extract_strided_slice %408 {offsets = [0, 512], sizes = [8, 128], strides = [1, 1]} : vector<8x768xf32> to vector<8x128xf32>
    %458 = arith.addf %456, %457 : vector<8x128xf32>
    %cst_169 = arith.constant 5.000000e-01 : f32
    %459 = vector.broadcast %cst_169 : f32 to vector<8x128xf32>
    %460 = arith.mulf %459, %458 : vector<8x128xf32>
    %461 = math.tanh %460 : vector<8x128xf32>
    %cst_170 = arith.constant 1.000000e+00 : f32
    %462 = vector.broadcast %cst_170 : f32 to vector<8x128xf32>
    %463 = arith.addf %461, %462 : vector<8x128xf32>
    %cst_171 = arith.constant 5.000000e-01 : f32
    %464 = vector.broadcast %cst_171 : f32 to vector<8x128xf32>
    %465 = arith.mulf %464, %463 : vector<8x128xf32>
    %466 = vector.extract_strided_slice %412 {offsets = [0, 256], sizes = [8, 128], strides = [1, 1]} : vector<8x384xf32> to vector<8x128xf32>
    %467 = vector.extract_strided_slice %408 {offsets = [0, 640], sizes = [8, 128], strides = [1, 1]} : vector<8x768xf32> to vector<8x128xf32>
    %468 = vector.broadcast %10 : vector<1x128xf32> to vector<8x128xf32>
    %469 = arith.addf %467, %468 : vector<8x128xf32>
    %470 = arith.mulf %455, %469 : vector<8x128xf32>
    %471 = arith.addf %466, %470 : vector<8x128xf32>
    %472 = math.tanh %471 : vector<8x128xf32>
    %cst_172 = arith.constant 1.000000e+00 : f32
    %473 = vector.broadcast %cst_172 : f32 to vector<8x128xf32>
    %474 = arith.subf %473, %465 : vector<8x128xf32>
    %475 = arith.mulf %474, %472 : vector<8x128xf32>
    %476 = vector.extract_strided_slice %406 {offsets = [0, 128], sizes = [8, 128], strides = [1, 1]} : vector<8x256xf32> to vector<8x128xf32>
    %477 = arith.mulf %465, %476 : vector<8x128xf32>
    %478 = arith.addf %475, %477 : vector<8x128xf32>
    %c5_173 = arith.constant 5 : index
    %c0_174 = arith.constant 0 : index
    %c0_175 = arith.constant 0 : index
    %479 = vector.load %arg7[%c5_173, %c0_174, %c0_175] : memref<8x8x256xf32, #tpu.memory_space<vmem>>, vector<1x8x128xf32>
    %480 = vector.shape_cast %479 : vector<1x8x128xf32> to vector<8x128xf32>
    %481 = vector.shape_cast %445 : vector<8x128xf32> to vector<1x8x128xf32>
    tpu.vector_store %arg7[%c5_173, %c0_174, %c0_175], %481 {strides = array<i32>} : memref<8x8x256xf32, #tpu.memory_space<vmem>>, vector<1x8x128xf32>,
    %c2_176 = arith.constant 2 : index
    %c0_177 = arith.constant 0 : index
    %c128_178 = arith.constant 128 : index
    %482 = vector.load %arg7[%c2_176, %c0_177, %c128_178] : memref<8x8x256xf32, #tpu.memory_space<vmem>>, vector<1x8x128xf32>
    %483 = vector.shape_cast %482 : vector<1x8x128xf32> to vector<8x128xf32>
    %484 = vector.shape_cast %478 : vector<8x128xf32> to vector<1x8x128xf32>
    tpu.vector_store %arg7[%c2_176, %c0_177, %c128_178], %484 {strides = array<i32>} : memref<8x8x256xf32, #tpu.memory_space<vmem>>, vector<1x8x128xf32>,
    %485 = tpu.concatenate %445, %478 in 1 : vector<8x128xf32>, vector<8x128xf32> -> vector<8x256xf32>
    %c0_179 = arith.constant 0 : index
    %c0_180 = arith.constant 0 : index
    %486 = vector.load %arg3[%c0_179, %c0_180] : memref<256x768xf32, #tpu.memory_space<vmem>>, vector<256x768xf32>
    %cst_181 = arith.constant dense<0.000000e+00> : vector<8x768xf32>
    %487 = tpu.matmul %485, %486, %cst_181 {dimension_numbers = #tpu.dot_dimension_numbers<[1], [0], [0], [1], [0, 0, 1, 1], [], []>} : vector<8x256xf32>, vector<256x768xf32>, vector<8x768xf32> -> vector<8x768xf32>
    %c6_182 = arith.constant 6 : index
    %c0_183 = arith.constant 0 : index
    %c0_184 = arith.constant 0 : index
    %488 = vector.load %arg9[%c6_182, %c0_183, %c0_184] : memref<8x8x768xf32, #tpu.memory_space<vmem>>, vector<1x8x384xf32>
    %489 = vector.shape_cast %488 : vector<1x8x384xf32> to vector<8x384xf32>
    %c1_185 = arith.constant 1 : index
    %c0_186 = arith.constant 0 : index
    %c384_187 = arith.constant 384 : index
    %490 = vector.load %arg9[%c1_185, %c0_186, %c384_187] : memref<8x8x768xf32, #tpu.memory_space<vmem>>, vector<1x8x384xf32>
    %491 = vector.shape_cast %490 : vector<1x8x384xf32> to vector<8x384xf32>
    %492 = vector.extract_strided_slice %489 {offsets = [0, 0], sizes = [8, 128], strides = [1, 1]} : vector<8x384xf32> to vector<8x128xf32>
    %493 = vector.extract_strided_slice %487 {offsets = [0, 0], sizes = [8, 128], strides = [1, 1]} : vector<8x768xf32> to vector<8x128xf32>
    %494 = arith.addf %492, %493 : vector<8x128xf32>
    %cst_188 = arith.constant 5.000000e-01 : f32
    %495 = vector.broadcast %cst_188 : f32 to vector<8x128xf32>
    %496 = arith.mulf %495, %494 : vector<8x128xf32>
    %497 = math.tanh %496 : vector<8x128xf32>
    %cst_189 = arith.constant 1.000000e+00 : f32
    %498 = vector.broadcast %cst_189 : f32 to vector<8x128xf32>
    %499 = arith.addf %497, %498 : vector<8x128xf32>
    %cst_190 = arith.constant 5.000000e-01 : f32
    %500 = vector.broadcast %cst_190 : f32 to vector<8x128xf32>
    %501 = arith.mulf %500, %499 : vector<8x128xf32>
    %502 = vector.extract_strided_slice %489 {offsets = [0, 128], sizes = [8, 128], strides = [1, 1]} : vector<8x384xf32> to vector<8x128xf32>
    %503 = vector.extract_strided_slice %487 {offsets = [0, 128], sizes = [8, 128], strides = [1, 1]} : vector<8x768xf32> to vector<8x128xf32>
    %504 = arith.addf %502, %503 : vector<8x128xf32>
    %cst_191 = arith.constant 5.000000e-01 : f32
    %505 = vector.broadcast %cst_191 : f32 to vector<8x128xf32>
    %506 = arith.mulf %505, %504 : vector<8x128xf32>
    %507 = math.tanh %506 : vector<8x128xf32>
    %cst_192 = arith.constant 1.000000e+00 : f32
    %508 = vector.broadcast %cst_192 : f32 to vector<8x128xf32>
    %509 = arith.addf %507, %508 : vector<8x128xf32>
    %cst_193 = arith.constant 5.000000e-01 : f32
    %510 = vector.broadcast %cst_193 : f32 to vector<8x128xf32>
    %511 = arith.mulf %510, %509 : vector<8x128xf32>
    %512 = vector.extract_strided_slice %489 {offsets = [0, 256], sizes = [8, 128], strides = [1, 1]} : vector<8x384xf32> to vector<8x128xf32>
    %513 = vector.extract_strided_slice %487 {offsets = [0, 256], sizes = [8, 128], strides = [1, 1]} : vector<8x768xf32> to vector<8x128xf32>
    %514 = vector.broadcast %9 : vector<1x128xf32> to vector<8x128xf32>
    %515 = arith.addf %513, %514 : vector<8x128xf32>
    %516 = arith.mulf %501, %515 : vector<8x128xf32>
    %517 = arith.addf %512, %516 : vector<8x128xf32>
    %518 = math.tanh %517 : vector<8x128xf32>
    %cst_194 = arith.constant 1.000000e+00 : f32
    %519 = vector.broadcast %cst_194 : f32 to vector<8x128xf32>
    %520 = arith.subf %519, %511 : vector<8x128xf32>
    %521 = arith.mulf %520, %518 : vector<8x128xf32>
    %522 = vector.extract_strided_slice %485 {offsets = [0, 0], sizes = [8, 128], strides = [1, 1]} : vector<8x256xf32> to vector<8x128xf32>
    %523 = arith.mulf %511, %522 : vector<8x128xf32>
    %524 = arith.addf %521, %523 : vector<8x128xf32>
    %525 = vector.extract_strided_slice %491 {offsets = [0, 0], sizes = [8, 128], strides = [1, 1]} : vector<8x384xf32> to vector<8x128xf32>
    %526 = vector.extract_strided_slice %487 {offsets = [0, 384], sizes = [8, 128], strides = [1, 1]} : vector<8x768xf32> to vector<8x128xf32>
    %527 = arith.addf %525, %526 : vector<8x128xf32>
    %cst_195 = arith.constant 5.000000e-01 : f32
    %528 = vector.broadcast %cst_195 : f32 to vector<8x128xf32>
    %529 = arith.mulf %528, %527 : vector<8x128xf32>
    %530 = math.tanh %529 : vector<8x128xf32>
    %cst_196 = arith.constant 1.000000e+00 : f32
    %531 = vector.broadcast %cst_196 : f32 to vector<8x128xf32>
    %532 = arith.addf %530, %531 : vector<8x128xf32>
    %cst_197 = arith.constant 5.000000e-01 : f32
    %533 = vector.broadcast %cst_197 : f32 to vector<8x128xf32>
    %534 = arith.mulf %533, %532 : vector<8x128xf32>
    %535 = vector.extract_strided_slice %491 {offsets = [0, 128], sizes = [8, 128], strides = [1, 1]} : vector<8x384xf32> to vector<8x128xf32>
    %536 = vector.extract_strided_slice %487 {offsets = [0, 512], sizes = [8, 128], strides = [1, 1]} : vector<8x768xf32> to vector<8x128xf32>
    %537 = arith.addf %535, %536 : vector<8x128xf32>
    %cst_198 = arith.constant 5.000000e-01 : f32
    %538 = vector.broadcast %cst_198 : f32 to vector<8x128xf32>
    %539 = arith.mulf %538, %537 : vector<8x128xf32>
    %540 = math.tanh %539 : vector<8x128xf32>
    %cst_199 = arith.constant 1.000000e+00 : f32
    %541 = vector.broadcast %cst_199 : f32 to vector<8x128xf32>
    %542 = arith.addf %540, %541 : vector<8x128xf32>
    %cst_200 = arith.constant 5.000000e-01 : f32
    %543 = vector.broadcast %cst_200 : f32 to vector<8x128xf32>
    %544 = arith.mulf %543, %542 : vector<8x128xf32>
    %545 = vector.extract_strided_slice %491 {offsets = [0, 256], sizes = [8, 128], strides = [1, 1]} : vector<8x384xf32> to vector<8x128xf32>
    %546 = vector.extract_strided_slice %487 {offsets = [0, 640], sizes = [8, 128], strides = [1, 1]} : vector<8x768xf32> to vector<8x128xf32>
    %547 = vector.broadcast %10 : vector<1x128xf32> to vector<8x128xf32>
    %548 = arith.addf %546, %547 : vector<8x128xf32>
    %549 = arith.mulf %534, %548 : vector<8x128xf32>
    %550 = arith.addf %545, %549 : vector<8x128xf32>
    %551 = math.tanh %550 : vector<8x128xf32>
    %cst_201 = arith.constant 1.000000e+00 : f32
    %552 = vector.broadcast %cst_201 : f32 to vector<8x128xf32>
    %553 = arith.subf %552, %544 : vector<8x128xf32>
    %554 = arith.mulf %553, %551 : vector<8x128xf32>
    %555 = vector.extract_strided_slice %485 {offsets = [0, 128], sizes = [8, 128], strides = [1, 1]} : vector<8x256xf32> to vector<8x128xf32>
    %556 = arith.mulf %544, %555 : vector<8x128xf32>
    %557 = arith.addf %554, %556 : vector<8x128xf32>
    %c6_202 = arith.constant 6 : index
    %c0_203 = arith.constant 0 : index
    %c0_204 = arith.constant 0 : index
    %558 = vector.load %arg7[%c6_202, %c0_203, %c0_204] : memref<8x8x256xf32, #tpu.memory_space<vmem>>, vector<1x8x128xf32>
    %559 = vector.shape_cast %558 : vector<1x8x128xf32> to vector<8x128xf32>
    %560 = vector.shape_cast %524 : vector<8x128xf32> to vector<1x8x128xf32>
    tpu.vector_store %arg7[%c6_202, %c0_203, %c0_204], %560 {strides = array<i32>} : memref<8x8x256xf32, #tpu.memory_space<vmem>>, vector<1x8x128xf32>,
    %c1_205 = arith.constant 1 : index
    %c0_206 = arith.constant 0 : index
    %c128_207 = arith.constant 128 : index
    %561 = vector.load %arg7[%c1_205, %c0_206, %c128_207] : memref<8x8x256xf32, #tpu.memory_space<vmem>>, vector<1x8x128xf32>
    %562 = vector.shape_cast %561 : vector<1x8x128xf32> to vector<8x128xf32>
    %563 = vector.shape_cast %557 : vector<8x128xf32> to vector<1x8x128xf32>
    tpu.vector_store %arg7[%c1_205, %c0_206, %c128_207], %563 {strides = array<i32>} : memref<8x8x256xf32, #tpu.memory_space<vmem>>, vector<1x8x128xf32>,
    %564 = tpu.concatenate %524, %557 in 1 : vector<8x128xf32>, vector<8x128xf32> -> vector<8x256xf32>
    %c0_208 = arith.constant 0 : index
    %c0_209 = arith.constant 0 : index
    %565 = vector.load %arg3[%c0_208, %c0_209] : memref<256x768xf32, #tpu.memory_space<vmem>>, vector<256x768xf32>
    %cst_210 = arith.constant dense<0.000000e+00> : vector<8x768xf32>
    %566 = tpu.matmul %564, %565, %cst_210 {dimension_numbers = #tpu.dot_dimension_numbers<[1], [0], [0], [1], [0, 0, 1, 1], [], []>} : vector<8x256xf32>, vector<256x768xf32>, vector<8x768xf32> -> vector<8x768xf32>
    %c7_211 = arith.constant 7 : index
    %c0_212 = arith.constant 0 : index
    %c0_213 = arith.constant 0 : index
    %567 = vector.load %arg9[%c7_211, %c0_212, %c0_213] : memref<8x8x768xf32, #tpu.memory_space<vmem>>, vector<1x8x384xf32>
    %568 = vector.shape_cast %567 : vector<1x8x384xf32> to vector<8x384xf32>
    %c0_214 = arith.constant 0 : index
    %c0_215 = arith.constant 0 : index
    %c384_216 = arith.constant 384 : index
    %569 = vector.load %arg9[%c0_214, %c0_215, %c384_216] : memref<8x8x768xf32, #tpu.memory_space<vmem>>, vector<1x8x384xf32>
    %570 = vector.shape_cast %569 : vector<1x8x384xf32> to vector<8x384xf32>
    %571 = vector.extract_strided_slice %568 {offsets = [0, 0], sizes = [8, 128], strides = [1, 1]} : vector<8x384xf32> to vector<8x128xf32>
    %572 = vector.extract_strided_slice %566 {offsets = [0, 0], sizes = [8, 128], strides = [1, 1]} : vector<8x768xf32> to vector<8x128xf32>
    %573 = arith.addf %571, %572 : vector<8x128xf32>
    %cst_217 = arith.constant 5.000000e-01 : f32
    %574 = vector.broadcast %cst_217 : f32 to vector<8x128xf32>
    %575 = arith.mulf %574, %573 : vector<8x128xf32>
    %576 = math.tanh %575 : vector<8x128xf32>
    %cst_218 = arith.constant 1.000000e+00 : f32
    %577 = vector.broadcast %cst_218 : f32 to vector<8x128xf32>
    %578 = arith.addf %576, %577 : vector<8x128xf32>
    %cst_219 = arith.constant 5.000000e-01 : f32
    %579 = vector.broadcast %cst_219 : f32 to vector<8x128xf32>
    %580 = arith.mulf %579, %578 : vector<8x128xf32>
    %581 = vector.extract_strided_slice %568 {offsets = [0, 128], sizes = [8, 128], strides = [1, 1]} : vector<8x384xf32> to vector<8x128xf32>
    %582 = vector.extract_strided_slice %566 {offsets = [0, 128], sizes = [8, 128], strides = [1, 1]} : vector<8x768xf32> to vector<8x128xf32>
    %583 = arith.addf %581, %582 : vector<8x128xf32>
    %cst_220 = arith.constant 5.000000e-01 : f32
    %584 = vector.broadcast %cst_220 : f32 to vector<8x128xf32>
    %585 = arith.mulf %584, %583 : vector<8x128xf32>
    %586 = math.tanh %585 : vector<8x128xf32>
    %cst_221 = arith.constant 1.000000e+00 : f32
    %587 = vector.broadcast %cst_221 : f32 to vector<8x128xf32>
    %588 = arith.addf %586, %587 : vector<8x128xf32>
    %cst_222 = arith.constant 5.000000e-01 : f32
    %589 = vector.broadcast %cst_222 : f32 to vector<8x128xf32>
    %590 = arith.mulf %589, %588 : vector<8x128xf32>
    %591 = vector.extract_strided_slice %568 {offsets = [0, 256], sizes = [8, 128], strides = [1, 1]} : vector<8x384xf32> to vector<8x128xf32>
    %592 = vector.extract_strided_slice %566 {offsets = [0, 256], sizes = [8, 128], strides = [1, 1]} : vector<8x768xf32> to vector<8x128xf32>
    %593 = vector.broadcast %9 : vector<1x128xf32> to vector<8x128xf32>
    %594 = arith.addf %592, %593 : vector<8x128xf32>
    %595 = arith.mulf %580, %594 : vector<8x128xf32>
    %596 = arith.addf %591, %595 : vector<8x128xf32>
    %597 = math.tanh %596 : vector<8x128xf32>
    %cst_223 = arith.constant 1.000000e+00 : f32
    %598 = vector.broadcast %cst_223 : f32 to vector<8x128xf32>
    %599 = arith.subf %598, %590 : vector<8x128xf32>
    %600 = arith.mulf %599, %597 : vector<8x128xf32>
    %601 = vector.extract_strided_slice %564 {offsets = [0, 0], sizes = [8, 128], strides = [1, 1]} : vector<8x256xf32> to vector<8x128xf32>
    %602 = arith.mulf %590, %601 : vector<8x128xf32>
    %603 = arith.addf %600, %602 : vector<8x128xf32>
    %604 = vector.extract_strided_slice %570 {offsets = [0, 0], sizes = [8, 128], strides = [1, 1]} : vector<8x384xf32> to vector<8x128xf32>
    %605 = vector.extract_strided_slice %566 {offsets = [0, 384], sizes = [8, 128], strides = [1, 1]} : vector<8x768xf32> to vector<8x128xf32>
    %606 = arith.addf %604, %605 : vector<8x128xf32>
    %cst_224 = arith.constant 5.000000e-01 : f32
    %607 = vector.broadcast %cst_224 : f32 to vector<8x128xf32>
    %608 = arith.mulf %607, %606 : vector<8x128xf32>
    %609 = math.tanh %608 : vector<8x128xf32>
    %cst_225 = arith.constant 1.000000e+00 : f32
    %610 = vector.broadcast %cst_225 : f32 to vector<8x128xf32>
    %611 = arith.addf %609, %610 : vector<8x128xf32>
    %cst_226 = arith.constant 5.000000e-01 : f32
    %612 = vector.broadcast %cst_226 : f32 to vector<8x128xf32>
    %613 = arith.mulf %612, %611 : vector<8x128xf32>
    %614 = vector.extract_strided_slice %570 {offsets = [0, 128], sizes = [8, 128], strides = [1, 1]} : vector<8x384xf32> to vector<8x128xf32>
    %615 = vector.extract_strided_slice %566 {offsets = [0, 512], sizes = [8, 128], strides = [1, 1]} : vector<8x768xf32> to vector<8x128xf32>
    %616 = arith.addf %614, %615 : vector<8x128xf32>
    %cst_227 = arith.constant 5.000000e-01 : f32
    %617 = vector.broadcast %cst_227 : f32 to vector<8x128xf32>
    %618 = arith.mulf %617, %616 : vector<8x128xf32>
    %619 = math.tanh %618 : vector<8x128xf32>
    %cst_228 = arith.constant 1.000000e+00 : f32
    %620 = vector.broadcast %cst_228 : f32 to vector<8x128xf32>
    %621 = arith.addf %619, %620 : vector<8x128xf32>
    %cst_229 = arith.constant 5.000000e-01 : f32
    %622 = vector.broadcast %cst_229 : f32 to vector<8x128xf32>
    %623 = arith.mulf %622, %621 : vector<8x128xf32>
    %624 = vector.extract_strided_slice %570 {offsets = [0, 256], sizes = [8, 128], strides = [1, 1]} : vector<8x384xf32> to vector<8x128xf32>
    %625 = vector.extract_strided_slice %566 {offsets = [0, 640], sizes = [8, 128], strides = [1, 1]} : vector<8x768xf32> to vector<8x128xf32>
    %626 = vector.broadcast %10 : vector<1x128xf32> to vector<8x128xf32>
    %627 = arith.addf %625, %626 : vector<8x128xf32>
    %628 = arith.mulf %613, %627 : vector<8x128xf32>
    %629 = arith.addf %624, %628 : vector<8x128xf32>
    %630 = math.tanh %629 : vector<8x128xf32>
    %cst_230 = arith.constant 1.000000e+00 : f32
    %631 = vector.broadcast %cst_230 : f32 to vector<8x128xf32>
    %632 = arith.subf %631, %623 : vector<8x128xf32>
    %633 = arith.mulf %632, %630 : vector<8x128xf32>
    %634 = vector.extract_strided_slice %564 {offsets = [0, 128], sizes = [8, 128], strides = [1, 1]} : vector<8x256xf32> to vector<8x128xf32>
    %635 = arith.mulf %623, %634 : vector<8x128xf32>
    %636 = arith.addf %633, %635 : vector<8x128xf32>
    %c7_231 = arith.constant 7 : index
    %c0_232 = arith.constant 0 : index
    %c0_233 = arith.constant 0 : index
    %637 = vector.load %arg7[%c7_231, %c0_232, %c0_233] : memref<8x8x256xf32, #tpu.memory_space<vmem>>, vector<1x8x128xf32>
    %638 = vector.shape_cast %637 : vector<1x8x128xf32> to vector<8x128xf32>
    %639 = vector.shape_cast %603 : vector<8x128xf32> to vector<1x8x128xf32>
    tpu.vector_store %arg7[%c7_231, %c0_232, %c0_233], %639 {strides = array<i32>} : memref<8x8x256xf32, #tpu.memory_space<vmem>>, vector<1x8x128xf32>,
    %c0_234 = arith.constant 0 : index
    %c0_235 = arith.constant 0 : index
    %c128_236 = arith.constant 128 : index
    %640 = vector.load %arg7[%c0_234, %c0_235, %c128_236] : memref<8x8x256xf32, #tpu.memory_space<vmem>>, vector<1x8x128xf32>
    %641 = vector.shape_cast %640 : vector<1x8x128xf32> to vector<8x128xf32>
    %642 = vector.shape_cast %636 : vector<8x128xf32> to vector<1x8x128xf32>
    tpu.vector_store %arg7[%c0_234, %c0_235, %c128_236], %642 {strides = array<i32>} : memref<8x8x256xf32, #tpu.memory_space<vmem>>, vector<1x8x128xf32>,
    %643 = tpu.concatenate %603, %636 in 1 : vector<8x128xf32>, vector<8x128xf32> -> vector<8x256xf32>
    %c0_237 = arith.constant 0 : index
    %c0_238 = arith.constant 0 : index
    %644 = vector.load %arg5[%c0_237, %c0_238] : memref<256x128xf32, #tpu.memory_space<vmem>>, vector<256x128xf32>
    %cst_239 = arith.constant dense<0.000000e+00> : vector<8x128xf32>
    %645 = tpu.matmul %643, %644, %cst_239 {dimension_numbers = #tpu.dot_dimension_numbers<[1], [0], [0], [1], [0, 0, 1, 1], [], []>} : vector<8x256xf32>, vector<256x128xf32>, vector<8x128xf32> -> vector<8x128xf32>
    %c0_240 = arith.constant 0 : index
    %c0_241 = arith.constant 0 : index
    %646 = vector.load %arg6[%c0_240, %c0_241] : memref<1x128xf32, #tpu.memory_space<vmem>>, vector<1x128xf32>
    %647 = vector.broadcast %646 : vector<1x128xf32> to vector<8x128xf32>
    %648 = arith.addf %645, %647 : vector<8x128xf32>
    %649 = math.tanh %648 : vector<8x128xf32>
    %c0_242 = arith.constant 0 : index
    %c0_243 = arith.constant 0 : index
    %650 = vector.load %arg8[%c0_242, %c0_243] : memref<8x128xf32, #tpu.memory_space<vmem>>, vector<8x128xf32>
    tpu.vector_store %arg8[%c0_242, %c0_243], %649 {strides = array<i32>} : memref<8x128xf32, #tpu.memory_space<vmem>>, vector<8x128xf32>,
    return
  }
}

</mosaic_0001>

<bundles_post_ra>
// kernel: tpu_custom_call.1
= control target key start
LH: loop header
LB: loop body
LE: loop exit
PB: predicated region body
PF: predicated region fallthrough
CT: control target
= control target key end

     0   :  { %14 = vsyncpa [#allocation4], 0  ;;  %s8187_s0 = inlined_call_operand.hbm [shape: f32[8,8,128], index: 0, kind: input, shape index: {}]   ;;  %s8188_s1 = inlined_call_operand.hbm [shape: f32[128,768], index: 1, kind: input, shape index: {}]   ;;  %s8189_s2 = inlined_call_operand.vmem [shape: f32[1,768], index: 2, kind: input, shape index: {}]   ;;  %s8190_s3 = inlined_call_operand.hbm [shape: f32[256,768], index: 3, kind: input, shape index: {}]   ;;  %s8191_s4 = inlined_call_operand.vmem [shape: f32[1,256], index: 4, kind: input, shape index: {}]   ;;  %s8192_s5 = inlined_call_operand.hbm [shape: f32[256,128], index: 5, kind: input, shape index: {}]   ;;  %s8193_s6 = inlined_call_operand.vmem [shape: f32[1,128], index: 6, kind: input, shape index: {}]   ;;  %s8194_s7 = inlined_call_operand.hbm [shape: f32[8,8,256], index: 7, kind: output, shape index: {0}]   ;;  %s8195_s8 = inlined_call_operand.hbm [shape: f32[8,128], index: 8, kind: output, shape index: {1}]  }
   0x1   :  { %15 = vsyncpa [#allocation7], 0 }
   0x2   :  { %16 = vsyncpa [#allocation10], 0 }
   0x3   :  { %17 = vsyncpa [#allocation5], 0 }
   0x4   :  { %18 = vsyncpa [#allocation13], 0  ;;  %s6365_s27 = smov [#allocation6]   ;;  %s6223_s9 = scalar_lea.hbm %s8188_s1, 12288 }
   0x5   :  { %s36_s28 = sshll.u32 %s6365_s27, 4  ;;  %p6224_p0 = scmp.ne.s32.totalorder %s8188_s1, %s6223_s9  ;;  %s37_s28 = int_to_ptr.vmem [resolvable:$true] %s36_s28 }
   0x6   :  { %p6227_p1 = scmp.lt.u32.totalorder %s6223_s9, %s8188_s1 }
   0x8   :  { %p6229_p2 = pnand %p6227_p1, %p6224_p0 }
   0xa   :  { %6232 = shalt.err (!%p6229_p2)
}
   0xb   :  { %s6233_s14 = scalar_lea.vmem %s37_s28, 12288  ;;  %p6238_p4 = scmp.lt.s32.totalorder %s37_s28, %s37_s28 }
   0xc   :  { %p6234_p3 = scmp.ne.s32.totalorder %s37_s28, %s6233_s14  ;;  %p6239_p5 = scmp.lt.s32.totalorder %s6233_s14, %s6233_s14 }
   0xe   :  { %p6240_p6 = por %p6239_p5, %p6238_p4 }
  0x10   :  { %p6241_p7 = pnand %p6240_p6, %p6234_p3 }
  0x12   :  { %6244 = shalt.err (!%p6241_p7)
}
  0x13   :  { %s6366_s15 = smov 768   ;;  %s6367_s16 = smov 48  }
  0x14   :  { %42 = dma.hbm_to_vmem [thread:$0]  %s8188_s1, 12288, %s37_s28, [#allocation7], %s6366_s15, %s6366_s15, %s6367_s16  }
  0x15   :  { %s6368_s19 = smov [#allocation3]   ;;  %s6245_s23 = scalar_lea.hbm %s8187_s0, 1024 }
  0x16   :  { %s24_s20 = sshll.u32 %s6368_s19, 4  ;;  %p6246_p8 = scmp.ne.s32.totalorder %s8187_s0, %s6245_s23  ;;  %s25_s20 = int_to_ptr.vmem [resolvable:$true] %s24_s20 }
  0x17   :  { %p6249_p9 = scmp.lt.u32.totalorder %s6245_s23, %s8187_s0 }
  0x19   :  { %p6251_p10 = pnand %p6249_p9, %p6246_p8 }
  0x1b   :  { %6254 = shalt.err (!%p6251_p10)
}
  0x1c   :  { %s6255_s29 = scalar_lea.vmem %s25_s20, 1024  ;;  %p6260_p12 = scmp.lt.s32.totalorder %s25_s20, %s25_s20 }
  0x1d   :  { %p6256_p11 = scmp.ne.s32.totalorder %s25_s20, %s6255_s29  ;;  %p6261_p13 = scmp.lt.s32.totalorder %s6255_s29, %s6255_s29 }
  0x1f   :  { %p6262_p0 = por %p6261_p13, %p6260_p12 }
  0x21   :  { %p6263_p1 = pnand %p6262_p0, %p6256_p11 }
  0x23   :  { %6266 = shalt.err (!%p6263_p1)
}
  0x24   :  { %s6369_s1 = smov 128   ;;  %s6370_s28 = smov 8  }
  0x25   :  { %30 = dma.hbm_to_vmem [thread:$0]  %s8187_s0, 1024, %s25_s20, [#allocation4], %s6369_s1, %s6369_s1, %s6370_s28  }
  0x26   :  { %s6371_s10 = smov [#allocation8]   ;;  %s6372_s12 = smov [#allocation9]  }
  0x27   :  { %s50_s11 = sshll.u32 %s6371_s10, 4  ;;  %s64_s13 = sshll.u32 %s6372_s12, 4  ;;  %s51_s11 = int_to_ptr.vmem [resolvable:$true] %s50_s11  ;;  %s6453_s13 = int_to_ptr.vmem [resolvable:$true] %s64_s13 }
  0x28   :  { %s6267_s18 = scalar_lea.hbm %s8190_s3, 24576 }
  0x29   :  { %p6268_p2 = scmp.ne.s32.totalorder %s8190_s3, %s6267_s18  ;;  %p6271_p3 = scmp.lt.u32.totalorder %s6267_s18, %s8190_s3 }
  0x2b   :  { %p6273_p4 = pnand %p6271_p3, %p6268_p2 }
  0x2d   :  { %6276 = shalt.err (!%p6273_p4)
}
  0x2e   :  { %s6277_s0 = scalar_lea.vmem %s51_s11, 24576  ;;  %p6282_p6 = scmp.lt.s32.totalorder %s51_s11, %s51_s11 }
  0x2f   :  { %p6278_p5 = scmp.ne.s32.totalorder %s51_s11, %s6277_s0  ;;  %p6283_p7 = scmp.lt.s32.totalorder %s6277_s0, %s6277_s0 }
  0x31   :  { %p6284_p8 = por %p6283_p7, %p6282_p6 }
  0x33   :  { %p6285_p9 = pnand %p6284_p8, %p6278_p5 }
  0x35   :  { %6288 = shalt.err (!%p6285_p9)
}
  0x36   :  { %56 = dma.hbm_to_vmem [thread:$0]  %s8190_s3, 24576, %s51_s11, [#allocation7], %s6366_s15, %s6366_s15, %s6367_s16  }
  0x37   :  { %s6289_s27 = scalar_lea.hbm %s8192_s5, 4096 }
  0x38   :  { %p6290_p10 = scmp.ne.s32.totalorder %s8192_s5, %s6289_s27  ;;  %p6293_p11 = scmp.lt.u32.totalorder %s6289_s27, %s8192_s5 }
  0x3a   :  { %p6295_p12 = pnand %p6293_p11, %p6290_p10 }
  0x3c   :  { %6298 = shalt.err (!%p6295_p12)
}
  0x3d   :  { %s6299_s12 = scalar_lea.vmem %s6453_s13, 4096  ;;  %p6304_p0 = scmp.lt.s32.totalorder %s6453_s13, %s6453_s13 }
  0x3e   :  { %p6300_p13 = scmp.ne.s32.totalorder %s6453_s13, %s6299_s12  ;;  %p6305_p1 = scmp.lt.s32.totalorder %s6299_s12, %s6299_s12 }
  0x40   :  { %p6306_p2 = por %p6305_p1, %p6304_p0 }
  0x42   :  { %p6307_p3 = pnand %p6306_p2, %p6300_p13 }
  0x44   :  { %6310 = shalt.err (!%p6307_p3)
}
  0x45   :  { %70 = dma.hbm_to_vmem [thread:$0]  %s8192_s5, 4096, %s6453_s13, [#allocation10], %s6369_s1, %s6369_s1, %s6370_s28  }
  0x46   :  { %6355 = dma.done.wait [#allocation4], 1024  }
  0x47   :  { %6356 = vsyncadd [#allocation4], 4294966272 }
  0x48   :  { %6357 = dma.done.wait [#allocation7], 36864  }
  0x49   :  { %6358 = vsyncadd [#allocation7], 4294930432 }
  0x4a   :  { %6359 = dma.done.wait [#allocation10], 4096  }
  0x4b   :  { %6360 = vsyncadd [#allocation10], 4294963200  ;;  %v6373_v0 = vmov 0.0   ;;  %v94_v1 = vld [vmem:[#allocation6 + $0x8] sm:$0xff]  ;;  %v100_v2 = vld [vmem:[#allocation6 + $0x38] sm:$0xff] }
  0x4c   :  { %398 = vmatprep.mubr.f32.mxu1 %v6373_v0  ;;  %285 = vmatprep.mubr.f32.mxu0 %v6373_v0  ;;  %v96_v3 = vld [vmem:[#allocation6 + $0x18] sm:$0xff]  ;;  %v4410_v4 = vpack.c.bf16 %v100_v2, %v94_v1  ;;  %v102_v5 = vld [vmem:[#allocation6 + $0x48] sm:$0xff]  ;;  %v93_v6 = vld [vmem:[#allocation6] sm:$0xff] }
  0x4d   :  { %v99_v7 = vld [vmem:[#allocation6 + $0x30] sm:$0xff]  ;;  %v4442_v8 = vpack.c.bf16 %v102_v5, %v96_v3  ;;  %v101_v11 = vld [vmem:[#allocation6 + $0x40] sm:$0xff]  ;;  %v106_v12 = vld [vmem:[#allocation6 + $0x68] sm:$0xff] }
  0x4e   :  { %v4412_v9 = vpack.c.bf16 %v99_v7, %v93_v6  ;;  %v95_v10 = vld [vmem:[#allocation6 + $0x10] sm:$0xff]  ;;  %4411 = vmatprep.subr.bf16.mxu0 %v4410_v4  ;;  %v112_v14 = vld [vmem:[#allocation6 + $0x98] sm:$0xff]  ;;  %v114_v16 = vld [vmem:[#allocation6 + $0xa8] sm:$0xff] }
  0x4f   :  { %v4444_v13 = vpack.c.bf16 %v101_v11, %v95_v10  ;;  %v108_v15 = vld [vmem:[#allocation6 + $0x78] sm:$0xff]  ;;  %4443 = vmatprep.subr.bf16.mxu1 %v4442_v8  ;;  %v4414_v17 = vpack.c.bf16 %v112_v14, %v106_v12  ;;  %v105_v19 = vld [vmem:[#allocation6 + $0x60] sm:$0xff]  ;;  %v111_v20 = vld [vmem:[#allocation6 + $0x90] sm:$0xff] }
  0x50   :  { %4413 = vmatpush1.bf16.msra.mxu0 %v4412_v9  ;;  %v4446_v18 = vpack.c.bf16 %v114_v16, %v108_v15  ;;  %v107_v21 = vld [vmem:[#allocation6 + $0x70] sm:$0xff]  ;;  %v4416_v22 = vpack.c.bf16 %v111_v20, %v105_v19  ;;  %v113_v23 = vld [vmem:[#allocation6 + $0xa0] sm:$0xff]  ;;  %v118_v24 = vld [vmem:[#allocation6 + $0xc8] sm:$0xff] }
  0x51   :  { %4445 = vmatpush1.bf16.msra.mxu1 %v4444_v13  ;;  %v124_v25 = vld [vmem:[#allocation6 + $0xf8] sm:$0xff]  ;;  %4415 = vmatprep.subr.bf16.mxu0 %v4414_v17  ;;  %v4448_v26 = vpack.c.bf16 %v113_v23, %v107_v21  ;;  %v126_v29 = vld [vmem:[#allocation6 + $0x108] sm:$0xff]  ;;  %v117_v30 = vld [vmem:[#allocation6 + $0xc0] sm:$0xff] }
  0x52   :  { %4447 = vmatprep.subr.bf16.mxu1 %v4446_v18  ;;  %v4418_v27 = vpack.c.bf16 %v124_v25, %v118_v24  ;;  %v120_v28 = vld [vmem:[#allocation6 + $0xd8] sm:$0xff]  ;;  %v123_v32 = vld [vmem:[#allocation6 + $0xf0] sm:$0xff]  ;;  %v125_v34 = vld [vmem:[#allocation6 + $0x100] sm:$0xff] }
  0x53   :  { %v4450_v31 = vpack.c.bf16 %v126_v29, %v120_v28  ;;  %v119_v33 = vld [vmem:[#allocation6 + $0xd0] sm:$0xff]  ;;  %v4420_v35 = vpack.c.bf16 %v123_v32, %v117_v30  ;;  %v130_v36 = vld [vmem:[#allocation6 + $0x128] sm:$0xff]  ;;  %v136_v37 = vld [vmem:[#allocation6 + $0x158] sm:$0xff] }
  0x54   :  { %4417 = vmatpush1.bf16.msra.mxu0 %v4416_v22  ;;  %v132_v38 = vld [vmem:[#allocation6 + $0x138] sm:$0xff]  ;;  %v4452_v39 = vpack.c.bf16 %v125_v34, %v119_v33  ;;  %v4422_v40 = vpack.c.bf16 %v136_v37, %v130_v36  ;;  %v138_v41 = vld [vmem:[#allocation6 + $0x168] sm:$0xff]  ;;  %v129_v42 = vld [vmem:[#allocation6 + $0x120] sm:$0xff] }
  0x55   :  { %4449 = vmatpush1.bf16.msra.mxu1 %v4448_v26  ;;  %4419 = vmatprep.subr.bf16.mxu0 %v4418_v27  ;;  %v135_v43 = vld [vmem:[#allocation6 + $0x150] sm:$0xff]  ;;  %v4454_v44 = vpack.c.bf16 %v138_v41, %v132_v38  ;;  %v137_v46 = vld [vmem:[#allocation6 + $0x160] sm:$0xff]  ;;  %v142_v47 = vld [vmem:[#allocation6 + $0x188] sm:$0xff] }
  0x56   :  { %4451 = vmatprep.subr.bf16.mxu1 %v4450_v31  ;;  %v131_v45 = vld [vmem:[#allocation6 + $0x130] sm:$0xff]  ;;  %v148_v48 = vld [vmem:[#allocation6 + $0x1b8] sm:$0xff]  ;;  %v150_v50 = vld [vmem:[#allocation6 + $0x1c8] sm:$0xff]  ;;  %v4424_v51 = vpack.c.bf16 %v135_v43, %v129_v42 }
  0x57   :  { %v144_v49 = vld [vmem:[#allocation6 + $0x198] sm:$0xff]  ;;  %v4456_v52 = vpack.c.bf16 %v137_v46, %v131_v45  ;;  %v4426_v53 = vpack.c.bf16 %v148_v48, %v142_v47  ;;  %v141_v54 = vld [vmem:[#allocation6 + $0x180] sm:$0xff]  ;;  %v147_v55 = vld [vmem:[#allocation6 + $0x1b0] sm:$0xff] }
  0x58   :  { %4421 = vmatpush1.bf16.msra.mxu0 %v4420_v35  ;;  %v143_v56 = vld [vmem:[#allocation6 + $0x190] sm:$0xff]  ;;  %v4458_v57 = vpack.c.bf16 %v150_v50, %v144_v49  ;;  %v149_v58 = vld [vmem:[#allocation6 + $0x1c0] sm:$0xff]  ;;  %v154_v59 = vld [vmem:[#allocation6 + $0x1e8] sm:$0xff]  ;;  %v4428_v63 = vpack.c.bf16 %v147_v55, %v141_v54 }
  0x59   :  { %4453 = vmatpush1.bf16.msra.mxu1 %v4452_v39  ;;  %4423 = vmatprep.subr.bf16.mxu0 %v4422_v40  ;;  %v160_v60 = vld [vmem:[#allocation6 + $0x218] sm:$0xff]  ;;  %v162_v62 = vld [vmem:[#allocation6 + $0x228] sm:$0xff]  ;;  %v4460_v1 = vpack.c.bf16 %v149_v58, %v143_v56  ;;  %v153_v3 = vld [vmem:[#allocation6 + $0x1e0] sm:$0xff] }
  0x5a   :  { %4455 = vmatprep.subr.bf16.mxu1 %v4454_v44  ;;  %v156_v61 = vld [vmem:[#allocation6 + $0x1f8] sm:$0xff]  ;;  %v4430_v2 = vpack.c.bf16 %v160_v60, %v154_v59  ;;  %v159_v4 = vld [vmem:[#allocation6 + $0x210] sm:$0xff]  ;;  %v161_v7 = vld [vmem:[#allocation6 + $0x220] sm:$0xff] }
  0x5b   :  { %v155_v5 = vld [vmem:[#allocation6 + $0x1f0] sm:$0xff]  ;;  %v4462_v6 = vpack.c.bf16 %v162_v62, %v156_v61  ;;  %v166_v8 = vld [vmem:[#allocation6 + $0x248] sm:$0xff]  ;;  %v172_v9 = vld [vmem:[#allocation6 + $0x278] sm:$0xff]  ;;  %v4432_v12 = vpack.c.bf16 %v159_v4, %v153_v3 }
  0x5c   :  { %4425 = vmatpush1.bf16.msra.mxu0 %v4424_v51  ;;  %v168_v10 = vld [vmem:[#allocation6 + $0x258] sm:$0xff]  ;;  %v174_v11 = vld [vmem:[#allocation6 + $0x288] sm:$0xff]  ;;  %v4464_v13 = vpack.c.bf16 %v161_v7, %v155_v5  ;;  %v4434_v14 = vpack.c.bf16 %v172_v9, %v166_v8  ;;  %v165_v15 = vld [vmem:[#allocation6 + $0x240] sm:$0xff] }
  0x5d   :  { %4457 = vmatpush1.bf16.msra.mxu1 %v4456_v52  ;;  %4427 = vmatprep.subr.bf16.mxu0 %v4426_v53  ;;  %v171_v16 = vld [vmem:[#allocation6 + $0x270] sm:$0xff]  ;;  %v4466_v18 = vpack.c.bf16 %v174_v11, %v168_v10  ;;  %v173_v19 = vld [vmem:[#allocation6 + $0x280] sm:$0xff]  ;;  %v178_v20 = vld [vmem:[#allocation6 + $0x2a8] sm:$0xff] }
  0x5e   :  { %4459 = vmatprep.subr.bf16.mxu1 %v4458_v57  ;;  %v167_v17 = vld [vmem:[#allocation6 + $0x250] sm:$0xff]  ;;  %v184_v21 = vld [vmem:[#allocation6 + $0x2d8] sm:$0xff]  ;;  %v186_v23 = vld [vmem:[#allocation6 + $0x2e8] sm:$0xff]  ;;  %v4436_v24 = vpack.c.bf16 %v171_v16, %v165_v15 }
  0x5f   :  { %v180_v22 = vld [vmem:[#allocation6 + $0x2b8] sm:$0xff]  ;;  %v4468_v25 = vpack.c.bf16 %v173_v19, %v167_v17  ;;  %v4438_v26 = vpack.c.bf16 %v184_v21, %v178_v20  ;;  %v177_v27 = vld [vmem:[#allocation6 + $0x2a0] sm:$0xff]  ;;  %v183_v28 = vld [vmem:[#allocation6 + $0x2d0] sm:$0xff] }
  0x60   :  { %4429 = vmatpush1.bf16.msra.mxu0 %v4428_v63  ;;  %v179_v29 = vld [vmem:[#allocation6 + $0x2b0] sm:$0xff]  ;;  %v4470_v30 = vpack.c.bf16 %v186_v23, %v180_v22  ;;  %v185_v31 = vld [vmem:[#allocation6 + $0x2e0] sm:$0xff]  ;;  %v98_v32 = vld [vmem:[#allocation6 + $0x28] sm:$0xff]  ;;  %v4440_v36 = vpack.c.bf16 %v183_v28, %v177_v27 }
  0x61   :  { %4461 = vmatpush1.bf16.msra.mxu1 %v4460_v1  ;;  %4431 = vmatprep.subr.bf16.mxu0 %v4430_v2  ;;  %v104_v33 = vld [vmem:[#allocation6 + $0x58] sm:$0xff]  ;;  %v619_v35 = vld [vmem:[#allocation8 + $0x48] sm:$0xff]  ;;  %v4472_v37 = vpack.c.bf16 %v185_v31, %v179_v29  ;;  %v97_v39 = vld [vmem:[#allocation6 + $0x20] sm:$0xff] }
  0x62   :  { %4463 = vmatprep.subr.bf16.mxu1 %v4462_v6  ;;  %v613_v34 = vld [vmem:[#allocation8 + $0x18] sm:$0xff]  ;;  %v4474_v38 = vpack.c.bf16 %v104_v33, %v98_v32  ;;  %v103_v40 = vld [vmem:[#allocation6 + $0x50] sm:$0xff]  ;;  %v618_v43 = vld [vmem:[#allocation8 + $0x40] sm:$0xff] }
  0x63   :  { %v4570_v41 = vpack.c.bf16 %v619_v35, %v613_v34  ;;  %v612_v42 = vld [vmem:[#allocation8 + $0x10] sm:$0xff]  ;;  %v110_v44 = vld [vmem:[#allocation6 + $0x88] sm:$0xff]  ;;  %v116_v45 = vld [vmem:[#allocation6 + $0xb8] sm:$0xff]  ;;  %v4476_v49 = vpack.c.bf16 %v103_v40, %v97_v39 }
  0x64   :  { %4433 = vmatpush1.bf16.msra.mxu0 %v4432_v12  ;;  %v625_v46 = vld [vmem:[#allocation8 + $0x78] sm:$0xff]  ;;  %v631_v47 = vld [vmem:[#allocation8 + $0xa8] sm:$0xff]  ;;  %v6492_v48 = vld [vmem:[#allocation3] sm:$0xff]  ;;  %v4572_v50 = vpack.c.bf16 %v618_v43, %v612_v42  ;;  %v4478_v54 = vpack.c.bf16 %v116_v45, %v110_v44 }
  0x65   :  { %4465 = vmatpush1.bf16.msra.mxu1 %v4464_v13  ;;  %4435 = vmatprep.subr.bf16.mxu0 %v4434_v14  ;;  %v109_v51 = vld [vmem:[#allocation6 + $0x80] sm:$0xff]  ;;  %v115_v52 = vld [vmem:[#allocation6 + $0xb0] sm:$0xff]  ;;  %v4574_v55 = vpack.c.bf16 %v631_v47, %v625_v46  ;;  %v122_v57 = vld [vmem:[#allocation6 + $0xe8] sm:$0xff] }
  0x66   :  { %4467 = vmatprep.subr.bf16.mxu1 %v4466_v18  ;;  %v624_v53 = vld [vmem:[#allocation8 + $0x70] sm:$0xff]  ;;  %v630_v56 = vld [vmem:[#allocation8 + $0xa0] sm:$0xff]  ;;  %v128_v58 = vld [vmem:[#allocation6 + $0x118] sm:$0xff]  ;;  %v4480_v62 = vpack.c.bf16 %v115_v52, %v109_v51 }
  0x67   :  { %v637_v59 = vld [vmem:[#allocation8 + $0xd8] sm:$0xff]  ;;  %v643_v60 = vld [vmem:[#allocation8 + $0x108] sm:$0xff]  ;;  %v4576_v63 = vpack.c.bf16 %v630_v56, %v624_v53  ;;  %v4482_v1 = vpack.c.bf16 %v128_v58, %v122_v57  ;;  %v121_v2 = vld [vmem:[#allocation6 + $0xe0] sm:$0xff] }
  0x68   :  { %4437 = vmatpush1.bf16.msra.mxu0 %v4436_v24  ;;  %v6496_v61 = vld [vmem:[#allocation3 + $0x8] sm:$0xff]  ;;  %v127_v3 = vld [vmem:[#allocation6 + $0x110] sm:$0xff]  ;;  %v4578_v5 = vpack.c.bf16 %v643_v60, %v637_v59  ;;  %v642_v6 = vld [vmem:[#allocation8 + $0x100] sm:$0xff] }
  0x69   :  { %4469 = vmatpush1.bf16.msra.mxu1 %v4468_v25  ;;  %4439 = vmatprep.subr.bf16.mxu0 %v4438_v26  ;;  %v636_v4 = vld [vmem:[#allocation8 + $0xd0] sm:$0xff]  ;;  %v134_v7 = vld [vmem:[#allocation6 + $0x148] sm:$0xff]  ;;  %v140_v8 = vld [vmem:[#allocation6 + $0x178] sm:$0xff]  ;;  %v4484_v12 = vpack.c.bf16 %v127_v3, %v121_v2 }
  0x6a   :  { %4471 = vmatprep.subr.bf16.mxu1 %v4470_v30  ;;  %v649_v9 = vld [vmem:[#allocation8 + $0x138] sm:$0xff]  ;;  %v655_v10 = vld [vmem:[#allocation8 + $0x168] sm:$0xff]  ;;  %v6502_v11 = vld [vmem:[#allocation3 + $0x10] sm:$0xff]  ;;  %v4580_v13 = vpack.c.bf16 %v642_v6, %v636_v4  ;;  %v4486_v14 = vpack.c.bf16 %v140_v8, %v134_v7 }
  0x6b   :  { %v133_v15 = vld [vmem:[#allocation6 + $0x140] sm:$0xff]  ;;  %v139_v16 = vld [vmem:[#allocation6 + $0x170] sm:$0xff]  ;;  %v4582_v18 = vpack.c.bf16 %v655_v10, %v649_v9  ;;  %v146_v20 = vld [vmem:[#allocation6 + $0x1a8] sm:$0xff] }
  0x6c   :  { %4441 = vmatpush1.bf16.msra.mxu0 %v4440_v36  ;;  %v648_v17 = vld [vmem:[#allocation8 + $0x130] sm:$0xff]  ;;  %v654_v19 = vld [vmem:[#allocation8 + $0x160] sm:$0xff]  ;;  %v152_v21 = vld [vmem:[#allocation6 + $0x1d8] sm:$0xff]  ;;  %v4488_v25 = vpack.c.bf16 %v139_v16, %v133_v15 }
  0x6d   :  { %4473 = vmatpush1.bf16.msra.mxu1 %v4472_v37  ;;  %4475 = vmatprep.subr.bf16.mxu0 %v4474_v38  ;;  %v661_v22 = vld [vmem:[#allocation8 + $0x198] sm:$0xff]  ;;  %v667_v23 = vld [vmem:[#allocation8 + $0x1c8] sm:$0xff]  ;;  %v4584_v26 = vpack.c.bf16 %v654_v19, %v648_v17  ;;  %v4490_v27 = vpack.c.bf16 %v152_v21, %v146_v20  ;;  %v145_v28 = vld [vmem:[#allocation6 + $0x1a0] sm:$0xff] }
  0x6e   :  { %4571 = vmatprep.subr.bf16.mxu1 %v4570_v41  ;;  %v6508_v24 = vld [vmem:[#allocation3 + $0x18] sm:$0xff]  ;;  %v151_v29 = vld [vmem:[#allocation6 + $0x1d0] sm:$0xff]  ;;  %v4586_v31 = vpack.c.bf16 %v667_v23, %v661_v22  ;;  %v666_v32 = vld [vmem:[#allocation8 + $0x1c0] sm:$0xff] }
  0x6f   :  { %286 = vmatmul.mubr.f32.vlgmr.msra.gmra.mrb[0].mxu0 %v6492_v48  ;;  %v660_v30 = vld [vmem:[#allocation8 + $0x190] sm:$0xff]  ;;  %v158_v33 = vld [vmem:[#allocation6 + $0x208] sm:$0xff]  ;;  %v164_v34 = vld [vmem:[#allocation6 + $0x238] sm:$0xff]  ;;  %v4492_v38 = vpack.c.bf16 %v151_v29, %v145_v28 }
  0x70   :  { %399 = vmatmul.mubr.f32.vlgmr.msra.gmra.mrb[0].mxu1 %v6492_v48  ;;  %4477 = vmatpush1.bf16.msra.mxu0 %v4476_v49  ;;  %v673_v35 = vld [vmem:[#allocation8 + $0x1f8] sm:$0xff]  ;;  %v679_v36 = vld [vmem:[#allocation8 + $0x228] sm:$0xff]  ;;  %v6514_v37 = vld [vmem:[#allocation3 + $0x20] sm:$0xff]  ;;  %v4588_v39 = vpack.c.bf16 %v666_v32, %v660_v30  ;;  %v4494_v40 = vpack.c.bf16 %v164_v34, %v158_v33 }
  0x71   :  { %4573 = vmatpush1.bf16.msra.mxu1 %v4572_v50  ;;  %291 = vmatprep.mubr.f32.mxu0 %v6373_v0  ;;  %v157_v41 = vld [vmem:[#allocation6 + $0x200] sm:$0xff]  ;;  %v163_v42 = vld [vmem:[#allocation6 + $0x230] sm:$0xff]  ;;  %v4590_v44 = vpack.c.bf16 %v679_v36, %v673_v35  ;;  %v170_v46 = vld [vmem:[#allocation6 + $0x268] sm:$0xff] }
  0x72   :  { %4479 = vmatprep.subr.bf16.mxu0 %v4478_v54  ;;  %4575 = vmatprep.subr.bf16.mxu1 %v4574_v55  ;;  %v672_v43 = vld [vmem:[#allocation8 + $0x1f0] sm:$0xff]  ;;  %v678_v45 = vld [vmem:[#allocation8 + $0x220] sm:$0xff]  ;;  %v176_v47 = vld [vmem:[#allocation6 + $0x298] sm:$0xff]  ;;  %v4496_v52 = vpack.c.bf16 %v163_v42, %v157_v41 }
  0x73   :  { %292 = vmatmul.mubr.f32.gmra.mrb[2].mxu0 %v6496_v61  ;;  %404 = vmatprep.mubr.f32.mxu1 %v6373_v0  ;;  %v685_v49 = vld [vmem:[#allocation8 + $0x258] sm:$0xff]  ;;  %v691_v50 = vld [vmem:[#allocation8 + $0x288] sm:$0xff]  ;;  %v4592_v53 = vpack.c.bf16 %v678_v45, %v672_v43  ;;  %v4498_v54 = vpack.c.bf16 %v176_v47, %v170_v46  ;;  %v169_v55 = vld [vmem:[#allocation6 + $0x260] sm:$0xff] }
  0x74   :  { %4481 = vmatpush1.bf16.msra.mxu0 %v4480_v62  ;;  %297 = vmatprep.mubr.f32.mxu0 %v6373_v0  ;;  %v6520_v51 = vld [vmem:[#allocation3 + $0x28] sm:$0xff]  ;;  %v175_v56 = vld [vmem:[#allocation6 + $0x290] sm:$0xff]  ;;  %v4594_v58 = vpack.c.bf16 %v691_v50, %v685_v49  ;;  %v690_v59 = vld [vmem:[#allocation8 + $0x280] sm:$0xff] }
  0x75   :  { %4577 = vmatpush1.bf16.msra.mxu1 %v4576_v63  ;;  %4483 = vmatprep.subr.bf16.mxu0 %v4482_v1  ;;  %v684_v57 = vld [vmem:[#allocation8 + $0x250] sm:$0xff]  ;;  %v182_v60 = vld [vmem:[#allocation6 + $0x2c8] sm:$0xff]  ;;  %v188_v62 = vld [vmem:[#allocation6 + $0x2f8] sm:$0xff]  ;;  %v4500_v3 = vpack.c.bf16 %v175_v56, %v169_v55 }
  0x76   :  { %4579 = vmatprep.subr.bf16.mxu1 %v4578_v5  ;;  %405 = vmatmul.mubr.f32.gmra.mrb[2].mxu1 %v6496_v61  ;;  %v697_v63 = vld [vmem:[#allocation8 + $0x2b8] sm:$0xff]  ;;  %v703_v1 = vld [vmem:[#allocation8 + $0x2e8] sm:$0xff]  ;;  %v6526_v2 = vld [vmem:[#allocation3 + $0x30] sm:$0xff]  ;;  %v4596_v4 = vpack.c.bf16 %v690_v59, %v684_v57  ;;  %v4502_v5 = vpack.c.bf16 %v188_v62, %v182_v60 }
  0x77   :  { %298 = vmatmul.mubr.f32.gmra.mrb[4].mxu0 %v6502_v11  ;;  %410 = vmatprep.mubr.f32.mxu1 %v6373_v0  ;;  %v181_v6 = vld [vmem:[#allocation6 + $0x2c0] sm:$0xff]  ;;  %v187_v7 = vld [vmem:[#allocation6 + $0x2f0] sm:$0xff]  ;;  %v4598_v9 = vpack.c.bf16 %v703_v1, %v697_v63  ;;  %v715_v15 = vld [vmem:[#allocation8 + $0x348] sm:$0xff] }
  0x78   :  { %4485 = vmatpush1.bf16.msra.mxu0 %v4484_v12  ;;  %303 = vmatprep.mubr.f32.mxu0 %v6373_v0  ;;  %v696_v8 = vld [vmem:[#allocation8 + $0x2b0] sm:$0xff]  ;;  %v702_v10 = vld [vmem:[#allocation8 + $0x2e0] sm:$0xff]  ;;  %v611_v12 = vld [vmem:[#allocation8 + $0x8] sm:$0xff]  ;;  %v4504_v17 = vpack.c.bf16 %v187_v7, %v181_v6 }
  0x79   :  { %4581 = vmatpush1.bf16.msra.mxu1 %v4580_v13  ;;  %4487 = vmatprep.subr.bf16.mxu0 %v4486_v14  ;;  %v617_v13 = vld [vmem:[#allocation8 + $0x38] sm:$0xff]  ;;  %v610_v20 = vld [vmem:[#allocation8] sm:$0xff]  ;;  %v616_v21 = vld [vmem:[#allocation8 + $0x30] sm:$0xff] }
  0x7a   :  { %4583 = vmatprep.subr.bf16.mxu1 %v4582_v18  ;;  %411 = vmatmul.mubr.f32.gmra.mrb[4].mxu1 %v6502_v11  ;;  %v709_v14 = vld [vmem:[#allocation8 + $0x318] sm:$0xff]  ;;  %v4600_v18 = vpack.c.bf16 %v702_v10, %v696_v8  ;;  %v6534_v19 = vpack.c.bf16 %v617_v13, %v611_v12  ;;  %v708_v22 = vld [vmem:[#allocation8 + $0x310] sm:$0xff]  ;;  %v727_v29 = vld [vmem:[#allocation8 + $0x3a8] sm:$0xff]  ;;  %v6540_v30 = vpack.c.bf16 %v616_v21, %v610_v20 }
  0x7b   :  { %304 = vmatmul.mubr.f32.gmra.mrb[6].mxu0 %v6508_v24  ;;  %416 = vmatprep.mubr.f32.mxu1 %v6373_v0  ;;  %v6532_v16 = vld [vmem:[#allocation3 + $0x38] sm:$0xff]  ;;  %v4602_v23 = vpack.c.bf16 %v715_v15, %v709_v14  ;;  %v622_v33 = vld [vmem:[#allocation8 + $0x60] sm:$0xff]  ;;  %v628_v34 = vld [vmem:[#allocation8 + $0x90] sm:$0xff] }
  0x7c   :  { %4489 = vmatpush1.bf16.msra.mxu0 %v4488_v25  ;;  %309 = vmatprep.mubr.f32.mxu0 %v6373_v0  ;;  %v714_v25 = vld [vmem:[#allocation8 + $0x340] sm:$0xff]  ;;  %v721_v28 = vld [vmem:[#allocation8 + $0x378] sm:$0xff]  ;;  %v720_v35 = vld [vmem:[#allocation8 + $0x370] sm:$0xff]  ;;  %v6549_v43 = vpack.c.bf16 %v628_v34, %v622_v33 }
  0x7d   :  { %4585 = vmatpush1.bf16.msra.mxu1 %v4584_v26  ;;  %4491 = vmatprep.subr.bf16.mxu0 %v4490_v27  ;;  %v623_v26 = vld [vmem:[#allocation8 + $0x68] sm:$0xff]  ;;  %v629_v27 = vld [vmem:[#allocation8 + $0x98] sm:$0xff]  ;;  %v4606_v36 = vpack.c.bf16 %v727_v29, %v721_v28  ;;  %v634_v46 = vld [vmem:[#allocation8 + $0xc0] sm:$0xff] }
  0x7e   :  { %4587 = vmatprep.subr.bf16.mxu1 %v4586_v31  ;;  %417 = vmatmul.mubr.f32.gmra.mrb[6].mxu1 %v6508_v24  ;;  %v4604_v31 = vpack.c.bf16 %v714_v25, %v708_v22  ;;  %v6543_v32 = vpack.c.bf16 %v629_v27, %v623_v26  ;;  %v733_v41 = vld [vmem:[#allocation8 + $0x3d8] sm:$0xff]  ;;  %v739_v42 = vld [vmem:[#allocation8 + $0x408] sm:$0xff]  ;;  %v640_v47 = vld [vmem:[#allocation8 + $0xf0] sm:$0xff] }
  0x7f   :  { %310 = vmatmul.mubr.f32.gmra.mrb[8].mxu0 %v6514_v37  ;;  %422 = vmatprep.mubr.f32.mxu1 %v6373_v0  ;;  %v732_v49 = vld [vmem:[#allocation8 + $0x3d0] sm:$0xff]  ;;  %v738_v50 = vld [vmem:[#allocation8 + $0x400] sm:$0xff]  ;;  %v751_v55 = vld [vmem:[#allocation8 + $0x468] sm:$0xff]  ;;  %v6557_v56 = vpack.c.bf16 %v640_v47, %v634_v46 }
  0x80   :  { %4493 = vmatpush1.bf16.msra.mxu0 %v4492_v38  ;;  %315 = vmatprep.mubr.f32.mxu0 %v6373_v0  ;;  %v726_v38 = vld [vmem:[#allocation8 + $0x3a0] sm:$0xff]  ;;  %v4612_v57 = vpack.c.bf16 %v738_v50, %v732_v49  ;;  %v652_v60 = vld [vmem:[#allocation8 + $0x150] sm:$0xff]  ;;  %v671_v15 = vld [vmem:[#allocation8 + $0x1e8] sm:$0xff] }
  0x81   :  { %4589 = vmatpush1.bf16.msra.mxu1 %v4588_v39  ;;  %4495 = vmatprep.subr.bf16.mxu0 %v4494_v40  ;;  %v635_v39 = vld [vmem:[#allocation8 + $0xc8] sm:$0xff]  ;;  %v641_v40 = vld [vmem:[#allocation8 + $0xf8] sm:$0xff]  ;;  %v646_v59 = vld [vmem:[#allocation8 + $0x120] sm:$0xff] }
  0x82   :  { %4591 = vmatprep.subr.bf16.mxu1 %v4590_v44  ;;  %423 = vmatmul.mubr.f32.gmra.mrb[8].mxu1 %v6514_v37  ;;  %v4608_v44 = vpack.c.bf16 %v726_v38, %v720_v35  ;;  %v6553_v45 = vpack.c.bf16 %v641_v40, %v635_v39  ;;  %v744_v62 = vld [vmem:[#allocation8 + $0x430] sm:$0xff]  ;;  %v750_v1 = vld [vmem:[#allocation8 + $0x460] sm:$0xff]  ;;  %v6565_v6 = vpack.c.bf16 %v652_v60, %v646_v59  ;;  %v683_v29 = vld [vmem:[#allocation8 + $0x248] sm:$0xff] }
  0x83   :  { %316 = vmatmul.mubr.f32.gmra.mrb[10].mxu0 %v6520_v51  ;;  %428 = vmatprep.mubr.f32.mxu1 %v6373_v0  ;;  %v4616_v7 = vpack.c.bf16 %v750_v1, %v744_v62  ;;  %v664_v10 = vld [vmem:[#allocation8 + $0x1b0] sm:$0xff]  ;;  %v762_v14 = vld [vmem:[#allocation8 + $0x4c0] sm:$0xff]  ;;  %v787_v33 = vld [vmem:[#allocation8 + $0x588] sm:$0xff] }
  0x84   :  { %4497 = vmatpush1.bf16.msra.mxu0 %v4496_v52  ;;  %321 = vmatprep.mubr.f32.mxu0 %v6373_v0  ;;  %v647_v52 = vld [vmem:[#allocation8 + $0x128] sm:$0xff]  ;;  %v756_v12 = vld [vmem:[#allocation8 + $0x490] sm:$0xff]  ;;  %v774_v28 = vld [vmem:[#allocation8 + $0x520] sm:$0xff] }
  0x85   :  { %4593 = vmatpush1.bf16.msra.mxu1 %v4592_v53  ;;  %4499 = vmatprep.subr.bf16.mxu0 %v4498_v54  ;;  %v653_v53 = vld [vmem:[#allocation8 + $0x158] sm:$0xff]  ;;  %v4620_v21 = vpack.c.bf16 %v762_v14, %v756_v12  ;;  %v676_v25 = vld [vmem:[#allocation8 + $0x210] sm:$0xff]  ;;  %v682_v38 = vld [vmem:[#allocation8 + $0x240] sm:$0xff] }
  0x86   :  { %4595 = vmatprep.subr.bf16.mxu1 %v4594_v58  ;;  %429 = vmatmul.mubr.f32.gmra.mrb[10].mxu1 %v6520_v51  ;;  %v745_v54 = vld [vmem:[#allocation8 + $0x438] sm:$0xff]  ;;  %v6561_v58 = vpack.c.bf16 %v653_v53, %v647_v52  ;;  %v768_v26 = vld [vmem:[#allocation8 + $0x4f0] sm:$0xff]  ;;  %v799_v47 = vld [vmem:[#allocation8 + $0x5e8] sm:$0xff] }
  0x87   :  { %322 = vmatmul.mubr.f32.gmra.mrb[12].mxu0 %v6526_v2  ;;  %434 = vmatprep.mubr.f32.mxu1 %v6373_v0  ;;  %v4614_v63 = vpack.c.bf16 %v751_v55, %v745_v54  ;;  %v4624_v35 = vpack.c.bf16 %v774_v28, %v768_v26  ;;  %v688_v39 = vld [vmem:[#allocation8 + $0x270] sm:$0xff]  ;;  %v793_v46 = vld [vmem:[#allocation8 + $0x5b8] sm:$0xff]  ;;  %v694_v52 = vld [vmem:[#allocation8 + $0x2a0] sm:$0xff] }
  0x88   :  { %4501 = vmatpush1.bf16.msra.mxu0 %v4500_v3  ;;  %327 = vmatprep.mubr.f32.mxu0 %v6373_v0  ;;  %v659_v3 = vld [vmem:[#allocation8 + $0x188] sm:$0xff]  ;;  %v780_v40 = vld [vmem:[#allocation8 + $0x550] sm:$0xff]  ;;  %v6589_v49 = vpack.c.bf16 %v688_v39, %v682_v38  ;;  %v4630_v55 = vpack.c.bf16 %v799_v47, %v793_v46  ;;  %v621_v62 = vld [vmem:[#allocation8 + $0x58] sm:$0xff] }
  0x89   :  { %4597 = vmatpush1.bf16.msra.mxu1 %v4596_v4  ;;  %4503 = vmatprep.subr.bf16.mxu0 %v4502_v5  ;;  %v757_v4 = vld [vmem:[#allocation8 + $0x498] sm:$0xff]  ;;  %v763_v5 = vld [vmem:[#allocation8 + $0x4c8] sm:$0xff]  ;;  %v700_v53 = vld [vmem:[#allocation8 + $0x2d0] sm:$0xff] }
  0x8a   :  { %4599 = vmatprep.subr.bf16.mxu1 %v4598_v9  ;;  %435 = vmatmul.mubr.f32.gmra.mrb[12].mxu1 %v6526_v2  ;;  %v658_v9 = vld [vmem:[#allocation8 + $0x180] sm:$0xff]  ;;  %v4618_v13 = vpack.c.bf16 %v763_v5, %v757_v4  ;;  %v792_v54 = vld [vmem:[#allocation8 + $0x5b0] sm:$0xff]  ;;  %v707_v59 = vld [vmem:[#allocation8 + $0x308] sm:$0xff] }
  0x8b   :  { %328 = vmatmul.mubr.f32.gmra.mrb[14].mxu0 %v6532_v16  ;;  %440 = vmatprep.mubr.f32.mxu1 %v6373_v0  ;;  %v6573_v20 = vpack.c.bf16 %v664_v10, %v658_v9  ;;  %v615_v60 = vld [vmem:[#allocation8 + $0x28] sm:$0xff]  ;;  %v712_v4 = vld [vmem:[#allocation8 + $0x330] sm:$0xff]  ;;  %v614_v5 = vld [vmem:[#allocation8 + $0x20] sm:$0xff] }
  0x8c   :  { %4505 = vmatpush1.bf16.msra.mxu0 %v4504_v17  ;;  %511 = vmatprep.mubr.f32.mxu0 %v6373_v0  ;;  %v769_v17 = vld [vmem:[#allocation8 + $0x4f8] sm:$0xff]  ;;  %v620_v9 = vld [vmem:[#allocation8 + $0x50] sm:$0xff]  ;;  %v719_v10 = vld [vmem:[#allocation8 + $0x368] sm:$0xff] }
  0x8d   :  { %4601 = vmatpush1.bf16.msra.mxu1 %v4600_v18  ;;  %4507 = vmatprep.subr.bf16.mxu0 %v6534_v19  ;;  %v775_v18 = vld [vmem:[#allocation8 + $0x528] sm:$0xff]  ;;  %v645_v28 = vld [vmem:[#allocation8 + $0x118] sm:$0xff]  ;;  %v638_v38 = vld [vmem:[#allocation8 + $0xe0] sm:$0xff] }
  0x8e   :  { %4603 = vmatprep.subr.bf16.mxu1 %v4602_v23  ;;  %441 = vmatmul.mubr.f32.gmra.mrb[14].mxu1 %v6532_v16  ;;  %v670_v23 = vld [vmem:[#allocation8 + $0x1e0] sm:$0xff]  ;;  %v4622_v27 = vpack.c.bf16 %v775_v18, %v769_v17  ;;  %v627_v12 = vld [vmem:[#allocation8 + $0x88] sm:$0xff]  ;;  %v724_v18 = vld [vmem:[#allocation8 + $0x390] sm:$0xff] }
  0x8f   :  { %512 = vmatmul.mubr.f32.vlgmr.msra.gmra.mrb[16].mxu0 %v6492_v48  ;;  %937 = vmatprep.mubr.f32.mxu1 %v6373_v0  ;;  %v4610_v48 = vpack.c.bf16 %v739_v42, %v733_v41  ;;  %v6581_v34 = vpack.c.bf16 %v676_v25, %v670_v23  ;;  %v786_v42 = vld [vmem:[#allocation8 + $0x580] sm:$0xff]  ;;  %v632_v25 = vld [vmem:[#allocation8 + $0xb0] sm:$0xff]  ;;  %v731_v26 = vld [vmem:[#allocation8 + $0x3c8] sm:$0xff] }
  0x90   :  { %4509 = vmatpush1.bf16.msra.mxu0 %v6540_v30  ;;  %517 = vmatprep.mubr.f32.mxu0 %v6373_v0  ;;  %v718_v17 = vld [vmem:[#allocation8 + $0x360] sm:$0xff] }
  0x91   :  { %4605 = vmatpush1.bf16.msra.mxu1 %v4604_v31  ;;  %4511 = vmatprep.subr.bf16.mxu0 %v6543_v32  ;;  %v781_v31 = vld [vmem:[#allocation8 + $0x558] sm:$0xff] }
  0x92   :  { %4607 = vmatprep.subr.bf16.mxu1 %v4606_v36  ;;  %v4626_v41 = vpack.c.bf16 %v787_v33, %v781_v31  ;;  %v730_v33 = vld [vmem:[#allocation8 + $0x3c0] sm:$0xff] }
  0x93   :  { %518 = vmatmul.mubr.f32.gmra.mrb[18].mxu0 %v6496_v61  ;;  %v665_v61 = vld [vmem:[#allocation8 + $0x1b8] sm:$0xff] }
  0x94   :  { %4513 = vmatpush1.bf16.msra.mxu0 %v6549_v43  ;;  %523 = vmatprep.mubr.f32.mxu0 %v6373_v0  ;;  %v6569_v8 = vpack.c.bf16 %v665_v61, %v659_v3  ;;  %v706_v61 = vld [vmem:[#allocation8 + $0x300] sm:$0xff] }
  0x95   :  { %4609 = vmatpush1.bf16.msra.mxu1 %v4608_v44  ;;  %4515 = vmatprep.subr.bf16.mxu0 %v6553_v45  ;;  %v695_v44 = vld [vmem:[#allocation8 + $0x2a8] sm:$0xff]  ;;  %v6605_v14 = vpack.c.bf16 %v712_v4, %v706_v61 }
  0x96   :  { %4611 = vmatprep.subr.bf16.mxu1 %v4610_v48  ;;  %v4628_v48 = vpack.c.bf16 %v786_v42, %v780_v40  ;;  %v644_v40 = vld [vmem:[#allocation8 + $0x110] sm:$0xff]  ;;  %v749_v42 = vld [vmem:[#allocation8 + $0x458] sm:$0xff] }
  0x97   :  { %524 = vmatmul.mubr.f32.gmra.mrb[20].mxu0 %v6502_v11  ;;  %v677_v11 = vld [vmem:[#allocation8 + $0x218] sm:$0xff]  ;;  %v4644_v47 = vpack.c.bf16 %v644_v40, %v638_v38 }
  0x98   :  { %4517 = vmatpush1.bf16.msra.mxu0 %v6557_v56  ;;  %529 = vmatprep.mubr.f32.mxu0 %v6373_v0  ;;  %v6577_v22 = vpack.c.bf16 %v677_v11, %v671_v15  ;;  %v4636_v15 = vpack.c.bf16 %v620_v9, %v614_v5  ;;  %v754_v5 = vld [vmem:[#allocation8 + $0x480] sm:$0xff]  ;;  %v693_v38 = vld [vmem:[#allocation8 + $0x298] sm:$0xff] }
  0x99   :  { %4613 = vmatpush1.bf16.msra.mxu1 %v4612_v57  ;;  %4519 = vmatprep.subr.bf16.mxu0 %v6561_v58  ;;  %v798_v57 = vld [vmem:[#allocation8 + $0x5e0] sm:$0xff] }
  0x9a   :  { %4615 = vmatprep.subr.bf16.mxu1 %v4614_v63  ;;  %v6597_v63 = vpack.c.bf16 %v700_v53, %v694_v52  ;;  %v4632_v1 = vpack.c.bf16 %v798_v57, %v792_v54  ;;  %v742_v52 = vld [vmem:[#allocation8 + $0x420] sm:$0xff]  ;;  %v748_v53 = vld [vmem:[#allocation8 + $0x450] sm:$0xff] }
  0x9b   :  { %530 = vmatmul.mubr.f32.gmra.mrb[22].mxu0 %v6508_v24  ;;  %v689_v24 = vld [vmem:[#allocation8 + $0x278] sm:$0xff]  ;;  %v650_v54 = vld [vmem:[#allocation8 + $0x140] sm:$0xff]  ;;  %v656_v57 = vld [vmem:[#allocation8 + $0x170] sm:$0xff] }
  0x9c   :  { %4521 = vmatpush1.bf16.msra.mxu0 %v6565_v6  ;;  %535 = vmatprep.mubr.f32.mxu0 %v6373_v0  ;;  %v6585_v36 = vpack.c.bf16 %v689_v24, %v683_v29  ;;  %v6613_v29 = vpack.c.bf16 %v724_v18, %v718_v17  ;;  %v4648_v61 = vpack.c.bf16 %v656_v57, %v650_v54  ;;  %v662_v9 = vld [vmem:[#allocation8 + $0x1a0] sm:$0xff]  ;;  %v681_v17 = vld [vmem:[#allocation8 + $0x238] sm:$0xff] }
  0x9d   :  { %4617 = vmatpush1.bf16.msra.mxu1 %v4616_v7  ;;  %4523 = vmatprep.subr.bf16.mxu0 %v6569_v8  ;;  %v4634_v7 = vpack.c.bf16 %v621_v62, %v615_v60  ;;  %v663_v60 = vld [vmem:[#allocation8 + $0x1a8] sm:$0xff]  ;;  %v669_v62 = vld [vmem:[#allocation8 + $0x1d8] sm:$0xff] }
  0x9e   :  { %4619 = vmatprep.subr.bf16.mxu1 %v4618_v13  ;;  %v633_v13 = vld [vmem:[#allocation8 + $0xb8] sm:$0xff] }
  0x9f   :  { %536 = vmatmul.mubr.f32.gmra.mrb[24].mxu0 %v6514_v37  ;;  %v701_v37 = vld [vmem:[#allocation8 + $0x2d8] sm:$0xff]  ;;  %v4638_v23 = vpack.c.bf16 %v633_v13, %v627_v12  ;;  %v767_v12 = vld [vmem:[#allocation8 + $0x4e8] sm:$0xff] }
  0xa0   :  { %4525 = vmatpush1.bf16.msra.mxu0 %v6573_v20  ;;  %541 = vmatprep.mubr.f32.mxu0 %v6373_v0  ;;  %v6593_v50 = vpack.c.bf16 %v701_v37, %v695_v44  ;;  %v651_v44 = vld [vmem:[#allocation8 + $0x148] sm:$0xff]  ;;  %v657_v37 = vld [vmem:[#allocation8 + $0x178] sm:$0xff] }
  0xa1   :  { %4621 = vmatpush1.bf16.msra.mxu1 %v4620_v21  ;;  %4527 = vmatprep.subr.bf16.mxu0 %v6577_v22  ;;  %v626_v21 = vld [vmem:[#allocation8 + $0x80] sm:$0xff]  ;;  %v773_v13 = vld [vmem:[#allocation8 + $0x518] sm:$0xff] }
  0xa2   :  { %4623 = vmatprep.subr.bf16.mxu1 %v4622_v27  ;;  %v639_v27 = vld [vmem:[#allocation8 + $0xe8] sm:$0xff]  ;;  %v4640_v24 = vpack.c.bf16 %v632_v25, %v626_v21  ;;  %v766_v25 = vld [vmem:[#allocation8 + $0x4e0] sm:$0xff]  ;;  %v797_v54 = vld [vmem:[#allocation8 + $0x5d8] sm:$0xff] }
  0xa3   :  { %542 = vmatmul.mubr.f32.gmra.mrb[26].mxu0 %v6520_v51  ;;  %v713_v51 = vld [vmem:[#allocation8 + $0x338] sm:$0xff]  ;;  %v4642_v39 = vpack.c.bf16 %v645_v28, %v639_v27  ;;  %v680_v28 = vld [vmem:[#allocation8 + $0x230] sm:$0xff] }
  0xa4   :  { %4529 = vmatpush1.bf16.msra.mxu0 %v6581_v34  ;;  %547 = vmatprep.mubr.f32.mxu0 %v6373_v0  ;;  %v6601_v3 = vpack.c.bf16 %v713_v51, %v707_v59  ;;  %v755_v59 = vld [vmem:[#allocation8 + $0x488] sm:$0xff]  ;;  %v761_v51 = vld [vmem:[#allocation8 + $0x4b8] sm:$0xff] }
  0xa5   :  { %4625 = vmatpush1.bf16.msra.mxu1 %v4624_v35  ;;  %4531 = vmatprep.subr.bf16.mxu0 %v6585_v36  ;;  %v736_v35 = vld [vmem:[#allocation8 + $0x3f0] sm:$0xff]  ;;  %v6629_v4 = vpack.c.bf16 %v761_v51, %v755_v59  ;;  %v705_v57 = vld [vmem:[#allocation8 + $0x2f8] sm:$0xff] }
  0xa6   :  { %4627 = vmatprep.subr.bf16.mxu1 %v4626_v41  ;;  %v743_v41 = vld [vmem:[#allocation8 + $0x428] sm:$0xff]  ;;  %v6620_v46 = vpack.c.bf16 %v736_v35, %v730_v33  ;;  %v785_v33 = vld [vmem:[#allocation8 + $0x578] sm:$0xff] }
  0xa7   :  { %548 = vmatmul.mubr.f32.gmra.mrb[28].mxu0 %v6526_v2  ;;  %v725_v2 = vld [vmem:[#allocation8 + $0x398] sm:$0xff]  ;;  %v687_v35 = vld [vmem:[#allocation8 + $0x268] sm:$0xff] }
  0xa8   :  { %4533 = vmatpush1.bf16.msra.mxu0 %v6589_v49  ;;  %553 = vmatprep.mubr.f32.mxu0 %v6373_v0  ;;  %v6609_v11 = vpack.c.bf16 %v725_v2, %v719_v10  ;;  %v4650_v10 = vpack.c.bf16 %v669_v62, %v663_v60  ;;  %v668_v2 = vld [vmem:[#allocation8 + $0x1d0] sm:$0xff]  ;;  %v790_v62 = vld [vmem:[#allocation8 + $0x5a0] sm:$0xff] }
  0xa9   :  { %4629 = vmatpush1.bf16.msra.mxu1 %v4628_v48  ;;  %4535 = vmatprep.subr.bf16.mxu0 %v6593_v50  ;;  %v6623_v48 = vpack.c.bf16 %v749_v42, %v743_v41  ;;  %v4652_v21 = vpack.c.bf16 %v668_v2, %v662_v9  ;;  %v778_v42 = vld [vmem:[#allocation8 + $0x540] sm:$0xff]  ;;  %v704_v9 = vld [vmem:[#allocation8 + $0x2f0] sm:$0xff]  ;;  %v717_v2 = vld [vmem:[#allocation8 + $0x358] sm:$0xff] }
  0xaa   :  { %4631 = vmatprep.subr.bf16.mxu1 %v4630_v55  ;;  %v4646_v55 = vpack.c.bf16 %v657_v37, %v651_v44  ;;  %v784_v44 = vld [vmem:[#allocation8 + $0x570] sm:$0xff]  ;;  %v686_v37 = vld [vmem:[#allocation8 + $0x260] sm:$0xff] }
  0xab   :  { %554 = vmatmul.mubr.f32.gmra.mrb[30].mxu0 %v6532_v16  ;;  %v737_v16 = vld [vmem:[#allocation8 + $0x3f8] sm:$0xff]  ;;  %v6644_v59 = vpack.c.bf16 %v784_v44, %v778_v42  ;;  %v734_v42 = vld [vmem:[#allocation8 + $0x3e0] sm:$0xff]  ;;  %v740_v44 = vld [vmem:[#allocation8 + $0x410] sm:$0xff] }
  0xac   :  { %4537 = vmatpush1.bf16.msra.mxu0 %v6597_v63  ;;  %866 = vmatprep.mubr.f32.mxu0 %v6373_v0  ;;  %v6616_v31 = vpack.c.bf16 %v737_v16, %v731_v26  ;;  %v772_v26 = vld [vmem:[#allocation8 + $0x510] sm:$0xff]  ;;  %v674_v16 = vld [vmem:[#allocation8 + $0x200] sm:$0xff] }
  0xad   :  { %4633 = vmatpush1.bf16.msra.mxu1 %v4632_v1  ;;  %4539 = vmatprep.subr.bf16.mxu0 %v6601_v3  ;;  %v6626_v1 = vpack.c.bf16 %v748_v53, %v742_v52  ;;  %v4656_v40 = vpack.c.bf16 %v680_v28, %v674_v16  ;;  %v692_v52 = vld [vmem:[#allocation8 + $0x290] sm:$0xff]  ;;  %v791_v53 = vld [vmem:[#allocation8 + $0x5a8] sm:$0xff]  ;;  %v722_v28 = vld [vmem:[#allocation8 + $0x380] sm:$0xff] }
  0xae   :  { %4635 = vmatprep.subr.bf16.mxu1 %v4634_v7  ;;  %v760_v7 = vld [vmem:[#allocation8 + $0x4b0] sm:$0xff]  ;;  %v4660_v51 = vpack.c.bf16 %v692_v52, %v686_v37  ;;  %v6647_v60 = vpack.c.bf16 %v797_v54, %v791_v53  ;;  %v747_v37 = vld [vmem:[#allocation8 + $0x448] sm:$0xff]  ;;  %v746_v53 = vld [vmem:[#allocation8 + $0x440] sm:$0xff] }
  0xaf   :  { %v6632_v18 = vpack.c.bf16 %v760_v7, %v754_v5  ;;  %v698_v7 = vld [vmem:[#allocation8 + $0x2c0] sm:$0xff]  ;;  %v759_v54 = vld [vmem:[#allocation8 + $0x4a8] sm:$0xff] }
  0xb0   :  { %938 = vmatmul.mubr.f32.vlgmr.msra.gmra.mrb[16].mxu1 %v6373_v0  ;;  %4541 = vmatpush1.bf16.msra.mxu0 %v6605_v14 }
  0xb1   :  { %4637 = vmatpush1.bf16.msra.mxu1 %v4636_v15  ;;  %4543 = vmatprep.subr.bf16.mxu0 %v6609_v11  ;;  %v675_v15 = vld [vmem:[#allocation8 + $0x208] sm:$0xff] }
  0xb2   :  { %4639 = vmatprep.subr.bf16.mxu1 %v4638_v23  ;;  %1008 = vmatprep.mubr.f32.mxu1 %v6373_v0  ;;  %v6635_v23 = vpack.c.bf16 %v773_v13, %v767_v12  ;;  %v4654_v27 = vpack.c.bf16 %v681_v17, %v675_v15  ;;  %v4664_v13 = vpack.c.bf16 %v704_v9, %v698_v7  ;;  %v710_v17 = vld [vmem:[#allocation8 + $0x320] sm:$0xff]  ;;  %v783_v9 = vld [vmem:[#allocation8 + $0x568] sm:$0xff] }
  0xb3   :  { %v770_v7 = vld [vmem:[#allocation8 + $0x500] sm:$0xff] }
  0xb4   :  { %4545 = vmatpush1.bf16.msra.mxu0 %v6613_v29 }
  0xb5   :  { %4641 = vmatpush1.bf16.msra.mxu1 %v4640_v24  ;;  %4547 = vmatprep.subr.bf16.mxu0 %v6616_v31  ;;  %v779_v24 = vld [vmem:[#allocation8 + $0x548] sm:$0xff] }
  0xb6   :  { %4643 = vmatprep.subr.bf16.mxu1 %v4642_v39  ;;  %v6638_v39 = vpack.c.bf16 %v772_v26, %v766_v25  ;;  %v6641_v41 = vpack.c.bf16 %v785_v33, %v779_v24  ;;  %v723_v25 = vld [vmem:[#allocation8 + $0x388] sm:$0xff]  ;;  %v729_v26 = vld [vmem:[#allocation8 + $0x3b8] sm:$0xff]  ;;  %v728_v24 = vld [vmem:[#allocation8 + $0x3b0] sm:$0xff] }
  0xb7   :  { %v735_v33 = vld [vmem:[#allocation8 + $0x3e8] sm:$0xff] }
  0xb8   :  { %4549 = vmatpush1.bf16.msra.mxu0 %v6620_v46 }
  0xb9   :  { %4645 = vmatpush1.bf16.msra.mxu1 %v4644_v47  ;;  %4551 = vmatprep.subr.bf16.mxu0 %v6623_v48  ;;  %v4658_v47 = vpack.c.bf16 %v693_v38, %v687_v35  ;;  %v741_v35 = vld [vmem:[#allocation8 + $0x418] sm:$0xff]  ;;  %v4672_v38 = vpack.c.bf16 %v728_v24, %v722_v28  ;;  %v1130_v28 = vld [vmem:[#allocation8 + $0x1c8] sm:$0xff] }
  0xba   :  { %4647 = vmatprep.subr.bf16.mxu1 %v4646_v55  ;;  %v699_v55 = vld [vmem:[#allocation8 + $0x2c8] sm:$0xff] }
  0xbb   :  { %v4662_v5 = vpack.c.bf16 %v705_v57, %v699_v55  ;;  %v765_v55 = vld [vmem:[#allocation8 + $0x4d8] sm:$0xff] }
  0xbc   :  { %4553 = vmatpush1.bf16.msra.mxu0 %v6626_v1  ;;  %v4682_v57 = vpack.c.bf16 %v765_v55, %v759_v54  ;;  %v1147_v54 = vld [vmem:[#allocation8 + $0x250] sm:$0xff]  ;;  %v1153_v55 = vld [vmem:[#allocation8 + $0x280] sm:$0xff] }
  0xbd   :  { %4649 = vmatpush1.bf16.msra.mxu1 %v4648_v61  ;;  %4555 = vmatprep.subr.bf16.mxu0 %v6629_v4  ;;  %v796_v61 = vld [vmem:[#allocation8 + $0x5d0] sm:$0xff] }
  0xbe   :  { %4651 = vmatprep.subr.bf16.mxu1 %v4650_v10  ;;  %v711_v10 = vld [vmem:[#allocation8 + $0x328] sm:$0xff]  ;;  %v6650_v12 = vpack.c.bf16 %v796_v61, %v790_v62  ;;  %v777_v61 = vld [vmem:[#allocation8 + $0x538] sm:$0xff] }
  0xbf   :  { %v4666_v15 = vpack.c.bf16 %v717_v2, %v711_v10  ;;  %v771_v62 = vld [vmem:[#allocation8 + $0x508] sm:$0xff]  ;;  %v789_v10 = vld [vmem:[#allocation8 + $0x598] sm:$0xff] }
  0xc0   :  { %4557 = vmatpush1.bf16.msra.mxu0 %v6632_v18  ;;  %v4690_v2 = vpack.c.bf16 %v789_v10, %v783_v9  ;;  %v1178_v9 = vld [vmem:[#allocation8 + $0x348] sm:$0xff] }
  0xc1   :  { %4653 = vmatpush1.bf16.msra.mxu1 %v4652_v21  ;;  %4559 = vmatprep.subr.bf16.mxu0 %v6635_v23  ;;  %v716_v21 = vld [vmem:[#allocation8 + $0x350] sm:$0xff] }
  0xc2   :  { %4655 = vmatprep.subr.bf16.mxu1 %v4654_v27  ;;  %v4668_v16 = vpack.c.bf16 %v716_v21, %v710_v17  ;;  %v4670_v27 = vpack.c.bf16 %v729_v26, %v723_v25  ;;  %v801_v17 = vld [vmem:[#allocation8 + $0x5f8] sm:$0xff]  ;;  %v794_v25 = vld [vmem:[#allocation8 + $0x5c0] sm:$0xff] }
  0xc3   :  { %v1117_v26 = vld [vmem:[#allocation8 + $0x160] sm:$0xff] }
  0xc4   :  { %4561 = vmatpush1.bf16.msra.mxu0 %v6638_v39 }
  0xc5   :  { %4657 = vmatpush1.bf16.msra.mxu1 %v4656_v40  ;;  %4563 = vmatprep.subr.bf16.mxu0 %v6641_v41  ;;  %v4674_v40 = vpack.c.bf16 %v741_v35, %v735_v33  ;;  %v1123_v33 = vld [vmem:[#allocation8 + $0x190] sm:$0xff]  ;;  %v1129_v35 = vld [vmem:[#allocation8 + $0x1c0] sm:$0xff] }
  0xc6   :  { %4659 = vmatprep.subr.bf16.mxu1 %v4658_v47  ;;  %v4676_v47 = vpack.c.bf16 %v740_v44, %v734_v42  ;;  %v1142_v42 = vld [vmem:[#allocation8 + $0x228] sm:$0xff] }
  0xc8   :  { %4565 = vmatpush1.bf16.msra.mxu0 %v6644_v59 }
  0xc9   :  { %4661 = vmatpush1.bf16.msra.mxu1 %v4660_v51  ;;  %4567 = vmatprep.subr.bf16.mxu0 %v6647_v60  ;;  %v758_v51 = vld [vmem:[#allocation8 + $0x4a0] sm:$0xff] }
  0xca   :  { %4663 = vmatprep.subr.bf16.mxu1 %v4662_v5  ;;  %v4686_v5 = vpack.c.bf16 %v777_v61, %v771_v62  ;;  %v1159_v61 = vld [vmem:[#allocation8 + $0x2b0] sm:$0xff] }
  0xcc   :  { %4569 = vmatpush1.bf16.msra.mxu0 %v6650_v12 }
  0xcd   :  { %4665 = vmatpush1.bf16.msra.mxu1 %v4664_v13  ;;  %4699 = vmatprep.subr.bf16.mxu0 %v6534_v19  ;;  %v753_v19 = vld [vmem:[#allocation8 + $0x478] sm:$0xff]  ;;  %v782_v13 = vld [vmem:[#allocation8 + $0x560] sm:$0xff] }
  0xce   :  { %4667 = vmatprep.subr.bf16.mxu1 %v4666_v15  ;;  %v4678_v52 = vpack.c.bf16 %v753_v19, %v747_v37  ;;  %v795_v15 = vld [vmem:[#allocation8 + $0x5c8] sm:$0xff]  ;;  %v1135_v37 = vld [vmem:[#allocation8 + $0x1f0] sm:$0xff]  ;;  %v1141_v19 = vld [vmem:[#allocation8 + $0x220] sm:$0xff] }
  0xcf   :  { %867 = vmatmul.mubr.f32.vlgmr.msra.gmra.mrb[0].mxu0 %v6373_v0  ;;  %v4694_v21 = vpack.c.bf16 %v801_v17, %v795_v15  ;;  %v6746_v15 = vld [vmem:[%s8189_s2] sm:$0x3f]  ;;  %v1184_v17 = vld [vmem:[#allocation8 + $0x378] sm:$0xff] }
  0xd0   :  { %4701 = vmatpush1.bf16.msra.mxu0 %v6540_v30  ;;  %v752_v30 = vld [vmem:[#allocation8 + $0x470] sm:$0xff] }
  0xd1   :  { %4669 = vmatpush1.bf16.msra.mxu1 %v4668_v16  ;;  %4703 = vmatprep.subr.bf16.mxu0 %v6543_v32  ;;  %v4680_v32 = vpack.c.bf16 %v752_v30, %v746_v53  ;;  %v1154_v53 = vld [vmem:[#allocation8 + $0x288] sm:$0xff] }
  0xd2   :  { %4671 = vmatprep.subr.bf16.mxu1 %v4670_v27  ;;  %v1124_v27 = vld [vmem:[#allocation8 + $0x198] sm:$0xff] }
  0xd3   :  { %v6712_v24 = vpack.c.bf16 %v1130_v28, %v1124_v27  ;;  %v1213_v27 = vld [vmem:[#allocation8 + $0x460] sm:$0xff] }
  0xd4   :  { %4705 = vmatpush1.bf16.msra.mxu0 %v6549_v43  ;;  %v764_v43 = vld [vmem:[#allocation8 + $0x4d0] sm:$0xff] }
  0xd5   :  { %4673 = vmatpush1.bf16.msra.mxu1 %v4672_v38  ;;  %4707 = vmatprep.subr.bf16.mxu0 %v6553_v45  ;;  %v4684_v45 = vpack.c.bf16 %v764_v43, %v758_v51  ;;  %v6714_v38 = vpack.c.bf16 %v1129_v35, %v1123_v33  ;;  %v1160_v51 = vld [vmem:[#allocation8 + $0x2b8] sm:$0xff]  ;;  %v1166_v43 = vld [vmem:[#allocation8 + $0x2e8] sm:$0xff] }
  0xd6   :  { %4675 = vmatprep.subr.bf16.mxu1 %v4674_v40  ;;  %v1136_v40 = vld [vmem:[#allocation8 + $0x1f8] sm:$0xff]  ;;  %v6730_v62 = vpack.c.bf16 %v1166_v43, %v1160_v51 }
  0xd7   :  { %v6718_v44 = vpack.c.bf16 %v1142_v42, %v1136_v40 }
  0xd8   :  { %4709 = vmatpush1.bf16.msra.mxu0 %v6557_v56  ;;  %v776_v56 = vld [vmem:[#allocation8 + $0x530] sm:$0xff] }
  0xd9   :  { %4677 = vmatpush1.bf16.msra.mxu1 %v4676_v47  ;;  %4711 = vmatprep.subr.bf16.mxu0 %v6561_v58  ;;  %v4688_v58 = vpack.c.bf16 %v776_v56, %v770_v7  ;;  %v6720_v47 = vpack.c.bf16 %v1141_v19, %v1135_v37  ;;  %v1172_v56 = vld [vmem:[#allocation8 + $0x318] sm:$0xff]  ;;  %v1226_v19 = vld [vmem:[#allocation8 + $0x4c8] sm:$0xff] }
  0xda   :  { %4679 = vmatprep.subr.bf16.mxu1 %v4678_v52  ;;  %v1148_v52 = vld [vmem:[#allocation8 + $0x258] sm:$0xff]  ;;  %v6738_v10 = vpack.c.bf16 %v1178_v9, %v1172_v56  ;;  %v1238_v56 = vld [vmem:[#allocation8 + $0x528] sm:$0xff] }
  0xdb   :  { %v6724_v30 = vpack.c.bf16 %v1154_v53, %v1148_v52  ;;  %v1220_v37 = vld [vmem:[#allocation8 + $0x498] sm:$0xff]  ;;  %v1219_v53 = vld [vmem:[#allocation8 + $0x490] sm:$0xff] }
  0xdc   :  { %4713 = vmatpush1.bf16.msra.mxu0 %v6565_v6  ;;  %v788_v6 = vld [vmem:[#allocation8 + $0x590] sm:$0xff]  ;;  %v6786_v52 = vpack.c.bf16 %v1226_v19, %v1220_v37 }
  0xdd   :  { %4681 = vmatpush1.bf16.msra.mxu1 %v4680_v32  ;;  %4715 = vmatprep.subr.bf16.mxu0 %v6569_v8  ;;  %v4692_v8 = vpack.c.bf16 %v788_v6, %v782_v13  ;;  %v191_v32 = vlaneseq  ;;  %v1255_v37 = vld [vmem:[#allocation8 + $0x5b0] sm:$0xff] }
  0xde   :  { %4683 = vmatprep.subr.bf16.mxu1 %v4682_v57  ;;  %v6726_v57 = vpack.c.bf16 %v1153_v55, %v1147_v54  ;;  %v1225_v54 = vld [vmem:[#allocation8 + $0x4c0] sm:$0xff] }
  0xe0   :  { %4717 = vmatpush1.bf16.msra.mxu0 %v6573_v20  ;;  %v800_v20 = vld [vmem:[#allocation8 + $0x5f0] sm:$0xff] }
  0xe1   :  { %4685 = vmatpush1.bf16.msra.mxu1 %v4684_v45  ;;  %4719 = vmatprep.subr.bf16.mxu0 %v6577_v22  ;;  %v4696_v22 = vpack.c.bf16 %v800_v20, %v794_v25  ;;  %v1165_v45 = vld [vmem:[#allocation8 + $0x2e0] sm:$0xff]  ;;  %v1183_v25 = vld [vmem:[#allocation8 + $0x370] sm:$0xff] }
  0xe2   :  { %4687 = vmatprep.subr.bf16.mxu1 %v4686_v5  ;;  %v6732_v5 = vshrl.u32 %v191_v32, 7  ;;  %v6734_v7 = vpack.c.bf16 %v1165_v45, %v1159_v61  ;;  %v1189_v20 = vld [vmem:[#allocation8 + $0x3a0] sm:$0xff]  ;;  %v6788_v32 = vpack.c.bf16 %v1225_v54, %v1219_v53  ;;  %v1232_v45 = vld [vmem:[#allocation8 + $0x4f8] sm:$0xff] }
  0xe3   :  { %v6798_v9 = vpack.c.bf16 %v1238_v56, %v1232_v45  ;;  %v1261_v53 = vld [vmem:[#allocation8 + $0x5e0] sm:$0xff]  ;;  %v1078_v56 = vld [vmem:[#allocation8 + $0x28] sm:$0xff] }
  0xe4   :  { %4721 = vmatpush1.bf16.msra.mxu0 %v6581_v34  ;;  %v1082_v34 = vld [vmem:[#allocation8 + $0x48] sm:$0xff]  ;;  %v205_v13 = vsub.s32 3, %v6732_v5 }
  0xe5   :  { %4689 = vmatpush1.bf16.msra.mxu1 %v4688_v58  ;;  %4723 = vmatprep.subr.bf16.mxu0 %v6585_v36  ;;  %v1075_v36 = vld [vmem:[#allocation8 + $0x10] sm:$0xff] }
  0xe6   :  { %4691 = vmatprep.subr.bf16.mxu1 %v4690_v2  ;;  %v1171_v58 = vld [vmem:[#allocation8 + $0x310] sm:$0xff]  ;;  %v1177_v2 = vld [vmem:[#allocation8 + $0x340] sm:$0xff] }
  0xe7   :  { %v6741_v6 = vpack.c.bf16 %v1177_v2, %v1171_v58  ;;  %v1231_v58 = vld [vmem:[#allocation8 + $0x4f0] sm:$0xff]  ;;  %v1237_v2 = vld [vmem:[#allocation8 + $0x520] sm:$0xff] }
  0xe8   :  { %4725 = vmatpush1.bf16.msra.mxu0 %v6589_v49 }
  0xe9   :  { %4693 = vmatpush1.bf16.msra.mxu1 %v4692_v8  ;;  %4727 = vmatprep.subr.bf16.mxu0 %v6593_v50  ;;  %v1081_v50 = vld [vmem:[#allocation8 + $0x40] sm:$0xff]  ;;  %v1190_v8 = vld [vmem:[#allocation8 + $0x3a8] sm:$0xff] }
  0xea   :  { %4695 = vmatprep.subr.bf16.mxu1 %v4694_v21  ;;  %v6750_v21 = vpack.c.bf16 %v1190_v8, %v1184_v17  ;;  %v6800_v17 = vpack.c.bf16 %v1237_v2, %v1231_v58  ;;  %v1084_v58 = vld [vmem:[#allocation8 + $0x58] sm:$0xff]  ;;  %v209_v2 = vsub.s32 4, %v6732_v5 }
  0xec   :  { %4729 = vmatpush1.bf16.msra.mxu0 %v6597_v63  ;;  %v1088_v63 = vld [vmem:[#allocation8 + $0x78] sm:$0xff] }
  0xed   :  { %4697 = vmatpush1.bf16.msra.mxu1 %v4696_v22  ;;  %4731 = vmatprep.subr.bf16.mxu0 %v6601_v3  ;;  %v1094_v3 = vld [vmem:[#allocation8 + $0xa8] sm:$0xff]  ;;  %v6753_v22 = vrot.slane %v6746_v15, %v205_v13 }
  0xf0   :  { %1009 = vmatmul.mubr.f32.vlgmr.msra.gmra.mrb[18].mxu1 %v6373_v0  ;;  %4733 = vmatpush1.bf16.msra.mxu0 %v6605_v14  ;;  %v1076_v0 = vld [vmem:[#allocation8 + $0x18] sm:$0xff]  ;;  %v6690_v14 = vpack.c.bf16 %v1081_v50, %v1075_v36  ;;  %v1202_v50 = vld [vmem:[#allocation8 + $0x408] sm:$0xff] }
  0xf1   :  { %4735 = vmatprep.subr.bf16.mxu0 %v6609_v11  ;;  %v6688_v49 = vpack.c.bf16 %v1082_v34, %v1076_v0  ;;  %v6692_v11 = vpack.c.bf16 %v1094_v3, %v1088_v63  ;;  %v6755_v0 = vpack.c.bf16 %v1189_v20, %v1183_v25  ;;  %v1196_v36 = vld [vmem:[#allocation8 + $0x3d8] sm:$0xff]  ;;  %v201_v63 = vsub.s32 2, %v6732_v5 }
  0xf3   :  { %4763 = vmatprep.subr.bf16.mxu1 %v6688_v49 }
  0xf4   :  { %4737 = vmatpush1.bf16.msra.mxu0 %v6613_v29  ;;  %4765 = vmatpush1.bf16.msra.mxu1 %v6690_v14  ;;  %v1087_v29 = vld [vmem:[#allocation8 + $0x70] sm:$0xff] }
  0xf5   :  { %4739 = vmatprep.subr.bf16.mxu0 %v6616_v31  ;;  %4767 = vmatprep.subr.bf16.mxu1 %v6692_v11  ;;  %v1093_v31 = vld [vmem:[#allocation8 + $0xa0] sm:$0xff] }
  0xf8   :  { %4741 = vmatpush1.bf16.msra.mxu0 %v6620_v46  ;;  %v6697_v46 = vpack.c.bf16 %v1093_v31, %v1087_v29  ;;  %v6762_v29 = vpack.c.bf16 %v1202_v50, %v1196_v36  ;;  %v1195_v31 = vld [vmem:[#allocation8 + $0x3d0] sm:$0xff]  ;;  %v1244_v36 = vld [vmem:[#allocation8 + $0x558] sm:$0xff]  ;;  %v1250_v50 = vld [vmem:[#allocation8 + $0x588] sm:$0xff] }
  0xf9   :  { %4743 = vmatprep.subr.bf16.mxu0 %v6623_v48  ;;  %v1100_v48 = vld [vmem:[#allocation8 + $0xd8] sm:$0xff] }
  0xfa   :  { %4769 = vmatpush1.bf16.msra.mxu1 %v6697_v46 }
  0xfc   :  { %4745 = vmatpush1.bf16.msra.mxu0 %v6626_v1  ;;  %v1106_v1 = vld [vmem:[#allocation8 + $0x108] sm:$0xff] }
  0xfd   :  { %4747 = vmatprep.subr.bf16.mxu0 %v6629_v4  ;;  %v6700_v4 = vpack.c.bf16 %v1106_v1, %v1100_v48  ;;  %v1201_v48 = vld [vmem:[#allocation8 + $0x400] sm:$0xff] }
  0xff   :  { %4771 = vmatprep.subr.bf16.mxu1 %v6700_v4 }
 0x100   :  { %4749 = vmatpush1.bf16.msra.mxu0 %v6632_v18  ;;  %v1099_v18 = vld [vmem:[#allocation8 + $0xd0] sm:$0xff] }
 0x101   :  { %4751 = vmatprep.subr.bf16.mxu0 %v6635_v23  ;;  %v1105_v23 = vld [vmem:[#allocation8 + $0x100] sm:$0xff] }
 0x104   :  { %4753 = vmatpush1.bf16.msra.mxu0 %v6638_v39  ;;  %v6702_v39 = vpack.c.bf16 %v1105_v23, %v1099_v18  ;;  %v6767_v18 = vpack.c.bf16 %v1201_v48, %v1195_v31  ;;  %v1208_v23 = vld [vmem:[#allocation8 + $0x438] sm:$0xff]  ;;  %v1249_v31 = vld [vmem:[#allocation8 + $0x580] sm:$0xff] }
 0x105   :  { %4755 = vmatprep.subr.bf16.mxu0 %v6641_v41  ;;  %v1112_v41 = vld [vmem:[#allocation8 + $0x138] sm:$0xff] }
 0x106   :  { %4773 = vmatpush1.bf16.msra.mxu1 %v6702_v39 }
 0x108   :  { %4757 = vmatpush1.bf16.msra.mxu0 %v6644_v59  ;;  %v1118_v59 = vld [vmem:[#allocation8 + $0x168] sm:$0xff] }
 0x109   :  { %4759 = vmatprep.subr.bf16.mxu0 %v6647_v60  ;;  %v6706_v60 = vpack.c.bf16 %v1118_v59, %v1112_v41  ;;  %v1214_v41 = vld [vmem:[#allocation8 + $0x468] sm:$0xff]  ;;  %v6772_v59 = vrot.slane %v6746_v15, %v201_v63  ;;  %v6810_v63 = vpack.c.bf16 %v1250_v50, %v1244_v36  ;;  %v213_v36 = vsub.s32 5, %v6732_v5 }
 0x10b   :  { %4775 = vmatprep.subr.bf16.mxu1 %v6706_v60 }
 0x10c   :  { %4761 = vmatpush1.bf16.msra.mxu0 %v6650_v12  ;;  %v1111_v12 = vld [vmem:[#allocation8 + $0x130] sm:$0xff] }
 0x10d   :  { %v6708_v16 = vpack.c.bf16 %v1117_v26, %v1111_v12  ;;  %v6774_v12 = vpack.c.bf16 %v1214_v41, %v1208_v23  ;;  %v1207_v26 = vld [vmem:[#allocation8 + $0x430] sm:$0xff] }
 0x10e   :  { %v6776_v33 = vpack.c.bf16 %v1213_v27, %v1207_v26 }
 0x10f   :  { %4777 = vmatpush1.bf16.msra.mxu1 %v6708_v16 }
 0x110   :  { %4779 = vmatprep.subr.bf16.mxu1 %v6712_v24 }
 0x113   :  { %4781 = vmatpush1.bf16.msra.mxu1 %v6714_v38 }
 0x114   :  { %4783 = vmatprep.subr.bf16.mxu1 %v6718_v44 }
 0x117   :  { %4785 = vmatpush1.bf16.msra.mxu1 %v6720_v47 }
 0x118   :  { %4787 = vmatprep.subr.bf16.mxu1 %v6724_v30 }
 0x11b   :  { %4789 = vmatpush1.bf16.msra.mxu1 %v6726_v57 }
 0x11c   :  { %4791 = vmatprep.subr.bf16.mxu1 %v6730_v62 }
 0x11f   :  { %4793 = vmatpush1.bf16.msra.mxu1 %v6734_v7 }
 0x120   :  { %4795 = vmatprep.subr.bf16.mxu1 %v6738_v10 }
 0x123   :  { %4797 = vmatpush1.bf16.msra.mxu1 %v6741_v6 }
 0x124   :  { %4799 = vmatprep.subr.bf16.mxu1 %v6750_v21 }
 0x127   :  { %4801 = vmatpush1.bf16.msra.mxu1 %v6755_v0 }
 0x128   :  { %4803 = vmatprep.subr.bf16.mxu1 %v6762_v29 }
 0x12b   :  { %4805 = vmatpush1.bf16.msra.mxu1 %v6767_v18 }
 0x12c   :  { %4807 = vmatprep.subr.bf16.mxu1 %v6774_v12 }
 0x12f   :  { %4809 = vmatpush1.bf16.msra.mxu1 %v6776_v33 }
 0x130   :  { %4811 = vmatprep.subr.bf16.mxu1 %v6786_v52 }
 0x133   :  { %4813 = vmatpush1.bf16.msra.mxu1 %v6788_v32 }
 0x134   :  { %4815 = vmatprep.subr.bf16.mxu1 %v6798_v9 }
 0x137   :  { %4817 = vmatpush1.bf16.msra.mxu1 %v6800_v17 }
 0x138   :  { %4819 = vmatprep.subr.bf16.mxu1 %v6810_v63 }
 0x143   :  { %v6758_v34 = vpop.f32.mrb[0].mxu1 }
 0x144   :  { %v402_v3 = vpop.f32.mrb[1].mxu1 }
 0x145   :  { %v6765_v1 = vadd.f32 %v402_v3, %v6753_v22  ;;  %v1243_v3 = vld [vmem:[#allocation8 + $0x550] sm:$0xff] }
 0x146   :  { %v6812_v23 = vpack.c.bf16 %v1249_v31, %v1243_v3 }
 0x147   :  { %8271 = vst [vmem:[#allocation19_spill] sm:$0xff] %v6765_v1 }
 0x148   :  { %4821 = vmatpush1.bf16.msra.mxu1 %v6812_v23 }
 0x149   :  { %v406_v28 = vpop.f32.mrb[2].mxu1 }
 0x14a   :  { %v6779_v35 = vadd.f32 %v406_v28, %v6772_v59  ;;  %v408_v40 = vpop.f32.mrb[3].mxu1  ;;  %v1256_v28 = vld [vmem:[#allocation8 + $0x5b8] sm:$0xff] }
 0x14b   :  { %v6783_v42 = vadd.f32 %v408_v40, %v6753_v22  ;;  %v1262_v40 = vld [vmem:[#allocation8 + $0x5e8] sm:$0xff] }
 0x14c   :  { %v6822_v19 = vpack.c.bf16 %v1262_v40, %v1256_v28  ;;  %v6850_v28 = vrot.slane %v6746_v15, %v213_v36 }
 0x14d   :  { %8272 = vst [vmem:[#allocation20_spill] sm:$0xff] %v6783_v42  ;;  %v412_v55 = vpop.f32.mrb[4].mxu1 }
 0x14e   :  { %v6791_v51 = vadd.f32 %v412_v55, %v6772_v59  ;;  %v414_v43 = vpop.f32.mrb[5].mxu1  ;;  %v6824_v55 = vpack.c.bf16 %v1261_v53, %v1255_v37  ;;  %4823 = vmatprep.subr.bf16.mxu1 %v6822_v19 }
 0x14f   :  { %v6795_v61 = vadd.f32 %v414_v43, %v6753_v22 }
 0x150   :  { %8273 = vst [vmem:[#allocation21_spill] sm:$0xff] %v6791_v51  ;;  %4825 = vmatpush1.bf16.msra.mxu1 %v6824_v55 }
 0x151   :  { %8274 = vst [vmem:[#allocation22_spill] sm:$0xff] %v6795_v61  ;;  %v418_v13 = vpop.f32.mrb[6].mxu1  ;;  %4955 = vmatprep.subr.bf16.mxu1 %v6688_v49 }
 0x152   :  { %v6803_v8 = vadd.f32 %v418_v13, %v6772_v59  ;;  %v420_v25 = vpop.f32.mrb[7].mxu1 }
 0x153   :  { %v6807_v20 = vadd.f32 %v420_v25, %v6753_v22  ;;  %v6835_v25 = vpack.c.bf16 %v1084_v58, %v1078_v56 }
 0x154   :  { %8275 = vst [vmem:[#allocation23_spill] sm:$0xff] %v6803_v8 }
 0x155   :  { %8276 = vst [vmem:[#allocation24_spill] sm:$0xff] %v6807_v20  ;;  %v424_v48 = vpop.f32.mrb[8].mxu1  ;;  %4827 = vmatprep.subr.bf16.mxu0 %v6835_v25 }
 0x156   :  { %v6815_v41 = vadd.f32 %v424_v48, %v6772_v59  ;;  %v426_v26 = vpop.f32.mrb[9].mxu1  ;;  %v6844_v48 = vrot.slane %v6746_v15, %v209_v2 }
 0x157   :  { %v6819_v27 = vadd.f32 %v426_v26, %v6753_v22 }
 0x158   :  { %8277 = vst [vmem:[#allocation25_spill] sm:$0xff] %v6815_v41 }
 0x159   :  { %8278 = vst [vmem:[#allocation26_spill] sm:$0xff] %v6819_v27  ;;  %v430_v54 = vpop.f32.mrb[10].mxu1 }
 0x15a   :  { %v6827_v43 = vadd.f32 %v430_v54, %v6772_v59  ;;  %v432_v45 = vpop.f32.mrb[11].mxu1 }
 0x15b   :  { %v6832_v13 = vadd.f32 %v432_v45, %v6753_v22 }
 0x15c   :  { %8279 = vst [vmem:[#allocation27_spill] sm:$0xff] %v6827_v43 }
 0x15d   :  { %8280 = vst [vmem:[#allocation28_spill] sm:$0xff] %v6832_v13  ;;  %v436_v50 = vpop.f32.mrb[12].mxu1  ;;  %v1604_v13 = vld [vmem:[#allocation8 + $0x270] sm:$0xff] }
 0x15e   :  { %v6841_v3 = vadd.f32 %v436_v50, %v6772_v59  ;;  %v438_v31 = vpop.f32.mrb[13].mxu1 }
 0x15f   :  { %v6847_v26 = vadd.f32 %v438_v31, %v6753_v22 }
 0x160   :  { %8281 = vst [vmem:[#allocation29_spill] sm:$0xff] %v6841_v3 }
 0x161   :  { %v442_v40 = vpop.f32.mrb[14].mxu1 }
 0x162   :  { %v513_v37 = vpop.f32.mrb[16].mxu0  ;;  %v6853_v49 = vadd.f32 %v442_v40, %v6772_v59  ;;  %v444_v53 = vpop.f32.mrb[15].mxu1 }
 0x163   :  { %v6856_v54 = vadd.f32 %v513_v37, %v6844_v48  ;;  %v515_v45 = vpop.f32.mrb[17].mxu0 }
 0x164   :  { %8282 = vst [vmem:[#allocation30_spill] sm:$0xff] %v6853_v49  ;;  %v6859_v56 = vadd.f32 %v515_v45, %v6850_v28 }
 0x165   :  { %8283 = vst [vmem:[#allocation31_spill] sm:$0xff] %v6856_v54 }
 0x166   :  { %8284 = vst [vmem:[#allocation32_spill] sm:$0xff] %v6859_v56  ;;  %v519_v58 = vpop.f32.mrb[18].mxu0 }
 0x167   :  { %v6862_v2 = vadd.f32 %v519_v58, %v6844_v48  ;;  %v521_v50 = vpop.f32.mrb[19].mxu0 }
 0x168   :  { %v6865_v36 = vadd.f32 %v521_v50, %v6850_v28 }
 0x169   :  { %8285 = vst [vmem:[#allocation33_spill] sm:$0xff] %v6862_v2 }
 0x16a   :  { %8286 = vst [vmem:[#allocation34_spill] sm:$0xff] %v6865_v36  ;;  %v525_v31 = vpop.f32.mrb[20].mxu0 }
 0x16b   :  { %v6868_v40 = vadd.f32 %v525_v31, %v6844_v48  ;;  %v527_v49 = vpop.f32.mrb[21].mxu0 }
 0x16c   :  { %v6871_v37 = vadd.f32 %v527_v49, %v6850_v28 }
 0x16d   :  { %8287 = vst [vmem:[#allocation35_spill] sm:$0xff] %v6868_v40 }
 0x16e   :  { %8288 = vst [vmem:[#allocation36_spill] sm:$0xff] %v6871_v37  ;;  %v531_v54 = vpop.f32.mrb[22].mxu0 }
 0x16f   :  { %v6874_v45 = vadd.f32 %v531_v54, %v6844_v48  ;;  %v533_v56 = vpop.f32.mrb[23].mxu0 }
 0x170   :  { %v6877_v58 = vadd.f32 %v533_v56, %v6850_v28 }
 0x171   :  { %8289 = vst [vmem:[#allocation37_spill] sm:$0xff] %v6874_v45  ;;  %v193_v45 = vsub.s32 0, %v6732_v5 }
 0x172   :  { %8290 = vst [vmem:[#allocation38_spill] sm:$0xff] %v6877_v58  ;;  %v537_v1 = vpop.f32.mrb[24].mxu0 }
 0x173   :  { %v6880_v50 = vadd.f32 %v537_v1, %v6844_v48  ;;  %v539_v36 = vpop.f32.mrb[25].mxu0  ;;  %v6901_v41 = vrot.slane %v6746_v15, %v193_v45 }
 0x174   :  { %v6883_v31 = vadd.f32 %v539_v36, %v6850_v28  ;;  %v445_v36 = vadd.f32 %v444_v53, %v6753_v22 }
 0x175   :  { %8291 = vst [vmem:[#allocation39_spill] sm:$0xff] %v6880_v50  ;;  %8295 = vst [vmem:[#allocation43_spill] sm:$0xff] %v6901_v41 }
 0x176   :  { %8292 = vst [vmem:[#allocation40_spill] sm:$0xff] %v6883_v31  ;;  %v543_v2 = vpop.f32.mrb[26].mxu0 }
 0x177   :  { %v6886_v49 = vadd.f32 %v543_v2, %v6844_v48  ;;  %v545_v3 = vpop.f32.mrb[27].mxu0 }
 0x178   :  { %v6889_v54 = vadd.f32 %v545_v3, %v6850_v28  ;;  %v197_v3 = vsub.s32 1, %v6732_v5  ;;  %v6911_v5 = vld [vmem:[%s8191_s4] ss:$0 sm:$0xff] }
 0x179   :  { %8293 = vst [vmem:[#allocation41_spill] sm:$0xff] %v6886_v49  ;;  %v1096_v49 = vld [vmem:[#allocation8 + $0xb8] sm:$0xff] }
 0x17a   :  { %8294 = vst [vmem:[#allocation42_spill] sm:$0xff] %v6889_v54  ;;  %v549_v42 = vpop.f32.mrb[28].mxu0  ;;  %v6904_v20 = vrot.slane %v6746_v15, %v197_v3 }
 0x17b   :  { %v6892_v56 = vadd.f32 %v549_v42, %v6844_v48  ;;  %v551_v37 = vpop.f32.mrb[29].mxu0 }
 0x17c   :  { %v6895_v1 = vadd.f32 %v551_v37, %v6850_v28 }
 0x17e   :  { %v555_v40 = vpop.f32.mrb[30].mxu0 }
 0x17f   :  { %v557_v43 = vpop.f32.mrb[31].mxu0  ;;  %v556_v27 = vadd.f32 %v555_v40, %v6844_v48 }
 0x183   :  { %v939_v61 = vpop.f32.mrb[16].mxu1 }
 0x184   :  { %v941_v58 = vpop.f32.mrb[17].mxu1  ;;  %v1038_v15 = vadd.f32 %v6911_v5, %v939_v61 }
 0x185   :  { %v1046_v2 = vadd.f32 %v941_v58, %v445_v36 }
 0x187   :  { %v1047_v58 = vmul.f32 0.5, %v1046_v2 }
 0x1a2   :  { %v868_v42 = vpop.f32.mrb[0].mxu0 }
 0x1a3   :  { %v6074_v37 = vadd.f32 %v868_v42, %v6901_v41  ;;  %v870_v31 = vpop.f32.mrb[1].mxu0  ;;  %v401_v42 = vadd.f32 %v6758_v34, %v6772_v59 }
 0x1a4   :  { %v6075_v22 = vadd.f32 %v870_v31, %v6904_v20 }
 0x1a5   :  { %v1023_v50 = vmul.f32 0.5, %v6074_v37 }
 0x1a6   :  { %v1028_v53 = vmul.f32 0.5, %v6075_v22 }
 0x1a7   :  { %6119 = vtanh.f32 %v1023_v50 }
 0x1a8   :  { %6121 = vtanh.f32 %v1028_v53 }
 0x1a9   :  { %6123 = vtanh.f32 %v1047_v58 }
 0x1b1   :  { %v6120_v36 = vpop.eup %6119 }
 0x1b2   :  { %v1025_v45 = vadd.f32 1.0, %v6120_v36  ;;  %v6122_v31 = vpop.eup %6121  ;;  %v6920_v36 = vld [vmem:[%s8191_s4 + $0x1] ss:$0 sm:$0xff] }
 0x1b3   :  { %v1030_v22 = vadd.f32 1.0, %v6122_v31  ;;  %v6124_v2 = vpop.eup %6123  ;;  %v558_v31 = vadd.f32 %v557_v43, %v6850_v28 }
 0x1b4   :  { %v1026_v3 = vmul.f32 0.5, %v1025_v45  ;;  %v1049_v8 = vadd.f32 1.0, %v6124_v2 }
 0x1b5   :  { %v1031_v53 = vmul.f32 0.5, %v1030_v22 }
 0x1b6   :  { %v1039_v37 = vmul.f32 %v1038_v15, %v1026_v3  ;;  %v1050_v3 = vmul.f32 0.5, %v1049_v8  ;;  %v1083_v8 = vld [vmem:[#allocation8 + $0x50] sm:$0xff] }
 0x1b7   :  { %v1042_v61 = vsub.f32 1.0, %v1031_v53  ;;  %v1044_v15 = vmul.f32 0.0, %v1031_v53  ;;  %v1077_v53 = vld [vmem:[#allocation8 + $0x20] sm:$0xff] }
 0x1b8   :  { %v1040_v50 = vadd.f32 %v1039_v37, %v401_v42  ;;  %v6929_v28 = vpack.c.bf16 %v1083_v8, %v1077_v53  ;;  %v1119_v53 = vld [vmem:[#allocation8 + $0x170] sm:$0xff]  ;;  %v1126_v8 = vld [vmem:[#allocation8 + $0x1a8] sm:$0xff] }
 0x1ba   :  { %6125 = vtanh.f32 %v1040_v50 }
 0x1c3   :  { %v1010_v58 = vpop.f32.mrb[18].mxu1 }
 0x1c4   :  { %v6126_v45 = vpop.eup %6125  ;;  %v1051_v54 = vadd.f32 %v1010_v58, %v556_v27  ;;  %v1012_v34 = vpop.f32.mrb[19].mxu1 }
 0x1c5   :  { %v1043_v59 = vmul.f32 %v6126_v45, %v1042_v61  ;;  %v1062_v42 = vadd.f32 %v6920_v36, %v1012_v34 }
 0x1c6   :  { %v1052_v37 = vmul.f32 0.5, %v1051_v54  ;;  %v1090_v54 = vld [vmem:[#allocation8 + $0x88] sm:$0xff] }
 0x1c7   :  { %v6924_v50 = vadd.f32 %v1044_v15, %v1043_v59  ;;  %v1063_v48 = vmul.f32 %v1062_v42, %v1050_v3  ;;  %v6931_v59 = vpack.c.bf16 %v1096_v49, %v1090_v54  ;;  %v1089_v15 = vld [vmem:[#allocation8 + $0x80] sm:$0xff]  ;;  %v1095_v3 = vld [vmem:[#allocation8 + $0xb0] sm:$0xff]  ;;  %v1102_v42 = vld [vmem:[#allocation8 + $0xe8] sm:$0xff] }
 0x1c8   :  { %6127 = vtanh.f32 %v1052_v37  ;;  %v1108_v37 = vld [vmem:[#allocation8 + $0x118] sm:$0xff]  ;;  %v6940_v49 = vpack.c.bf16 %v1095_v3, %v1089_v15  ;;  %v1131_v54 = vld [vmem:[#allocation8 + $0x1d0] sm:$0xff]  ;;  %v1138_v15 = vld [vmem:[#allocation8 + $0x208] sm:$0xff] }
 0x1c9   :  { %1070 = vst [vmem:[#allocation11] sm:$0xff] %v6924_v50  ;;  %v1064_v40 = vadd.f32 %v1063_v48, %v558_v31  ;;  %v6943_v31 = vpack.c.bf16 %v1108_v37, %v1102_v42  ;;  %v1101_v48 = vld [vmem:[#allocation8 + $0xe0] sm:$0xff]  ;;  %v1144_v3 = vld [vmem:[#allocation8 + $0x238] sm:$0xff]  ;;  %v1143_v37 = vld [vmem:[#allocation8 + $0x230] sm:$0xff] }
 0x1ca   :  { %v1137_v42 = vld [vmem:[#allocation8 + $0x200] sm:$0xff] }
 0x1cb   :  { %6129 = vtanh.f32 %v1064_v40  ;;  %v1107_v40 = vld [vmem:[#allocation8 + $0x110] sm:$0xff] }
 0x1d2   :  { %v6128_v22 = vpop.eup %6127 }
 0x1d3   :  { %v1054_v2 = vadd.f32 1.0, %v6128_v22  ;;  %v1114_v22 = vld [vmem:[#allocation8 + $0x148] sm:$0xff] }
 0x1d5   :  { %v1055_v27 = vmul.f32 0.5, %v1054_v2  ;;  %v6130_v61 = vpop.eup %6129  ;;  %v1120_v2 = vld [vmem:[#allocation8 + $0x178] sm:$0xff] }
 0x1d7   :  { %v1066_v58 = vsub.f32 1.0, %v1055_v27  ;;  %v1068_v45 = vmul.f32 0.0, %v1055_v27  ;;  %v6948_v27 = vpack.c.bf16 %v1107_v40, %v1101_v48  ;;  %v1150_v48 = vld [vmem:[#allocation8 + $0x268] sm:$0xff]  ;;  %v1156_v40 = vld [vmem:[#allocation8 + $0x298] sm:$0xff] }
 0x1d9   :  { %v1067_v34 = vmul.f32 %v6130_v61, %v1066_v58  ;;  %v6951_v58 = vpack.c.bf16 %v1120_v2, %v1114_v22  ;;  %v1113_v61 = vld [vmem:[#allocation8 + $0x140] sm:$0xff]  ;;  %v1155_v2 = vld [vmem:[#allocation8 + $0x290] sm:$0xff] }
 0x1da   :  { %v1149_v22 = vld [vmem:[#allocation8 + $0x260] sm:$0xff] }
 0x1db   :  { %v6927_v43 = vadd.f32 %v1068_v45, %v1067_v34  ;;  %v1132_v45 = vld [vmem:[#allocation8 + $0x1d8] sm:$0xff]  ;;  %v1125_v34 = vld [vmem:[#allocation8 + $0x1a0] sm:$0xff] }
 0x1dd   :  { %1072 = vst [vmem:[#allocation11 + $0x78] sm:$0xff] %v6927_v43  ;;  %1329 = vmatprep.mubr.f32.mxu0 %v6927_v43  ;;  %1400 = vmatprep.mubr.f32.mxu1 %v6927_v43 }
 0x1de   :  { %1330 = vmatmul.mubr.f32.vlgmr.msra.gmra.mrb[2].mxu0 %v6924_v50  ;;  %1401 = vmatmul.mubr.f32.vlgmr.msra.gmra.mrb[20].mxu1 %v6924_v50 }
 0x1df   :  { %4829 = vmatpush1.bf16.msra.mxu0 %v6929_v28  ;;  %1471 = vmatprep.mubr.f32.mxu0 %v6927_v43 }
 0x1e0   :  { %4831 = vmatprep.subr.bf16.mxu0 %v6931_v59  ;;  %4957 = vmatpush1.bf16.msra.mxu1 %v6690_v14  ;;  %v6956_v14 = vpack.c.bf16 %v1119_v53, %v1113_v61  ;;  %v1162_v61 = vld [vmem:[#allocation8 + $0x2c8] sm:$0xff]  ;;  %v1168_v53 = vld [vmem:[#allocation8 + $0x2f8] sm:$0xff] }
 0x1e1   :  { %4959 = vmatprep.subr.bf16.mxu1 %v6692_v11  ;;  %v6959_v11 = vpack.c.bf16 %v1132_v45, %v1126_v8  ;;  %v1161_v8 = vld [vmem:[#allocation8 + $0x2c0] sm:$0xff]  ;;  %v1167_v45 = vld [vmem:[#allocation8 + $0x2f0] sm:$0xff] }
 0x1e3   :  { %4833 = vmatpush1.bf16.msra.mxu0 %v6940_v49 }
 0x1e4   :  { %4835 = vmatprep.subr.bf16.mxu0 %v6943_v31  ;;  %4961 = vmatpush1.bf16.msra.mxu1 %v6697_v46  ;;  %v6964_v46 = vpack.c.bf16 %v1131_v54, %v1125_v34  ;;  %v1174_v34 = vld [vmem:[#allocation8 + $0x328] sm:$0xff]  ;;  %v1180_v54 = vld [vmem:[#allocation8 + $0x358] sm:$0xff] }
 0x1e5   :  { %4963 = vmatprep.subr.bf16.mxu1 %v6700_v4  ;;  %v6967_v4 = vpack.c.bf16 %v1144_v3, %v1138_v15  ;;  %v1173_v15 = vld [vmem:[#allocation8 + $0x320] sm:$0xff]  ;;  %v1179_v3 = vld [vmem:[#allocation8 + $0x350] sm:$0xff] }
 0x1e7   :  { %4837 = vmatpush1.bf16.msra.mxu0 %v6948_v27 }
 0x1e8   :  { %4839 = vmatprep.subr.bf16.mxu0 %v6951_v58  ;;  %4965 = vmatpush1.bf16.msra.mxu1 %v6702_v39  ;;  %v6972_v39 = vpack.c.bf16 %v1143_v37, %v1137_v42  ;;  %v1186_v42 = vld [vmem:[#allocation8 + $0x388] sm:$0xff]  ;;  %v1192_v37 = vld [vmem:[#allocation8 + $0x3b8] sm:$0xff] }
 0x1e9   :  { %4967 = vmatprep.subr.bf16.mxu1 %v6706_v60  ;;  %v6975_v60 = vpack.c.bf16 %v1156_v40, %v1150_v48  ;;  %v1185_v48 = vld [vmem:[#allocation8 + $0x380] sm:$0xff]  ;;  %v1191_v40 = vld [vmem:[#allocation8 + $0x3b0] sm:$0xff] }
 0x1eb   :  { %4841 = vmatpush1.bf16.msra.mxu0 %v6956_v14 }
 0x1ec   :  { %4843 = vmatprep.subr.bf16.mxu0 %v6959_v11  ;;  %4969 = vmatpush1.bf16.msra.mxu1 %v6708_v16  ;;  %v6980_v16 = vpack.c.bf16 %v1155_v2, %v1149_v22  ;;  %v1198_v22 = vld [vmem:[#allocation8 + $0x3e8] sm:$0xff]  ;;  %v1204_v2 = vld [vmem:[#allocation8 + $0x418] sm:$0xff] }
 0x1ed   :  { %4971 = vmatprep.subr.bf16.mxu1 %v6712_v24  ;;  %v6983_v24 = vpack.c.bf16 %v1168_v53, %v1162_v61  ;;  %v1197_v61 = vld [vmem:[#allocation8 + $0x3e0] sm:$0xff]  ;;  %v1203_v53 = vld [vmem:[#allocation8 + $0x410] sm:$0xff] }
 0x1ef   :  { %4845 = vmatpush1.bf16.msra.mxu0 %v6964_v46 }
 0x1f0   :  { %4847 = vmatprep.subr.bf16.mxu0 %v6967_v4  ;;  %4973 = vmatpush1.bf16.msra.mxu1 %v6714_v38  ;;  %v6988_v38 = vpack.c.bf16 %v1167_v45, %v1161_v8  ;;  %v1210_v8 = vld [vmem:[#allocation8 + $0x448] sm:$0xff]  ;;  %v1216_v45 = vld [vmem:[#allocation8 + $0x478] sm:$0xff] }
 0x1f1   :  { %4975 = vmatprep.subr.bf16.mxu1 %v6718_v44  ;;  %v6991_v44 = vpack.c.bf16 %v1180_v54, %v1174_v34  ;;  %v1209_v34 = vld [vmem:[#allocation8 + $0x440] sm:$0xff]  ;;  %v1215_v54 = vld [vmem:[#allocation8 + $0x470] sm:$0xff] }
 0x1f3   :  { %4849 = vmatpush1.bf16.msra.mxu0 %v6972_v39 }
 0x1f4   :  { %4851 = vmatprep.subr.bf16.mxu0 %v6975_v60  ;;  %4977 = vmatpush1.bf16.msra.mxu1 %v6720_v47  ;;  %v6996_v47 = vpack.c.bf16 %v1179_v3, %v1173_v15  ;;  %v1222_v15 = vld [vmem:[#allocation8 + $0x4a8] sm:$0xff]  ;;  %v1228_v3 = vld [vmem:[#allocation8 + $0x4d8] sm:$0xff] }
 0x1f5   :  { %4979 = vmatprep.subr.bf16.mxu1 %v6724_v30  ;;  %v6999_v30 = vpack.c.bf16 %v1192_v37, %v1186_v42  ;;  %v1221_v42 = vld [vmem:[#allocation8 + $0x4a0] sm:$0xff]  ;;  %v1227_v37 = vld [vmem:[#allocation8 + $0x4d0] sm:$0xff] }
 0x1f7   :  { %4853 = vmatpush1.bf16.msra.mxu0 %v6980_v16 }
 0x1f8   :  { %4855 = vmatprep.subr.bf16.mxu0 %v6983_v24  ;;  %4981 = vmatpush1.bf16.msra.mxu1 %v6726_v57  ;;  %v7004_v57 = vpack.c.bf16 %v1191_v40, %v1185_v48  ;;  %v1234_v48 = vld [vmem:[#allocation8 + $0x508] sm:$0xff]  ;;  %v1240_v40 = vld [vmem:[#allocation8 + $0x538] sm:$0xff] }
 0x1f9   :  { %4983 = vmatprep.subr.bf16.mxu1 %v6730_v62  ;;  %v7007_v62 = vpack.c.bf16 %v1204_v2, %v1198_v22  ;;  %v1233_v22 = vld [vmem:[#allocation8 + $0x500] sm:$0xff]  ;;  %v1239_v2 = vld [vmem:[#allocation8 + $0x530] sm:$0xff] }
 0x1fb   :  { %4857 = vmatpush1.bf16.msra.mxu0 %v6988_v38  ;;  %8296 = vst [vmem:[#allocation44_spill] sm:$0xff] %v7007_v62 }
 0x1fc   :  { %4859 = vmatprep.subr.bf16.mxu0 %v6991_v44  ;;  %4985 = vmatpush1.bf16.msra.mxu1 %v6734_v7  ;;  %v7012_v7 = vpack.c.bf16 %v1203_v53, %v1197_v61  ;;  %v1246_v61 = vld [vmem:[#allocation8 + $0x568] sm:$0xff]  ;;  %v1252_v53 = vld [vmem:[#allocation8 + $0x598] sm:$0xff] }
 0x1fd   :  { %4987 = vmatprep.subr.bf16.mxu1 %v6738_v10  ;;  %v7015_v10 = vpack.c.bf16 %v1216_v45, %v1210_v8  ;;  %v1245_v8 = vld [vmem:[#allocation8 + $0x560] sm:$0xff]  ;;  %v1251_v45 = vld [vmem:[#allocation8 + $0x590] sm:$0xff] }
 0x1fe   :  { %8297 = vst [vmem:[#allocation45_spill] sm:$0xff] %v7012_v7 }
 0x1ff   :  { %4861 = vmatpush1.bf16.msra.mxu0 %v6996_v47  ;;  %8298 = vst [vmem:[#allocation46_spill] sm:$0xff] %v7015_v10 }
 0x200   :  { %4863 = vmatprep.subr.bf16.mxu0 %v6999_v30  ;;  %4989 = vmatpush1.bf16.msra.mxu1 %v6741_v6  ;;  %v7020_v6 = vpack.c.bf16 %v1215_v54, %v1209_v34  ;;  %v1258_v34 = vld [vmem:[#allocation8 + $0x5c8] sm:$0xff]  ;;  %v1264_v54 = vld [vmem:[#allocation8 + $0x5f8] sm:$0xff] }
 0x201   :  { %4991 = vmatprep.subr.bf16.mxu1 %v6750_v21  ;;  %v7023_v21 = vpack.c.bf16 %v1228_v3, %v1222_v15  ;;  %v1257_v15 = vld [vmem:[#allocation8 + $0x5c0] sm:$0xff]  ;;  %v1263_v3 = vld [vmem:[#allocation8 + $0x5f0] sm:$0xff] }
 0x202   :  { %8299 = vst [vmem:[#allocation47_spill] sm:$0xff] %v7020_v6 }
 0x203   :  { %4865 = vmatpush1.bf16.msra.mxu0 %v7004_v57  ;;  %8300 = vst [vmem:[#allocation48_spill] sm:$0xff] %v7023_v21 }
 0x204   :  { %4867 = vmatprep.subr.bf16.mxu0 %v7007_v62  ;;  %4993 = vmatpush1.bf16.msra.mxu1 %v6755_v0  ;;  %v7028_v0 = vpack.c.bf16 %v1227_v37, %v1221_v42  ;;  %v1526_v42 = vld [vmem:[#allocation8] sm:$0xff]  ;;  %v1532_v37 = vld [vmem:[#allocation8 + $0x30] sm:$0xff] }
 0x205   :  { %4995 = vmatprep.subr.bf16.mxu1 %v6762_v29  ;;  %v7031_v29 = vpack.c.bf16 %v1240_v40, %v1234_v48  ;;  %v7063_v48 = vpack.c.bf16 %v1532_v37, %v1526_v42  ;;  %v1575_v37 = vld [vmem:[#allocation8 + $0x188] sm:$0xff] }
 0x206   :  { %8301 = vst [vmem:[#allocation49_spill] sm:$0xff] %v7028_v0 }
 0x207   :  { %4869 = vmatpush1.bf16.msra.mxu0 %v7012_v7  ;;  %8302 = vst [vmem:[#allocation50_spill] sm:$0xff] %v7031_v29 }
 0x208   :  { %4871 = vmatprep.subr.bf16.mxu0 %v7015_v10  ;;  %4997 = vmatpush1.bf16.msra.mxu1 %v6767_v18  ;;  %v7036_v18 = vpack.c.bf16 %v1239_v2, %v1233_v22  ;;  %v1551_v2 = vld [vmem:[#allocation8 + $0xc8] sm:$0xff]  ;;  %v1676_v10 = vld [vmem:[#allocation8 + $0x4b0] sm:$0xff] }
 0x209   :  { %4999 = vmatprep.subr.bf16.mxu1 %v6774_v12  ;;  %v7039_v12 = vpack.c.bf16 %v1252_v53, %v1246_v61  ;;  %v1557_v61 = vld [vmem:[#allocation8 + $0xf8] sm:$0xff] }
 0x20a   :  { %8303 = vst [vmem:[#allocation51_spill] sm:$0xff] %v7036_v18  ;;  %v7073_v53 = vpack.c.bf16 %v1557_v61, %v1551_v2  ;;  %v1587_v2 = vld [vmem:[#allocation8 + $0x1e8] sm:$0xff]  ;;  %v1593_v61 = vld [vmem:[#allocation8 + $0x218] sm:$0xff] }
 0x20b   :  { %4873 = vmatpush1.bf16.msra.mxu0 %v7020_v6  ;;  %8304 = vst [vmem:[#allocation52_spill] sm:$0xff] %v7039_v12 }
 0x20c   :  { %4875 = vmatprep.subr.bf16.mxu0 %v7023_v21  ;;  %5001 = vmatpush1.bf16.msra.mxu1 %v6776_v33  ;;  %v7044_v33 = vpack.c.bf16 %v1251_v45, %v1245_v8  ;;  %v1550_v8 = vld [vmem:[#allocation8 + $0xc0] sm:$0xff]  ;;  %v1556_v45 = vld [vmem:[#allocation8 + $0xf0] sm:$0xff] }
 0x20d   :  { %5003 = vmatprep.subr.bf16.mxu1 %v6786_v52  ;;  %v7047_v52 = vpack.c.bf16 %v1264_v54, %v1258_v34  ;;  %v7075_v34 = vpack.c.bf16 %v1556_v45, %v1550_v8  ;;  %v1563_v54 = vld [vmem:[#allocation8 + $0x128] sm:$0xff]  ;;  %v7089_v45 = vpack.c.bf16 %v1593_v61, %v1587_v2 }
 0x20e   :  { %8305 = vst [vmem:[#allocation53_spill] sm:$0xff] %v7044_v33 }
 0x20f   :  { %4877 = vmatpush1.bf16.msra.mxu0 %v7028_v0  ;;  %8306 = vst [vmem:[#allocation54_spill] sm:$0xff] %v7047_v52 }
 0x210   :  { %4879 = vmatprep.subr.bf16.mxu0 %v7031_v29  ;;  %5005 = vmatpush1.bf16.msra.mxu1 %v6788_v32  ;;  %v7052_v32 = vpack.c.bf16 %v1263_v3, %v1257_v15  ;;  %v1569_v15 = vld [vmem:[#allocation8 + $0x158] sm:$0xff] }
 0x211   :  { %5007 = vmatprep.subr.bf16.mxu1 %v6798_v9  ;;  %v1527_v9 = vld [vmem:[#allocation8 + $0x8] sm:$0xff]  ;;  %v7079_v3 = vpack.c.bf16 %v1569_v15, %v1563_v54  ;;  %v1586_v54 = vld [vmem:[#allocation8 + $0x1e0] sm:$0xff]  ;;  %v1592_v15 = vld [vmem:[#allocation8 + $0x210] sm:$0xff] }
 0x212   :  { %8307 = vst [vmem:[#allocation55_spill] sm:$0xff] %v7052_v32  ;;  %v7093_v51 = vpack.c.bf16 %v1592_v15, %v1586_v54  ;;  %v1623_v54 = vld [vmem:[#allocation8 + $0x308] sm:$0xff]  ;;  %v1629_v15 = vld [vmem:[#allocation8 + $0x338] sm:$0xff] }
 0x213   :  { %4881 = vmatpush1.bf16.msra.mxu0 %v7036_v18  ;;  %v1653_v18 = vld [vmem:[#allocation8 + $0x3f8] sm:$0xff] }
 0x214   :  { %4883 = vmatprep.subr.bf16.mxu0 %v7039_v12  ;;  %5009 = vmatpush1.bf16.msra.mxu1 %v6800_v17  ;;  %v1533_v17 = vld [vmem:[#allocation8 + $0x38] sm:$0xff]  ;;  %v1628_v12 = vld [vmem:[#allocation8 + $0x330] sm:$0xff] }
 0x215   :  { %5011 = vmatprep.subr.bf16.mxu1 %v6810_v63  ;;  %v7061_v63 = vpack.c.bf16 %v1533_v17, %v1527_v9  ;;  %v1562_v9 = vld [vmem:[#allocation8 + $0x120] sm:$0xff]  ;;  %v1568_v17 = vld [vmem:[#allocation8 + $0x150] sm:$0xff] }
 0x216   :  { %v7081_v42 = vpack.c.bf16 %v1568_v17, %v1562_v9  ;;  %v1599_v9 = vld [vmem:[#allocation8 + $0x248] sm:$0xff]  ;;  %v1605_v17 = vld [vmem:[#allocation8 + $0x278] sm:$0xff] }
 0x217   :  { %4885 = vmatpush1.bf16.msra.mxu0 %v7044_v33  ;;  %v1622_v33 = vld [vmem:[#allocation8 + $0x300] sm:$0xff] }
 0x218   :  { %4887 = vmatprep.subr.bf16.mxu0 %v7047_v52  ;;  %5013 = vmatpush1.bf16.msra.mxu1 %v6812_v23  ;;  %v1539_v23 = vld [vmem:[#allocation8 + $0x68] sm:$0xff]  ;;  %v1616_v52 = vld [vmem:[#allocation8 + $0x2d0] sm:$0xff] }
 0x219   :  { %5015 = vmatprep.subr.bf16.mxu1 %v6822_v19  ;;  %v1545_v19 = vld [vmem:[#allocation8 + $0x98] sm:$0xff] }
 0x21a   :  { %v7067_v40 = vpack.c.bf16 %v1545_v19, %v1539_v23  ;;  %v1581_v23 = vld [vmem:[#allocation8 + $0x1b8] sm:$0xff]  ;;  %v1574_v19 = vld [vmem:[#allocation8 + $0x180] sm:$0xff] }
 0x21b   :  { %4889 = vmatpush1.bf16.msra.mxu0 %v7052_v32  ;;  %v1610_v32 = vld [vmem:[#allocation8 + $0x2a0] sm:$0xff] }
 0x21c   :  { %5017 = vmatpush1.bf16.msra.mxu1 %v6824_v55  ;;  %4891 = vmatprep.subr.bf16.mxu0 %v7061_v63  ;;  %v1538_v55 = vld [vmem:[#allocation8 + $0x60] sm:$0xff] }
 0x21d   :  { %5019 = vmatprep.subr.bf16.mxu1 %v6835_v25  ;;  %v1544_v25 = vld [vmem:[#allocation8 + $0x90] sm:$0xff] }
 0x21e   :  { %1472 = vmatmul.mubr.f32.vlgmr.msra.gmra.mrb[32].mxu0 %v6924_v50  ;;  %v7069_v22 = vpack.c.bf16 %v1544_v25, %v1538_v55  ;;  %v7085_v55 = vpack.c.bf16 %v1581_v23, %v1575_v37  ;;  %v1580_v25 = vld [vmem:[#allocation8 + $0x1b0] sm:$0xff]  ;;  %v7096_v37 = vpack.c.bf16 %v1605_v17, %v1599_v9  ;;  %v1598_v23 = vld [vmem:[#allocation8 + $0x240] sm:$0xff]  ;;  %v7105_v9 = vpack.c.bf16 %v1616_v52, %v1610_v32 }
 0x21f   :  { %4893 = vmatpush1.bf16.msra.mxu0 %v7063_v48  ;;  %v7087_v8 = vpack.c.bf16 %v1580_v25, %v1574_v19  ;;  %v1611_v19 = vld [vmem:[#allocation8 + $0x2a8] sm:$0xff]  ;;  %v1617_v25 = vld [vmem:[#allocation8 + $0x2d8] sm:$0xff]  ;;  %v7099_v2 = vpack.c.bf16 %v1604_v13, %v1598_v23  ;;  %v7108_v17 = vpack.c.bf16 %v1629_v15, %v1623_v54  ;;  %v1634_v52 = vld [vmem:[#allocation8 + $0x360] sm:$0xff] }
 0x220   :  { %4895 = vmatprep.subr.bf16.mxu0 %v7067_v40  ;;  %v7102_v61 = vpack.c.bf16 %v1617_v25, %v1611_v19  ;;  %v1635_v13 = vld [vmem:[#allocation8 + $0x368] sm:$0xff]  ;;  %v1641_v23 = vld [vmem:[#allocation8 + $0x398] sm:$0xff]  ;;  %v7111_v19 = vpack.c.bf16 %v1628_v12, %v1622_v33  ;;  %v1640_v32 = vld [vmem:[#allocation8 + $0x390] sm:$0xff] }
 0x221   :  { %v7114_v25 = vpack.c.bf16 %v1641_v23, %v1635_v13  ;;  %v7118_v54 = vpack.c.bf16 %v1640_v32, %v1634_v52  ;;  %v1647_v15 = vld [vmem:[#allocation8 + $0x3c8] sm:$0xff]  ;;  %v1646_v12 = vld [vmem:[#allocation8 + $0x3c0] sm:$0xff]  ;;  %v1652_v33 = vld [vmem:[#allocation8 + $0x3f0] sm:$0xff] }
 0x222   :  { %v7121_v29 = vpack.c.bf16 %v1653_v18, %v1647_v15  ;;  %v7123_v0 = vpack.c.bf16 %v1652_v33, %v1646_v12  ;;  %v1659_v13 = vld [vmem:[#allocation8 + $0x428] sm:$0xff]  ;;  %v1665_v23 = vld [vmem:[#allocation8 + $0x458] sm:$0xff]  ;;  %v1658_v52 = vld [vmem:[#allocation8 + $0x420] sm:$0xff] }
 0x223   :  { %4897 = vmatpush1.bf16.msra.mxu0 %v7069_v22  ;;  %8308 = vst [vmem:[#allocation56_spill] sm:$0xff] %v7118_v54  ;;  %v7127_v21 = vpack.c.bf16 %v1665_v23, %v1659_v13  ;;  %v1664_v32 = vld [vmem:[#allocation8 + $0x450] sm:$0xff]  ;;  %v1671_v18 = vld [vmem:[#allocation8 + $0x488] sm:$0xff]  ;;  %v1677_v15 = vld [vmem:[#allocation8 + $0x4b8] sm:$0xff] }
 0x224   :  { %4899 = vmatprep.subr.bf16.mxu0 %v7073_v53  ;;  %8309 = vst [vmem:[#allocation57_spill] sm:$0xff] %v7121_v29  ;;  %8310 = vst [vmem:[#allocation58_spill] sm:$0xff] %v7123_v0  ;;  %v7129_v6 = vpack.c.bf16 %v1664_v32, %v1658_v52  ;;  %v7133_v12 = vpack.c.bf16 %v1677_v15, %v1671_v18  ;;  %v1670_v33 = vld [vmem:[#allocation8 + $0x480] sm:$0xff]  ;;  %v1683_v13 = vld [vmem:[#allocation8 + $0x4e8] sm:$0xff] }
 0x225   :  { %8311 = vst [vmem:[#allocation59_spill] sm:$0xff] %v7127_v21  ;;  %v7135_v7 = vpack.c.bf16 %v1676_v10, %v1670_v33  ;;  %v1689_v23 = vld [vmem:[#allocation8 + $0x518] sm:$0xff]  ;;  %v1682_v32 = vld [vmem:[#allocation8 + $0x4e0] sm:$0xff]  ;;  %v1695_v18 = vld [vmem:[#allocation8 + $0x548] sm:$0xff] }
 0x226   :  { %8312 = vst [vmem:[#allocation60_spill] sm:$0xff] %v7129_v6  ;;  %8313 = vst [vmem:[#allocation61_spill] sm:$0xff] %v7133_v12  ;;  %v7139_v52 = vpack.c.bf16 %v1689_v23, %v1683_v13  ;;  %v1701_v15 = vld [vmem:[#allocation8 + $0x578] sm:$0xff]  ;;  %v1694_v33 = vld [vmem:[#allocation8 + $0x540] sm:$0xff] }
 0x227   :  { %4901 = vmatpush1.bf16.msra.mxu0 %v7075_v34  ;;  %8314 = vst [vmem:[#allocation62_spill] sm:$0xff] %v7135_v7  ;;  %v7145_v10 = vpack.c.bf16 %v1701_v15, %v1695_v18  ;;  %v1707_v13 = vld [vmem:[#allocation8 + $0x5a8] sm:$0xff]  ;;  %v1713_v23 = vld [vmem:[#allocation8 + $0x5d8] sm:$0xff] }
 0x228   :  { %4903 = vmatprep.subr.bf16.mxu0 %v7079_v3  ;;  %8315 = vst [vmem:[#allocation63_spill] sm:$0xff] %v7139_v52 }
 0x229   :  { %8317 = vst [vmem:[#allocation65_spill] sm:$0xff] %v7145_v10 }
 0x22b   :  { %4905 = vmatpush1.bf16.msra.mxu0 %v7081_v42 }
 0x22c   :  { %4907 = vmatprep.subr.bf16.mxu0 %v7085_v55 }
 0x22f   :  { %4909 = vmatpush1.bf16.msra.mxu0 %v7087_v8 }
 0x230   :  { %4911 = vmatprep.subr.bf16.mxu0 %v7089_v45 }
 0x233   :  { %4913 = vmatpush1.bf16.msra.mxu0 %v7093_v51 }
 0x234   :  { %4915 = vmatprep.subr.bf16.mxu0 %v7096_v37 }
 0x237   :  { %4917 = vmatpush1.bf16.msra.mxu0 %v7099_v2 }
 0x238   :  { %4919 = vmatprep.subr.bf16.mxu0 %v7102_v61 }
 0x23b   :  { %4921 = vmatpush1.bf16.msra.mxu0 %v7105_v9 }
 0x23c   :  { %4923 = vmatprep.subr.bf16.mxu0 %v7108_v17 }
 0x23f   :  { %4925 = vmatpush1.bf16.msra.mxu0 %v7111_v19 }
 0x240   :  { %4927 = vmatprep.subr.bf16.mxu0 %v7114_v25 }
 0x243   :  { %4929 = vmatpush1.bf16.msra.mxu0 %v7118_v54 }
 0x244   :  { %4931 = vmatprep.subr.bf16.mxu0 %v7121_v29 }
 0x247   :  { %4933 = vmatpush1.bf16.msra.mxu0 %v7123_v0 }
 0x248   :  { %4935 = vmatprep.subr.bf16.mxu0 %v7127_v21  ;;  %v1688_v21 = vld [vmem:[#allocation8 + $0x510] sm:$0xff] }
 0x249   :  { %v7141_v0 = vpack.c.bf16 %v1688_v21, %v1682_v32  ;;  %v1706_v21 = vld [vmem:[#allocation8 + $0x5a0] sm:$0xff]  ;;  %v7151_v32 = vpack.c.bf16 %v1713_v23, %v1707_v13 }
 0x24b   :  { %4937 = vmatpush1.bf16.msra.mxu0 %v7129_v6  ;;  %8316 = vst [vmem:[#allocation64_spill] sm:$0xff] %v7141_v0  ;;  %8319 = vst [vmem:[#allocation67_spill] sm:$0xff] %v7151_v32 }
 0x24c   :  { %4939 = vmatprep.subr.bf16.mxu0 %v7133_v12  ;;  %v1700_v12 = vld [vmem:[#allocation8 + $0x570] sm:$0xff] }
 0x24d   :  { %v7147_v6 = vpack.c.bf16 %v1700_v12, %v1694_v33 }
 0x24f   :  { %4941 = vmatpush1.bf16.msra.mxu0 %v7135_v7  ;;  %8318 = vst [vmem:[#allocation66_spill] sm:$0xff] %v7147_v6 }
 0x250   :  { %4943 = vmatprep.subr.bf16.mxu0 %v7139_v52  ;;  %v1712_v52 = vld [vmem:[#allocation8 + $0x5d0] sm:$0xff] }
 0x251   :  { %v7153_v7 = vpack.c.bf16 %v1712_v52, %v1706_v21 }
 0x253   :  { %4945 = vmatpush1.bf16.msra.mxu0 %v7141_v0  ;;  %8320 = vst [vmem:[#allocation68_spill] sm:$0xff] %v7153_v7 }
 0x254   :  { %4947 = vmatprep.subr.bf16.mxu0 %v7145_v10 }
 0x257   :  { %4949 = vmatpush1.bf16.msra.mxu0 %v7147_v6 }
 0x258   :  { %4951 = vmatprep.subr.bf16.mxu0 %v7151_v32 }
 0x25b   :  { %4953 = vmatpush1.bf16.msra.mxu0 %v7153_v7 }
 0x25c   :  { %5083 = vmatprep.subr.bf16.mxu0 %v7061_v63 }
 0x2b1   :  { %v1331_v12 = vpop.f32.mrb[2].mxu0  ;;  %v1402_v18 = vpop.f32.mrb[20].mxu1 }
 0x2b2   :  { %v6076_v15 = vadd.f32 %v1331_v12, %v6901_v41  ;;  %v1333_v33 = vpop.f32.mrb[3].mxu0  ;;  %v1404_v6 = vpop.f32.mrb[21].mxu1  ;;  %v1496_v7 = vadd.f32 %v6911_v5, %v1402_v18 }
 0x2b3   :  { %v1504_v10 = vadd.f32 %v1404_v6, %v6847_v26  ;;  %v6077_v13 = vadd.f32 %v1333_v33, %v6904_v20 }
 0x2b4   :  { %v1487_v0 = vmul.f32 0.5, %v6076_v15 }
 0x2b5   :  { %v1492_v52 = vmul.f32 0.5, %v6077_v13  ;;  %v1505_v33 = vmul.f32 0.5, %v1504_v10 }
 0x2b6   :  { %6131 = vtanh.f32 %v1487_v0 }
 0x2b7   :  { %6133 = vtanh.f32 %v1492_v52 }
 0x2c0   :  { %v6132_v23 = vpop.eup %6131 }
 0x2c1   :  { %v1489_v21 = vadd.f32 1.0, %v6132_v23  ;;  %v6134_v29 = vpop.eup %6133 }
 0x2c2   :  { %v1494_v12 = vadd.f32 1.0, %v6134_v29 }
 0x2c3   :  { %v1490_v32 = vmul.f32 0.5, %v1489_v21 }
 0x2c4   :  { %v1495_v41 = vmul.f32 0.5, %v1494_v12 }
 0x2c5   :  { %v1497_v63 = vmul.f32 %v1496_v7, %v1490_v32 }
 0x2c6   :  { %v1500_v62 = vsub.f32 1.0, %v1495_v41  ;;  %v1502_v15 = vmul.f32 %v1495_v41, %v6924_v50 }
 0x2c7   :  { %v1498_v54 = vadd.f32 %v1497_v63, %v6779_v35 }
 0x2c9   :  { %6135 = vtanh.f32 %v1498_v54 }
 0x2ca   :  { %6137 = vtanh.f32 %v1505_v33  ;;  %v2018_v33 = vld [vmem:[#allocation8 + $0x138] sm:$0xff] }
 0x2d3   :  { %v6136_v26 = vpop.eup %6135 }
 0x2d4   :  { %v1501_v6 = vmul.f32 %v6136_v26, %v1500_v62  ;;  %v6138_v13 = vpop.eup %6137 }
 0x2d5   :  { %v1507_v5 = vadd.f32 1.0, %v6138_v13  ;;  %v2024_v13 = vld [vmem:[#allocation8 + $0x168] sm:$0xff] }
 0x2d6   :  { %v7164_v0 = vadd.f32 %v1502_v15, %v1501_v6  ;;  %v2011_v6 = vld [vmem:[#allocation8 + $0x100] sm:$0xff] }
 0x2d7   :  { %v1508_v54 = vmul.f32 0.5, %v1507_v5  ;;  %v7260_v5 = vpack.c.bf16 %v2024_v13, %v2018_v33  ;;  %v2132_v33 = vld [vmem:[#allocation8 + $0x4c8] sm:$0xff] }
 0x2d8   :  { %1523 = vst [vmem:[#allocation11 + $0x10] sm:$0xff] %v7164_v0 }
 0x2f1   :  { %v1473_v7 = vpop.f32.mrb[32].mxu0 }
 0x2f2   :  { %v1509_v32 = vadd.f32 %v1473_v7, %v6892_v56  ;;  %v1475_v35 = vpop.f32.mrb[33].mxu0  ;;  %v8322_v56 = vld [vmem:[#allocation56_spill] sm:$0xff] }
 0x2f3   :  { %v1514_v29 = vadd.f32 %v6920_v36, %v1475_v35  ;;  %v8324_v36 = vld [vmem:[#allocation45_spill] sm:$0xff]  ;;  %v2017_v7 = vld [vmem:[#allocation8 + $0x130] sm:$0xff] }
 0x2f4   :  { %v1510_v18 = vmul.f32 0.5, %v1509_v32  ;;  %v2023_v32 = vld [vmem:[#allocation8 + $0x160] sm:$0xff] }
 0x2f5   :  { %v1515_v52 = vmul.f32 %v1514_v29, %v1508_v54  ;;  %v7262_v35 = vpack.c.bf16 %v2023_v32, %v2017_v7  ;;  %v2030_v54 = vld [vmem:[#allocation8 + $0x198] sm:$0xff]  ;;  %v2036_v29 = vld [vmem:[#allocation8 + $0x1c8] sm:$0xff]  ;;  %v2125_v7 = vld [vmem:[#allocation8 + $0x490] sm:$0xff] }
 0x2f6   :  { %6139 = vtanh.f32 %v1510_v18  ;;  %v2029_v18 = vld [vmem:[#allocation8 + $0x190] sm:$0xff]  ;;  %v2131_v32 = vld [vmem:[#allocation8 + $0x4c0] sm:$0xff] }
 0x2f7   :  { %v1516_v41 = vadd.f32 %v1515_v52, %v6895_v1  ;;  %v8323_v1 = vld [vmem:[#allocation57_spill] sm:$0xff]  ;;  %v7266_v52 = vpack.c.bf16 %v2036_v29, %v2030_v54  ;;  %v7316_v54 = vpack.c.bf16 %v2131_v32, %v2125_v7 }
 0x2f8   :  { %v2138_v29 = vld [vmem:[#allocation8 + $0x4f8] sm:$0xff] }
 0x2f9   :  { %6141 = vtanh.f32 %v1516_v41  ;;  %v2035_v41 = vld [vmem:[#allocation8 + $0x1c0] sm:$0xff] }
 0x300   :  { %v6140_v50 = vpop.eup %6139 }
 0x301   :  { %v1512_v62 = vadd.f32 1.0, %v6140_v50  ;;  %v2042_v50 = vld [vmem:[#allocation8 + $0x1f8] sm:$0xff] }
 0x303   :  { %v1513_v23 = vmul.f32 0.5, %v1512_v62  ;;  %v6142_v21 = vpop.eup %6141  ;;  %v2048_v62 = vld [vmem:[#allocation8 + $0x228] sm:$0xff] }
 0x305   :  { %v1518_v10 = vsub.f32 1.0, %v1513_v23  ;;  %v1520_v63 = vmul.f32 %v1513_v23, %v6927_v43  ;;  %v8325_v43 = vld [vmem:[#allocation46_spill] sm:$0xff]  ;;  %v7268_v23 = vpack.c.bf16 %v2035_v41, %v2029_v18  ;;  %v2144_v18 = vld [vmem:[#allocation8 + $0x528] sm:$0xff] }
 0x306   :  { %v7320_v41 = vpack.c.bf16 %v2144_v18, %v2138_v29 }
 0x307   :  { %v1519_v12 = vmul.f32 %v6142_v21, %v1518_v10  ;;  %v7270_v10 = vpack.c.bf16 %v2048_v62, %v2042_v50  ;;  %v2041_v21 = vld [vmem:[#allocation8 + $0x1f0] sm:$0xff]  ;;  %v2143_v62 = vld [vmem:[#allocation8 + $0x520] sm:$0xff] }
 0x308   :  { %v2137_v50 = vld [vmem:[#allocation8 + $0x4f0] sm:$0xff] }
 0x309   :  { %v7171_v26 = vadd.f32 %v1520_v63, %v1519_v12  ;;  %v2047_v63 = vld [vmem:[#allocation8 + $0x220] sm:$0xff]  ;;  %v2054_v12 = vld [vmem:[#allocation8 + $0x258] sm:$0xff] }
 0x30b   :  { %1525 = vst [vmem:[#allocation11 + $0x68] sm:$0xff] %v7171_v26  ;;  %1782 = vmatprep.mubr.f32.mxu0 %v7171_v26  ;;  %1853 = vmatprep.mubr.f32.mxu1 %v7171_v26 }
 0x30c   :  { %1783 = vmatmul.mubr.f32.vlgmr.msra.gmra.mrb[4].mxu0 %v7164_v0  ;;  %1854 = vmatmul.mubr.f32.vlgmr.msra.gmra.mrb[22].mxu1 %v7164_v0 }
 0x30d   :  { %5021 = vmatpush1.bf16.msra.mxu1 %v6929_v28  ;;  %1924 = vmatprep.mubr.f32.mxu1 %v7171_v26  ;;  %v8326_v28 = vld [vmem:[#allocation58_spill] sm:$0xff] }
 0x30e   :  { %5023 = vmatprep.subr.bf16.mxu1 %v6931_v59  ;;  %5085 = vmatpush1.bf16.msra.mxu0 %v7063_v48  ;;  %v8327_v59 = vld [vmem:[#allocation59_spill] sm:$0xff]  ;;  %v8345_v48 = vld [vmem:[#allocation68_spill] sm:$0xff] }
 0x30f   :  { %5087 = vmatprep.subr.bf16.mxu0 %v7067_v40  ;;  %v1982_v40 = vld [vmem:[#allocation8 + $0x18] sm:$0xff] }
 0x311   :  { %5025 = vmatpush1.bf16.msra.mxu1 %v6940_v49  ;;  %v8328_v49 = vld [vmem:[#allocation47_spill] sm:$0xff] }
 0x312   :  { %5027 = vmatprep.subr.bf16.mxu1 %v6943_v31  ;;  %5089 = vmatpush1.bf16.msra.mxu0 %v7069_v22  ;;  %v8329_v31 = vld [vmem:[#allocation48_spill] sm:$0xff]  ;;  %v1988_v22 = vld [vmem:[#allocation8 + $0x48] sm:$0xff] }
 0x313   :  { %5091 = vmatprep.subr.bf16.mxu0 %v7073_v53  ;;  %v7242_v53 = vpack.c.bf16 %v1988_v22, %v1982_v40  ;;  %v2108_v40 = vld [vmem:[#allocation8 + $0x408] sm:$0xff] }
 0x315   :  { %5029 = vmatpush1.bf16.msra.mxu1 %v6948_v27  ;;  %v8330_v27 = vld [vmem:[#allocation60_spill] sm:$0xff] }
 0x316   :  { %5031 = vmatprep.subr.bf16.mxu1 %v6951_v58  ;;  %5093 = vmatpush1.bf16.msra.mxu0 %v7075_v34  ;;  %v8331_v58 = vld [vmem:[#allocation61_spill] sm:$0xff]  ;;  %v1981_v34 = vld [vmem:[#allocation8 + $0x10] sm:$0xff] }
 0x317   :  { %5095 = vmatprep.subr.bf16.mxu0 %v7079_v3  ;;  %v1987_v3 = vld [vmem:[#allocation8 + $0x40] sm:$0xff] }
 0x319   :  { %5033 = vmatpush1.bf16.msra.mxu1 %v6956_v14  ;;  %v8332_v14 = vld [vmem:[#allocation49_spill] sm:$0xff] }
 0x31a   :  { %5035 = vmatprep.subr.bf16.mxu1 %v6959_v11  ;;  %5097 = vmatpush1.bf16.msra.mxu0 %v7081_v42  ;;  %v8333_v11 = vld [vmem:[#allocation50_spill] sm:$0xff]  ;;  %v7244_v42 = vpack.c.bf16 %v1987_v3, %v1981_v34  ;;  %v2101_v34 = vld [vmem:[#allocation8 + $0x3d0] sm:$0xff] }
 0x31b   :  { %5099 = vmatprep.subr.bf16.mxu0 %v7085_v55  ;;  %v1994_v55 = vld [vmem:[#allocation8 + $0x78] sm:$0xff]  ;;  %v2107_v3 = vld [vmem:[#allocation8 + $0x400] sm:$0xff] }
 0x31d   :  { %5037 = vmatpush1.bf16.msra.mxu1 %v6964_v46  ;;  %v8334_v46 = vld [vmem:[#allocation62_spill] sm:$0xff] }
 0x31e   :  { %5039 = vmatprep.subr.bf16.mxu1 %v6967_v4  ;;  %5101 = vmatpush1.bf16.msra.mxu0 %v7087_v8  ;;  %v8335_v4 = vld [vmem:[#allocation63_spill] sm:$0xff] }
 0x31f   :  { %5103 = vmatprep.subr.bf16.mxu0 %v7089_v45  ;;  %v2000_v8 = vld [vmem:[#allocation8 + $0xa8] sm:$0xff] }
 0x320   :  { %v7248_v45 = vpack.c.bf16 %v2000_v8, %v1994_v55  ;;  %v7304_v55 = vpack.c.bf16 %v2107_v3, %v2101_v34  ;;  %v2114_v8 = vld [vmem:[#allocation8 + $0x438] sm:$0xff] }
 0x321   :  { %5041 = vmatpush1.bf16.msra.mxu1 %v6972_v39  ;;  %v8336_v39 = vld [vmem:[#allocation51_spill] sm:$0xff] }
 0x322   :  { %5043 = vmatprep.subr.bf16.mxu1 %v6975_v60  ;;  %5105 = vmatpush1.bf16.msra.mxu0 %v7093_v51  ;;  %v8321_v51 = vld [vmem:[#allocation44_spill] sm:$0xff] }
 0x323   :  { %5107 = vmatprep.subr.bf16.mxu0 %v7096_v37  ;;  %v8337_v60 = vld [vmem:[#allocation52_spill] sm:$0xff] }
 0x324   :  { %v1993_v37 = vld [vmem:[#allocation8 + $0x70] sm:$0xff] }
 0x325   :  { %5045 = vmatpush1.bf16.msra.mxu1 %v6980_v16  ;;  %v8338_v16 = vld [vmem:[#allocation64_spill] sm:$0xff] }
 0x326   :  { %5047 = vmatprep.subr.bf16.mxu1 %v6983_v24  ;;  %5109 = vmatpush1.bf16.msra.mxu0 %v7099_v2  ;;  %v8339_v24 = vld [vmem:[#allocation65_spill] sm:$0xff]  ;;  %v1999_v2 = vld [vmem:[#allocation8 + $0xa0] sm:$0xff] }
 0x327   :  { %5111 = vmatprep.subr.bf16.mxu0 %v7102_v61  ;;  %v7250_v61 = vpack.c.bf16 %v1999_v2, %v1993_v37  ;;  %v2120_v37 = vld [vmem:[#allocation8 + $0x468] sm:$0xff] }
 0x328   :  { %v7308_v2 = vpack.c.bf16 %v2120_v37, %v2114_v8  ;;  %v8347_v8 = vld [vmem:[#allocation28_spill] sm:$0xff] }
 0x329   :  { %5049 = vmatpush1.bf16.msra.mxu1 %v6988_v38  ;;  %v8340_v38 = vld [vmem:[#allocation53_spill] sm:$0xff] }
 0x32a   :  { %5051 = vmatprep.subr.bf16.mxu1 %v6991_v44  ;;  %5113 = vmatpush1.bf16.msra.mxu0 %v7105_v9  ;;  %v8341_v44 = vld [vmem:[#allocation54_spill] sm:$0xff]  ;;  %v2006_v9 = vld [vmem:[#allocation8 + $0xd8] sm:$0xff] }
 0x32b   :  { %5115 = vmatprep.subr.bf16.mxu0 %v7108_v17  ;;  %v2012_v17 = vld [vmem:[#allocation8 + $0x108] sm:$0xff] }
 0x32d   :  { %5053 = vmatpush1.bf16.msra.mxu1 %v6996_v47  ;;  %v8342_v47 = vld [vmem:[#allocation66_spill] sm:$0xff] }
 0x32e   :  { %5055 = vmatprep.subr.bf16.mxu1 %v6999_v30  ;;  %5117 = vmatpush1.bf16.msra.mxu0 %v7111_v19  ;;  %v8343_v30 = vld [vmem:[#allocation67_spill] sm:$0xff]  ;;  %v7254_v19 = vpack.c.bf16 %v2012_v17, %v2006_v9  ;;  %v2113_v9 = vld [vmem:[#allocation8 + $0x430] sm:$0xff]  ;;  %v2119_v17 = vld [vmem:[#allocation8 + $0x460] sm:$0xff] }
 0x32f   :  { %5119 = vmatprep.subr.bf16.mxu0 %v7114_v25  ;;  %v2005_v25 = vld [vmem:[#allocation8 + $0xd0] sm:$0xff] }
 0x330   :  { %v7256_v15 = vpack.c.bf16 %v2011_v6, %v2005_v25  ;;  %v7310_v25 = vpack.c.bf16 %v2119_v17, %v2113_v9  ;;  %v2126_v6 = vld [vmem:[#allocation8 + $0x498] sm:$0xff] }
 0x331   :  { %5057 = vmatpush1.bf16.msra.mxu1 %v7004_v57  ;;  %v8344_v57 = vld [vmem:[#allocation55_spill] sm:$0xff]  ;;  %v7314_v13 = vpack.c.bf16 %v2132_v33, %v2126_v6 }
 0x332   :  { %5059 = vmatprep.subr.bf16.mxu1 %v8321_v51  ;;  %5121 = vmatpush1.bf16.msra.mxu0 %v8322_v56  ;;  %v2060_v51 = vld [vmem:[#allocation8 + $0x288] sm:$0xff]  ;;  %v7274_v56 = vpack.c.bf16 %v2047_v63, %v2041_v21  ;;  %v7322_v21 = vpack.c.bf16 %v2143_v62, %v2137_v50  ;;  %v2150_v63 = vld [vmem:[#allocation8 + $0x558] sm:$0xff] }
 0x333   :  { %5123 = vmatprep.subr.bf16.mxu0 %v8323_v1  ;;  %v7277_v1 = vpack.c.bf16 %v2060_v51, %v2054_v12  ;;  %v2156_v12 = vld [vmem:[#allocation8 + $0x588] sm:$0xff]  ;;  %v8348_v62 = vld [vmem:[#allocation21_spill] sm:$0xff] }
 0x334   :  { %v7326_v51 = vpack.c.bf16 %v2156_v12, %v2150_v63 }
 0x335   :  { %5061 = vmatpush1.bf16.msra.mxu1 %v8324_v36  ;;  %v2053_v36 = vld [vmem:[#allocation8 + $0x250] sm:$0xff] }
 0x336   :  { %5063 = vmatprep.subr.bf16.mxu1 %v8325_v43  ;;  %5125 = vmatpush1.bf16.msra.mxu0 %v8326_v28  ;;  %v2059_v43 = vld [vmem:[#allocation8 + $0x280] sm:$0xff]  ;;  %v2066_v28 = vld [vmem:[#allocation8 + $0x2b8] sm:$0xff] }
 0x337   :  { %5127 = vmatprep.subr.bf16.mxu0 %v8327_v59  ;;  %v2072_v59 = vld [vmem:[#allocation8 + $0x2e8] sm:$0xff] }
 0x339   :  { %5065 = vmatpush1.bf16.msra.mxu1 %v8328_v49  ;;  %v7280_v49 = vpack.c.bf16 %v2059_v43, %v2053_v36  ;;  %v2149_v36 = vld [vmem:[#allocation8 + $0x550] sm:$0xff]  ;;  %v2155_v43 = vld [vmem:[#allocation8 + $0x580] sm:$0xff] }
 0x33a   :  { %5067 = vmatprep.subr.bf16.mxu1 %v8329_v31  ;;  %5129 = vmatpush1.bf16.msra.mxu0 %v8330_v27  ;;  %v7283_v31 = vpack.c.bf16 %v2072_v59, %v2066_v28  ;;  %v2065_v27 = vld [vmem:[#allocation8 + $0x2b0] sm:$0xff]  ;;  %v7328_v28 = vpack.c.bf16 %v2155_v43, %v2149_v36  ;;  %v2162_v59 = vld [vmem:[#allocation8 + $0x5b8] sm:$0xff] }
 0x33b   :  { %5131 = vmatprep.subr.bf16.mxu0 %v8331_v58  ;;  %v2071_v58 = vld [vmem:[#allocation8 + $0x2e0] sm:$0xff] }
 0x33d   :  { %5069 = vmatpush1.bf16.msra.mxu1 %v8332_v14  ;;  %v2078_v14 = vld [vmem:[#allocation8 + $0x318] sm:$0xff] }
 0x33e   :  { %5071 = vmatprep.subr.bf16.mxu1 %v8333_v11  ;;  %5133 = vmatpush1.bf16.msra.mxu0 %v8334_v46  ;;  %v2084_v11 = vld [vmem:[#allocation8 + $0x348] sm:$0xff]  ;;  %v7286_v46 = vpack.c.bf16 %v2071_v58, %v2065_v27  ;;  %v2161_v58 = vld [vmem:[#allocation8 + $0x5b0] sm:$0xff] }
 0x33f   :  { %5135 = vmatprep.subr.bf16.mxu0 %v8335_v4  ;;  %v7289_v4 = vpack.c.bf16 %v2084_v11, %v2078_v14  ;;  %v2168_v27 = vld [vmem:[#allocation8 + $0x5e8] sm:$0xff]  ;;  %v2167_v11 = vld [vmem:[#allocation8 + $0x5e0] sm:$0xff] }
 0x340   :  { %v7332_v14 = vpack.c.bf16 %v2168_v27, %v2162_v59 }
 0x341   :  { %5073 = vmatpush1.bf16.msra.mxu1 %v8336_v39  ;;  %v2077_v39 = vld [vmem:[#allocation8 + $0x310] sm:$0xff] }
 0x342   :  { %5075 = vmatprep.subr.bf16.mxu1 %v8337_v60  ;;  %5137 = vmatpush1.bf16.msra.mxu0 %v8338_v16  ;;  %v2083_v60 = vld [vmem:[#allocation8 + $0x340] sm:$0xff]  ;;  %v2090_v16 = vld [vmem:[#allocation8 + $0x378] sm:$0xff] }
 0x343   :  { %5139 = vmatprep.subr.bf16.mxu0 %v8339_v24  ;;  %v2096_v24 = vld [vmem:[#allocation8 + $0x3a8] sm:$0xff] }
 0x345   :  { %5077 = vmatpush1.bf16.msra.mxu1 %v8340_v38  ;;  %v7292_v38 = vpack.c.bf16 %v2083_v60, %v2077_v39  ;;  %v7334_v39 = vpack.c.bf16 %v2167_v11, %v2161_v58  ;;  %v1984_v60 = vld [vmem:[#allocation8 + $0x28] sm:$0xff] }
 0x346   :  { %5079 = vmatprep.subr.bf16.mxu1 %v8341_v44  ;;  %5141 = vmatpush1.bf16.msra.mxu0 %v8342_v47  ;;  %v7295_v44 = vpack.c.bf16 %v2096_v24, %v2090_v16  ;;  %v2089_v47 = vld [vmem:[#allocation8 + $0x370] sm:$0xff]  ;;  %v1990_v16 = vld [vmem:[#allocation8 + $0x58] sm:$0xff] }
 0x347   :  { %5143 = vmatprep.subr.bf16.mxu0 %v8343_v30  ;;  %v2095_v30 = vld [vmem:[#allocation8 + $0x3a0] sm:$0xff]  ;;  %v7338_v24 = vpack.c.bf16 %v1990_v16, %v1984_v60 }
 0x349   :  { %5081 = vmatpush1.bf16.msra.mxu1 %v8344_v57  ;;  %v7299_v57 = vpack.c.bf16 %v2095_v30, %v2089_v47 }
 0x34a   :  { %5145 = vmatpush1.bf16.msra.mxu0 %v8345_v48  ;;  %5147 = vmatprep.subr.bf16.mxu1 %v7242_v53  ;;  %v2102_v48 = vld [vmem:[#allocation8 + $0x3d8] sm:$0xff] }
 0x34b   :  { %v7302_v22 = vpack.c.bf16 %v2108_v40, %v2102_v48  ;;  %5211 = vmatprep.subr.bf16.mxu0 %v7338_v24  ;;  %v8346_v48 = vld [vmem:[#allocation43_spill] sm:$0xff] }
 0x34c   :  { %1925 = vmatmul.mubr.f32.vlgmr.msra.gmra.mrb[24].mxu1 %v7164_v0 }
 0x34d   :  { %5149 = vmatpush1.bf16.msra.mxu1 %v7244_v42 }
 0x34e   :  { %5151 = vmatprep.subr.bf16.mxu1 %v7248_v45 }
 0x351   :  { %5153 = vmatpush1.bf16.msra.mxu1 %v7250_v61 }
 0x352   :  { %5155 = vmatprep.subr.bf16.mxu1 %v7254_v19 }
 0x355   :  { %5157 = vmatpush1.bf16.msra.mxu1 %v7256_v15 }
 0x356   :  { %5159 = vmatprep.subr.bf16.mxu1 %v7260_v5 }
 0x359   :  { %5161 = vmatpush1.bf16.msra.mxu1 %v7262_v35 }
 0x35a   :  { %5163 = vmatprep.subr.bf16.mxu1 %v7266_v52 }
 0x35d   :  { %5165 = vmatpush1.bf16.msra.mxu1 %v7268_v23 }
 0x35e   :  { %5167 = vmatprep.subr.bf16.mxu1 %v7270_v10 }
 0x361   :  { %5169 = vmatpush1.bf16.msra.mxu1 %v7274_v56 }
 0x362   :  { %5171 = vmatprep.subr.bf16.mxu1 %v7277_v1 }
 0x365   :  { %5173 = vmatpush1.bf16.msra.mxu1 %v7280_v49 }
 0x366   :  { %5175 = vmatprep.subr.bf16.mxu1 %v7283_v31 }
 0x369   :  { %5177 = vmatpush1.bf16.msra.mxu1 %v7286_v46 }
 0x36a   :  { %5179 = vmatprep.subr.bf16.mxu1 %v7289_v4 }
 0x36d   :  { %5181 = vmatpush1.bf16.msra.mxu1 %v7292_v38 }
 0x36e   :  { %5183 = vmatprep.subr.bf16.mxu1 %v7295_v44 }
 0x371   :  { %5185 = vmatpush1.bf16.msra.mxu1 %v7299_v57 }
 0x372   :  { %5187 = vmatprep.subr.bf16.mxu1 %v7302_v22 }
 0x375   :  { %5189 = vmatpush1.bf16.msra.mxu1 %v7304_v55 }
 0x376   :  { %5191 = vmatprep.subr.bf16.mxu1 %v7308_v2 }
 0x379   :  { %5193 = vmatpush1.bf16.msra.mxu1 %v7310_v25 }
 0x37a   :  { %5195 = vmatprep.subr.bf16.mxu1 %v7314_v13 }
 0x37d   :  { %5197 = vmatpush1.bf16.msra.mxu1 %v7316_v54 }
 0x37e   :  { %5199 = vmatprep.subr.bf16.mxu1 %v7320_v41 }
 0x381   :  { %5201 = vmatpush1.bf16.msra.mxu1 %v7322_v21 }
 0x382   :  { %5203 = vmatprep.subr.bf16.mxu1 %v7326_v51 }
 0x385   :  { %5205 = vmatpush1.bf16.msra.mxu1 %v7328_v28 }
 0x386   :  { %5207 = vmatprep.subr.bf16.mxu1 %v7332_v14 }
 0x389   :  { %5209 = vmatpush1.bf16.msra.mxu1 %v7334_v39 }
 0x38a   :  { %5339 = vmatprep.subr.bf16.mxu1 %v7242_v53  ;;  %v7348_v53 = vld [vmem:[%s8191_s4] ss:$0 sm:$0xff] }
 0x3df   :  { %v1784_v47 = vpop.f32.mrb[4].mxu0  ;;  %v1855_v30 = vpop.f32.mrb[22].mxu1 }
 0x3e0   :  { %v6078_v40 = vadd.f32 %v1784_v47, %v8346_v48  ;;  %v1786_v34 = vpop.f32.mrb[5].mxu0  ;;  %v1857_v3 = vpop.f32.mrb[23].mxu1  ;;  %v1949_v29 = vadd.f32 %v7348_v53, %v1855_v30 }
 0x3e1   :  { %v1957_v37 = vadd.f32 %v1857_v3, %v8347_v8  ;;  %v6079_v17 = vadd.f32 %v1786_v34, %v6904_v20 }
 0x3e2   :  { %v1940_v9 = vmul.f32 0.5, %v6078_v40  ;;  %v8349_v40 = vld [vmem:[#allocation41_spill] sm:$0xff] }
 0x3e3   :  { %v1945_v6 = vmul.f32 0.5, %v6079_v17  ;;  %v1958_v60 = vmul.f32 0.5, %v1957_v37 }
 0x3e4   :  { %6143 = vtanh.f32 %v1940_v9  ;;  %v7360_v9 = vld [vmem:[%s8191_s4 + $0x1] ss:$0 sm:$0xff] }
 0x3e5   :  { %6145 = vtanh.f32 %v1945_v6 }
 0x3ee   :  { %v6144_v33 = vpop.eup %6143 }
 0x3ef   :  { %v1942_v7 = vadd.f32 1.0, %v6144_v33  ;;  %v6146_v50 = vpop.eup %6145  ;;  %v8350_v33 = vld [vmem:[#allocation42_spill] sm:$0xff] }
 0x3f0   :  { %v1947_v12 = vadd.f32 1.0, %v6146_v50 }
 0x3f1   :  { %v1943_v32 = vmul.f32 0.5, %v1942_v7 }
 0x3f2   :  { %v1948_v36 = vmul.f32 0.5, %v1947_v12 }
 0x3f3   :  { %v1950_v18 = vmul.f32 %v1949_v29, %v1943_v32 }
 0x3f4   :  { %v1953_v43 = vsub.f32 1.0, %v1948_v36  ;;  %v1955_v58 = vmul.f32 %v1948_v36, %v7164_v0 }
 0x3f5   :  { %v1951_v63 = vadd.f32 %v1950_v18, %v8348_v62  ;;  %v1983_v62 = vld [vmem:[#allocation8 + $0x20] sm:$0xff] }
 0x3f7   :  { %6147 = vtanh.f32 %v1951_v63  ;;  %v1989_v63 = vld [vmem:[#allocation8 + $0x50] sm:$0xff] }
 0x3f8   :  { %6149 = vtanh.f32 %v1958_v60 }
 0x401   :  { %v6148_v59 = vpop.eup %6147 }
 0x402   :  { %v1954_v27 = vmul.f32 %v6148_v59, %v1953_v43  ;;  %v6150_v16 = vpop.eup %6149  ;;  %v1996_v43 = vld [vmem:[#allocation8 + $0x88] sm:$0xff]  ;;  %v2002_v59 = vld [vmem:[#allocation8 + $0xb8] sm:$0xff] }
 0x403   :  { %v1960_v47 = vadd.f32 1.0, %v6150_v16  ;;  %v7369_v60 = vpack.c.bf16 %v2002_v59, %v1996_v43  ;;  %v1995_v16 = vld [vmem:[#allocation8 + $0x80] sm:$0xff]  ;;  %v2056_v43 = vld [vmem:[#allocation8 + $0x268] sm:$0xff]  ;;  %v2062_v59 = vld [vmem:[#allocation8 + $0x298] sm:$0xff] }
 0x404   :  { %v7353_v11 = vadd.f32 %v1955_v58, %v1954_v27  ;;  %v7367_v58 = vpack.c.bf16 %v1989_v63, %v1983_v62  ;;  %v2044_v62 = vld [vmem:[#allocation8 + $0x208] sm:$0xff]  ;;  %v2050_v63 = vld [vmem:[#allocation8 + $0x238] sm:$0xff] }
 0x405   :  { %v1961_v8 = vmul.f32 0.5, %v1960_v47  ;;  %v2001_v47 = vld [vmem:[#allocation8 + $0xb0] sm:$0xff] }
 0x406   :  { %1976 = vst [vmem:[#allocation11 + $0x20] sm:$0xff] %v7353_v11 }
 0x41f   :  { %v1926_v30 = vpop.f32.mrb[24].mxu1 }
 0x420   :  { %v1962_v34 = vadd.f32 %v1926_v30, %v8349_v40  ;;  %v1928_v3 = vpop.f32.mrb[25].mxu1  ;;  %v2008_v30 = vld [vmem:[#allocation8 + $0xe8] sm:$0xff]  ;;  %v2014_v40 = vld [vmem:[#allocation8 + $0x118] sm:$0xff] }
 0x421   :  { %v1967_v0 = vadd.f32 %v7360_v9, %v1928_v3  ;;  %v2007_v3 = vld [vmem:[#allocation8 + $0xe0] sm:$0xff] }
 0x422   :  { %v1963_v17 = vmul.f32 0.5, %v1962_v34  ;;  %v7381_v34 = vpack.c.bf16 %v2014_v40, %v2008_v30  ;;  %v2068_v30 = vld [vmem:[#allocation8 + $0x2c8] sm:$0xff]  ;;  %v2074_v40 = vld [vmem:[#allocation8 + $0x2f8] sm:$0xff] }
 0x423   :  { %v1968_v6 = vmul.f32 %v1967_v0, %v1961_v8  ;;  %v2013_v8 = vld [vmem:[#allocation8 + $0x110] sm:$0xff]  ;;  %v2020_v0 = vld [vmem:[#allocation8 + $0x148] sm:$0xff] }
 0x424   :  { %6151 = vtanh.f32 %v1963_v17  ;;  %v2026_v17 = vld [vmem:[#allocation8 + $0x178] sm:$0xff] }
 0x425   :  { %v1969_v37 = vadd.f32 %v1968_v6, %v8350_v33  ;;  %v7386_v6 = vpack.c.bf16 %v2013_v8, %v2007_v3  ;;  %v7389_v33 = vpack.c.bf16 %v2026_v17, %v2020_v0  ;;  %v2067_v3 = vld [vmem:[#allocation8 + $0x2c0] sm:$0xff]  ;;  %v2073_v8 = vld [vmem:[#allocation8 + $0x2f0] sm:$0xff]  ;;  %v2080_v0 = vld [vmem:[#allocation8 + $0x328] sm:$0xff] }
 0x426   :  { %v2086_v17 = vld [vmem:[#allocation8 + $0x358] sm:$0xff] }
 0x427   :  { %6153 = vtanh.f32 %v1969_v37  ;;  %v2019_v37 = vld [vmem:[#allocation8 + $0x140] sm:$0xff] }
 0x42e   :  { %v6152_v7 = vpop.eup %6151 }
 0x42f   :  { %v1965_v32 = vadd.f32 1.0, %v6152_v7  ;;  %v2025_v7 = vld [vmem:[#allocation8 + $0x170] sm:$0xff] }
 0x431   :  { %v1966_v29 = vmul.f32 0.5, %v1965_v32  ;;  %v6154_v50 = vpop.eup %6153  ;;  %v2032_v32 = vld [vmem:[#allocation8 + $0x1a8] sm:$0xff] }
 0x433   :  { %v1971_v18 = vsub.f32 1.0, %v1966_v29  ;;  %v1973_v12 = vmul.f32 %v1966_v29, %v7171_v26  ;;  %v7378_v26 = vpack.c.bf16 %v2001_v47, %v1995_v16  ;;  %v2038_v29 = vld [vmem:[#allocation8 + $0x1d8] sm:$0xff]  ;;  %v2055_v16 = vld [vmem:[#allocation8 + $0x260] sm:$0xff]  ;;  %v2061_v47 = vld [vmem:[#allocation8 + $0x290] sm:$0xff] }
 0x435   :  { %v1972_v36 = vmul.f32 %v6154_v50, %v1971_v18  ;;  %v2031_v18 = vld [vmem:[#allocation8 + $0x1a0] sm:$0xff]  ;;  %v2037_v50 = vld [vmem:[#allocation8 + $0x1d0] sm:$0xff] }
 0x437   :  { %v7365_v27 = vadd.f32 %v1973_v12, %v1972_v36  ;;  %v2043_v12 = vld [vmem:[#allocation8 + $0x200] sm:$0xff]  ;;  %v2049_v36 = vld [vmem:[#allocation8 + $0x230] sm:$0xff] }
 0x439   :  { %1978 = vst [vmem:[#allocation11 + $0x58] sm:$0xff] %v7365_v27  ;;  %2235 = vmatprep.mubr.f32.mxu0 %v7365_v27  ;;  %2306 = vmatprep.mubr.f32.mxu1 %v7365_v27 }
 0x43a   :  { %2236 = vmatmul.mubr.f32.vlgmr.msra.gmra.mrb[6].mxu0 %v7353_v11  ;;  %2307 = vmatmul.mubr.f32.vlgmr.msra.gmra.mrb[26].mxu1 %v7353_v11 }
 0x43b   :  { %5213 = vmatpush1.bf16.msra.mxu0 %v7367_v58  ;;  %2377 = vmatprep.mubr.f32.mxu0 %v7365_v27 }
 0x43c   :  { %5215 = vmatprep.subr.bf16.mxu0 %v7369_v60  ;;  %5341 = vmatpush1.bf16.msra.mxu1 %v7244_v42  ;;  %v7394_v42 = vpack.c.bf16 %v2025_v7, %v2019_v37  ;;  %v2079_v37 = vld [vmem:[#allocation8 + $0x320] sm:$0xff]  ;;  %v2085_v7 = vld [vmem:[#allocation8 + $0x350] sm:$0xff] }
 0x43d   :  { %5343 = vmatprep.subr.bf16.mxu1 %v7248_v45  ;;  %v7397_v45 = vpack.c.bf16 %v2038_v29, %v2032_v32  ;;  %v2092_v32 = vld [vmem:[#allocation8 + $0x388] sm:$0xff]  ;;  %v2098_v29 = vld [vmem:[#allocation8 + $0x3b8] sm:$0xff] }
 0x43f   :  { %5217 = vmatpush1.bf16.msra.mxu0 %v7378_v26 }
 0x440   :  { %5219 = vmatprep.subr.bf16.mxu0 %v7381_v34  ;;  %5345 = vmatpush1.bf16.msra.mxu1 %v7250_v61  ;;  %v7402_v61 = vpack.c.bf16 %v2037_v50, %v2031_v18  ;;  %v2091_v18 = vld [vmem:[#allocation8 + $0x380] sm:$0xff]  ;;  %v2097_v50 = vld [vmem:[#allocation8 + $0x3b0] sm:$0xff] }
 0x441   :  { %5347 = vmatprep.subr.bf16.mxu1 %v7254_v19  ;;  %v7405_v19 = vpack.c.bf16 %v2050_v63, %v2044_v62  ;;  %v2104_v62 = vld [vmem:[#allocation8 + $0x3e8] sm:$0xff]  ;;  %v2110_v63 = vld [vmem:[#allocation8 + $0x418] sm:$0xff] }
 0x443   :  { %5221 = vmatpush1.bf16.msra.mxu0 %v7386_v6 }
 0x444   :  { %5223 = vmatprep.subr.bf16.mxu0 %v7389_v33  ;;  %5349 = vmatpush1.bf16.msra.mxu1 %v7256_v15  ;;  %v7410_v15 = vpack.c.bf16 %v2049_v36, %v2043_v12  ;;  %v2103_v12 = vld [vmem:[#allocation8 + $0x3e0] sm:$0xff]  ;;  %v2109_v36 = vld [vmem:[#allocation8 + $0x410] sm:$0xff] }
 0x445   :  { %5351 = vmatprep.subr.bf16.mxu1 %v7260_v5  ;;  %v7413_v5 = vpack.c.bf16 %v2062_v59, %v2056_v43  ;;  %v2116_v43 = vld [vmem:[#allocation8 + $0x448] sm:$0xff]  ;;  %v2122_v59 = vld [vmem:[#allocation8 + $0x478] sm:$0xff] }
 0x447   :  { %5225 = vmatpush1.bf16.msra.mxu0 %v7394_v42 }
 0x448   :  { %5227 = vmatprep.subr.bf16.mxu0 %v7397_v45  ;;  %5353 = vmatpush1.bf16.msra.mxu1 %v7262_v35  ;;  %v7418_v35 = vpack.c.bf16 %v2061_v47, %v2055_v16  ;;  %v2115_v16 = vld [vmem:[#allocation8 + $0x440] sm:$0xff]  ;;  %v2121_v47 = vld [vmem:[#allocation8 + $0x470] sm:$0xff] }
 0x449   :  { %5355 = vmatprep.subr.bf16.mxu1 %v7266_v52  ;;  %v7421_v52 = vpack.c.bf16 %v2074_v40, %v2068_v30  ;;  %v2128_v30 = vld [vmem:[#allocation8 + $0x4a8] sm:$0xff]  ;;  %v2134_v40 = vld [vmem:[#allocation8 + $0x4d8] sm:$0xff] }
 0x44b   :  { %5229 = vmatpush1.bf16.msra.mxu0 %v7402_v61 }
 0x44c   :  { %5231 = vmatprep.subr.bf16.mxu0 %v7405_v19  ;;  %5357 = vmatpush1.bf16.msra.mxu1 %v7268_v23  ;;  %v7426_v23 = vpack.c.bf16 %v2073_v8, %v2067_v3  ;;  %v2127_v3 = vld [vmem:[#allocation8 + $0x4a0] sm:$0xff]  ;;  %v2133_v8 = vld [vmem:[#allocation8 + $0x4d0] sm:$0xff] }
 0x44d   :  { %5359 = vmatprep.subr.bf16.mxu1 %v7270_v10  ;;  %v7429_v10 = vpack.c.bf16 %v2086_v17, %v2080_v0  ;;  %v2140_v0 = vld [vmem:[#allocation8 + $0x508] sm:$0xff]  ;;  %v2146_v17 = vld [vmem:[#allocation8 + $0x538] sm:$0xff] }
 0x44f   :  { %5233 = vmatpush1.bf16.msra.mxu0 %v7410_v15 }
 0x450   :  { %5235 = vmatprep.subr.bf16.mxu0 %v7413_v5  ;;  %5361 = vmatpush1.bf16.msra.mxu1 %v7274_v56  ;;  %v7434_v56 = vpack.c.bf16 %v2085_v7, %v2079_v37  ;;  %v2139_v37 = vld [vmem:[#allocation8 + $0x500] sm:$0xff]  ;;  %v2145_v7 = vld [vmem:[#allocation8 + $0x530] sm:$0xff] }
 0x451   :  { %5363 = vmatprep.subr.bf16.mxu1 %v7277_v1  ;;  %v7437_v1 = vpack.c.bf16 %v2098_v29, %v2092_v32  ;;  %v2152_v32 = vld [vmem:[#allocation8 + $0x568] sm:$0xff]  ;;  %v2158_v29 = vld [vmem:[#allocation8 + $0x598] sm:$0xff] }
 0x453   :  { %5237 = vmatpush1.bf16.msra.mxu0 %v7418_v35 }
 0x454   :  { %5239 = vmatprep.subr.bf16.mxu0 %v7421_v52  ;;  %5365 = vmatpush1.bf16.msra.mxu1 %v7280_v49  ;;  %v7442_v49 = vpack.c.bf16 %v2097_v50, %v2091_v18  ;;  %v2151_v18 = vld [vmem:[#allocation8 + $0x560] sm:$0xff]  ;;  %v2157_v50 = vld [vmem:[#allocation8 + $0x590] sm:$0xff] }
 0x455   :  { %5367 = vmatprep.subr.bf16.mxu1 %v7283_v31  ;;  %v7445_v31 = vpack.c.bf16 %v2110_v63, %v2104_v62  ;;  %v2164_v62 = vld [vmem:[#allocation8 + $0x5c8] sm:$0xff]  ;;  %v2170_v63 = vld [vmem:[#allocation8 + $0x5f8] sm:$0xff] }
 0x457   :  { %5241 = vmatpush1.bf16.msra.mxu0 %v7426_v23 }
 0x458   :  { %5243 = vmatprep.subr.bf16.mxu0 %v7429_v10  ;;  %5369 = vmatpush1.bf16.msra.mxu1 %v7286_v46  ;;  %v7450_v46 = vpack.c.bf16 %v2109_v36, %v2103_v12  ;;  %v2163_v12 = vld [vmem:[#allocation8 + $0x5c0] sm:$0xff]  ;;  %v2169_v36 = vld [vmem:[#allocation8 + $0x5f0] sm:$0xff] }
 0x459   :  { %5371 = vmatprep.subr.bf16.mxu1 %v7289_v4  ;;  %v7453_v4 = vpack.c.bf16 %v2122_v59, %v2116_v43  ;;  %v2432_v43 = vld [vmem:[#allocation8] sm:$0xff]  ;;  %v2438_v59 = vld [vmem:[#allocation8 + $0x30] sm:$0xff] }
 0x45a   :  { %8351 = vst [vmem:[#allocation44_spill] sm:$0xff] %v7450_v46 }
 0x45b   :  { %5245 = vmatpush1.bf16.msra.mxu0 %v7434_v56  ;;  %8352 = vst [vmem:[#allocation56_spill] sm:$0xff] %v7453_v4 }
 0x45c   :  { %5247 = vmatprep.subr.bf16.mxu0 %v7437_v1  ;;  %5373 = vmatpush1.bf16.msra.mxu1 %v7292_v38  ;;  %v7458_v38 = vpack.c.bf16 %v2121_v47, %v2115_v16  ;;  %v7501_v16 = vpack.c.bf16 %v2438_v59, %v2432_v43  ;;  %v2493_v43 = vld [vmem:[#allocation8 + $0x1e8] sm:$0xff]  ;;  %v2499_v59 = vld [vmem:[#allocation8 + $0x218] sm:$0xff] }
 0x45d   :  { %5375 = vmatprep.subr.bf16.mxu1 %v7295_v44  ;;  %v7461_v44 = vpack.c.bf16 %v2134_v40, %v2128_v30  ;;  %v2457_v40 = vld [vmem:[#allocation8 + $0xc8] sm:$0xff] }
 0x45e   :  { %8353 = vst [vmem:[#allocation57_spill] sm:$0xff] %v7458_v38 }
 0x45f   :  { %5249 = vmatpush1.bf16.msra.mxu0 %v7442_v49  ;;  %8354 = vst [vmem:[#allocation45_spill] sm:$0xff] %v7461_v44 }
 0x460   :  { %5251 = vmatprep.subr.bf16.mxu0 %v7445_v31  ;;  %5377 = vmatpush1.bf16.msra.mxu1 %v7299_v57  ;;  %v7466_v57 = vpack.c.bf16 %v2133_v8, %v2127_v3  ;;  %v2463_v3 = vld [vmem:[#allocation8 + $0xf8] sm:$0xff] }
 0x461   :  { %5379 = vmatprep.subr.bf16.mxu1 %v7302_v22  ;;  %v7469_v22 = vpack.c.bf16 %v2146_v17, %v2140_v0  ;;  %v7511_v8 = vpack.c.bf16 %v2463_v3, %v2457_v40  ;;  %v2456_v0 = vld [vmem:[#allocation8 + $0xc0] sm:$0xff]  ;;  %v2462_v17 = vld [vmem:[#allocation8 + $0xf0] sm:$0xff]  ;;  %v2505_v40 = vld [vmem:[#allocation8 + $0x248] sm:$0xff] }
 0x462   :  { %8355 = vst [vmem:[#allocation46_spill] sm:$0xff] %v7466_v57  ;;  %v2511_v3 = vld [vmem:[#allocation8 + $0x278] sm:$0xff] }
 0x463   :  { %5253 = vmatpush1.bf16.msra.mxu0 %v7450_v46  ;;  %8356 = vst [vmem:[#allocation58_spill] sm:$0xff] %v7469_v22 }
 0x464   :  { %5255 = vmatprep.subr.bf16.mxu0 %v7453_v4  ;;  %5381 = vmatpush1.bf16.msra.mxu1 %v7304_v55  ;;  %v7474_v55 = vpack.c.bf16 %v2145_v7, %v2139_v37  ;;  %v7513_v37 = vpack.c.bf16 %v2462_v17, %v2456_v0  ;;  %v2469_v7 = vld [vmem:[#allocation8 + $0x128] sm:$0xff]  ;;  %v7534_v17 = vpack.c.bf16 %v2511_v3, %v2505_v40  ;;  %v2528_v40 = vld [vmem:[#allocation8 + $0x300] sm:$0xff]  ;;  %v2534_v3 = vld [vmem:[#allocation8 + $0x330] sm:$0xff] }
 0x465   :  { %5383 = vmatprep.subr.bf16.mxu1 %v7308_v2  ;;  %v7477_v2 = vpack.c.bf16 %v2158_v29, %v2152_v32  ;;  %v2475_v32 = vld [vmem:[#allocation8 + $0x158] sm:$0xff]  ;;  %v8375_v4 = vld [vmem:[#allocation23_spill] sm:$0xff] }
 0x466   :  { %8357 = vst [vmem:[#allocation59_spill] sm:$0xff] %v7474_v55  ;;  %v7517_v29 = vpack.c.bf16 %v2475_v32, %v2469_v7  ;;  %v2504_v7 = vld [vmem:[#allocation8 + $0x240] sm:$0xff]  ;;  %v2510_v32 = vld [vmem:[#allocation8 + $0x270] sm:$0xff] }
 0x467   :  { %5257 = vmatpush1.bf16.msra.mxu0 %v7458_v38  ;;  %8358 = vst [vmem:[#allocation47_spill] sm:$0xff] %v7477_v2 }
 0x468   :  { %5259 = vmatprep.subr.bf16.mxu0 %v7461_v44  ;;  %5385 = vmatpush1.bf16.msra.mxu1 %v7310_v25  ;;  %v7482_v25 = vpack.c.bf16 %v2157_v50, %v2151_v18  ;;  %v2468_v18 = vld [vmem:[#allocation8 + $0x120] sm:$0xff]  ;;  %v2474_v50 = vld [vmem:[#allocation8 + $0x150] sm:$0xff] }
 0x469   :  { %5387 = vmatprep.subr.bf16.mxu1 %v7314_v13  ;;  %v7485_v13 = vpack.c.bf16 %v2170_v63, %v2164_v62  ;;  %v7519_v62 = vpack.c.bf16 %v2474_v50, %v2468_v18  ;;  %v2481_v63 = vld [vmem:[#allocation8 + $0x188] sm:$0xff]  ;;  %v2523_v50 = vld [vmem:[#allocation8 + $0x2d8] sm:$0xff]  ;;  %v2594_v44 = vld [vmem:[#allocation8 + $0x510] sm:$0xff] }
 0x46a   :  { %8359 = vst [vmem:[#allocation48_spill] sm:$0xff] %v7482_v25  ;;  %v2517_v18 = vld [vmem:[#allocation8 + $0x2a8] sm:$0xff] }
 0x46b   :  { %5261 = vmatpush1.bf16.msra.mxu0 %v7466_v57  ;;  %8360 = vst [vmem:[#allocation60_spill] sm:$0xff] %v7485_v13 }
 0x46c   :  { %5263 = vmatprep.subr.bf16.mxu0 %v7469_v22  ;;  %5389 = vmatpush1.bf16.msra.mxu1 %v7316_v54  ;;  %v7490_v54 = vpack.c.bf16 %v2169_v36, %v2163_v12  ;;  %v2487_v12 = vld [vmem:[#allocation8 + $0x1b8] sm:$0xff]  ;;  %v2480_v36 = vld [vmem:[#allocation8 + $0x180] sm:$0xff]  ;;  %v2582_v22 = vld [vmem:[#allocation8 + $0x4b0] sm:$0xff] }
 0x46d   :  { %5391 = vmatprep.subr.bf16.mxu1 %v7320_v41  ;;  %v2433_v41 = vld [vmem:[#allocation8 + $0x8] sm:$0xff] }
 0x46e   :  { %8361 = vst [vmem:[#allocation61_spill] sm:$0xff] %v7490_v54 }
 0x46f   :  { %5265 = vmatpush1.bf16.msra.mxu0 %v7474_v55 }
 0x470   :  { %5267 = vmatprep.subr.bf16.mxu0 %v7477_v2  ;;  %5393 = vmatpush1.bf16.msra.mxu1 %v7322_v21  ;;  %v2439_v21 = vld [vmem:[#allocation8 + $0x38] sm:$0xff] }
 0x471   :  { %5395 = vmatprep.subr.bf16.mxu1 %v7326_v51  ;;  %v7499_v51 = vpack.c.bf16 %v2439_v21, %v2433_v41  ;;  %v7523_v41 = vpack.c.bf16 %v2487_v12, %v2481_v63  ;;  %v2486_v21 = vld [vmem:[#allocation8 + $0x1b0] sm:$0xff]  ;;  %v7537_v63 = vpack.c.bf16 %v2510_v32, %v2504_v7  ;;  %v7540_v12 = vpack.c.bf16 %v2523_v50, %v2517_v18  ;;  %v2541_v7 = vld [vmem:[#allocation8 + $0x368] sm:$0xff]  ;;  %v2547_v32 = vld [vmem:[#allocation8 + $0x398] sm:$0xff] }
 0x472   :  { %v7549_v18 = vpack.c.bf16 %v2534_v3, %v2528_v40  ;;  %v7552_v50 = vpack.c.bf16 %v2547_v32, %v2541_v7  ;;  %v2552_v40 = vld [vmem:[#allocation8 + $0x3c0] sm:$0xff]  ;;  %v2558_v3 = vld [vmem:[#allocation8 + $0x3f0] sm:$0xff]  ;;  %v2565_v7 = vld [vmem:[#allocation8 + $0x428] sm:$0xff] }
 0x473   :  { %5269 = vmatpush1.bf16.msra.mxu0 %v7482_v25  ;;  %v7561_v25 = vpack.c.bf16 %v2558_v3, %v2552_v40  ;;  %v2571_v32 = vld [vmem:[#allocation8 + $0x458] sm:$0xff]  ;;  %v2576_v3 = vld [vmem:[#allocation8 + $0x480] sm:$0xff] }
 0x474   :  { %5271 = vmatprep.subr.bf16.mxu0 %v7485_v13  ;;  %5397 = vmatpush1.bf16.msra.mxu1 %v7328_v28  ;;  %v2445_v28 = vld [vmem:[#allocation8 + $0x68] sm:$0xff]  ;;  %v7565_v2 = vpack.c.bf16 %v2571_v32, %v2565_v7  ;;  %v7573_v57 = vpack.c.bf16 %v2582_v22, %v2576_v3  ;;  %v2595_v32 = vld [vmem:[#allocation8 + $0x518] sm:$0xff]  ;;  %v2600_v3 = vld [vmem:[#allocation8 + $0x540] sm:$0xff] }
 0x475   :  { %5399 = vmatprep.subr.bf16.mxu1 %v7332_v14  ;;  %v2451_v14 = vld [vmem:[#allocation8 + $0x98] sm:$0xff]  ;;  %8363 = vst [vmem:[#allocation50_spill] sm:$0xff] %v7561_v25  ;;  %v2589_v7 = vld [vmem:[#allocation8 + $0x4e8] sm:$0xff] }
 0x476   :  { %v7505_v47 = vpack.c.bf16 %v2451_v14, %v2445_v28  ;;  %v7525_v28 = vpack.c.bf16 %v2486_v21, %v2480_v36  ;;  %v7527_v14 = vpack.c.bf16 %v2499_v59, %v2493_v43  ;;  %v2516_v36 = vld [vmem:[#allocation8 + $0x2a0] sm:$0xff]  ;;  %v2522_v21 = vld [vmem:[#allocation8 + $0x2d0] sm:$0xff]  ;;  %v2529_v43 = vld [vmem:[#allocation8 + $0x308] sm:$0xff]  ;;  %8364 = vst [vmem:[#allocation62_spill] sm:$0xff] %v7565_v2 }
 0x477   :  { %5273 = vmatpush1.bf16.msra.mxu0 %v7490_v54  ;;  %v2535_v59 = vld [vmem:[#allocation8 + $0x338] sm:$0xff]  ;;  %8367 = vst [vmem:[#allocation52_spill] sm:$0xff] %v7573_v57 }
 0x478   :  { %5401 = vmatpush1.bf16.msra.mxu1 %v7334_v39  ;;  %5275 = vmatprep.subr.bf16.mxu0 %v7499_v51  ;;  %v2444_v39 = vld [vmem:[#allocation8 + $0x60] sm:$0xff]  ;;  %v2559_v54 = vld [vmem:[#allocation8 + $0x3f8] sm:$0xff] }
 0x479   :  { %5403 = vmatprep.subr.bf16.mxu1 %v7338_v24  ;;  %v2450_v24 = vld [vmem:[#allocation8 + $0x90] sm:$0xff] }
 0x47a   :  { %2378 = vmatmul.mubr.f32.vlgmr.msra.gmra.mrb[34].mxu0 %v7353_v11  ;;  %v7507_v30 = vpack.c.bf16 %v2450_v24, %v2444_v39  ;;  %v2492_v39 = vld [vmem:[#allocation8 + $0x1e0] sm:$0xff]  ;;  %v2498_v24 = vld [vmem:[#allocation8 + $0x210] sm:$0xff] }
 0x47b   :  { %5277 = vmatpush1.bf16.msra.mxu0 %v7501_v16  ;;  %v7531_v0 = vpack.c.bf16 %v2498_v24, %v2492_v39  ;;  %v7543_v39 = vpack.c.bf16 %v2522_v21, %v2516_v36  ;;  %v7546_v24 = vpack.c.bf16 %v2535_v59, %v2529_v43  ;;  %v2540_v36 = vld [vmem:[#allocation8 + $0x360] sm:$0xff]  ;;  %v2546_v21 = vld [vmem:[#allocation8 + $0x390] sm:$0xff]  ;;  %v2553_v59 = vld [vmem:[#allocation8 + $0x3c8] sm:$0xff] }
 0x47c   :  { %5279 = vmatprep.subr.bf16.mxu0 %v7505_v47  ;;  %v7556_v43 = vpack.c.bf16 %v2546_v21, %v2540_v36  ;;  %v7559_v13 = vpack.c.bf16 %v2559_v54, %v2553_v59  ;;  %v2564_v36 = vld [vmem:[#allocation8 + $0x420] sm:$0xff]  ;;  %v2570_v21 = vld [vmem:[#allocation8 + $0x450] sm:$0xff]  ;;  %v2577_v54 = vld [vmem:[#allocation8 + $0x488] sm:$0xff] }
 0x47d   :  { %v7567_v55 = vpack.c.bf16 %v2570_v21, %v2564_v36  ;;  %v2583_v59 = vld [vmem:[#allocation8 + $0x4b8] sm:$0xff]  ;;  %v7577_v36 = vpack.c.bf16 %v2595_v32, %v2589_v7  ;;  %v2588_v21 = vld [vmem:[#allocation8 + $0x4e0] sm:$0xff]  ;;  %v2613_v7 = vld [vmem:[#allocation8 + $0x5a8] sm:$0xff] }
 0x47e   :  { %8362 = vst [vmem:[#allocation49_spill] sm:$0xff] %v7559_v13  ;;  %v7571_v40 = vpack.c.bf16 %v2583_v59, %v2577_v54  ;;  %v7579_v38 = vpack.c.bf16 %v2594_v44, %v2588_v21  ;;  %v2601_v54 = vld [vmem:[#allocation8 + $0x548] sm:$0xff]  ;;  %v2607_v59 = vld [vmem:[#allocation8 + $0x578] sm:$0xff]  ;;  %v2612_v44 = vld [vmem:[#allocation8 + $0x5a0] sm:$0xff] }
 0x47f   :  { %5281 = vmatpush1.bf16.msra.mxu0 %v7507_v30  ;;  %8365 = vst [vmem:[#allocation63_spill] sm:$0xff] %v7567_v55  ;;  %8368 = vst [vmem:[#allocation64_spill] sm:$0xff] %v7577_v36  ;;  %v7583_v22 = vpack.c.bf16 %v2607_v59, %v2601_v54  ;;  %v2619_v32 = vld [vmem:[#allocation8 + $0x5d8] sm:$0xff] }
 0x480   :  { %5283 = vmatprep.subr.bf16.mxu0 %v7511_v8  ;;  %8366 = vst [vmem:[#allocation51_spill] sm:$0xff] %v7571_v40  ;;  %8369 = vst [vmem:[#allocation65_spill] sm:$0xff] %v7579_v38  ;;  %v7589_v21 = vpack.c.bf16 %v2619_v32, %v2613_v7 }
 0x481   :  { %8370 = vst [vmem:[#allocation53_spill] sm:$0xff] %v7583_v22 }
 0x482   :  { %8372 = vst [vmem:[#allocation66_spill] sm:$0xff] %v7589_v21 }
 0x483   :  { %5285 = vmatpush1.bf16.msra.mxu0 %v7513_v37 }
 0x484   :  { %5287 = vmatprep.subr.bf16.mxu0 %v7517_v29 }
 0x487   :  { %5289 = vmatpush1.bf16.msra.mxu0 %v7519_v62 }
 0x488   :  { %5291 = vmatprep.subr.bf16.mxu0 %v7523_v41 }
 0x48b   :  { %5293 = vmatpush1.bf16.msra.mxu0 %v7525_v28 }
 0x48c   :  { %5295 = vmatprep.subr.bf16.mxu0 %v7527_v14 }
 0x48f   :  { %5297 = vmatpush1.bf16.msra.mxu0 %v7531_v0 }
 0x490   :  { %5299 = vmatprep.subr.bf16.mxu0 %v7534_v17 }
 0x493   :  { %5301 = vmatpush1.bf16.msra.mxu0 %v7537_v63 }
 0x494   :  { %5303 = vmatprep.subr.bf16.mxu0 %v7540_v12 }
 0x497   :  { %5305 = vmatpush1.bf16.msra.mxu0 %v7543_v39 }
 0x498   :  { %5307 = vmatprep.subr.bf16.mxu0 %v7546_v24 }
 0x49b   :  { %5309 = vmatpush1.bf16.msra.mxu0 %v7549_v18 }
 0x49c   :  { %5311 = vmatprep.subr.bf16.mxu0 %v7552_v50 }
 0x49f   :  { %5313 = vmatpush1.bf16.msra.mxu0 %v7556_v43 }
 0x4a0   :  { %5315 = vmatprep.subr.bf16.mxu0 %v7559_v13 }
 0x4a3   :  { %5317 = vmatpush1.bf16.msra.mxu0 %v7561_v25 }
 0x4a4   :  { %5319 = vmatprep.subr.bf16.mxu0 %v7565_v2 }
 0x4a7   :  { %5321 = vmatpush1.bf16.msra.mxu0 %v7567_v55 }
 0x4a8   :  { %5323 = vmatprep.subr.bf16.mxu0 %v7571_v40  ;;  %v2606_v40 = vld [vmem:[#allocation8 + $0x570] sm:$0xff] }
 0x4a9   :  { %v7585_v55 = vpack.c.bf16 %v2606_v40, %v2600_v3 }
 0x4ab   :  { %5325 = vmatpush1.bf16.msra.mxu0 %v7573_v57  ;;  %8371 = vst [vmem:[#allocation54_spill] sm:$0xff] %v7585_v55 }
 0x4ac   :  { %5327 = vmatprep.subr.bf16.mxu0 %v7577_v36  ;;  %v2618_v36 = vld [vmem:[#allocation8 + $0x5d0] sm:$0xff] }
 0x4ad   :  { %v7591_v57 = vpack.c.bf16 %v2618_v36, %v2612_v44 }
 0x4af   :  { %5329 = vmatpush1.bf16.msra.mxu0 %v7579_v38  ;;  %8373 = vst [vmem:[#allocation67_spill] sm:$0xff] %v7591_v57 }
 0x4b0   :  { %5331 = vmatprep.subr.bf16.mxu0 %v7583_v22  ;;  %v8374_v22 = vld [vmem:[#allocation26_spill] sm:$0xff] }
 0x4b3   :  { %5333 = vmatpush1.bf16.msra.mxu0 %v7585_v55 }
 0x4b4   :  { %5335 = vmatprep.subr.bf16.mxu0 %v7589_v21 }
 0x4b7   :  { %5337 = vmatpush1.bf16.msra.mxu0 %v7591_v57 }
 0x4b8   :  { %5467 = vmatprep.subr.bf16.mxu0 %v7499_v51 }
 0x50d   :  { %v2237_v40 = vpop.f32.mrb[6].mxu0  ;;  %v2308_v54 = vpop.f32.mrb[26].mxu1 }
 0x50e   :  { %v6080_v59 = vadd.f32 %v2237_v40, %v8346_v48  ;;  %v2239_v3 = vpop.f32.mrb[7].mxu0  ;;  %v2310_v55 = vpop.f32.mrb[27].mxu1  ;;  %v2402_v57 = vadd.f32 %v7348_v53, %v2308_v54 }
 0x50f   :  { %v2410_v38 = vadd.f32 %v2310_v55, %v8374_v22  ;;  %v6081_v7 = vadd.f32 %v2239_v3, %v6904_v20 }
 0x510   :  { %v2393_v2 = vmul.f32 0.5, %v6080_v59 }
 0x511   :  { %v2398_v36 = vmul.f32 0.5, %v6081_v7  ;;  %v2411_v3 = vmul.f32 0.5, %v2410_v38 }
 0x512   :  { %6155 = vtanh.f32 %v2393_v2 }
 0x513   :  { %6157 = vtanh.f32 %v2398_v36 }
 0x51c   :  { %v6156_v32 = vpop.eup %6155 }
 0x51d   :  { %v2395_v44 = vadd.f32 1.0, %v6156_v32  ;;  %v6158_v25 = vpop.eup %6157 }
 0x51e   :  { %v2400_v40 = vadd.f32 1.0, %v6158_v25 }
 0x51f   :  { %v2396_v21 = vmul.f32 0.5, %v2395_v44 }
 0x520   :  { %v2401_v48 = vmul.f32 0.5, %v2400_v40 }
 0x521   :  { %v2403_v51 = vmul.f32 %v2402_v57, %v2396_v21  ;;  %v8376_v21 = vld [vmem:[#allocation39_spill] sm:$0xff] }
 0x522   :  { %v2406_v13 = vsub.f32 1.0, %v2401_v48  ;;  %v2408_v59 = vmul.f32 %v2401_v48, %v7353_v11 }
 0x523   :  { %v2404_v46 = vadd.f32 %v2403_v51, %v8375_v4 }
 0x525   :  { %6159 = vtanh.f32 %v2404_v46 }
 0x526   :  { %6161 = vtanh.f32 %v2411_v3  ;;  %v2920_v3 = vld [vmem:[#allocation8 + $0x138] sm:$0xff] }
 0x52f   :  { %v6160_v55 = vpop.eup %6159 }
 0x530   :  { %v2407_v22 = vmul.f32 %v6160_v55, %v2406_v13  ;;  %v6162_v7 = vpop.eup %6161  ;;  %v8377_v13 = vld [vmem:[#allocation40_spill] sm:$0xff] }
 0x531   :  { %v2413_v53 = vadd.f32 1.0, %v6162_v7  ;;  %v2926_v7 = vld [vmem:[#allocation8 + $0x168] sm:$0xff] }
 0x532   :  { %v7602_v2 = vadd.f32 %v2408_v59, %v2407_v22 }
 0x533   :  { %v2414_v46 = vmul.f32 0.5, %v2413_v53  ;;  %v7698_v53 = vpack.c.bf16 %v2926_v7, %v2920_v3  ;;  %v3034_v3 = vld [vmem:[#allocation8 + $0x4c8] sm:$0xff] }
 0x534   :  { %2429 = vst [vmem:[#allocation11 + $0x30] sm:$0xff] %v7602_v2 }
 0x54d   :  { %v2379_v57 = vpop.f32.mrb[34].mxu0 }
 0x54e   :  { %v2415_v54 = vadd.f32 %v2379_v57, %v8376_v21  ;;  %v2381_v4 = vpop.f32.mrb[35].mxu0  ;;  %v2919_v57 = vld [vmem:[#allocation8 + $0x130] sm:$0xff]  ;;  %v2925_v21 = vld [vmem:[#allocation8 + $0x160] sm:$0xff] }
 0x54f   :  { %v2420_v25 = vadd.f32 %v7360_v9, %v2381_v4  ;;  %v8378_v9 = vld [vmem:[#allocation49_spill] sm:$0xff] }
 0x550   :  { %v2416_v36 = vmul.f32 0.5, %v2415_v54  ;;  %v7700_v54 = vpack.c.bf16 %v2925_v21, %v2919_v57  ;;  %v2932_v4 = vld [vmem:[#allocation8 + $0x198] sm:$0xff]  ;;  %v3027_v57 = vld [vmem:[#allocation8 + $0x490] sm:$0xff]  ;;  %v3033_v21 = vld [vmem:[#allocation8 + $0x4c0] sm:$0xff] }
 0x551   :  { %v2421_v32 = vmul.f32 %v2420_v25, %v2414_v46  ;;  %v2938_v46 = vld [vmem:[#allocation8 + $0x1c8] sm:$0xff]  ;;  %v2931_v25 = vld [vmem:[#allocation8 + $0x190] sm:$0xff] }
 0x552   :  { %6163 = vtanh.f32 %v2416_v36  ;;  %v7704_v36 = vpack.c.bf16 %v2938_v46, %v2932_v4  ;;  %v7754_v4 = vpack.c.bf16 %v3033_v21, %v3027_v57  ;;  %v3040_v46 = vld [vmem:[#allocation8 + $0x4f8] sm:$0xff] }
 0x553   :  { %v2422_v48 = vadd.f32 %v2421_v32, %v8377_v13  ;;  %v2937_v32 = vld [vmem:[#allocation8 + $0x1c0] sm:$0xff]  ;;  %v2944_v13 = vld [vmem:[#allocation8 + $0x1f8] sm:$0xff] }
 0x555   :  { %6165 = vtanh.f32 %v2422_v48  ;;  %v2950_v48 = vld [vmem:[#allocation8 + $0x228] sm:$0xff] }
 0x55c   :  { %v6164_v11 = vpop.eup %6163 }
 0x55d   :  { %v2418_v44 = vadd.f32 1.0, %v6164_v11  ;;  %v7706_v11 = vpack.c.bf16 %v2937_v32, %v2931_v25  ;;  %v3046_v25 = vld [vmem:[#allocation8 + $0x528] sm:$0xff] }
 0x55e   :  { %v7758_v32 = vpack.c.bf16 %v3046_v25, %v3040_v46 }
 0x55f   :  { %v2419_v51 = vmul.f32 0.5, %v2418_v44  ;;  %v6166_v40 = vpop.eup %6165  ;;  %v7708_v44 = vpack.c.bf16 %v2950_v48, %v2944_v13  ;;  %v3039_v13 = vld [vmem:[#allocation8 + $0x4f0] sm:$0xff]  ;;  %v3045_v48 = vld [vmem:[#allocation8 + $0x520] sm:$0xff] }
 0x561   :  { %v2424_v38 = vsub.f32 1.0, %v2419_v51  ;;  %v2426_v55 = vmul.f32 %v2419_v51, %v7365_v27  ;;  %v8379_v27 = vld [vmem:[#allocation44_spill] sm:$0xff] }
 0x562   :  { %v2943_v51 = vld [vmem:[#allocation8 + $0x1f0] sm:$0xff] }
 0x563   :  { %v2425_v22 = vmul.f32 %v6166_v40, %v2424_v38  ;;  %v2949_v38 = vld [vmem:[#allocation8 + $0x220] sm:$0xff]  ;;  %v2956_v40 = vld [vmem:[#allocation8 + $0x258] sm:$0xff] }
 0x565   :  { %v7609_v59 = vadd.f32 %v2426_v55, %v2425_v22  ;;  %v2962_v55 = vld [vmem:[#allocation8 + $0x288] sm:$0xff]  ;;  %v7712_v22 = vpack.c.bf16 %v2949_v38, %v2943_v51  ;;  %v7760_v51 = vpack.c.bf16 %v3045_v48, %v3039_v13  ;;  %v3052_v38 = vld [vmem:[#allocation8 + $0x558] sm:$0xff] }
 0x566   :  { %v8403_v48 = vld [vmem:[#allocation25_spill] sm:$0xff] }
 0x567   :  { %2431 = vst [vmem:[#allocation11 + $0x48] sm:$0xff] %v7609_v59  ;;  %2688 = vmatprep.mubr.f32.mxu0 %v7609_v59  ;;  %2759 = vmatprep.mubr.f32.mxu1 %v7609_v59 }
 0x568   :  { %2689 = vmatmul.mubr.f32.vlgmr.msra.gmra.mrb[8].mxu0 %v7602_v2  ;;  %2760 = vmatmul.mubr.f32.vlgmr.msra.gmra.mrb[28].mxu1 %v7602_v2 }
 0x569   :  { %5405 = vmatpush1.bf16.msra.mxu1 %v7367_v58  ;;  %2830 = vmatprep.mubr.f32.mxu1 %v7609_v59  ;;  %v8380_v58 = vld [vmem:[#allocation56_spill] sm:$0xff] }
 0x56a   :  { %5407 = vmatprep.subr.bf16.mxu1 %v7369_v60  ;;  %5469 = vmatpush1.bf16.msra.mxu0 %v7501_v16  ;;  %v8381_v60 = vld [vmem:[#allocation50_spill] sm:$0xff]  ;;  %v8400_v16 = vld [vmem:[#allocation67_spill] sm:$0xff] }
 0x56b   :  { %5471 = vmatprep.subr.bf16.mxu0 %v7505_v47  ;;  %v2884_v47 = vld [vmem:[#allocation8 + $0x18] sm:$0xff] }
 0x56d   :  { %5409 = vmatpush1.bf16.msra.mxu1 %v7378_v26  ;;  %v8382_v26 = vld [vmem:[#allocation62_spill] sm:$0xff] }
 0x56e   :  { %5411 = vmatprep.subr.bf16.mxu1 %v7381_v34  ;;  %5473 = vmatpush1.bf16.msra.mxu0 %v7507_v30  ;;  %v8383_v34 = vld [vmem:[#allocation57_spill] sm:$0xff]  ;;  %v2890_v30 = vld [vmem:[#allocation8 + $0x48] sm:$0xff] }
 0x56f   :  { %5475 = vmatprep.subr.bf16.mxu0 %v7511_v8  ;;  %v7680_v8 = vpack.c.bf16 %v2890_v30, %v2884_v47  ;;  %v3010_v47 = vld [vmem:[#allocation8 + $0x408] sm:$0xff] }
 0x571   :  { %5413 = vmatpush1.bf16.msra.mxu1 %v7386_v6  ;;  %v8384_v6 = vld [vmem:[#allocation45_spill] sm:$0xff] }
 0x572   :  { %5415 = vmatprep.subr.bf16.mxu1 %v7389_v33  ;;  %5477 = vmatpush1.bf16.msra.mxu0 %v7513_v37  ;;  %v8385_v33 = vld [vmem:[#allocation63_spill] sm:$0xff]  ;;  %v2883_v37 = vld [vmem:[#allocation8 + $0x10] sm:$0xff] }
 0x573   :  { %5479 = vmatprep.subr.bf16.mxu0 %v7517_v29  ;;  %v2889_v29 = vld [vmem:[#allocation8 + $0x40] sm:$0xff] }
 0x575   :  { %5417 = vmatpush1.bf16.msra.mxu1 %v7394_v42  ;;  %v8386_v42 = vld [vmem:[#allocation51_spill] sm:$0xff] }
 0x576   :  { %5419 = vmatprep.subr.bf16.mxu1 %v7397_v45  ;;  %5481 = vmatpush1.bf16.msra.mxu0 %v7519_v62  ;;  %v8387_v45 = vld [vmem:[#allocation46_spill] sm:$0xff]  ;;  %v7682_v62 = vpack.c.bf16 %v2889_v29, %v2883_v37  ;;  %v3003_v37 = vld [vmem:[#allocation8 + $0x3d0] sm:$0xff] }
 0x577   :  { %5483 = vmatprep.subr.bf16.mxu0 %v7523_v41  ;;  %v2896_v41 = vld [vmem:[#allocation8 + $0x78] sm:$0xff]  ;;  %v3009_v29 = vld [vmem:[#allocation8 + $0x400] sm:$0xff] }
 0x579   :  { %5421 = vmatpush1.bf16.msra.mxu1 %v7402_v61  ;;  %v8388_v61 = vld [vmem:[#allocation58_spill] sm:$0xff] }
 0x57a   :  { %5423 = vmatprep.subr.bf16.mxu1 %v7405_v19  ;;  %5485 = vmatpush1.bf16.msra.mxu0 %v7525_v28  ;;  %v8389_v19 = vld [vmem:[#allocation52_spill] sm:$0xff]  ;;  %v2902_v28 = vld [vmem:[#allocation8 + $0xa8] sm:$0xff] }
 0x57b   :  { %5487 = vmatprep.subr.bf16.mxu0 %v7527_v14  ;;  %v7686_v14 = vpack.c.bf16 %v2902_v28, %v2896_v41  ;;  %v7742_v41 = vpack.c.bf16 %v3009_v29, %v3003_v37  ;;  %v3016_v28 = vld [vmem:[#allocation8 + $0x438] sm:$0xff] }
 0x57d   :  { %5425 = vmatpush1.bf16.msra.mxu1 %v7410_v15  ;;  %v8390_v15 = vld [vmem:[#allocation64_spill] sm:$0xff] }
 0x57e   :  { %5427 = vmatprep.subr.bf16.mxu1 %v7413_v5  ;;  %5489 = vmatpush1.bf16.msra.mxu0 %v7531_v0  ;;  %v8391_v5 = vld [vmem:[#allocation59_spill] sm:$0xff]  ;;  %v2895_v0 = vld [vmem:[#allocation8 + $0x70] sm:$0xff] }
 0x57f   :  { %5491 = vmatprep.subr.bf16.mxu0 %v7534_v17  ;;  %v2901_v17 = vld [vmem:[#allocation8 + $0xa0] sm:$0xff] }
 0x581   :  { %5429 = vmatpush1.bf16.msra.mxu1 %v7418_v35  ;;  %v8392_v35 = vld [vmem:[#allocation47_spill] sm:$0xff] }
 0x582   :  { %5431 = vmatprep.subr.bf16.mxu1 %v7421_v52  ;;  %5493 = vmatpush1.bf16.msra.mxu0 %v7537_v63  ;;  %v8393_v52 = vld [vmem:[#allocation65_spill] sm:$0xff]  ;;  %v7688_v63 = vpack.c.bf16 %v2901_v17, %v2895_v0  ;;  %v3022_v0 = vld [vmem:[#allocation8 + $0x468] sm:$0xff] }
 0x583   :  { %5495 = vmatprep.subr.bf16.mxu0 %v7540_v12  ;;  %v2908_v12 = vld [vmem:[#allocation8 + $0xd8] sm:$0xff]  ;;  %v7746_v17 = vpack.c.bf16 %v3022_v0, %v3016_v28  ;;  %v8402_v28 = vld [vmem:[#allocation24_spill] sm:$0xff] }
 0x585   :  { %5433 = vmatpush1.bf16.msra.mxu1 %v7426_v23  ;;  %v8394_v23 = vld [vmem:[#allocation53_spill] sm:$0xff] }
 0x586   :  { %5435 = vmatprep.subr.bf16.mxu1 %v7429_v10  ;;  %5497 = vmatpush1.bf16.msra.mxu0 %v7543_v39  ;;  %v8395_v10 = vld [vmem:[#allocation48_spill] sm:$0xff]  ;;  %v2914_v39 = vld [vmem:[#allocation8 + $0x108] sm:$0xff] }
 0x587   :  { %5499 = vmatprep.subr.bf16.mxu0 %v7546_v24  ;;  %v7692_v24 = vpack.c.bf16 %v2914_v39, %v2908_v12  ;;  %v3015_v12 = vld [vmem:[#allocation8 + $0x430] sm:$0xff]  ;;  %v3021_v39 = vld [vmem:[#allocation8 + $0x460] sm:$0xff] }
 0x589   :  { %5437 = vmatpush1.bf16.msra.mxu1 %v7434_v56  ;;  %v8396_v56 = vld [vmem:[#allocation60_spill] sm:$0xff] }
 0x58a   :  { %5439 = vmatprep.subr.bf16.mxu1 %v7437_v1  ;;  %5501 = vmatpush1.bf16.msra.mxu0 %v7549_v18  ;;  %v8397_v1 = vld [vmem:[#allocation54_spill] sm:$0xff]  ;;  %v2907_v18 = vld [vmem:[#allocation8 + $0xd0] sm:$0xff] }
 0x58b   :  { %5503 = vmatprep.subr.bf16.mxu0 %v7552_v50  ;;  %v2913_v50 = vld [vmem:[#allocation8 + $0x100] sm:$0xff] }
 0x58d   :  { %5441 = vmatpush1.bf16.msra.mxu1 %v7442_v49  ;;  %v8398_v49 = vld [vmem:[#allocation66_spill] sm:$0xff] }
 0x58e   :  { %5443 = vmatprep.subr.bf16.mxu1 %v7445_v31  ;;  %5505 = vmatpush1.bf16.msra.mxu0 %v7556_v43  ;;  %v8399_v31 = vld [vmem:[#allocation61_spill] sm:$0xff]  ;;  %v7694_v43 = vpack.c.bf16 %v2913_v50, %v2907_v18  ;;  %v7748_v18 = vpack.c.bf16 %v3021_v39, %v3015_v12 }
 0x58f   :  { %5507 = vmatprep.subr.bf16.mxu0 %v8378_v9  ;;  %v7715_v9 = vpack.c.bf16 %v2962_v55, %v2956_v40  ;;  %v3028_v50 = vld [vmem:[#allocation8 + $0x498] sm:$0xff]  ;;  %v3058_v40 = vld [vmem:[#allocation8 + $0x588] sm:$0xff] }
 0x590   :  { %v7752_v7 = vpack.c.bf16 %v3034_v3, %v3028_v50  ;;  %v7764_v55 = vpack.c.bf16 %v3058_v40, %v3052_v38 }
 0x591   :  { %5445 = vmatpush1.bf16.msra.mxu1 %v8379_v27  ;;  %v2955_v27 = vld [vmem:[#allocation8 + $0x250] sm:$0xff] }
 0x592   :  { %5447 = vmatprep.subr.bf16.mxu1 %v8380_v58  ;;  %5509 = vmatpush1.bf16.msra.mxu0 %v8381_v60  ;;  %v2961_v58 = vld [vmem:[#allocation8 + $0x280] sm:$0xff]  ;;  %v2968_v60 = vld [vmem:[#allocation8 + $0x2b8] sm:$0xff] }
 0x593   :  { %5511 = vmatprep.subr.bf16.mxu0 %v8382_v26  ;;  %v2974_v26 = vld [vmem:[#allocation8 + $0x2e8] sm:$0xff] }
 0x595   :  { %5449 = vmatpush1.bf16.msra.mxu1 %v8383_v34  ;;  %v7718_v34 = vpack.c.bf16 %v2961_v58, %v2955_v27  ;;  %v3051_v27 = vld [vmem:[#allocation8 + $0x550] sm:$0xff]  ;;  %v3057_v58 = vld [vmem:[#allocation8 + $0x580] sm:$0xff] }
 0x596   :  { %5451 = vmatprep.subr.bf16.mxu1 %v8384_v6  ;;  %5513 = vmatpush1.bf16.msra.mxu0 %v8385_v33  ;;  %v7721_v6 = vpack.c.bf16 %v2974_v26, %v2968_v60  ;;  %v2967_v33 = vld [vmem:[#allocation8 + $0x2b0] sm:$0xff]  ;;  %v7766_v60 = vpack.c.bf16 %v3057_v58, %v3051_v27  ;;  %v3064_v26 = vld [vmem:[#allocation8 + $0x5b8] sm:$0xff] }
 0x597   :  { %5515 = vmatprep.subr.bf16.mxu0 %v8386_v42  ;;  %v2973_v42 = vld [vmem:[#allocation8 + $0x2e0] sm:$0xff] }
 0x599   :  { %5453 = vmatpush1.bf16.msra.mxu1 %v8387_v45  ;;  %v2980_v45 = vld [vmem:[#allocation8 + $0x318] sm:$0xff] }
 0x59a   :  { %5455 = vmatprep.subr.bf16.mxu1 %v8388_v61  ;;  %5517 = vmatpush1.bf16.msra.mxu0 %v8389_v19  ;;  %v2986_v61 = vld [vmem:[#allocation8 + $0x348] sm:$0xff]  ;;  %v7724_v19 = vpack.c.bf16 %v2973_v42, %v2967_v33  ;;  %v3063_v42 = vld [vmem:[#allocation8 + $0x5b0] sm:$0xff] }
 0x59b   :  { %5519 = vmatprep.subr.bf16.mxu0 %v8390_v15  ;;  %v7727_v15 = vpack.c.bf16 %v2986_v61, %v2980_v45  ;;  %v3070_v33 = vld [vmem:[#allocation8 + $0x5e8] sm:$0xff]  ;;  %v3069_v61 = vld [vmem:[#allocation8 + $0x5e0] sm:$0xff] }
 0x59c   :  { %v7770_v45 = vpack.c.bf16 %v3070_v33, %v3064_v26 }
 0x59d   :  { %5457 = vmatpush1.bf16.msra.mxu1 %v8391_v5  ;;  %v2979_v5 = vld [vmem:[#allocation8 + $0x310] sm:$0xff] }
 0x59e   :  { %5459 = vmatprep.subr.bf16.mxu1 %v8392_v35  ;;  %5521 = vmatpush1.bf16.msra.mxu0 %v8393_v52  ;;  %v2985_v35 = vld [vmem:[#allocation8 + $0x340] sm:$0xff]  ;;  %v2992_v52 = vld [vmem:[#allocation8 + $0x378] sm:$0xff] }
 0x59f   :  { %5523 = vmatprep.subr.bf16.mxu0 %v8394_v23  ;;  %v2998_v23 = vld [vmem:[#allocation8 + $0x3a8] sm:$0xff] }
 0x5a1   :  { %5461 = vmatpush1.bf16.msra.mxu1 %v8395_v10  ;;  %v7730_v10 = vpack.c.bf16 %v2985_v35, %v2979_v5  ;;  %v7772_v5 = vpack.c.bf16 %v3069_v61, %v3063_v42  ;;  %v2886_v35 = vld [vmem:[#allocation8 + $0x28] sm:$0xff] }
 0x5a2   :  { %5463 = vmatprep.subr.bf16.mxu1 %v8396_v56  ;;  %5525 = vmatpush1.bf16.msra.mxu0 %v8397_v1  ;;  %v7733_v56 = vpack.c.bf16 %v2998_v23, %v2992_v52  ;;  %v2991_v1 = vld [vmem:[#allocation8 + $0x370] sm:$0xff]  ;;  %v2892_v52 = vld [vmem:[#allocation8 + $0x58] sm:$0xff] }
 0x5a3   :  { %5527 = vmatprep.subr.bf16.mxu0 %v8398_v49  ;;  %v2997_v49 = vld [vmem:[#allocation8 + $0x3a0] sm:$0xff]  ;;  %v7776_v23 = vpack.c.bf16 %v2892_v52, %v2886_v35 }
 0x5a5   :  { %5465 = vmatpush1.bf16.msra.mxu1 %v8399_v31  ;;  %v7737_v31 = vpack.c.bf16 %v2997_v49, %v2991_v1 }
 0x5a6   :  { %5529 = vmatpush1.bf16.msra.mxu0 %v8400_v16  ;;  %5531 = vmatprep.subr.bf16.mxu1 %v7680_v8  ;;  %v3004_v16 = vld [vmem:[#allocation8 + $0x3d8] sm:$0xff] }
 0x5a7   :  { %v7740_v30 = vpack.c.bf16 %v3010_v47, %v3004_v16  ;;  %5595 = vmatprep.subr.bf16.mxu0 %v7776_v23  ;;  %v8401_v16 = vld [vmem:[#allocation43_spill] sm:$0xff] }
 0x5a8   :  { %2831 = vmatmul.mubr.f32.vlgmr.msra.gmra.mrb[30].mxu1 %v7602_v2 }
 0x5a9   :  { %5533 = vmatpush1.bf16.msra.mxu1 %v7682_v62 }
 0x5aa   :  { %5535 = vmatprep.subr.bf16.mxu1 %v7686_v14 }
 0x5ad   :  { %5537 = vmatpush1.bf16.msra.mxu1 %v7688_v63 }
 0x5ae   :  { %5539 = vmatprep.subr.bf16.mxu1 %v7692_v24 }
 0x5b1   :  { %5541 = vmatpush1.bf16.msra.mxu1 %v7694_v43 }
 0x5b2   :  { %5543 = vmatprep.subr.bf16.mxu1 %v7698_v53 }
 0x5b5   :  { %5545 = vmatpush1.bf16.msra.mxu1 %v7700_v54 }
 0x5b6   :  { %5547 = vmatprep.subr.bf16.mxu1 %v7704_v36 }
 0x5b9   :  { %5549 = vmatpush1.bf16.msra.mxu1 %v7706_v11 }
 0x5ba   :  { %5551 = vmatprep.subr.bf16.mxu1 %v7708_v44 }
 0x5bd   :  { %5553 = vmatpush1.bf16.msra.mxu1 %v7712_v22 }
 0x5be   :  { %5555 = vmatprep.subr.bf16.mxu1 %v7715_v9 }
 0x5c1   :  { %5557 = vmatpush1.bf16.msra.mxu1 %v7718_v34 }
 0x5c2   :  { %5559 = vmatprep.subr.bf16.mxu1 %v7721_v6 }
 0x5c5   :  { %5561 = vmatpush1.bf16.msra.mxu1 %v7724_v19 }
 0x5c6   :  { %5563 = vmatprep.subr.bf16.mxu1 %v7727_v15 }
 0x5c9   :  { %5565 = vmatpush1.bf16.msra.mxu1 %v7730_v10 }
 0x5ca   :  { %5567 = vmatprep.subr.bf16.mxu1 %v7733_v56 }
 0x5cd   :  { %5569 = vmatpush1.bf16.msra.mxu1 %v7737_v31 }
 0x5ce   :  { %5571 = vmatprep.subr.bf16.mxu1 %v7740_v30 }
 0x5d1   :  { %5573 = vmatpush1.bf16.msra.mxu1 %v7742_v41 }
 0x5d2   :  { %5575 = vmatprep.subr.bf16.mxu1 %v7746_v17 }
 0x5d5   :  { %5577 = vmatpush1.bf16.msra.mxu1 %v7748_v18 }
 0x5d6   :  { %5579 = vmatprep.subr.bf16.mxu1 %v7752_v7 }
 0x5d9   :  { %5581 = vmatpush1.bf16.msra.mxu1 %v7754_v4 }
 0x5da   :  { %5583 = vmatprep.subr.bf16.mxu1 %v7758_v32 }
 0x5dd   :  { %5585 = vmatpush1.bf16.msra.mxu1 %v7760_v51 }
 0x5de   :  { %5587 = vmatprep.subr.bf16.mxu1 %v7764_v55 }
 0x5e1   :  { %5589 = vmatpush1.bf16.msra.mxu1 %v7766_v60 }
 0x5e2   :  { %5591 = vmatprep.subr.bf16.mxu1 %v7770_v45 }
 0x5e5   :  { %5593 = vmatpush1.bf16.msra.mxu1 %v7772_v5 }
 0x5e6   :  { %5723 = vmatprep.subr.bf16.mxu1 %v7680_v8  ;;  %v7786_v8 = vld [vmem:[%s8191_s4] ss:$0 sm:$0xff] }
 0x63b   :  { %v2690_v1 = vpop.f32.mrb[8].mxu0  ;;  %v2761_v49 = vpop.f32.mrb[28].mxu1 }
 0x63c   :  { %v6082_v47 = vadd.f32 %v2690_v1, %v8401_v16  ;;  %v2692_v37 = vpop.f32.mrb[9].mxu0  ;;  %v2763_v29 = vpop.f32.mrb[29].mxu1  ;;  %v2853_v46 = vadd.f32 %v7786_v8, %v2761_v49 }
 0x63d   :  { %v2861_v0 = vadd.f32 %v2763_v29, %v8402_v28  ;;  %v6083_v39 = vadd.f32 %v2692_v37, %v6904_v20 }
 0x63e   :  { %v2844_v12 = vmul.f32 0.5, %v6082_v47  ;;  %v8404_v47 = vld [vmem:[#allocation37_spill] sm:$0xff] }
 0x63f   :  { %v2849_v50 = vmul.f32 0.5, %v6083_v39  ;;  %v2862_v35 = vmul.f32 0.5, %v2861_v0 }
 0x640   :  { %6167 = vtanh.f32 %v2844_v12  ;;  %v7798_v12 = vld [vmem:[%s8191_s4 + $0x1] ss:$0 sm:$0xff] }
 0x641   :  { %6169 = vtanh.f32 %v2849_v50 }
 0x64a   :  { %v6168_v3 = vpop.eup %6167 }
 0x64b   :  { %v2846_v57 = vadd.f32 1.0, %v6168_v3  ;;  %v6170_v13 = vpop.eup %6169  ;;  %v8405_v3 = vld [vmem:[#allocation38_spill] sm:$0xff] }
 0x64c   :  { %v2851_v40 = vadd.f32 1.0, %v6170_v13 }
 0x64d   :  { %v2847_v21 = vmul.f32 0.5, %v2846_v57 }
 0x64e   :  { %v2852_v27 = vmul.f32 0.5, %v2851_v40 }
 0x64f   :  { %v2854_v25 = vmul.f32 %v2853_v46, %v2847_v21 }
 0x650   :  { %v2857_v58 = vsub.f32 1.0, %v2852_v27  ;;  %v2859_v42 = vmul.f32 %v2852_v27, %v7602_v2 }
 0x651   :  { %v2855_v38 = vadd.f32 %v2854_v25, %v8403_v48  ;;  %v2885_v48 = vld [vmem:[#allocation8 + $0x20] sm:$0xff] }
 0x653   :  { %6171 = vtanh.f32 %v2855_v38  ;;  %v2891_v38 = vld [vmem:[#allocation8 + $0x50] sm:$0xff] }
 0x654   :  { %6173 = vtanh.f32 %v2862_v35 }
 0x65d   :  { %v6172_v26 = vpop.eup %6171 }
 0x65e   :  { %v2858_v33 = vmul.f32 %v6172_v26, %v2857_v58  ;;  %v6174_v52 = vpop.eup %6173  ;;  %v2898_v58 = vld [vmem:[#allocation8 + $0x88] sm:$0xff]  ;;  %v2904_v26 = vld [vmem:[#allocation8 + $0xb8] sm:$0xff] }
 0x65f   :  { %v2864_v1 = vadd.f32 1.0, %v6174_v52  ;;  %v7807_v35 = vpack.c.bf16 %v2904_v26, %v2898_v58  ;;  %v2897_v52 = vld [vmem:[#allocation8 + $0x80] sm:$0xff]  ;;  %v2958_v58 = vld [vmem:[#allocation8 + $0x268] sm:$0xff]  ;;  %v2964_v26 = vld [vmem:[#allocation8 + $0x298] sm:$0xff] }
 0x660   :  { %v7791_v61 = vadd.f32 %v2859_v42, %v2858_v33  ;;  %v7805_v42 = vpack.c.bf16 %v2891_v38, %v2885_v48  ;;  %v2946_v48 = vld [vmem:[#allocation8 + $0x208] sm:$0xff]  ;;  %v2952_v38 = vld [vmem:[#allocation8 + $0x238] sm:$0xff] }
 0x661   :  { %v2865_v28 = vmul.f32 0.5, %v2864_v1  ;;  %v2903_v1 = vld [vmem:[#allocation8 + $0xb0] sm:$0xff] }
 0x662   :  { %2879 = vst [vmem:[#allocation11 + $0x40] sm:$0xff] %v7791_v61 }
 0x67b   :  { %v2832_v49 = vpop.f32.mrb[30].mxu1 }
 0x67c   :  { %v2866_v37 = vadd.f32 %v2832_v49, %v8404_v47  ;;  %v2834_v29 = vpop.f32.mrb[31].mxu1  ;;  %v2910_v49 = vld [vmem:[#allocation8 + $0xe8] sm:$0xff]  ;;  %v2916_v47 = vld [vmem:[#allocation8 + $0x118] sm:$0xff] }
 0x67d   :  { %v2871_v2 = vadd.f32 %v7798_v12, %v2834_v29  ;;  %v2909_v29 = vld [vmem:[#allocation8 + $0xe0] sm:$0xff] }
 0x67e   :  { %v2867_v39 = vmul.f32 0.5, %v2866_v37  ;;  %v7819_v37 = vpack.c.bf16 %v2916_v47, %v2910_v49  ;;  %v2970_v49 = vld [vmem:[#allocation8 + $0x2c8] sm:$0xff]  ;;  %v2976_v47 = vld [vmem:[#allocation8 + $0x2f8] sm:$0xff] }
 0x67f   :  { %v2872_v50 = vmul.f32 %v2871_v2, %v2865_v28  ;;  %v2915_v28 = vld [vmem:[#allocation8 + $0x110] sm:$0xff]  ;;  %v2922_v2 = vld [vmem:[#allocation8 + $0x148] sm:$0xff] }
 0x680   :  { %6175 = vtanh.f32 %v2867_v39  ;;  %v2928_v39 = vld [vmem:[#allocation8 + $0x178] sm:$0xff] }
 0x681   :  { %v2873_v0 = vadd.f32 %v2872_v50, %v8405_v3  ;;  %v7824_v50 = vpack.c.bf16 %v2915_v28, %v2909_v29  ;;  %v7827_v3 = vpack.c.bf16 %v2928_v39, %v2922_v2  ;;  %v2969_v29 = vld [vmem:[#allocation8 + $0x2c0] sm:$0xff]  ;;  %v2975_v28 = vld [vmem:[#allocation8 + $0x2f0] sm:$0xff]  ;;  %v2982_v2 = vld [vmem:[#allocation8 + $0x328] sm:$0xff] }
 0x682   :  { %v2988_v39 = vld [vmem:[#allocation8 + $0x358] sm:$0xff] }
 0x683   :  { %6177 = vtanh.f32 %v2873_v0  ;;  %v2921_v0 = vld [vmem:[#allocation8 + $0x140] sm:$0xff] }
 0x68a   :  { %v6176_v57 = vpop.eup %6175 }
 0x68b   :  { %v2869_v21 = vadd.f32 1.0, %v6176_v57  ;;  %v2927_v57 = vld [vmem:[#allocation8 + $0x170] sm:$0xff] }
 0x68d   :  { %v2870_v46 = vmul.f32 0.5, %v2869_v21  ;;  %v6178_v13 = vpop.eup %6177  ;;  %v2934_v21 = vld [vmem:[#allocation8 + $0x1a8] sm:$0xff] }
 0x68f   :  { %v2875_v25 = vsub.f32 1.0, %v2870_v46  ;;  %v2877_v40 = vmul.f32 %v2870_v46, %v7609_v59  ;;  %v7816_v59 = vpack.c.bf16 %v2903_v1, %v2897_v52  ;;  %v2940_v46 = vld [vmem:[#allocation8 + $0x1d8] sm:$0xff]  ;;  %v2957_v52 = vld [vmem:[#allocation8 + $0x260] sm:$0xff]  ;;  %v2963_v1 = vld [vmem:[#allocation8 + $0x290] sm:$0xff] }
 0x691   :  { %v2876_v27 = vmul.f32 %v6178_v13, %v2875_v25  ;;  %v2933_v25 = vld [vmem:[#allocation8 + $0x1a0] sm:$0xff]  ;;  %v2939_v13 = vld [vmem:[#allocation8 + $0x1d0] sm:$0xff] }
 0x693   :  { %v7803_v33 = vadd.f32 %v2877_v40, %v2876_v27  ;;  %v2945_v40 = vld [vmem:[#allocation8 + $0x200] sm:$0xff]  ;;  %v2951_v27 = vld [vmem:[#allocation8 + $0x230] sm:$0xff] }
 0x695   :  { %2880 = vst [vmem:[#allocation11 + $0x38] sm:$0xff] %v7803_v33  ;;  %3137 = vmatprep.mubr.f32.mxu0 %v7803_v33  ;;  %3208 = vmatprep.mubr.f32.mxu1 %v7803_v33 }
 0x696   :  { %3138 = vmatmul.mubr.f32.vlgmr.msra.gmra.mrb[10].mxu0 %v7791_v61  ;;  %3209 = vmatmul.mubr.f32.vlgmr.msra.gmra.mrb[32].mxu1 %v7791_v61 }
 0x697   :  { %5597 = vmatpush1.bf16.msra.mxu0 %v7805_v42  ;;  %3279 = vmatprep.mubr.f32.mxu0 %v7803_v33 }
 0x698   :  { %5599 = vmatprep.subr.bf16.mxu0 %v7807_v35  ;;  %5725 = vmatpush1.bf16.msra.mxu1 %v7682_v62  ;;  %v7832_v62 = vpack.c.bf16 %v2927_v57, %v2921_v0  ;;  %v2981_v0 = vld [vmem:[#allocation8 + $0x320] sm:$0xff]  ;;  %v2987_v57 = vld [vmem:[#allocation8 + $0x350] sm:$0xff] }
 0x699   :  { %5727 = vmatprep.subr.bf16.mxu1 %v7686_v14  ;;  %v7835_v14 = vpack.c.bf16 %v2940_v46, %v2934_v21  ;;  %v2994_v21 = vld [vmem:[#allocation8 + $0x388] sm:$0xff]  ;;  %v3000_v46 = vld [vmem:[#allocation8 + $0x3b8] sm:$0xff] }
 0x69b   :  { %5601 = vmatpush1.bf16.msra.mxu0 %v7816_v59 }
 0x69c   :  { %5603 = vmatprep.subr.bf16.mxu0 %v7819_v37  ;;  %5729 = vmatpush1.bf16.msra.mxu1 %v7688_v63  ;;  %v7840_v63 = vpack.c.bf16 %v2939_v13, %v2933_v25  ;;  %v2993_v25 = vld [vmem:[#allocation8 + $0x380] sm:$0xff]  ;;  %v2999_v13 = vld [vmem:[#allocation8 + $0x3b0] sm:$0xff] }
 0x69d   :  { %5731 = vmatprep.subr.bf16.mxu1 %v7692_v24  ;;  %v7843_v24 = vpack.c.bf16 %v2952_v38, %v2946_v48  ;;  %v3006_v48 = vld [vmem:[#allocation8 + $0x3e8] sm:$0xff]  ;;  %v3012_v38 = vld [vmem:[#allocation8 + $0x418] sm:$0xff] }
 0x69f   :  { %5605 = vmatpush1.bf16.msra.mxu0 %v7824_v50 }
 0x6a0   :  { %5607 = vmatprep.subr.bf16.mxu0 %v7827_v3  ;;  %5733 = vmatpush1.bf16.msra.mxu1 %v7694_v43  ;;  %v7848_v43 = vpack.c.bf16 %v2951_v27, %v2945_v40  ;;  %v3005_v40 = vld [vmem:[#allocation8 + $0x3e0] sm:$0xff]  ;;  %v3011_v27 = vld [vmem:[#allocation8 + $0x410] sm:$0xff] }
 0x6a1   :  { %5735 = vmatprep.subr.bf16.mxu1 %v7698_v53  ;;  %v7851_v53 = vpack.c.bf16 %v2964_v26, %v2958_v58  ;;  %v3018_v58 = vld [vmem:[#allocation8 + $0x448] sm:$0xff]  ;;  %v3024_v26 = vld [vmem:[#allocation8 + $0x478] sm:$0xff] }
 0x6a3   :  { %5609 = vmatpush1.bf16.msra.mxu0 %v7832_v62 }
 0x6a4   :  { %5611 = vmatprep.subr.bf16.mxu0 %v7835_v14  ;;  %5737 = vmatpush1.bf16.msra.mxu1 %v7700_v54  ;;  %v7856_v54 = vpack.c.bf16 %v2963_v1, %v2957_v52  ;;  %v3017_v52 = vld [vmem:[#allocation8 + $0x440] sm:$0xff]  ;;  %v3023_v1 = vld [vmem:[#allocation8 + $0x470] sm:$0xff] }
 0x6a5   :  { %5739 = vmatprep.subr.bf16.mxu1 %v7704_v36  ;;  %v7859_v36 = vpack.c.bf16 %v2976_v47, %v2970_v49  ;;  %v3030_v49 = vld [vmem:[#allocation8 + $0x4a8] sm:$0xff]  ;;  %v3036_v47 = vld [vmem:[#allocation8 + $0x4d8] sm:$0xff] }
 0x6a7   :  { %5613 = vmatpush1.bf16.msra.mxu0 %v7840_v63 }
 0x6a8   :  { %5615 = vmatprep.subr.bf16.mxu0 %v7843_v24  ;;  %5741 = vmatpush1.bf16.msra.mxu1 %v7706_v11  ;;  %v7864_v11 = vpack.c.bf16 %v2975_v28, %v2969_v29  ;;  %v3029_v29 = vld [vmem:[#allocation8 + $0x4a0] sm:$0xff]  ;;  %v3035_v28 = vld [vmem:[#allocation8 + $0x4d0] sm:$0xff] }
 0x6a9   :  { %5743 = vmatprep.subr.bf16.mxu1 %v7708_v44  ;;  %v7867_v44 = vpack.c.bf16 %v2988_v39, %v2982_v2  ;;  %v3042_v2 = vld [vmem:[#allocation8 + $0x508] sm:$0xff]  ;;  %v3048_v39 = vld [vmem:[#allocation8 + $0x538] sm:$0xff] }
 0x6ab   :  { %5617 = vmatpush1.bf16.msra.mxu0 %v7848_v43 }
 0x6ac   :  { %5619 = vmatprep.subr.bf16.mxu0 %v7851_v53  ;;  %5745 = vmatpush1.bf16.msra.mxu1 %v7712_v22  ;;  %v7872_v22 = vpack.c.bf16 %v2987_v57, %v2981_v0  ;;  %v3041_v0 = vld [vmem:[#allocation8 + $0x500] sm:$0xff]  ;;  %v3047_v57 = vld [vmem:[#allocation8 + $0x530] sm:$0xff] }
 0x6ad   :  { %5747 = vmatprep.subr.bf16.mxu1 %v7715_v9  ;;  %v7875_v9 = vpack.c.bf16 %v3000_v46, %v2994_v21  ;;  %v3054_v21 = vld [vmem:[#allocation8 + $0x568] sm:$0xff]  ;;  %v3060_v46 = vld [vmem:[#allocation8 + $0x598] sm:$0xff] }
 0x6af   :  { %5621 = vmatpush1.bf16.msra.mxu0 %v7856_v54 }
 0x6b0   :  { %5623 = vmatprep.subr.bf16.mxu0 %v7859_v36  ;;  %5749 = vmatpush1.bf16.msra.mxu1 %v7718_v34  ;;  %v7880_v34 = vpack.c.bf16 %v2999_v13, %v2993_v25  ;;  %v3053_v25 = vld [vmem:[#allocation8 + $0x560] sm:$0xff]  ;;  %v3059_v13 = vld [vmem:[#allocation8 + $0x590] sm:$0xff] }
 0x6b1   :  { %5751 = vmatprep.subr.bf16.mxu1 %v7721_v6  ;;  %v7883_v6 = vpack.c.bf16 %v3012_v38, %v3006_v48  ;;  %v3066_v48 = vld [vmem:[#allocation8 + $0x5c8] sm:$0xff]  ;;  %v3072_v38 = vld [vmem:[#allocation8 + $0x5f8] sm:$0xff] }
 0x6b3   :  { %5625 = vmatpush1.bf16.msra.mxu0 %v7864_v11 }
 0x6b4   :  { %5627 = vmatprep.subr.bf16.mxu0 %v7867_v44  ;;  %5753 = vmatpush1.bf16.msra.mxu1 %v7724_v19  ;;  %v7888_v19 = vpack.c.bf16 %v3011_v27, %v3005_v40  ;;  %v3065_v40 = vld [vmem:[#allocation8 + $0x5c0] sm:$0xff]  ;;  %v3071_v27 = vld [vmem:[#allocation8 + $0x5f0] sm:$0xff] }
 0x6b5   :  { %5755 = vmatprep.subr.bf16.mxu1 %v7727_v15  ;;  %v7891_v15 = vpack.c.bf16 %v3024_v26, %v3018_v58  ;;  %v3330_v58 = vld [vmem:[#allocation8] sm:$0xff]  ;;  %v3336_v26 = vld [vmem:[#allocation8 + $0x30] sm:$0xff] }
 0x6b6   :  { %8406 = vst [vmem:[#allocation55_spill] sm:$0xff] %v7888_v19 }
 0x6b7   :  { %5629 = vmatpush1.bf16.msra.mxu0 %v7872_v22  ;;  %8407 = vst [vmem:[#allocation68_spill] sm:$0xff] %v7891_v15 }
 0x6b8   :  { %5631 = vmatprep.subr.bf16.mxu0 %v7875_v9  ;;  %5757 = vmatpush1.bf16.msra.mxu1 %v7730_v10  ;;  %v7896_v10 = vpack.c.bf16 %v3023_v1, %v3017_v52  ;;  %v7939_v52 = vpack.c.bf16 %v3336_v26, %v3330_v58  ;;  %v3391_v58 = vld [vmem:[#allocation8 + $0x1e8] sm:$0xff]  ;;  %v3397_v26 = vld [vmem:[#allocation8 + $0x218] sm:$0xff] }
 0x6b9   :  { %5759 = vmatprep.subr.bf16.mxu1 %v7733_v56  ;;  %v7899_v56 = vpack.c.bf16 %v3036_v47, %v3030_v49  ;;  %v3355_v47 = vld [vmem:[#allocation8 + $0xc8] sm:$0xff] }
 0x6ba   :  { %8408 = vst [vmem:[#allocation28_spill] sm:$0xff] %v7896_v10 }
 0x6bb   :  { %5633 = vmatpush1.bf16.msra.mxu0 %v7880_v34  ;;  %8409 = vst [vmem:[#allocation21_spill] sm:$0xff] %v7899_v56 }
 0x6bc   :  { %5635 = vmatprep.subr.bf16.mxu0 %v7883_v6  ;;  %5761 = vmatpush1.bf16.msra.mxu1 %v7737_v31  ;;  %v7904_v31 = vpack.c.bf16 %v3035_v28, %v3029_v29  ;;  %v3361_v29 = vld [vmem:[#allocation8 + $0xf8] sm:$0xff] }
 0x6bd   :  { %5763 = vmatprep.subr.bf16.mxu1 %v7740_v30  ;;  %v7907_v30 = vpack.c.bf16 %v3048_v39, %v3042_v2  ;;  %v7949_v28 = vpack.c.bf16 %v3361_v29, %v3355_v47  ;;  %v3354_v2 = vld [vmem:[#allocation8 + $0xc0] sm:$0xff]  ;;  %v3360_v39 = vld [vmem:[#allocation8 + $0xf0] sm:$0xff]  ;;  %v3403_v47 = vld [vmem:[#allocation8 + $0x248] sm:$0xff] }
 0x6be   :  { %8410 = vst [vmem:[#allocation41_spill] sm:$0xff] %v7904_v31  ;;  %v3409_v29 = vld [vmem:[#allocation8 + $0x278] sm:$0xff] }
 0x6bf   :  { %5637 = vmatpush1.bf16.msra.mxu0 %v7888_v19  ;;  %8411 = vst [vmem:[#allocation42_spill] sm:$0xff] %v7907_v30 }
 0x6c0   :  { %5639 = vmatprep.subr.bf16.mxu0 %v7891_v15  ;;  %5765 = vmatpush1.bf16.msra.mxu1 %v7742_v41  ;;  %v7912_v41 = vpack.c.bf16 %v3047_v57, %v3041_v0  ;;  %v7951_v0 = vpack.c.bf16 %v3360_v39, %v3354_v2  ;;  %v3367_v57 = vld [vmem:[#allocation8 + $0x128] sm:$0xff]  ;;  %v7972_v39 = vpack.c.bf16 %v3409_v29, %v3403_v47  ;;  %v3426_v47 = vld [vmem:[#allocation8 + $0x300] sm:$0xff]  ;;  %v3432_v29 = vld [vmem:[#allocation8 + $0x330] sm:$0xff] }
 0x6c1   :  { %5767 = vmatprep.subr.bf16.mxu1 %v7746_v17  ;;  %v7915_v17 = vpack.c.bf16 %v3060_v46, %v3054_v21  ;;  %v3373_v21 = vld [vmem:[#allocation8 + $0x158] sm:$0xff]  ;;  %v8430_v15 = vld [vmem:[#allocation27_spill] sm:$0xff] }
 0x6c2   :  { %8412 = vst [vmem:[#allocation26_spill] sm:$0xff] %v7912_v41  ;;  %v7955_v46 = vpack.c.bf16 %v3373_v21, %v3367_v57  ;;  %v3402_v57 = vld [vmem:[#allocation8 + $0x240] sm:$0xff]  ;;  %v3408_v21 = vld [vmem:[#allocation8 + $0x270] sm:$0xff] }
 0x6c3   :  { %5641 = vmatpush1.bf16.msra.mxu0 %v7896_v10  ;;  %8413 = vst [vmem:[#allocation23_spill] sm:$0xff] %v7915_v17 }
 0x6c4   :  { %5643 = vmatprep.subr.bf16.mxu0 %v7899_v56  ;;  %5769 = vmatpush1.bf16.msra.mxu1 %v7748_v18  ;;  %v7920_v18 = vpack.c.bf16 %v3059_v13, %v3053_v25  ;;  %v3366_v25 = vld [vmem:[#allocation8 + $0x120] sm:$0xff]  ;;  %v3372_v13 = vld [vmem:[#allocation8 + $0x150] sm:$0xff] }
 0x6c5   :  { %5771 = vmatprep.subr.bf16.mxu1 %v7752_v7  ;;  %v7923_v7 = vpack.c.bf16 %v3072_v38, %v3066_v48  ;;  %v7957_v48 = vpack.c.bf16 %v3372_v13, %v3366_v25  ;;  %v3379_v38 = vld [vmem:[#allocation8 + $0x188] sm:$0xff]  ;;  %v3421_v13 = vld [vmem:[#allocation8 + $0x2d8] sm:$0xff]  ;;  %v3492_v56 = vld [vmem:[#allocation8 + $0x510] sm:$0xff] }
 0x6c6   :  { %8414 = vst [vmem:[#allocation39_spill] sm:$0xff] %v7920_v18  ;;  %v3415_v25 = vld [vmem:[#allocation8 + $0x2a8] sm:$0xff] }
 0x6c7   :  { %5645 = vmatpush1.bf16.msra.mxu0 %v7904_v31  ;;  %8415 = vst [vmem:[#allocation40_spill] sm:$0xff] %v7923_v7 }
 0x6c8   :  { %5647 = vmatprep.subr.bf16.mxu0 %v7907_v30  ;;  %5773 = vmatpush1.bf16.msra.mxu1 %v7754_v4  ;;  %v7928_v4 = vpack.c.bf16 %v3071_v27, %v3065_v40  ;;  %v3385_v40 = vld [vmem:[#allocation8 + $0x1b8] sm:$0xff]  ;;  %v3378_v27 = vld [vmem:[#allocation8 + $0x180] sm:$0xff]  ;;  %v3480_v30 = vld [vmem:[#allocation8 + $0x4b0] sm:$0xff] }
 0x6c9   :  { %5775 = vmatprep.subr.bf16.mxu1 %v7758_v32  ;;  %v3331_v32 = vld [vmem:[#allocation8 + $0x8] sm:$0xff] }
 0x6ca   :  { %8416 = vst [vmem:[#allocation49_spill] sm:$0xff] %v7928_v4 }
 0x6cb   :  { %5649 = vmatpush1.bf16.msra.mxu0 %v7912_v41 }
 0x6cc   :  { %5651 = vmatprep.subr.bf16.mxu0 %v7915_v17  ;;  %5777 = vmatpush1.bf16.msra.mxu1 %v7760_v51  ;;  %v3337_v51 = vld [vmem:[#allocation8 + $0x38] sm:$0xff] }
 0x6cd   :  { %5779 = vmatprep.subr.bf16.mxu1 %v7764_v55  ;;  %v7937_v55 = vpack.c.bf16 %v3337_v51, %v3331_v32  ;;  %v7961_v32 = vpack.c.bf16 %v3385_v40, %v3379_v38  ;;  %v3384_v51 = vld [vmem:[#allocation8 + $0x1b0] sm:$0xff]  ;;  %v7975_v38 = vpack.c.bf16 %v3408_v21, %v3402_v57  ;;  %v7978_v40 = vpack.c.bf16 %v3421_v13, %v3415_v25  ;;  %v3439_v57 = vld [vmem:[#allocation8 + $0x368] sm:$0xff]  ;;  %v3445_v21 = vld [vmem:[#allocation8 + $0x398] sm:$0xff] }
 0x6ce   :  { %v7987_v25 = vpack.c.bf16 %v3432_v29, %v3426_v47  ;;  %v7990_v13 = vpack.c.bf16 %v3445_v21, %v3439_v57  ;;  %v3450_v47 = vld [vmem:[#allocation8 + $0x3c0] sm:$0xff]  ;;  %v3456_v29 = vld [vmem:[#allocation8 + $0x3f0] sm:$0xff]  ;;  %v3463_v57 = vld [vmem:[#allocation8 + $0x428] sm:$0xff] }
 0x6cf   :  { %5653 = vmatpush1.bf16.msra.mxu0 %v7920_v18  ;;  %v7999_v18 = vpack.c.bf16 %v3456_v29, %v3450_v47  ;;  %v3469_v21 = vld [vmem:[#allocation8 + $0x458] sm:$0xff]  ;;  %v3474_v29 = vld [vmem:[#allocation8 + $0x480] sm:$0xff] }
 0x6d0   :  { %5655 = vmatprep.subr.bf16.mxu0 %v7923_v7  ;;  %5781 = vmatpush1.bf16.msra.mxu1 %v7766_v60  ;;  %v3343_v60 = vld [vmem:[#allocation8 + $0x68] sm:$0xff]  ;;  %v8003_v17 = vpack.c.bf16 %v3469_v21, %v3463_v57  ;;  %v8011_v31 = vpack.c.bf16 %v3480_v30, %v3474_v29  ;;  %v3493_v21 = vld [vmem:[#allocation8 + $0x518] sm:$0xff]  ;;  %v3498_v29 = vld [vmem:[#allocation8 + $0x540] sm:$0xff] }
 0x6d1   :  { %5783 = vmatprep.subr.bf16.mxu1 %v7770_v45  ;;  %v3349_v45 = vld [vmem:[#allocation8 + $0x98] sm:$0xff]  ;;  %8418 = vst [vmem:[#allocation56_spill] sm:$0xff] %v7999_v18  ;;  %v3487_v57 = vld [vmem:[#allocation8 + $0x4e8] sm:$0xff] }
 0x6d2   :  { %v7943_v1 = vpack.c.bf16 %v3349_v45, %v3343_v60  ;;  %v7963_v60 = vpack.c.bf16 %v3384_v51, %v3378_v27  ;;  %v7965_v45 = vpack.c.bf16 %v3397_v26, %v3391_v58  ;;  %v3414_v27 = vld [vmem:[#allocation8 + $0x2a0] sm:$0xff]  ;;  %v3420_v51 = vld [vmem:[#allocation8 + $0x2d0] sm:$0xff]  ;;  %v3427_v58 = vld [vmem:[#allocation8 + $0x308] sm:$0xff]  ;;  %8419 = vst [vmem:[#allocation50_spill] sm:$0xff] %v8003_v17 }
 0x6d3   :  { %5657 = vmatpush1.bf16.msra.mxu0 %v7928_v4  ;;  %v3433_v26 = vld [vmem:[#allocation8 + $0x338] sm:$0xff]  ;;  %8422 = vst [vmem:[#allocation45_spill] sm:$0xff] %v8011_v31 }
 0x6d4   :  { %5785 = vmatpush1.bf16.msra.mxu1 %v7772_v5  ;;  %5659 = vmatprep.subr.bf16.mxu0 %v7937_v55  ;;  %v3342_v5 = vld [vmem:[#allocation8 + $0x60] sm:$0xff]  ;;  %v3457_v4 = vld [vmem:[#allocation8 + $0x3f8] sm:$0xff] }
 0x6d5   :  { %5787 = vmatprep.subr.bf16.mxu1 %v7776_v23  ;;  %v3348_v23 = vld [vmem:[#allocation8 + $0x90] sm:$0xff] }
 0x6d6   :  { %3280 = vmatmul.mubr.f32.vlgmr.msra.gmra.mrb[36].mxu0 %v7791_v61  ;;  %v7945_v49 = vpack.c.bf16 %v3348_v23, %v3342_v5  ;;  %v3390_v5 = vld [vmem:[#allocation8 + $0x1e0] sm:$0xff]  ;;  %v3396_v23 = vld [vmem:[#allocation8 + $0x210] sm:$0xff] }
 0x6d7   :  { %5661 = vmatpush1.bf16.msra.mxu0 %v7939_v52  ;;  %v7969_v2 = vpack.c.bf16 %v3396_v23, %v3390_v5  ;;  %v7981_v5 = vpack.c.bf16 %v3420_v51, %v3414_v27  ;;  %v7984_v23 = vpack.c.bf16 %v3433_v26, %v3427_v58  ;;  %v3438_v27 = vld [vmem:[#allocation8 + $0x360] sm:$0xff]  ;;  %v3444_v51 = vld [vmem:[#allocation8 + $0x390] sm:$0xff]  ;;  %v3451_v26 = vld [vmem:[#allocation8 + $0x3c8] sm:$0xff] }
 0x6d8   :  { %5663 = vmatprep.subr.bf16.mxu0 %v7943_v1  ;;  %v7994_v58 = vpack.c.bf16 %v3444_v51, %v3438_v27  ;;  %v7997_v7 = vpack.c.bf16 %v3457_v4, %v3451_v26  ;;  %v3462_v27 = vld [vmem:[#allocation8 + $0x420] sm:$0xff]  ;;  %v3468_v51 = vld [vmem:[#allocation8 + $0x450] sm:$0xff]  ;;  %v3475_v4 = vld [vmem:[#allocation8 + $0x488] sm:$0xff] }
 0x6d9   :  { %v8005_v41 = vpack.c.bf16 %v3468_v51, %v3462_v27  ;;  %v3481_v26 = vld [vmem:[#allocation8 + $0x4b8] sm:$0xff]  ;;  %v8015_v27 = vpack.c.bf16 %v3493_v21, %v3487_v57  ;;  %v3486_v51 = vld [vmem:[#allocation8 + $0x4e0] sm:$0xff]  ;;  %v3511_v57 = vld [vmem:[#allocation8 + $0x5a8] sm:$0xff] }
 0x6da   :  { %8417 = vst [vmem:[#allocation44_spill] sm:$0xff] %v7997_v7  ;;  %v8009_v47 = vpack.c.bf16 %v3481_v26, %v3475_v4  ;;  %v8017_v10 = vpack.c.bf16 %v3492_v56, %v3486_v51  ;;  %v3499_v4 = vld [vmem:[#allocation8 + $0x548] sm:$0xff]  ;;  %v3505_v26 = vld [vmem:[#allocation8 + $0x578] sm:$0xff]  ;;  %v3510_v56 = vld [vmem:[#allocation8 + $0x5a0] sm:$0xff] }
 0x6db   :  { %5665 = vmatpush1.bf16.msra.mxu0 %v7945_v49  ;;  %8420 = vst [vmem:[#allocation62_spill] sm:$0xff] %v8005_v41  ;;  %8423 = vst [vmem:[#allocation63_spill] sm:$0xff] %v8015_v27  ;;  %v8021_v30 = vpack.c.bf16 %v3505_v26, %v3499_v4  ;;  %v3517_v21 = vld [vmem:[#allocation8 + $0x5d8] sm:$0xff] }
 0x6dc   :  { %5667 = vmatprep.subr.bf16.mxu0 %v7949_v28  ;;  %8421 = vst [vmem:[#allocation57_spill] sm:$0xff] %v8009_v47  ;;  %8424 = vst [vmem:[#allocation51_spill] sm:$0xff] %v8017_v10  ;;  %v8027_v51 = vpack.c.bf16 %v3517_v21, %v3511_v57 }
 0x6dd   :  { %8425 = vst [vmem:[#allocation46_spill] sm:$0xff] %v8021_v30 }
 0x6de   :  { %8427 = vst [vmem:[#allocation52_spill] sm:$0xff] %v8027_v51 }
 0x6df   :  { %5669 = vmatpush1.bf16.msra.mxu0 %v7951_v0 }
 0x6e0   :  { %5671 = vmatprep.subr.bf16.mxu0 %v7955_v46 }
 0x6e3   :  { %5673 = vmatpush1.bf16.msra.mxu0 %v7957_v48 }
 0x6e4   :  { %5675 = vmatprep.subr.bf16.mxu0 %v7961_v32 }
 0x6e7   :  { %5677 = vmatpush1.bf16.msra.mxu0 %v7963_v60 }
 0x6e8   :  { %5679 = vmatprep.subr.bf16.mxu0 %v7965_v45 }
 0x6eb   :  { %5681 = vmatpush1.bf16.msra.mxu0 %v7969_v2 }
 0x6ec   :  { %5683 = vmatprep.subr.bf16.mxu0 %v7972_v39 }
 0x6ef   :  { %5685 = vmatpush1.bf16.msra.mxu0 %v7975_v38 }
 0x6f0   :  { %5687 = vmatprep.subr.bf16.mxu0 %v7978_v40 }
 0x6f3   :  { %5689 = vmatpush1.bf16.msra.mxu0 %v7981_v5 }
 0x6f4   :  { %5691 = vmatprep.subr.bf16.mxu0 %v7984_v23 }
 0x6f7   :  { %5693 = vmatpush1.bf16.msra.mxu0 %v7987_v25 }
 0x6f8   :  { %5695 = vmatprep.subr.bf16.mxu0 %v7990_v13 }
 0x6fb   :  { %5697 = vmatpush1.bf16.msra.mxu0 %v7994_v58 }
 0x6fc   :  { %5699 = vmatprep.subr.bf16.mxu0 %v7997_v7 }
 0x6ff   :  { %5701 = vmatpush1.bf16.msra.mxu0 %v7999_v18 }
 0x700   :  { %5703 = vmatprep.subr.bf16.mxu0 %v8003_v17 }
 0x703   :  { %5705 = vmatpush1.bf16.msra.mxu0 %v8005_v41 }
 0x704   :  { %5707 = vmatprep.subr.bf16.mxu0 %v8009_v47  ;;  %v3504_v47 = vld [vmem:[#allocation8 + $0x570] sm:$0xff] }
 0x705   :  { %v8023_v41 = vpack.c.bf16 %v3504_v47, %v3498_v29 }
 0x707   :  { %5709 = vmatpush1.bf16.msra.mxu0 %v8011_v31  ;;  %8426 = vst [vmem:[#allocation58_spill] sm:$0xff] %v8023_v41 }
 0x708   :  { %5711 = vmatprep.subr.bf16.mxu0 %v8015_v27  ;;  %v3516_v27 = vld [vmem:[#allocation8 + $0x5d0] sm:$0xff] }
 0x709   :  { %v8029_v31 = vpack.c.bf16 %v3516_v27, %v3510_v56 }
 0x70b   :  { %5713 = vmatpush1.bf16.msra.mxu0 %v8017_v10  ;;  %8428 = vst [vmem:[#allocation64_spill] sm:$0xff] %v8029_v31 }
 0x70c   :  { %5715 = vmatprep.subr.bf16.mxu0 %v8021_v30  ;;  %v8429_v30 = vld [vmem:[#allocation22_spill] sm:$0xff] }
 0x70f   :  { %5717 = vmatpush1.bf16.msra.mxu0 %v8023_v41 }
 0x710   :  { %5719 = vmatprep.subr.bf16.mxu0 %v8027_v51 }
 0x713   :  { %5721 = vmatpush1.bf16.msra.mxu0 %v8029_v31 }
 0x714   :  { %5851 = vmatprep.subr.bf16.mxu0 %v7937_v55 }
 0x769   :  { %v3139_v47 = vpop.f32.mrb[10].mxu0  ;;  %v3210_v4 = vpop.f32.mrb[32].mxu1 }
 0x76a   :  { %v6084_v26 = vadd.f32 %v3139_v47, %v8401_v16  ;;  %v3141_v29 = vpop.f32.mrb[11].mxu0  ;;  %v3212_v41 = vpop.f32.mrb[33].mxu1  ;;  %v3302_v31 = vadd.f32 %v7786_v8, %v3210_v4 }
 0x76b   :  { %v3310_v10 = vadd.f32 %v3212_v41, %v8429_v30  ;;  %v6085_v57 = vadd.f32 %v3141_v29, %v6904_v20 }
 0x76c   :  { %v3293_v17 = vmul.f32 0.5, %v6084_v26 }
 0x76d   :  { %v3298_v27 = vmul.f32 0.5, %v6085_v57  ;;  %v3311_v29 = vmul.f32 0.5, %v3310_v10 }
 0x76e   :  { %6179 = vtanh.f32 %v3293_v17 }
 0x76f   :  { %6181 = vtanh.f32 %v3298_v27 }
 0x778   :  { %v6180_v21 = vpop.eup %6179 }
 0x779   :  { %v3295_v56 = vadd.f32 1.0, %v6180_v21  ;;  %v6182_v18 = vpop.eup %6181 }
 0x77a   :  { %v3300_v47 = vadd.f32 1.0, %v6182_v18 }
 0x77b   :  { %v3296_v51 = vmul.f32 0.5, %v3295_v56 }
 0x77c   :  { %v3301_v16 = vmul.f32 0.5, %v3300_v47 }
 0x77d   :  { %v3303_v55 = vmul.f32 %v3302_v31, %v3296_v51  ;;  %v8431_v51 = vld [vmem:[#allocation35_spill] sm:$0xff] }
 0x77e   :  { %v3306_v7 = vsub.f32 1.0, %v3301_v16  ;;  %v3308_v26 = vmul.f32 %v3301_v16, %v7791_v61 }
 0x77f   :  { %v3304_v19 = vadd.f32 %v3303_v55, %v8430_v15 }
 0x781   :  { %6183 = vtanh.f32 %v3304_v19 }
 0x782   :  { %6185 = vtanh.f32 %v3311_v29  ;;  %v3818_v29 = vld [vmem:[#allocation8 + $0x138] sm:$0xff] }
 0x78b   :  { %v6184_v41 = vpop.eup %6183 }
 0x78c   :  { %v3307_v30 = vmul.f32 %v6184_v41, %v3306_v7  ;;  %v6186_v57 = vpop.eup %6185  ;;  %v8432_v7 = vld [vmem:[#allocation36_spill] sm:$0xff] }
 0x78d   :  { %v3313_v8 = vadd.f32 1.0, %v6186_v57  ;;  %v3824_v57 = vld [vmem:[#allocation8 + $0x168] sm:$0xff] }
 0x78e   :  { %v8040_v17 = vadd.f32 %v3308_v26, %v3307_v30 }
 0x78f   :  { %v3314_v19 = vmul.f32 0.5, %v3313_v8  ;;  %v5926_v8 = vpack.c.bf16 %v3824_v57, %v3818_v29  ;;  %v3944_v29 = vld [vmem:[#allocation8 + $0x528] sm:$0xff] }
 0x790   :  { %3328 = vst [vmem:[#allocation11 + $0x50] sm:$0xff] %v8040_v17 }
 0x7a9   :  { %v3281_v31 = vpop.f32.mrb[36].mxu0 }
 0x7aa   :  { %v3315_v4 = vadd.f32 %v3281_v31, %v8431_v51  ;;  %v3283_v15 = vpop.f32.mrb[37].mxu0  ;;  %v3817_v31 = vld [vmem:[#allocation8 + $0x130] sm:$0xff]  ;;  %v3823_v51 = vld [vmem:[#allocation8 + $0x160] sm:$0xff] }
 0x7ab   :  { %v3320_v18 = vadd.f32 %v7798_v12, %v3283_v15  ;;  %v8433_v12 = vld [vmem:[#allocation44_spill] sm:$0xff]  ;;  %v3830_v15 = vld [vmem:[#allocation8 + $0x198] sm:$0xff] }
 0x7ac   :  { %v3316_v27 = vmul.f32 0.5, %v3315_v4  ;;  %v5928_v4 = vpack.c.bf16 %v3823_v51, %v3817_v31  ;;  %v3943_v31 = vld [vmem:[#allocation8 + $0x520] sm:$0xff] }
 0x7ad   :  { %v3321_v21 = vmul.f32 %v3320_v18, %v3314_v19  ;;  %v3836_v19 = vld [vmem:[#allocation8 + $0x1c8] sm:$0xff]  ;;  %v3829_v18 = vld [vmem:[#allocation8 + $0x190] sm:$0xff] }
 0x7ae   :  { %6187 = vtanh.f32 %v3316_v27  ;;  %v5930_v27 = vpack.c.bf16 %v3836_v19, %v3830_v15  ;;  %v3956_v15 = vld [vmem:[#allocation8 + $0x588] sm:$0xff] }
 0x7af   :  { %v3322_v16 = vadd.f32 %v3321_v21, %v8432_v7  ;;  %v3835_v21 = vld [vmem:[#allocation8 + $0x1c0] sm:$0xff]  ;;  %v3842_v7 = vld [vmem:[#allocation8 + $0x1f8] sm:$0xff] }
 0x7b1   :  { %6189 = vtanh.f32 %v3322_v16  ;;  %v3848_v16 = vld [vmem:[#allocation8 + $0x228] sm:$0xff] }
 0x7b8   :  { %v6188_v61 = vpop.eup %6187 }
 0x7b9   :  { %v3318_v56 = vadd.f32 1.0, %v6188_v61  ;;  %v5932_v61 = vpack.c.bf16 %v3835_v21, %v3829_v18  ;;  %v3949_v18 = vld [vmem:[#allocation8 + $0x550] sm:$0xff] }
 0x7bb   :  { %v3319_v55 = vmul.f32 0.5, %v3318_v56  ;;  %v6190_v47 = vpop.eup %6189  ;;  %v5934_v56 = vpack.c.bf16 %v3848_v16, %v3842_v7  ;;  %v3962_v7 = vld [vmem:[#allocation8 + $0x5b8] sm:$0xff]  ;;  %v3968_v16 = vld [vmem:[#allocation8 + $0x5e8] sm:$0xff] }
 0x7bd   :  { %v3324_v10 = vsub.f32 1.0, %v3319_v55  ;;  %v3326_v41 = vmul.f32 %v3319_v55, %v7803_v33  ;;  %v8434_v33 = vld [vmem:[#allocation55_spill] sm:$0xff]  ;;  %v3841_v55 = vld [vmem:[#allocation8 + $0x1f0] sm:$0xff] }
 0x7bf   :  { %v3325_v30 = vmul.f32 %v6190_v47, %v3324_v10  ;;  %v3847_v10 = vld [vmem:[#allocation8 + $0x220] sm:$0xff]  ;;  %v3854_v47 = vld [vmem:[#allocation8 + $0x258] sm:$0xff] }
 0x7c1   :  { %v8047_v26 = vadd.f32 %v3326_v41, %v3325_v30  ;;  %v3860_v41 = vld [vmem:[#allocation8 + $0x288] sm:$0xff]  ;;  %v5936_v30 = vpack.c.bf16 %v3847_v10, %v3841_v55  ;;  %v3967_v55 = vld [vmem:[#allocation8 + $0x5e0] sm:$0xff] }
 0x7c3   :  { %3329 = vst [vmem:[#allocation11 + $0x28] sm:$0xff] %v8047_v26  ;;  %3586 = vmatprep.mubr.f32.mxu0 %v8047_v26  ;;  %3657 = vmatprep.mubr.f32.mxu1 %v8047_v26 }
 0x7c4   :  { %3587 = vmatmul.mubr.f32.vlgmr.msra.gmra.mrb[12].mxu0 %v8040_v17  ;;  %3658 = vmatmul.mubr.f32.vlgmr.msra.gmra.mrb[34].mxu1 %v8040_v17 }
 0x7c5   :  { %5789 = vmatpush1.bf16.msra.mxu1 %v7805_v42  ;;  %3728 = vmatprep.mubr.f32.mxu1 %v8047_v26  ;;  %v8435_v42 = vld [vmem:[#allocation68_spill] sm:$0xff] }
 0x7c6   :  { %5791 = vmatprep.subr.bf16.mxu1 %v7807_v35  ;;  %5853 = vmatpush1.bf16.msra.mxu0 %v7939_v52  ;;  %v8436_v35 = vld [vmem:[#allocation56_spill] sm:$0xff] }
 0x7c7   :  { %5855 = vmatprep.subr.bf16.mxu0 %v7943_v1  ;;  %v8455_v52 = vld [vmem:[#allocation64_spill] sm:$0xff]  ;;  %v3782_v1 = vld [vmem:[#allocation8 + $0x18] sm:$0xff] }
 0x7c9   :  { %5793 = vmatpush1.bf16.msra.mxu1 %v7816_v59  ;;  %v8437_v59 = vld [vmem:[#allocation50_spill] sm:$0xff] }
 0x7ca   :  { %5795 = vmatprep.subr.bf16.mxu1 %v7819_v37  ;;  %5857 = vmatpush1.bf16.msra.mxu0 %v7945_v49  ;;  %v8438_v37 = vld [vmem:[#allocation28_spill] sm:$0xff]  ;;  %v3788_v49 = vld [vmem:[#allocation8 + $0x48] sm:$0xff] }
 0x7cb   :  { %5859 = vmatprep.subr.bf16.mxu0 %v7949_v28  ;;  %v5914_v28 = vpack.c.bf16 %v3788_v49, %v3782_v1  ;;  %v3908_v1 = vld [vmem:[#allocation8 + $0x408] sm:$0xff] }
 0x7cd   :  { %5797 = vmatpush1.bf16.msra.mxu1 %v7824_v50  ;;  %v8439_v50 = vld [vmem:[#allocation21_spill] sm:$0xff] }
 0x7ce   :  { %5799 = vmatprep.subr.bf16.mxu1 %v7827_v3  ;;  %5861 = vmatpush1.bf16.msra.mxu0 %v7951_v0  ;;  %v8440_v3 = vld [vmem:[#allocation62_spill] sm:$0xff]  ;;  %v3781_v0 = vld [vmem:[#allocation8 + $0x10] sm:$0xff] }
 0x7cf   :  { %5863 = vmatprep.subr.bf16.mxu0 %v7955_v46  ;;  %v3787_v46 = vld [vmem:[#allocation8 + $0x40] sm:$0xff] }
 0x7d1   :  { %5801 = vmatpush1.bf16.msra.mxu1 %v7832_v62  ;;  %v8441_v62 = vld [vmem:[#allocation57_spill] sm:$0xff] }
 0x7d2   :  { %5803 = vmatprep.subr.bf16.mxu1 %v7835_v14  ;;  %5865 = vmatpush1.bf16.msra.mxu0 %v7957_v48  ;;  %v8442_v14 = vld [vmem:[#allocation41_spill] sm:$0xff]  ;;  %v5916_v48 = vpack.c.bf16 %v3787_v46, %v3781_v0  ;;  %v3907_v0 = vld [vmem:[#allocation8 + $0x400] sm:$0xff] }
 0x7d3   :  { %5867 = vmatprep.subr.bf16.mxu0 %v7961_v32  ;;  %v3794_v32 = vld [vmem:[#allocation8 + $0x78] sm:$0xff] }
 0x7d5   :  { %5805 = vmatpush1.bf16.msra.mxu1 %v7840_v63  ;;  %v8443_v63 = vld [vmem:[#allocation42_spill] sm:$0xff] }
 0x7d6   :  { %5807 = vmatprep.subr.bf16.mxu1 %v7843_v24  ;;  %5869 = vmatpush1.bf16.msra.mxu0 %v7963_v60  ;;  %v8444_v24 = vld [vmem:[#allocation45_spill] sm:$0xff]  ;;  %v3800_v60 = vld [vmem:[#allocation8 + $0xa8] sm:$0xff] }
 0x7d7   :  { %5871 = vmatprep.subr.bf16.mxu0 %v7965_v45  ;;  %v5918_v45 = vpack.c.bf16 %v3800_v60, %v3794_v32  ;;  %v3920_v32 = vld [vmem:[#allocation8 + $0x468] sm:$0xff] }
 0x7d9   :  { %5809 = vmatpush1.bf16.msra.mxu1 %v7848_v43  ;;  %v8445_v43 = vld [vmem:[#allocation63_spill] sm:$0xff] }
 0x7da   :  { %5811 = vmatprep.subr.bf16.mxu1 %v7851_v53  ;;  %5873 = vmatpush1.bf16.msra.mxu0 %v7969_v2  ;;  %v8446_v53 = vld [vmem:[#allocation26_spill] sm:$0xff]  ;;  %v3793_v2 = vld [vmem:[#allocation8 + $0x70] sm:$0xff] }
 0x7db   :  { %5875 = vmatprep.subr.bf16.mxu0 %v7972_v39  ;;  %v3799_v39 = vld [vmem:[#allocation8 + $0xa0] sm:$0xff] }
 0x7dd   :  { %5813 = vmatpush1.bf16.msra.mxu1 %v7856_v54  ;;  %v8447_v54 = vld [vmem:[#allocation23_spill] sm:$0xff] }
 0x7de   :  { %5815 = vmatprep.subr.bf16.mxu1 %v7859_v36  ;;  %5877 = vmatpush1.bf16.msra.mxu0 %v7975_v38  ;;  %v8448_v36 = vld [vmem:[#allocation51_spill] sm:$0xff]  ;;  %v5920_v38 = vpack.c.bf16 %v3799_v39, %v3793_v2  ;;  %v3919_v2 = vld [vmem:[#allocation8 + $0x460] sm:$0xff] }
 0x7df   :  { %5879 = vmatprep.subr.bf16.mxu0 %v7978_v40  ;;  %v3806_v40 = vld [vmem:[#allocation8 + $0xd8] sm:$0xff] }
 0x7e1   :  { %5817 = vmatpush1.bf16.msra.mxu1 %v7864_v11  ;;  %v8449_v11 = vld [vmem:[#allocation46_spill] sm:$0xff] }
 0x7e2   :  { %5819 = vmatprep.subr.bf16.mxu1 %v7867_v44  ;;  %5881 = vmatpush1.bf16.msra.mxu0 %v7981_v5  ;;  %v8450_v44 = vld [vmem:[#allocation39_spill] sm:$0xff] }
 0x7e3   :  { %5883 = vmatprep.subr.bf16.mxu0 %v7984_v23  ;;  %v3812_v5 = vld [vmem:[#allocation8 + $0x108] sm:$0xff] }
 0x7e4   :  { %v5922_v23 = vpack.c.bf16 %v3812_v5, %v3806_v40  ;;  %v3932_v40 = vld [vmem:[#allocation8 + $0x4c8] sm:$0xff] }
 0x7e5   :  { %5821 = vmatpush1.bf16.msra.mxu1 %v7872_v22  ;;  %v8451_v22 = vld [vmem:[#allocation40_spill] sm:$0xff] }
 0x7e6   :  { %5823 = vmatprep.subr.bf16.mxu1 %v7875_v9  ;;  %5885 = vmatpush1.bf16.msra.mxu0 %v7987_v25  ;;  %v8452_v9 = vld [vmem:[#allocation58_spill] sm:$0xff]  ;;  %v3805_v25 = vld [vmem:[#allocation8 + $0xd0] sm:$0xff] }
 0x7e7   :  { %5887 = vmatprep.subr.bf16.mxu0 %v7990_v13  ;;  %v3811_v13 = vld [vmem:[#allocation8 + $0x100] sm:$0xff] }
 0x7e9   :  { %5825 = vmatpush1.bf16.msra.mxu1 %v7880_v34  ;;  %v8453_v34 = vld [vmem:[#allocation52_spill] sm:$0xff] }
 0x7ea   :  { %5827 = vmatprep.subr.bf16.mxu1 %v7883_v6  ;;  %5889 = vmatpush1.bf16.msra.mxu0 %v7994_v58  ;;  %v8454_v6 = vld [vmem:[#allocation49_spill] sm:$0xff]  ;;  %v5924_v58 = vpack.c.bf16 %v3811_v13, %v3805_v25  ;;  %v3931_v25 = vld [vmem:[#allocation8 + $0x4c0] sm:$0xff] }
 0x7eb   :  { %5891 = vmatprep.subr.bf16.mxu0 %v8433_v12  ;;  %v5938_v12 = vpack.c.bf16 %v3860_v41, %v3854_v47  ;;  %v3784_v47 = vld [vmem:[#allocation8 + $0x28] sm:$0xff]  ;;  %v3790_v41 = vld [vmem:[#allocation8 + $0x58] sm:$0xff] }
 0x7ed   :  { %5829 = vmatpush1.bf16.msra.mxu1 %v8434_v33  ;;  %v3853_v33 = vld [vmem:[#allocation8 + $0x250] sm:$0xff] }
 0x7ee   :  { %5831 = vmatprep.subr.bf16.mxu1 %v8435_v42  ;;  %5893 = vmatpush1.bf16.msra.mxu0 %v8436_v35  ;;  %v3859_v42 = vld [vmem:[#allocation8 + $0x280] sm:$0xff]  ;;  %v3866_v35 = vld [vmem:[#allocation8 + $0x2b8] sm:$0xff] }
 0x7ef   :  { %5895 = vmatprep.subr.bf16.mxu0 %v8437_v59  ;;  %v3872_v59 = vld [vmem:[#allocation8 + $0x2e8] sm:$0xff] }
 0x7f1   :  { %5833 = vmatpush1.bf16.msra.mxu1 %v8438_v37  ;;  %v5940_v37 = vpack.c.bf16 %v3859_v42, %v3853_v33  ;;  %v8456_v42 = vld [vmem:[#allocation43_spill] sm:$0xff] }
 0x7f2   :  { %5835 = vmatprep.subr.bf16.mxu1 %v8439_v50  ;;  %5897 = vmatpush1.bf16.msra.mxu0 %v8440_v3  ;;  %v5942_v50 = vpack.c.bf16 %v3872_v59, %v3866_v35  ;;  %v3865_v3 = vld [vmem:[#allocation8 + $0x2b0] sm:$0xff] }
 0x7f3   :  { %5899 = vmatprep.subr.bf16.mxu0 %v8441_v62  ;;  %v3871_v62 = vld [vmem:[#allocation8 + $0x2e0] sm:$0xff] }
 0x7f5   :  { %5837 = vmatpush1.bf16.msra.mxu1 %v8442_v14  ;;  %v3878_v14 = vld [vmem:[#allocation8 + $0x318] sm:$0xff] }
 0x7f6   :  { %5839 = vmatprep.subr.bf16.mxu1 %v8443_v63  ;;  %5901 = vmatpush1.bf16.msra.mxu0 %v8444_v24  ;;  %v3884_v63 = vld [vmem:[#allocation8 + $0x348] sm:$0xff]  ;;  %v5944_v24 = vpack.c.bf16 %v3871_v62, %v3865_v3 }
 0x7f7   :  { %5903 = vmatprep.subr.bf16.mxu0 %v8445_v43  ;;  %v5946_v43 = vpack.c.bf16 %v3884_v63, %v3878_v14 }
 0x7f9   :  { %5841 = vmatpush1.bf16.msra.mxu1 %v8446_v53  ;;  %v3877_v53 = vld [vmem:[#allocation8 + $0x310] sm:$0xff] }
 0x7fa   :  { %5843 = vmatprep.subr.bf16.mxu1 %v8447_v54  ;;  %5905 = vmatpush1.bf16.msra.mxu0 %v8448_v36  ;;  %v3883_v54 = vld [vmem:[#allocation8 + $0x340] sm:$0xff]  ;;  %v3890_v36 = vld [vmem:[#allocation8 + $0x378] sm:$0xff] }
 0x7fb   :  { %5907 = vmatprep.subr.bf16.mxu0 %v8449_v11  ;;  %v3896_v11 = vld [vmem:[#allocation8 + $0x3a8] sm:$0xff] }
 0x7fd   :  { %5845 = vmatpush1.bf16.msra.mxu1 %v8450_v44  ;;  %v5948_v44 = vpack.c.bf16 %v3883_v54, %v3877_v53  ;;  %v8124_v54 = vld [vmem:[%s8191_s4] ss:$0 sm:$0xff] }
 0x7fe   :  { %5847 = vmatprep.subr.bf16.mxu1 %v8451_v22  ;;  %5909 = vmatpush1.bf16.msra.mxu0 %v8452_v9  ;;  %v5950_v22 = vpack.c.bf16 %v3896_v11, %v3890_v36  ;;  %v3889_v9 = vld [vmem:[#allocation8 + $0x370] sm:$0xff] }
 0x7ff   :  { %5911 = vmatprep.subr.bf16.mxu0 %v8453_v34  ;;  %v3895_v34 = vld [vmem:[#allocation8 + $0x3a0] sm:$0xff] }
 0x801   :  { %5849 = vmatpush1.bf16.msra.mxu1 %v8454_v6  ;;  %v5952_v6 = vpack.c.bf16 %v3895_v34, %v3889_v9 }
 0x802   :  { %5913 = vmatpush1.bf16.msra.mxu0 %v8455_v52  ;;  %5915 = vmatprep.subr.bf16.mxu1 %v5914_v28  ;;  %v3902_v52 = vld [vmem:[#allocation8 + $0x3d8] sm:$0xff]  ;;  %v3901_v28 = vld [vmem:[#allocation8 + $0x3d0] sm:$0xff] }
 0x803   :  { %v5954_v49 = vpack.c.bf16 %v3908_v1, %v3902_v52  ;;  %v5956_v46 = vpack.c.bf16 %v3907_v0, %v3901_v28 }
 0x804   :  { %3729 = vmatmul.mubr.f32.vlgmr.msra.gmra.mrb[36].mxu1 %v8040_v17 }
 0x805   :  { %5917 = vmatpush1.bf16.msra.mxu1 %v5916_v48  ;;  %v3914_v48 = vld [vmem:[#allocation8 + $0x438] sm:$0xff] }
 0x806   :  { %5919 = vmatprep.subr.bf16.mxu1 %v5918_v45  ;;  %v5958_v60 = vpack.c.bf16 %v3920_v32, %v3914_v48  ;;  %v3913_v45 = vld [vmem:[#allocation8 + $0x430] sm:$0xff] }
 0x807   :  { %v5960_v39 = vpack.c.bf16 %v3919_v2, %v3913_v45  ;;  %v8459_v45 = vld [vmem:[#allocation33_spill] sm:$0xff] }
 0x809   :  { %5921 = vmatpush1.bf16.msra.mxu1 %v5920_v38  ;;  %v3926_v38 = vld [vmem:[#allocation8 + $0x498] sm:$0xff] }
 0x80a   :  { %5923 = vmatprep.subr.bf16.mxu1 %v5922_v23  ;;  %v5962_v5 = vpack.c.bf16 %v3932_v40, %v3926_v38  ;;  %v3925_v23 = vld [vmem:[#allocation8 + $0x490] sm:$0xff]  ;;  %v8136_v40 = vld [vmem:[%s8191_s4 + $0x1] ss:$0 sm:$0xff]  ;;  %s6374_s4 = smov [#allocation11]  }
 0x80b   :  { %v5964_v13 = vpack.c.bf16 %v3931_v25, %v3925_v23  ;;  %v8460_v25 = vld [vmem:[#allocation34_spill] sm:$0xff]  ;;  %s4344_s26 = sshll.u32 %s6374_s4, 4  ;;  %s4345_s26 = int_to_ptr.vmem [resolvable:$true] %s4344_s26 }
 0x80c   :  { %s6311_s27 = scalar_lea.vmem %s4345_s26, 2048  ;;  %p6316_p5 = scmp.lt.s32.totalorder %s4345_s26, %s4345_s26 }
 0x80d   :  { %5925 = vmatpush1.bf16.msra.mxu1 %v5924_v58  ;;  %v3938_v58 = vld [vmem:[#allocation8 + $0x4f8] sm:$0xff]  ;;  %p6312_p4 = scmp.ne.s32.totalorder %s4345_s26, %s6311_s27  ;;  %p6317_p6 = scmp.lt.s32.totalorder %s6311_s27, %s6311_s27 }
 0x80e   :  { %5927 = vmatprep.subr.bf16.mxu1 %v5926_v8  ;;  %v5966_v57 = vpack.c.bf16 %v3944_v29, %v3938_v58  ;;  %v3937_v8 = vld [vmem:[#allocation8 + $0x4f0] sm:$0xff] }
 0x80f   :  { %v5968_v51 = vpack.c.bf16 %v3943_v31, %v3937_v8  ;;  %p6318_p7 = por %p6317_p6, %p6316_p5 }
 0x811   :  { %5929 = vmatpush1.bf16.msra.mxu1 %v5928_v4  ;;  %v3950_v4 = vld [vmem:[#allocation8 + $0x558] sm:$0xff]  ;;  %p6319_p8 = pnand %p6318_p7, %p6312_p4 }
 0x812   :  { %5931 = vmatprep.subr.bf16.mxu1 %v5930_v27  ;;  %v5970_v19 = vpack.c.bf16 %v3956_v15, %v3950_v4  ;;  %v3955_v27 = vld [vmem:[#allocation8 + $0x580] sm:$0xff]  ;;  %v3789_v4 = vld [vmem:[#allocation8 + $0x50] sm:$0xff] }
 0x813   :  { %v5972_v21 = vpack.c.bf16 %v3955_v27, %v3949_v18  ;;  %v3796_v18 = vld [vmem:[#allocation8 + $0x88] sm:$0xff]  ;;  %v3802_v27 = vld [vmem:[#allocation8 + $0xb8] sm:$0xff] }
 0x815   :  { %5933 = vmatpush1.bf16.msra.mxu1 %v5932_v61  ;;  %v3961_v61 = vld [vmem:[#allocation8 + $0x5b0] sm:$0xff] }
 0x816   :  { %5935 = vmatprep.subr.bf16.mxu1 %v5934_v56  ;;  %v5974_v56 = vpack.c.bf16 %v3968_v16, %v3962_v7  ;;  %v5976_v10 = vpack.c.bf16 %v3967_v55, %v3961_v61  ;;  %v5982_v16 = vpack.c.bf16 %v3802_v27, %v3796_v18  ;;  %v3795_v61 = vld [vmem:[#allocation8 + $0x80] sm:$0xff]  ;;  %v3808_v55 = vld [vmem:[#allocation8 + $0xe8] sm:$0xff]  ;;  %v3909_v27 = vld [vmem:[#allocation8 + $0x410] sm:$0xff] }
 0x817   :  { %v3903_v18 = vld [vmem:[#allocation8 + $0x3e0] sm:$0xff] }
 0x819   :  { %5937 = vmatpush1.bf16.msra.mxu1 %v5936_v30  ;;  %v5978_v30 = vpack.c.bf16 %v3790_v41, %v3784_v47  ;;  %v3807_v41 = vld [vmem:[#allocation8 + $0xe0] sm:$0xff] }
 0x81a   :  { %5939 = vmatprep.subr.bf16.mxu1 %v5938_v12 }
 0x81b   :  { %5979 = vmatprep.subr.bf16.mxu0 %v5978_v30  ;;  %v3813_v30 = vld [vmem:[#allocation8 + $0x110] sm:$0xff] }
 0x81d   :  { %5941 = vmatpush1.bf16.msra.mxu1 %v5940_v37 }
 0x81e   :  { %5943 = vmatprep.subr.bf16.mxu1 %v5942_v50  ;;  %v8457_v50 = vld [vmem:[#allocation20_spill] sm:$0xff] }
 0x821   :  { %5945 = vmatpush1.bf16.msra.mxu1 %v5944_v24 }
 0x822   :  { %5947 = vmatprep.subr.bf16.mxu1 %v5946_v43 }
 0x825   :  { %5949 = vmatpush1.bf16.msra.mxu1 %v5948_v44 }
 0x826   :  { %5951 = vmatprep.subr.bf16.mxu1 %v5950_v22  ;;  %v8458_v22 = vld [vmem:[#allocation29_spill] sm:$0xff] }
 0x829   :  { %5953 = vmatpush1.bf16.msra.mxu1 %v5952_v6 }
 0x82a   :  { %5955 = vmatprep.subr.bf16.mxu1 %v5954_v49 }
 0x82d   :  { %5957 = vmatpush1.bf16.msra.mxu1 %v5956_v46 }
 0x82e   :  { %5959 = vmatprep.subr.bf16.mxu1 %v5958_v60 }
 0x831   :  { %5961 = vmatpush1.bf16.msra.mxu1 %v5960_v39 }
 0x832   :  { %5963 = vmatprep.subr.bf16.mxu1 %v5962_v5 }
 0x835   :  { %5965 = vmatpush1.bf16.msra.mxu1 %v5964_v13 }
 0x836   :  { %5967 = vmatprep.subr.bf16.mxu1 %v5966_v57 }
 0x839   :  { %5969 = vmatpush1.bf16.msra.mxu1 %v5968_v51  ;;  %v3783_v51 = vld [vmem:[#allocation8 + $0x20] sm:$0xff] }
 0x83a   :  { %5971 = vmatprep.subr.bf16.mxu1 %v5970_v19  ;;  %v5980_v7 = vpack.c.bf16 %v3789_v4, %v3783_v51  ;;  %v3904_v51 = vld [vmem:[#allocation8 + $0x3e8] sm:$0xff]  ;;  %v3910_v4 = vld [vmem:[#allocation8 + $0x418] sm:$0xff] }
 0x83d   :  { %5973 = vmatpush1.bf16.msra.mxu1 %v5972_v21 }
 0x83e   :  { %5975 = vmatprep.subr.bf16.mxu1 %v5974_v56  ;;  %v3801_v56 = vld [vmem:[#allocation8 + $0xb0] sm:$0xff] }
 0x841   :  { %5977 = vmatpush1.bf16.msra.mxu1 %v5976_v10  ;;  %v3814_v10 = vld [vmem:[#allocation8 + $0x118] sm:$0xff] }
 0x842   :  { %v5986_v47 = vpack.c.bf16 %v3814_v10, %v3808_v55  ;;  %v3915_v55 = vld [vmem:[#allocation8 + $0x440] sm:$0xff]  ;;  %v3921_v10 = vld [vmem:[#allocation8 + $0x470] sm:$0xff] }
 0x897   :  { %v3588_v12 = vpop.f32.mrb[12].mxu0  ;;  %v3659_v33 = vpop.f32.mrb[34].mxu1 }
 0x898   :  { %v6086_v35 = vadd.f32 %v3588_v12, %v8456_v42  ;;  %v3590_v59 = vpop.f32.mrb[13].mxu0  ;;  %v3661_v37 = vpop.f32.mrb[35].mxu1  ;;  %v3751_v36 = vadd.f32 %v8124_v54, %v3659_v33  ;;  %v3820_v12 = vld [vmem:[#allocation8 + $0x148] sm:$0xff]  ;;  %v3826_v33 = vld [vmem:[#allocation8 + $0x178] sm:$0xff] }
 0x899   :  { %v3759_v3 = vadd.f32 %v3661_v37, %v8457_v50  ;;  %v6087_v14 = vadd.f32 %v3590_v59, %v6904_v20  ;;  %v5990_v59 = vpack.c.bf16 %v3826_v33, %v3820_v12  ;;  %v3819_v37 = vld [vmem:[#allocation8 + $0x140] sm:$0xff]  ;;  %v3825_v50 = vld [vmem:[#allocation8 + $0x170] sm:$0xff] }
 0x89a   :  { %v3742_v62 = vmul.f32 0.5, %v6086_v35  ;;  %v5988_v35 = vpack.c.bf16 %v3813_v30, %v3807_v41  ;;  %v6024_v41 = vpack.c.bf16 %v3921_v10, %v3915_v55  ;;  %v3927_v12 = vld [vmem:[#allocation8 + $0x4a0] sm:$0xff]  ;;  %v3933_v33 = vld [vmem:[#allocation8 + $0x4d0] sm:$0xff]  ;;  %v4255_v55 = vld [vmem:[#allocation9 + $0xd8] sm:$0xff] }
 0x89b   :  { %v3747_v63 = vmul.f32 0.5, %v6087_v14  ;;  %v3760_v46 = vmul.f32 0.5, %v3759_v3  ;;  %v3832_v3 = vld [vmem:[#allocation8 + $0x1a8] sm:$0xff]  ;;  %v5992_v14 = vpack.c.bf16 %v3825_v50, %v3819_v37  ;;  %v6028_v37 = vpack.c.bf16 %v3933_v33, %v3927_v12 }
 0x89c   :  { %6191 = vtanh.f32 %v3742_v62  ;;  %v3838_v62 = vld [vmem:[#allocation8 + $0x1d8] sm:$0xff]  ;;  %v4257_v12 = vld [vmem:[#allocation9 + $0xe8] sm:$0xff] }
 0x89d   :  { %6193 = vtanh.f32 %v3747_v63  ;;  %v5994_v63 = vpack.c.bf16 %v3838_v62, %v3832_v3  ;;  %v3939_v3 = vld [vmem:[#allocation8 + $0x500] sm:$0xff]  ;;  %v3945_v62 = vld [vmem:[#allocation8 + $0x530] sm:$0xff] }
 0x8a6   :  { %v6192_v24 = vpop.eup %6191 }
 0x8a7   :  { %v3744_v43 = vadd.f32 1.0, %v6192_v24  ;;  %v6194_v44 = vpop.eup %6193  ;;  %v3831_v24 = vld [vmem:[#allocation8 + $0x1a0] sm:$0xff] }
 0x8a8   :  { %v3749_v34 = vadd.f32 1.0, %v6194_v44 }
 0x8a9   :  { %v3745_v53 = vmul.f32 0.5, %v3744_v43  ;;  %v3837_v43 = vld [vmem:[#allocation8 + $0x1d0] sm:$0xff] }
 0x8aa   :  { %v3750_v6 = vmul.f32 0.5, %v3749_v34  ;;  %v3856_v34 = vld [vmem:[#allocation8 + $0x268] sm:$0xff] }
 0x8ab   :  { %v3752_v11 = vmul.f32 %v3751_v36, %v3745_v53  ;;  %v3844_v53 = vld [vmem:[#allocation8 + $0x208] sm:$0xff]  ;;  %v3850_v36 = vld [vmem:[#allocation8 + $0x238] sm:$0xff] }
 0x8ac   :  { %v3755_v52 = vsub.f32 1.0, %v3750_v6  ;;  %v3757_v28 = vmul.f32 %v3750_v6, %v8040_v17  ;;  %v5998_v44 = vpack.c.bf16 %v3850_v36, %v3844_v53  ;;  %v3862_v6 = vld [vmem:[#allocation8 + $0x298] sm:$0xff]  ;;  %v3951_v53 = vld [vmem:[#allocation8 + $0x560] sm:$0xff]  ;;  %v3957_v36 = vld [vmem:[#allocation8 + $0x590] sm:$0xff] }
 0x8ad   :  { %v3753_v9 = vadd.f32 %v3752_v11, %v8458_v22  ;;  %v5996_v11 = vpack.c.bf16 %v3837_v43, %v3831_v24  ;;  %v3843_v22 = vld [vmem:[#allocation8 + $0x200] sm:$0xff]  ;;  %v6032_v24 = vpack.c.bf16 %v3945_v62, %v3939_v3  ;;  %v4259_v3 = vld [vmem:[#allocation9 + $0xf8] sm:$0xff]  ;;  %v4242_v62 = vld [vmem:[#allocation9 + $0x70] sm:$0xff] }
 0x8af   :  { %6195 = vtanh.f32 %v3753_v9  ;;  %v3849_v9 = vld [vmem:[#allocation8 + $0x230] sm:$0xff] }
 0x8b0   :  { %6197 = vtanh.f32 %v3760_v46  ;;  %v3868_v46 = vld [vmem:[#allocation8 + $0x2c8] sm:$0xff] }
 0x8b9   :  { %v6196_v1 = vpop.eup %6195 }
 0x8ba   :  { %v3756_v49 = vmul.f32 %v6196_v1, %v3755_v52  ;;  %v6198_v48 = vpop.eup %6197  ;;  %v6000_v52 = vpack.c.bf16 %v3849_v9, %v3843_v22  ;;  %v6002_v1 = vpack.c.bf16 %v3862_v6, %v3856_v34  ;;  %v6036_v22 = vpack.c.bf16 %v3957_v36, %v3951_v53  ;;  %v3963_v34 = vld [vmem:[#allocation8 + $0x5c0] sm:$0xff]  ;;  %v3969_v6 = vld [vmem:[#allocation8 + $0x5f0] sm:$0xff] }
 0x8bb   :  { %v3762_v32 = vadd.f32 1.0, %v6198_v48  ;;  %v3874_v48 = vld [vmem:[#allocation8 + $0x2f8] sm:$0xff] }
 0x8bc   :  { %v8129_v0 = vadd.f32 %v3757_v28, %v3756_v49  ;;  %v3855_v49 = vld [vmem:[#allocation8 + $0x260] sm:$0xff]  ;;  %v3861_v28 = vld [vmem:[#allocation8 + $0x290] sm:$0xff] }
 0x8bd   :  { %v3763_v38 = vmul.f32 0.5, %v3762_v32  ;;  %v6004_v32 = vpack.c.bf16 %v3861_v28, %v3855_v49  ;;  %v4245_v49 = vld [vmem:[#allocation9 + $0x88] sm:$0xff]  ;;  %v4228_v28 = vld [vmem:[#allocation9] sm:$0xff] }
 0x8be   :  { %3777 = vst [vmem:[#allocation11 + $0x60] sm:$0xff] %v8129_v0 }
 0x8d7   :  { %v3730_v60 = vpop.f32.mrb[36].mxu1 }
 0x8d8   :  { %v3764_v2 = vadd.f32 %v3730_v60, %v8459_v45  ;;  %v3732_v39 = vpop.f32.mrb[37].mxu1  ;;  %v6006_v60 = vpack.c.bf16 %v3874_v48, %v3868_v46  ;;  %v3867_v45 = vld [vmem:[#allocation8 + $0x2c0] sm:$0xff]  ;;  %v4229_v48 = vld [vmem:[#allocation9 + $0x8] sm:$0xff] }
 0x8d9   :  { %v3769_v17 = vadd.f32 %v8136_v40, %v3732_v39  ;;  %v3880_v39 = vld [vmem:[#allocation8 + $0x328] sm:$0xff] }
 0x8da   :  { %v3765_v5 = vmul.f32 0.5, %v3764_v2  ;;  %v3873_v2 = vld [vmem:[#allocation8 + $0x2f0] sm:$0xff] }
 0x8db   :  { %v3770_v23 = vmul.f32 %v3769_v17, %v3763_v38  ;;  %v3886_v38 = vld [vmem:[#allocation8 + $0x358] sm:$0xff]  ;;  %v6008_v17 = vpack.c.bf16 %v3873_v2, %v3867_v45  ;;  %v6044_v45 = vpack.c.bf16 %v4229_v48, %v4228_v28 }
 0x8dc   :  { %6199 = vtanh.f32 %v3765_v5  ;;  %v6010_v5 = vpack.c.bf16 %v3886_v38, %v3880_v39  ;;  %v4230_v39 = vld [vmem:[#allocation9 + $0x10] sm:$0xff]  ;;  %v4231_v38 = vld [vmem:[#allocation9 + $0x18] sm:$0xff] }
 0x8dd   :  { %v3771_v13 = vadd.f32 %v3770_v23, %v8460_v25  ;;  %v3879_v23 = vld [vmem:[#allocation8 + $0x320] sm:$0xff]  ;;  %v3885_v25 = vld [vmem:[#allocation8 + $0x350] sm:$0xff] }
 0x8df   :  { %6201 = vtanh.f32 %v3771_v13  ;;  %v3892_v13 = vld [vmem:[#allocation8 + $0x388] sm:$0xff] }
 0x8e6   :  { %v6200_v58 = vpop.eup %6199 }
 0x8e7   :  { %v3767_v29 = vadd.f32 1.0, %v6200_v58  ;;  %v3898_v58 = vld [vmem:[#allocation8 + $0x3b8] sm:$0xff] }
 0x8e9   :  { %v3768_v57 = vmul.f32 0.5, %v3767_v29  ;;  %v6202_v31 = vpop.eup %6201  ;;  %v6012_v29 = vpack.c.bf16 %v3885_v25, %v3879_v23  ;;  %v4249_v23 = vld [vmem:[#allocation9 + $0xa8] sm:$0xff] }
 0x8eb   :  { %v3773_v8 = vsub.f32 1.0, %v3768_v57  ;;  %v3775_v15 = vmul.f32 %v3768_v57, %v8047_v26  ;;  %v5984_v26 = vpack.c.bf16 %v3801_v56, %v3795_v61  ;;  %v6014_v57 = vpack.c.bf16 %v3898_v58, %v3892_v13  ;;  %v4232_v13 = vld [vmem:[#allocation9 + $0x20] sm:$0xff]  ;;  %v4233_v58 = vld [vmem:[#allocation9 + $0x28] sm:$0xff] }
 0x8ec   :  { %v6020_v61 = vpack.c.bf16 %v3909_v27, %v3903_v18  ;;  %v4253_v18 = vld [vmem:[#allocation9 + $0xc8] sm:$0xff] }
 0x8ed   :  { %v3774_v19 = vmul.f32 %v6202_v31, %v3773_v8  ;;  %v3891_v8 = vld [vmem:[#allocation8 + $0x380] sm:$0xff]  ;;  %v3897_v31 = vld [vmem:[#allocation8 + $0x3b0] sm:$0xff] }
 0x8ef   :  { %v8141_v21 = vadd.f32 %v3775_v15, %v3774_v19  ;;  %v6016_v15 = vpack.c.bf16 %v3897_v31, %v3891_v8  ;;  %v6018_v19 = vpack.c.bf16 %v3910_v4, %v3904_v51  ;;  %v4251_v8 = vld [vmem:[#allocation9 + $0xb8] sm:$0xff]  ;;  %v4234_v51 = vld [vmem:[#allocation9 + $0x30] sm:$0xff] }
 0x8f0   :  { %v4235_v4 = vld [vmem:[#allocation9 + $0x38] sm:$0xff] }
 0x8f1   :  { %3778 = vst [vmem:[#allocation11 + $0x18] sm:$0xff] %v8141_v21  ;;  %4035 = vmatprep.mubr.f32.mxu0 %v8141_v21  ;;  %4106 = vmatprep.mubr.f32.mxu1 %v8141_v21 }
 0x8f2   :  { %4036 = vmatmul.mubr.f32.vlgmr.msra.gmra.mrb[14].mxu0 %v8129_v0  ;;  %4107 = vmatmul.mubr.f32.vlgmr.msra.gmra.mrb[38].mxu1 %v8129_v0 }
 0x8f3   :  { %5981 = vmatpush1.bf16.msra.mxu0 %v5980_v7  ;;  %4177 = vmatprep.mubr.f32.mxu0 %v8141_v21  ;;  %v3916_v7 = vld [vmem:[#allocation8 + $0x448] sm:$0xff] }
 0x8f4   :  { %5983 = vmatprep.subr.bf16.mxu0 %v5982_v16  ;;  %v3922_v16 = vld [vmem:[#allocation8 + $0x478] sm:$0xff] }
 0x8f5   :  { %v6022_v56 = vpack.c.bf16 %v3922_v16, %v3916_v7  ;;  %v4236_v7 = vld [vmem:[#allocation9 + $0x40] sm:$0xff]  ;;  %v4237_v16 = vld [vmem:[#allocation9 + $0x48] sm:$0xff] }
 0x8f7   :  { %5985 = vmatpush1.bf16.msra.mxu0 %v5984_v26  ;;  %v3928_v26 = vld [vmem:[#allocation8 + $0x4a8] sm:$0xff] }
 0x8f8   :  { %5987 = vmatprep.subr.bf16.mxu0 %v5986_v47  ;;  %v3934_v47 = vld [vmem:[#allocation8 + $0x4d8] sm:$0xff] }
 0x8f9   :  { %v6026_v30 = vpack.c.bf16 %v3934_v47, %v3928_v26  ;;  %v4238_v26 = vld [vmem:[#allocation9 + $0x50] sm:$0xff]  ;;  %v4239_v47 = vld [vmem:[#allocation9 + $0x58] sm:$0xff] }
 0x8fb   :  { %5989 = vmatpush1.bf16.msra.mxu0 %v5988_v35  ;;  %v3940_v35 = vld [vmem:[#allocation8 + $0x508] sm:$0xff] }
 0x8fc   :  { %5991 = vmatprep.subr.bf16.mxu0 %v5990_v59  ;;  %v3946_v59 = vld [vmem:[#allocation8 + $0x538] sm:$0xff] }
 0x8fd   :  { %v6030_v50 = vpack.c.bf16 %v3946_v59, %v3940_v35  ;;  %v4240_v35 = vld [vmem:[#allocation9 + $0x60] sm:$0xff]  ;;  %v4241_v59 = vld [vmem:[#allocation9 + $0x68] sm:$0xff] }
 0x8ff   :  { %5993 = vmatpush1.bf16.msra.mxu0 %v5992_v14  ;;  %v3952_v14 = vld [vmem:[#allocation8 + $0x568] sm:$0xff] }
 0x900   :  { %5995 = vmatprep.subr.bf16.mxu0 %v5994_v63  ;;  %v3958_v63 = vld [vmem:[#allocation8 + $0x598] sm:$0xff] }
 0x901   :  { %v6034_v43 = vpack.c.bf16 %v3958_v63, %v3952_v14  ;;  %v4243_v63 = vld [vmem:[#allocation9 + $0x78] sm:$0xff] }
 0x903   :  { %5997 = vmatpush1.bf16.msra.mxu0 %v5996_v11  ;;  %v3964_v11 = vld [vmem:[#allocation8 + $0x5c8] sm:$0xff] }
 0x904   :  { %5999 = vmatprep.subr.bf16.mxu0 %v5998_v44  ;;  %v3970_v44 = vld [vmem:[#allocation8 + $0x5f8] sm:$0xff] }
 0x905   :  { %v6038_v9 = vpack.c.bf16 %v3970_v44, %v3964_v11 }
 0x907   :  { %6001 = vmatpush1.bf16.msra.mxu0 %v6000_v52  ;;  %v6040_v52 = vpack.c.bf16 %v3969_v6, %v3963_v34 }
 0x908   :  { %6003 = vmatprep.subr.bf16.mxu0 %v6002_v1  ;;  %v4244_v1 = vld [vmem:[#allocation9 + $0x80] sm:$0xff] }
 0x909   :  { %v6042_v46 = vpack.c.bf16 %v4245_v49, %v4244_v1 }
 0x90b   :  { %6005 = vmatpush1.bf16.msra.mxu0 %v6004_v32  ;;  %v4246_v32 = vld [vmem:[#allocation9 + $0x90] sm:$0xff]  ;;  %6043 = vmatprep.subr.bf16.mxu1 %v6042_v46 }
 0x90c   :  { %6007 = vmatprep.subr.bf16.mxu0 %v6006_v60  ;;  %v4247_v60 = vld [vmem:[#allocation9 + $0x98] sm:$0xff]  ;;  %6045 = vmatpush3.bf16.msra.mxu1 %v6044_v45 }
 0x90d   :  { %v6046_v2 = vpack.c.bf16 %v4247_v60, %v4246_v32  ;;  %v8462_v60 = vld [vmem:[#allocation30_spill] sm:$0xff] }
 0x90f   :  { %6009 = vmatpush1.bf16.msra.mxu0 %v6008_v17  ;;  %6047 = vmatprep.subr.bf16.mxu1 %v6046_v2  ;;  %v6048_v17 = vpack.c.bf16 %v4231_v38, %v4230_v39 }
 0x910   :  { %6011 = vmatprep.subr.bf16.mxu0 %v6010_v5  ;;  %v4248_v5 = vld [vmem:[#allocation9 + $0xa0] sm:$0xff] }
 0x911   :  { %6049 = vmatpush3.bf16.msra.mxu1 %v6048_v17  ;;  %v6050_v25 = vpack.c.bf16 %v4249_v23, %v4248_v5 }
 0x913   :  { %6013 = vmatpush1.bf16.msra.mxu0 %v6012_v29  ;;  %v6052_v29 = vpack.c.bf16 %v4233_v58, %v4232_v13  ;;  %6051 = vmatprep.subr.bf16.mxu1 %v6050_v25 }
 0x914   :  { %6015 = vmatprep.subr.bf16.mxu0 %v6014_v57  ;;  %v4250_v57 = vld [vmem:[#allocation9 + $0xb0] sm:$0xff] }
 0x915   :  { %6053 = vmatpush3.bf16.msra.mxu1 %v6052_v29  ;;  %v6054_v31 = vpack.c.bf16 %v4251_v8, %v4250_v57 }
 0x917   :  { %6017 = vmatpush1.bf16.msra.mxu0 %v6016_v15  ;;  %v6056_v15 = vpack.c.bf16 %v4235_v4, %v4234_v51  ;;  %6055 = vmatprep.subr.bf16.mxu1 %v6054_v31 }
 0x918   :  { %6019 = vmatprep.subr.bf16.mxu0 %v6018_v19  ;;  %v4252_v19 = vld [vmem:[#allocation9 + $0xc0] sm:$0xff] }
 0x919   :  { %6057 = vmatpush3.bf16.msra.mxu1 %v6056_v15  ;;  %v6058_v27 = vpack.c.bf16 %v4253_v18, %v4252_v19  ;;  %v8464_v15 = vld [vmem:[#allocation32_spill] sm:$0xff] }
 0x91b   :  { %6021 = vmatpush1.bf16.msra.mxu0 %v6020_v61  ;;  %v6060_v61 = vpack.c.bf16 %v4237_v16, %v4236_v7  ;;  %6059 = vmatprep.subr.bf16.mxu1 %v6058_v27 }
 0x91c   :  { %6023 = vmatprep.subr.bf16.mxu0 %v6022_v56  ;;  %v4254_v56 = vld [vmem:[#allocation9 + $0xd0] sm:$0xff] }
 0x91d   :  { %6061 = vmatpush3.bf16.msra.mxu1 %v6060_v61  ;;  %v6062_v10 = vpack.c.bf16 %v4255_v55, %v4254_v56 }
 0x91f   :  { %6025 = vmatpush1.bf16.msra.mxu0 %v6024_v41  ;;  %v6064_v41 = vpack.c.bf16 %v4239_v47, %v4238_v26  ;;  %6063 = vmatprep.subr.bf16.mxu1 %v6062_v10 }
 0x920   :  { %6027 = vmatprep.subr.bf16.mxu0 %v6026_v30  ;;  %v4256_v30 = vld [vmem:[#allocation9 + $0xe0] sm:$0xff] }
 0x921   :  { %6065 = vmatpush3.bf16.msra.mxu1 %v6064_v41  ;;  %v6066_v33 = vpack.c.bf16 %v4257_v12, %v4256_v30 }
 0x923   :  { %6029 = vmatpush1.bf16.msra.mxu0 %v6028_v37  ;;  %v6068_v37 = vpack.c.bf16 %v4241_v59, %v4240_v35  ;;  %6067 = vmatprep.subr.bf16.mxu1 %v6066_v33 }
 0x924   :  { %6031 = vmatprep.subr.bf16.mxu0 %v6030_v50  ;;  %v4258_v50 = vld [vmem:[#allocation9 + $0xf0] sm:$0xff] }
 0x925   :  { %6069 = vmatpush3.bf16.msra.mxu1 %v6068_v37  ;;  %v6070_v14 = vpack.c.bf16 %v4259_v3, %v4258_v50 }
 0x927   :  { %6033 = vmatpush1.bf16.msra.mxu0 %v6032_v24  ;;  %v6072_v24 = vpack.c.bf16 %v4243_v63, %v4242_v62  ;;  %6071 = vmatprep.subr.bf16.mxu1 %v6070_v14 }
 0x928   :  { %6035 = vmatprep.subr.bf16.mxu0 %v6034_v43 }
 0x929   :  { %6073 = vmatpush3.bf16.msra.mxu1 %v6072_v24 }
 0x92b   :  { %6037 = vmatpush1.bf16.msra.mxu0 %v6036_v22  ;;  %v8461_v22 = vld [vmem:[#allocation19_spill] sm:$0xff] }
 0x92c   :  { %6039 = vmatprep.subr.bf16.mxu0 %v6038_v9 }
 0x92f   :  { %6041 = vmatpush1.bf16.msra.mxu0 %v6040_v52 }
 0x932   :  { %4178 = vmatmul.mubr.f32.vlgmr.msra.gmra.mrb[38].mxu0 %v8129_v0 }
 0x9c5   :  { %v4037_v43 = vpop.f32.mrb[14].mxu0  ;;  %v4108_v53 = vpop.f32.mrb[38].mxu1 }
 0x9c6   :  { %v6088_v36 = vadd.f32 %v4037_v43, %v8456_v42  ;;  %v4039_v11 = vpop.f32.mrb[15].mxu0  ;;  %v4110_v44 = vpop.f32.mrb[39].mxu1  ;;  %v4200_v46 = vadd.f32 %v8124_v54, %v4108_v53  ;;  %v8463_v54 = vld [vmem:[#allocation31_spill] sm:$0xff] }
 0x9c7   :  { %v4208_v9 = vadd.f32 %v4110_v44, %v8461_v22  ;;  %v6089_v6 = vadd.f32 %v4039_v11, %v6904_v20 }
 0x9c8   :  { %v4191_v34 = vmul.f32 0.5, %v6088_v36 }
 0x9c9   :  { %v4196_v52 = vmul.f32 0.5, %v6089_v6  ;;  %v4209_v23 = vmul.f32 0.5, %v4208_v9 }
 0x9ca   :  { %6203 = vtanh.f32 %v4191_v34 }
 0x9cb   :  { %6205 = vtanh.f32 %v4196_v52 }
 0x9d4   :  { %v6204_v1 = vpop.eup %6203 }
 0x9d5   :  { %v4193_v49 = vadd.f32 1.0, %v6204_v1  ;;  %v6206_v32 = vpop.eup %6205 }
 0x9d6   :  { %v4198_v42 = vadd.f32 1.0, %v6206_v32 }
 0x9d7   :  { %v4194_v28 = vmul.f32 0.5, %v4193_v49 }
 0x9d8   :  { %v4199_v2 = vmul.f32 0.5, %v4198_v42 }
 0x9d9   :  { %v4201_v48 = vmul.f32 %v4200_v46, %v4194_v28 }
 0x9da   :  { %v4204_v39 = vsub.f32 1.0, %v4199_v2  ;;  %v4206_v20 = vmul.f32 %v4199_v2, %v8129_v0 }
 0x9db   :  { %v4202_v45 = vadd.f32 %v4201_v48, %v8462_v60 }
 0x9dd   :  { %6207 = vtanh.f32 %v4202_v45 }
 0x9de   :  { %6209 = vtanh.f32 %v4209_v23 }
 0x9e7   :  { %v6208_v38 = vpop.eup %6207 }
 0x9e8   :  { %v4205_v17 = vmul.f32 %v6208_v38, %v4204_v39  ;;  %v6210_v25 = vpop.eup %6209 }
 0x9e9   :  { %v4211_v13 = vadd.f32 1.0, %v6210_v25 }
 0x9ea   :  { %v4207_v5 = vadd.f32 %v4206_v20, %v4205_v17 }
 0x9eb   :  { %v4212_v8 = vmul.f32 0.5, %v4211_v13 }
 0x9ec   :  { %4226 = vst [vmem:[#allocation11 + $0x70] sm:$0xff] %v4207_v5 }
 0xa05   :  { %v4179_v58 = vpop.f32.mrb[38].mxu0 }
 0xa06   :  { %v4213_v29 = vadd.f32 %v4179_v58, %v8463_v54  ;;  %v4181_v57 = vpop.f32.mrb[39].mxu0 }
 0xa07   :  { %v4218_v31 = vadd.f32 %v8136_v40, %v4181_v57 }
 0xa08   :  { %v4214_v51 = vmul.f32 0.5, %v4213_v29 }
 0xa09   :  { %v4219_v4 = vmul.f32 %v4218_v31, %v4212_v8 }
 0xa0a   :  { %6211 = vtanh.f32 %v4214_v51 }
 0xa0b   :  { %v4220_v19 = vadd.f32 %v4219_v4, %v8464_v15 }
 0xa0d   :  { %6213 = vtanh.f32 %v4220_v19 }
 0xa14   :  { %v6212_v0 = vpop.eup %6211 }
 0xa15   :  { %v4216_v18 = vadd.f32 1.0, %v6212_v0 }
 0xa17   :  { %v4217_v27 = vmul.f32 0.5, %v4216_v18  ;;  %v6214_v16 = vpop.eup %6213 }
 0xa19   :  { %v4222_v7 = vsub.f32 1.0, %v4217_v27  ;;  %v4224_v56 = vmul.f32 %v4217_v27, %v8141_v21 }
 0xa1b   :  { %v4223_v61 = vmul.f32 %v6214_v16, %v4222_v7 }
 0xa1d   :  { %v4225_v55 = vadd.f32 %v4224_v56, %v4223_v61 }
 0xa1f   :  { %4227 = vst [vmem:[#allocation11 + $0x8] sm:$0xff] %v4225_v55  ;;  %4331 = vmatprep.mubr.f32.mxu1 %v4225_v55 }
 0xa20   :  { %4332 = vmatmul.mubr.f32.vlgmr.msra.gmra.mrb[40].mxu1 %v4207_v5 }
 0xa21   :  { %6322 = shalt.err (!%p6319_p8)
}
 0xa22   :  { %s6323_s9 = scalar_lea.hbm %s8194_s7, 2048 }
 0xa23   :  { %p6324_p9 = scmp.ne.s32.totalorder %s8194_s7, %s6323_s9  ;;  %p6327_p10 = scmp.lt.u32.totalorder %s6323_s9, %s8194_s7 }
 0xa25   :  { %p6329_p11 = pnand %p6327_p10, %p6324_p9 }
 0xa27   :  { %6332 = shalt.err (!%p6329_p11)
}
 0xa28   :  { %s6375_s5 = smov 256   ;;  %s6376_s16 = smov 16   ;;  %v4374_v21 = vld [vmem:[%s8193_s6] ss:$0 sm:$0xff] }
 0xa29   :  { %4350 = dma.vmem_to_hbm [thread:$0]  %s4345_s26, 2048, %s8194_s7, [#allocation5], %s6375_s5, %s6375_s5, %s6376_s16  }
 0xa2a   :  { %s6377_s13 = smov [#allocation12]  }
 0xa2b   :  { %s4357_s14 = sshll.u32 %s6377_s13, 4  ;;  %s4358_s14 = int_to_ptr.vmem [resolvable:$true] %s4357_s14 }
 0xa2c   :  { %s6333_s17 = scalar_lea.vmem %s4358_s14, 128  ;;  %p6338_p13 = scmp.lt.s32.totalorder %s4358_s14, %s4358_s14 }
 0xa2d   :  { %p6334_p12 = scmp.ne.s32.totalorder %s4358_s14, %s6333_s17  ;;  %p6339_p0 = scmp.lt.s32.totalorder %s6333_s17, %s6333_s17 }
 0xa2f   :  { %p6340_p1 = por %p6339_p0, %p6338_p13 }
 0xa31   :  { %p6341_p2 = pnand %p6340_p1, %p6334_p12 }
 0xaf3   :  { %v4407_v40 = vpop.f32.mrb[40].mxu1 }
 0xaf4   :  { %v4408_v10 = vpop.f32.mrb[41].mxu1 }
 0xaf5   :  { %v4409_v26 = vadd.f32 %v4408_v10, %v4407_v40 }
 0xaf7   :  { %v4334_v47 = vadd.f32 %v4409_v26, %v4374_v21 }
 0xaf9   :  { %6215 = vtanh.f32 %v4334_v47 }
 0xb03   :  { %v6216_v41 = vpop.eup %6215 }
 0xb04   :  { %4338 = vst [vmem:[#allocation12] sm:$0xff] %v6216_v41 }
 0xb05   :  { %6344 = shalt.err (!%p6341_p2)
}
 0xb06   :  { %s6345_s6 = scalar_lea.hbm %s8195_s8, 128 }
 0xb07   :  { %p6346_p3 = scmp.ne.s32.totalorder %s8195_s8, %s6345_s6  ;;  %p6349_p4 = scmp.lt.u32.totalorder %s6345_s6, %s8195_s8 }
 0xb09   :  { %p6351_p5 = pnand %p6349_p4, %p6346_p3 }
 0xb0b   :  { %6354 = shalt.err (!%p6351_p5)
}
 0xb0c   :  { %4360 = dma.vmem_to_hbm [thread:$0]  %s4358_s14, 128, %s8195_s8, [#allocation13]  }
 0xb0d   :  { %6361 = dma.done.wait [#allocation5], 2048  }
 0xb0e   :  { %6362 = vsyncadd [#allocation5], 4294965248 }
 0xb0f   :  { %6363 = dma.done.wait [#allocation13], 128  }
 0xb10   :  { %6364 = vsyncadd [#allocation13], 4294967168 }
 0xb11   :  { %4367 = vsyncpa [#allocation4], 1 }
 0xb12   :  { %4368 = vsyncpa [#allocation7], 1 }
 0xb13   :  { %4369 = vsyncpa [#allocation10], 1 }
 0xb14   :  { %4370 = vsyncpa [#allocation5], 1 }
 0xb15   :  { %4371 = vsyncpa [#allocation13], 1 }

</bundles_post_ra>
